<compile_context>
chip_gen: v5e
topology: v5e:2x2
jax: 0.10.0
libtpu: 0.0.40
codegen_flags: <defaults>
</compile_context>

<pallas_src>
import math
from functools import partial

import jax
import jax.numpy as jnp
from jax.experimental import pallas as pl
from jax.experimental.pallas import tpu as pltpu


# ----------------------------------------------------------------------------
# Small helpers
# ----------------------------------------------------------------------------
def _vmem_limit_bytes():
    """Generation-aware VMEM budget: 75% of physical capacity, capped."""
    try:
        cap = pltpu.get_tpu_info().vmem_capacity_bytes
    except Exception:
        cap = 64 * 1024 * 1024          # conservative (v7x-sized) fallback
    return int(min(cap * 3 // 4, 100 * 1024 * 1024))


def _m_tiling(m, tm_max=512):
    """Pick an M tile so the 'parallel' M grid axis has >= 2 steps whenever
    feasible (keeps both v7x TensorCores busy).  Tiles are multiples of 8;
    the ragged last block relies on Pallas masking of the garbage rows."""
    if m > tm_max:
        return tm_max, pl.cdiv(m, tm_max)
    if m >= 16:
        tm = (((m + 1) // 2) + 7) // 8 * 8
        return tm, pl.cdiv(m, tm)
    return m, 1                         # tiny M: single full-extent block


# ----------------------------------------------------------------------------
# Pallas kernel 1: fused matmul + bias + ReLU (used by the conv layers)
# ----------------------------------------------------------------------------
def _mm_bias_kernel(x_ref, w_ref, b_ref, o_ref, *, relu):
    acc = jnp.dot(x_ref[...], w_ref[...], preferred_element_type=jnp.float32)
    acc = acc + b_ref[...]                          # (TM,N) + (1,N), f32
    if relu:
        acc = jnp.maximum(acc, 0.0)
    o_ref[...] = acc.astype(o_ref.dtype)


def matmul_bias_relu(x, w, b, *, out_dtype=jnp.bfloat16, tm_max=512,
                     fuse_x_producer=False):
    """relu(x @ w + b) on the MXU.  x:(M,K) bf16, w:(K,N) bf16, b:(N,) f32."""
    M, K = x.shape
    K2, N = w.shape
    assert K == K2
    b2 = b.reshape(1, N).astype(jnp.float32)
    tm, grid_m = _m_tiling(M, tm_max)

    return pl.pallas_call(
        partial(_mm_bias_kernel, relu=True),
        out_shape=jax.ShapeDtypeStruct((M, N), out_dtype),
        grid=(grid_m,),
        in_specs=[
            pl.BlockSpec((tm, K), lambda i: (i, 0)),
            pl.BlockSpec((K, N), lambda i: (0, 0)),
            pl.BlockSpec((1, N), lambda i: (0, 0)),
        ],
        out_specs=pl.BlockSpec((tm, N), lambda i: (i, 0)),
        compiler_params=pltpu.CompilerParams(
            dimension_semantics=("parallel",),
            vmem_limit_bytes=_vmem_limit_bytes(),
            # Let XLA fold the im2col producer into the kernel's input
            # pipeline when it can (it never hurts correctness).
            allow_input_fusion=[bool(fuse_x_producer), False, False],
        ),
    )(x, w, b2)


# ----------------------------------------------------------------------------
# Pallas kernel 2: fused FC stack
#   hidden = relu(flat @ w1 + b1)        (w1 streamed in 256-col chunks)
#   heads  = hidden @ w2 + b2            (block-diag q2|i2, padded to 2x128)
#   outputs: q2(q), log_softmax(i), i    written directly from the epilogue
# ----------------------------------------------------------------------------
def _fc_head_kernel(flat_ref, w1_ref, b1_ref, w2_ref, b2_ref,
                    q_ref, logp_ref, i_ref, heads_acc, *, num_actions):
    n = pl.program_id(1)

    @pl.when(n == 0)
    def _():
        heads_acc[...] = jnp.zeros_like(heads_acc)

    # hidden chunk (TM, TN): relu(flat @ w1[:, chunk] + b1[chunk]), f32
    h = jnp.dot(flat_ref[...], w1_ref[...], preferred_element_type=jnp.float32)
    h = jnp.maximum(h + b1_ref[...], 0.0)
    # partial heads: hidden_chunk @ w2[chunk_rows, :]
    heads_acc[...] += jnp.dot(h.astype(jnp.bfloat16), w2_ref[...],
                              preferred_element_type=jnp.float32)

    @pl.when(n == pl.num_programs(1) - 1)
    def _():
        heads = heads_acc[...] + b2_ref[...]            # (TM, 256) f32
        q = heads[:, :128]                              # q2 head (padded lanes = 0)
        iv = heads[:, 128:]                             # i2 head (padded lanes = 0)
        # log_softmax over the first `num_actions` lanes of the i head.
        col = jax.lax.broadcasted_iota(jnp.int32, iv.shape, 1)
        im = jnp.where(col < num_actions, iv, -jnp.inf)
        m = jnp.max(im, axis=-1, keepdims=True)
        lse = m + jnp.log(jnp.sum(jnp.exp(im - m), axis=-1, keepdims=True))
        q_ref[...] = q[:, :num_actions]
        i_ref[...] = iv[:, :num_actions]
        logp_ref[...] = (iv - lse)[:, :num_actions]


def fc_heads_logsoftmax(flat, w1, b1, w2, b2, *, num_actions, tn=256,
                        tm_max=256):
    """flat:(M,3136) bf16 -> (q2(q), log_softmax(i), i), each (M, A) f32."""
    M, K = flat.shape
    Kw, H = w1.shape
    assert K == Kw and H % tn == 0
    tm, grid_m = _m_tiling(M, tm_max)
    grid_n = H // tn

    out_sds = jax.ShapeDtypeStruct((M, num_actions), jnp.float32)
    out_spec = pl.BlockSpec((tm, num_actions), lambda m, n: (m, 0))

    return pl.pallas_call(
        partial(_fc_head_kernel, num_actions=num_actions),
        out_shape=(out_sds, out_sds, out_sds),
        grid=(grid_m, grid_n),
        in_specs=[
            pl.BlockSpec((tm, K), lambda m, n: (m, 0)),       # flat (held over n)
            pl.BlockSpec((K, tn), lambda m, n: (0, n)),       # w1 column chunk
            pl.BlockSpec((1, tn), lambda m, n: (0, n)),       # b1 chunk
            pl.BlockSpec((tn, 256), lambda m, n: (n, 0)),     # w2 row chunk
            pl.BlockSpec((1, 256), lambda m, n: (0, 0)),      # b2
        ],
        out_specs=(out_spec, out_spec, out_spec),
        scratch_shapes=[pltpu.VMEM((tm, 256), jnp.float32)],  # heads accumulator
        compiler_params=pltpu.CompilerParams(
            dimension_semantics=("parallel", "arbitrary"),
            vmem_limit_bytes=_vmem_limit_bytes(),
        ),
    )(flat, w1, b1, w2, b2)


# ----------------------------------------------------------------------------
# Conv2d = NHWC im2col (JAX glue) + Pallas matmul
# ----------------------------------------------------------------------------
def _im2col_nhwc(x, kh, kw, stride):
    """x: (N,H,W,C) -> patches (N*OH*OW, KH*KW*C), tap order (kh, kw, c)."""
    N, H, W, C = x.shape
    oh = (H - kh) // stride + 1
    ow = (W - kw) // stride + 1
    cols = []
    for i in range(kh):
        for j in range(kw):
            cols.append(
                x[:, i: i + stride * (oh - 1) + 1: stride,
                      j: j + stride * (ow - 1) + 1: stride, :])
    p = jnp.stack(cols, axis=3)                 # (N, OH, OW, KH*KW, C)
    return p.reshape(N * oh * ow, kh * kw * C), oh, ow


def conv2d_relu_nhwc(x, wmat, b, *, kh, kw, stride):
    """PyTorch-semantics Conv2d (no padding) + ReLU, NHWC in / NHWC out (bf16).
    wmat: (KH*KW*Cin, Cout) bf16, pre-reordered from (Cout,Cin,KH,KW)."""
    N = x.shape[0]
    cout = wmat.shape[1]
    patches, oh, ow = _im2col_nhwc(x, kh, kw, stride)
    y = matmul_bias_relu(patches, wmat, b, out_dtype=jnp.bfloat16,
                         fuse_x_producer=True)          # (N*OH*OW, Cout)
    return y.reshape(N, oh, ow, cout)


# ----------------------------------------------------------------------------
# Model: parameters + forward
# ----------------------------------------------------------------------------
def init_params(key, frames, num_actions):
    """PyTorch-default-like U(-1/sqrt(fan_in), +) init, PyTorch layouts."""
    def u(k, shape, fan_in):
        bound = 1.0 / math.sqrt(fan_in)
        return jax.random.uniform(k, shape, jnp.float32, -bound, bound)

    ks = jax.random.split(key, 14)
    p = {}
    p["c1_w"] = u(ks[0], (32, frames, 8, 8), frames * 8 * 8)
    p["c1_b"] = u(ks[1], (32,), frames * 8 * 8)
    p["c2_w"] = u(ks[2], (64, 32, 4, 4), 32 * 4 * 4)
    p["c2_b"] = u(ks[3], (64,), 32 * 4 * 4)
    p["c3_w"] = u(ks[4], (64, 64, 3, 3), 64 * 3 * 3)
    p["c3_b"] = u(ks[5], (64,), 64 * 3 * 3)
    p["q1_w"] = u(ks[6], (512, 3136), 3136)
    p["q1_b"] = u(ks[7], (512,), 3136)
    p["q2_w"] = u(ks[8], (num_actions, 512), 512)
    p["q2_b"] = u(ks[9], (num_actions,), 512)
    p["i1_w"] = u(ks[10], (512, 3136), 3136)
    p["i1_b"] = u(ks[11], (512,), 3136)
    p["i2_w"] = u(ks[12], (num_actions, 512), 512)
    p["i2_b"] = u(ks[13], (num_actions,), 512)
    return p


def prepare_params(p, num_actions):
    """One-time layout prep: NHWC conv weights, NCHW-flatten permutation folded
    into q1/i1 columns, fused q1+i1 weight, padded block-diagonal q2+i2 head
    (q in lanes [0,128), i in lanes [128,256)), bf16 MXU operands."""
    bf = jnp.bfloat16
    A = num_actions
    assert 1 <= A <= 128

    def conv_w(w):  # (Cout, Cin, KH, KW) -> (KH*KW*Cin, Cout)
        cout, cin, kh, kw = w.shape
        return w.transpose(2, 3, 1, 0).reshape(kh * kw * cin, cout).astype(bf)

    def fc_w_nhwc(w):
        # (512, 3136) columns in (C,H,W) order -> rows in (H,W,C) order so it
        # consumes the NHWC flatten directly.
        return w.reshape(512, 64, 7, 7).transpose(2, 3, 1, 0).reshape(3136, 512)

    w1 = jnp.concatenate([fc_w_nhwc(p["q1_w"]), fc_w_nhwc(p["i1_w"])],
                         axis=1).astype(bf)                       # (3136, 1024)
    b1 = jnp.concatenate([p["q1_b"], p["i1_b"]]).reshape(1, 1024).astype(jnp.float32)

    w2 = jnp.zeros((1024, 256), jnp.float32)
    w2 = w2.at[:512, :A].set(p["q2_w"].T)             # q head -> lanes [0, A)
    w2 = w2.at[512:, 128:128 + A].set(p["i2_w"].T)    # i head -> lanes [128, 128+A)
    b2 = jnp.zeros((1, 256), jnp.float32)
    b2 = b2.at[0, :A].set(p["q2_b"])
    b2 = b2.at[0, 128:128 + A].set(p["i2_b"])

    return {
        "c1_w": conv_w(p["c1_w"]), "c1_b": p["c1_b"],
        "c2_w": conv_w(p["c2_w"]), "c2_b": p["c2_b"],
        "c3_w": conv_w(p["c3_w"]), "c3_b": p["c3_b"],
        "w1": w1, "b1": b1,
        "w2": w2.astype(bf), "b2": b2,
    }


def conv_forward(params, state, *, num_actions):
    """Replicates Conv.forward(state).  state: (N, frames, 84, 84) NCHW f32.
    Returns (q2(q), log_softmax(i, dim=1), i)."""
    p = params
    x = jnp.transpose(state, (0, 2, 3, 1)).astype(jnp.bfloat16)   # NCHW->NHWC once
    c = conv2d_relu_nhwc(x, p["c1_w"], p["c1_b"], kh=8, kw=8, stride=4)  # (N,20,20,32)
    c = conv2d_relu_nhwc(c, p["c2_w"], p["c2_b"], kh=4, kw=4, stride=2)  # (N, 9, 9,64)
    c = conv2d_relu_nhwc(c, p["c3_w"], p["c3_b"], kh=3, kw=3, stride=1)  # (N, 7, 7,64)
    flat = c.reshape(-1, 3136)          # NHWC flatten; head weights pre-permuted
    q_out, logp, i_out = fc_heads_logsoftmax(
        flat, p["w1"], p["b1"], p["w2"], p["b2"], num_actions=num_actions)
    return q_out, logp, i_out


# ----------------------------------------------------------------------------
# Pure-JAX f32 reference (PyTorch semantics) for a tolerance check
# ----------------------------------------------------------------------------
def reference_forward(p, state, num_actions):
    hp = jax.lax.Precision.HIGHEST

    def conv(x, w, b, s):
        y = jax.lax.conv_general_dilated(
            x, w, window_strides=(s, s), padding="VALID",
            dimension_numbers=("NCHW", "OIHW", "NCHW"), precision=hp)
        return jax.nn.relu(y + b[None, :, None, None])

    c = conv(state, p["c1_w"], p["c1_b"], 4)
    c = conv(c, p["c2_w"], p["c2_b"], 2)
    c = conv(c, p["c3_w"], p["c3_b"], 1)
    flat = c.reshape(-1, 3136)
    q = jax.nn.relu(jnp.dot(flat, p["q1_w"].T, precision=hp) + p["q1_b"])
    i = jax.nn.relu(jnp.dot(flat, p["i1_w"].T, precision=hp) + p["i1_b"])
    q2 = jnp.dot(q, p["q2_w"].T, precision=hp) + p["q2_b"]
    i2 = jnp.dot(i, p["i2_w"].T, precision=hp) + p["i2_b"]
    return q2, jax.nn.log_softmax(i2, axis=1), i2


if __name__ == "__main__":
    frames = 4
    num_actions = 6
    batch = 2
    # 84x84 spatial input is what the module implies (q1 expects 3136 = 64*7*7).
    key = jax.random.PRNGKey(0)
    pkey, xkey = jax.random.split(key)
    raw_params = init_params(pkey, frames, num_actions)
    params = prepare_params(raw_params, num_actions)
    state = jax.random.uniform(xkey, (batch, frames, 84, 84), jnp.float32)

    fwd = jax.jit(partial(conv_forward, num_actions=num_actions))
    q_out, logp, i_out = fwd(params, state)
    jax.block_until_ready((q_out, logp, i_out))

    assert q_out.shape == (batch, num_actions)
    assert logp.shape == (batch, num_actions)
    assert i_out.shape == (batch, num_actions)
    # log_softmax rows must sum (in prob space) to ~1
    assert bool(jnp.all(jnp.abs(jnp.sum(jnp.exp(logp), axis=1) - 1.0) < 1e-4))
    assert bool(jnp.all(jnp.isfinite(q_out))) and bool(jnp.all(jnp.isfinite(i_out)))

    # Loose check vs. the f32 reference (kernel uses bf16 MXU operands with
    # f32 accumulation -> small, expected divergence).
    q_ref, logp_ref, i_ref = reference_forward(raw_params, state, num_actions)
    for got, ref in ((q_out, q_ref), (i_out, i_ref), (logp, logp_ref)):
        err = float(jnp.max(jnp.abs(got - ref.astype(jnp.float32))))
        assert err < 5e-2, f"max abs err {err}"

    print("KERNEL_OK")
</pallas_src>

<mosaic_0001>
module attributes {stable_mosaic.version = 11 : i64} {
  func.func @_mm_bias_kernel(%arg0: i32, %arg1: memref<512x256xbf16, #tpu.memory_space<vmem>>, %arg2: memref<256x32xbf16, #tpu.memory_space<vmem>>, %arg3: memref<1x32xf32, #tpu.memory_space<vmem>>, %arg4: memref<512x32xbf16, #tpu.memory_space<vmem>>) attributes {dimension_semantics = [#tpu.dimension_semantics<parallel>], iteration_bounds = array<i64: 2>, scalar_prefetch = 0 : i64, scratch_operands = 0 : i64, tpu.core_type = #tpu.core_type<tc>, window_params = [{transform_indices = @transform_0, window_bounds = array<i64: 512, 256>}, {pipeline_mode = #tpu.pipeline_mode<synchronous>, transform_indices = @transform_1, window_bounds = array<i64: 256, 32>}, {pipeline_mode = #tpu.pipeline_mode<synchronous>, transform_indices = @transform_2, window_bounds = array<i64: 1, 32>}, {transform_indices = @transform_3, window_bounds = array<i64: 512, 32>}]} {
    %c0 = arith.constant 0 : index
    %c0_0 = arith.constant 0 : index
    %0 = vector.load %arg1[%c0, %c0_0] : memref<512x256xbf16, #tpu.memory_space<vmem>>, vector<512x256xbf16>
    %c0_1 = arith.constant 0 : index
    %c0_2 = arith.constant 0 : index
    %1 = vector.load %arg2[%c0_1, %c0_2] : memref<256x32xbf16, #tpu.memory_space<vmem>>, vector<256x32xbf16>
    %cst = arith.constant dense<0.000000e+00> : vector<512x32xf32>
    %2 = tpu.matmul %0, %1, %cst {dimension_numbers = #tpu.dot_dimension_numbers<[1], [0], [0], [1], [0, 0, 1, 1], [], []>} : vector<512x256xbf16>, vector<256x32xbf16>, vector<512x32xf32> -> vector<512x32xf32>
    %c0_3 = arith.constant 0 : index
    %c0_4 = arith.constant 0 : index
    %3 = vector.load %arg3[%c0_3, %c0_4] : memref<1x32xf32, #tpu.memory_space<vmem>>, vector<1x32xf32>
    %4 = vector.broadcast %3 : vector<1x32xf32> to vector<512x32xf32>
    %5 = arith.addf %2, %4 : vector<512x32xf32>
    %cst_5 = arith.constant 0.000000e+00 : f32
    %6 = vector.broadcast %cst_5 : f32 to vector<512x32xf32>
    %7 = arith.maximumf %5, %6 : vector<512x32xf32>
    %8 = arith.truncf %7 : vector<512x32xf32> to vector<512x32xbf16>
    %c0_6 = arith.constant 0 : index
    %c0_7 = arith.constant 0 : index
    %9 = vector.load %arg4[%c0_6, %c0_7] : memref<512x32xbf16, #tpu.memory_space<vmem>>, vector<512x32xbf16>
    tpu.vector_store %arg4[%c0_6, %c0_7], %8 {strides = array<i32>} : memref<512x32xbf16, #tpu.memory_space<vmem>>, vector<512x32xbf16>,
    return
  }
  func.func @transform_0(%arg0: i32) -> (i32, i32) {
    %c0_i32 = arith.constant 0 : i32
    %c0_i32_0 = arith.constant 0 : i32
    return %arg0, %c0_i32 : i32, i32
  }
  func.func @transform_1(%arg0: i32) -> (i32, i32) {
    %c0_i32 = arith.constant 0 : i32
    %c0_i32_0 = arith.constant 0 : i32
    %c0_i32_1 = arith.constant 0 : i32
    return %c0_i32, %c0_i32_0 : i32, i32
  }
  func.func @transform_2(%arg0: i32) -> (i32, i32) {
    %c0_i32 = arith.constant 0 : i32
    %c0_i32_0 = arith.constant 0 : i32
    %c0_i32_1 = arith.constant 0 : i32
    return %c0_i32, %c0_i32_0 : i32, i32
  }
  func.func @transform_3(%arg0: i32) -> (i32, i32) {
    %c0_i32 = arith.constant 0 : i32
    %c0_i32_0 = arith.constant 0 : i32
    return %arg0, %c0_i32 : i32, i32
  }
}

module attributes {stable_mosaic.version = 11 : i64} {
  func.func @_mm_bias_kernel(%arg0: i32, %arg1: memref<88x512xbf16, #tpu.memory_space<vmem>>, %arg2: memref<512x64xbf16, #tpu.memory_space<vmem>>, %arg3: memref<1x64xf32, #tpu.memory_space<vmem>>, %arg4: memref<88x64xbf16, #tpu.memory_space<vmem>>) attributes {dimension_semantics = [#tpu.dimension_semantics<parallel>], iteration_bounds = array<i64: 2>, scalar_prefetch = 0 : i64, scratch_operands = 0 : i64, tpu.core_type = #tpu.core_type<tc>, window_params = [{transform_indices = @transform_0, window_bounds = array<i64: 88, 512>}, {pipeline_mode = #tpu.pipeline_mode<synchronous>, transform_indices = @transform_1, window_bounds = array<i64: 512, 64>}, {pipeline_mode = #tpu.pipeline_mode<synchronous>, transform_indices = @transform_2, window_bounds = array<i64: 1, 64>}, {transform_indices = @transform_3, window_bounds = array<i64: 88, 64>}]} {
    %c0 = arith.constant 0 : index
    %c0_0 = arith.constant 0 : index
    %0 = vector.load %arg1[%c0, %c0_0] : memref<88x512xbf16, #tpu.memory_space<vmem>>, vector<88x512xbf16>
    %c0_1 = arith.constant 0 : index
    %c0_2 = arith.constant 0 : index
    %1 = vector.load %arg2[%c0_1, %c0_2] : memref<512x64xbf16, #tpu.memory_space<vmem>>, vector<512x64xbf16>
    %cst = arith.constant dense<0.000000e+00> : vector<88x64xf32>
    %2 = tpu.matmul %0, %1, %cst {dimension_numbers = #tpu.dot_dimension_numbers<[1], [0], [0], [1], [0, 0, 1, 1], [], []>} : vector<88x512xbf16>, vector<512x64xbf16>, vector<88x64xf32> -> vector<88x64xf32>
    %c0_3 = arith.constant 0 : index
    %c0_4 = arith.constant 0 : index
    %3 = vector.load %arg3[%c0_3, %c0_4] : memref<1x64xf32, #tpu.memory_space<vmem>>, vector<1x64xf32>
    %4 = vector.broadcast %3 : vector<1x64xf32> to vector<88x64xf32>
    %5 = arith.addf %2, %4 : vector<88x64xf32>
    %cst_5 = arith.constant 0.000000e+00 : f32
    %6 = vector.broadcast %cst_5 : f32 to vector<88x64xf32>
    %7 = arith.maximumf %5, %6 : vector<88x64xf32>
    %8 = arith.truncf %7 : vector<88x64xf32> to vector<88x64xbf16>
    %c0_6 = arith.constant 0 : index
    %c0_7 = arith.constant 0 : index
    %9 = vector.load %arg4[%c0_6, %c0_7] : memref<88x64xbf16, #tpu.memory_space<vmem>>, vector<88x64xbf16>
    tpu.vector_store %arg4[%c0_6, %c0_7], %8 {strides = array<i32>} : memref<88x64xbf16, #tpu.memory_space<vmem>>, vector<88x64xbf16>,
    return
  }
  func.func @transform_0(%arg0: i32) -> (i32, i32) {
    %c0_i32 = arith.constant 0 : i32
    %c0_i32_0 = arith.constant 0 : i32
    return %arg0, %c0_i32 : i32, i32
  }
  func.func @transform_1(%arg0: i32) -> (i32, i32) {
    %c0_i32 = arith.constant 0 : i32
    %c0_i32_0 = arith.constant 0 : i32
    %c0_i32_1 = arith.constant 0 : i32
    return %c0_i32, %c0_i32_0 : i32, i32
  }
  func.func @transform_2(%arg0: i32) -> (i32, i32) {
    %c0_i32 = arith.constant 0 : i32
    %c0_i32_0 = arith.constant 0 : i32
    %c0_i32_1 = arith.constant 0 : i32
    return %c0_i32, %c0_i32_0 : i32, i32
  }
  func.func @transform_3(%arg0: i32) -> (i32, i32) {
    %c0_i32 = arith.constant 0 : i32
    %c0_i32_0 = arith.constant 0 : i32
    return %arg0, %c0_i32 : i32, i32
  }
}

module attributes {stable_mosaic.version = 11 : i64} {
  func.func @_mm_bias_kernel(%arg0: i32, %arg1: memref<56x576xbf16, #tpu.memory_space<vmem>>, %arg2: memref<576x64xbf16, #tpu.memory_space<vmem>>, %arg3: memref<1x64xf32, #tpu.memory_space<vmem>>, %arg4: memref<56x64xbf16, #tpu.memory_space<vmem>>) attributes {dimension_semantics = [#tpu.dimension_semantics<parallel>], iteration_bounds = array<i64: 2>, scalar_prefetch = 0 : i64, scratch_operands = 0 : i64, tpu.core_type = #tpu.core_type<tc>, window_params = [{transform_indices = @transform_0, window_bounds = array<i64: 56, 576>}, {pipeline_mode = #tpu.pipeline_mode<synchronous>, transform_indices = @transform_1, window_bounds = array<i64: 576, 64>}, {pipeline_mode = #tpu.pipeline_mode<synchronous>, transform_indices = @transform_2, window_bounds = array<i64: 1, 64>}, {transform_indices = @transform_3, window_bounds = array<i64: 56, 64>}]} {
    %c0 = arith.constant 0 : index
    %c0_0 = arith.constant 0 : index
    %0 = vector.load %arg1[%c0, %c0_0] : memref<56x576xbf16, #tpu.memory_space<vmem>>, vector<56x576xbf16>
    %c0_1 = arith.constant 0 : index
    %c0_2 = arith.constant 0 : index
    %1 = vector.load %arg2[%c0_1, %c0_2] : memref<576x64xbf16, #tpu.memory_space<vmem>>, vector<576x64xbf16>
    %cst = arith.constant dense<0.000000e+00> : vector<56x64xf32>
    %2 = tpu.matmul %0, %1, %cst {dimension_numbers = #tpu.dot_dimension_numbers<[1], [0], [0], [1], [0, 0, 1, 1], [], []>} : vector<56x576xbf16>, vector<576x64xbf16>, vector<56x64xf32> -> vector<56x64xf32>
    %c0_3 = arith.constant 0 : index
    %c0_4 = arith.constant 0 : index
    %3 = vector.load %arg3[%c0_3, %c0_4] : memref<1x64xf32, #tpu.memory_space<vmem>>, vector<1x64xf32>
    %4 = vector.broadcast %3 : vector<1x64xf32> to vector<56x64xf32>
    %5 = arith.addf %2, %4 : vector<56x64xf32>
    %cst_5 = arith.constant 0.000000e+00 : f32
    %6 = vector.broadcast %cst_5 : f32 to vector<56x64xf32>
    %7 = arith.maximumf %5, %6 : vector<56x64xf32>
    %8 = arith.truncf %7 : vector<56x64xf32> to vector<56x64xbf16>
    %c0_6 = arith.constant 0 : index
    %c0_7 = arith.constant 0 : index
    %9 = vector.load %arg4[%c0_6, %c0_7] : memref<56x64xbf16, #tpu.memory_space<vmem>>, vector<56x64xbf16>
    tpu.vector_store %arg4[%c0_6, %c0_7], %8 {strides = array<i32>} : memref<56x64xbf16, #tpu.memory_space<vmem>>, vector<56x64xbf16>,
    return
  }
  func.func @transform_0(%arg0: i32) -> (i32, i32) {
    %c0_i32 = arith.constant 0 : i32
    %c0_i32_0 = arith.constant 0 : i32
    return %arg0, %c0_i32 : i32, i32
  }
  func.func @transform_1(%arg0: i32) -> (i32, i32) {
    %c0_i32 = arith.constant 0 : i32
    %c0_i32_0 = arith.constant 0 : i32
    %c0_i32_1 = arith.constant 0 : i32
    return %c0_i32, %c0_i32_0 : i32, i32
  }
  func.func @transform_2(%arg0: i32) -> (i32, i32) {
    %c0_i32 = arith.constant 0 : i32
    %c0_i32_0 = arith.constant 0 : i32
    %c0_i32_1 = arith.constant 0 : i32
    return %c0_i32, %c0_i32_0 : i32, i32
  }
  func.func @transform_3(%arg0: i32) -> (i32, i32) {
    %c0_i32 = arith.constant 0 : i32
    %c0_i32_0 = arith.constant 0 : i32
    return %arg0, %c0_i32 : i32, i32
  }
}

module attributes {stable_mosaic.version = 11 : i64} {
  func.func @_fc_head_kernel(%arg0: i32, %arg1: i32, %arg2: memref<2x3136xbf16, #tpu.memory_space<vmem>>, %arg3: memref<3136x256xbf16, #tpu.memory_space<vmem>>, %arg4: memref<1x256xf32, #tpu.memory_space<vmem>>, %arg5: memref<256x256xbf16, #tpu.memory_space<vmem>>, %arg6: memref<1x256xf32, #tpu.memory_space<vmem>>, %arg7: memref<2x6xf32, #tpu.memory_space<vmem>>, %arg8: memref<2x6xf32, #tpu.memory_space<vmem>>, %arg9: memref<2x6xf32, #tpu.memory_space<vmem>>, %arg10: memref<2x256xf32, #tpu.memory_space<vmem>>) attributes {dimension_semantics = [#tpu.dimension_semantics<parallel>, #tpu.dimension_semantics<arbitrary>], iteration_bounds = array<i64: 1, 4>, scalar_prefetch = 0 : i64, scratch_operands = 1 : i64, tpu.core_type = #tpu.core_type<tc>, window_params = [{transform_indices = @transform_0, window_bounds = array<i64: 2, 3136>}, {transform_indices = @transform_1, window_bounds = array<i64: 3136, 256>}, {transform_indices = @transform_2, window_bounds = array<i64: 1, 256>}, {transform_indices = @transform_3, window_bounds = array<i64: 256, 256>}, {pipeline_mode = #tpu.pipeline_mode<synchronous>, transform_indices = @transform_4, window_bounds = array<i64: 1, 256>}, {transform_indices = @transform_5, window_bounds = array<i64: 2, 6>}, {transform_indices = @transform_6, window_bounds = array<i64: 2, 6>}, {transform_indices = @transform_7, window_bounds = array<i64: 2, 6>}]} {
    %c0_i32 = arith.constant 0 : i32
    %0 = arith.cmpi eq, %arg1, %c0_i32 : i32
    %1 = arith.extui %0 : i1 to i32
    %c0_i32_0 = arith.constant 0 : i32
    %2 = arith.cmpi ne, %1, %c0_i32_0 : i32
    scf.if %2 {
      %cst_15 = arith.constant 0.000000e+00 : f32
      %20 = vector.broadcast %cst_15 : f32 to vector<2x256xf32>
      %c0_16 = arith.constant 0 : index
      %c0_17 = arith.constant 0 : index
      %21 = vector.load %arg10[%c0_16, %c0_17] : memref<2x256xf32, #tpu.memory_space<vmem>>, vector<2x256xf32>
      tpu.vector_store %arg10[%c0_16, %c0_17], %20 {strides = array<i32>} : memref<2x256xf32, #tpu.memory_space<vmem>>, vector<2x256xf32>,
    } else {
    }
    %c0 = arith.constant 0 : index
    %c0_1 = arith.constant 0 : index
    %3 = vector.load %arg2[%c0, %c0_1] : memref<2x3136xbf16, #tpu.memory_space<vmem>>, vector<2x3136xbf16>
    %c0_2 = arith.constant 0 : index
    %c0_3 = arith.constant 0 : index
    %4 = vector.load %arg3[%c0_2, %c0_3] : memref<3136x256xbf16, #tpu.memory_space<vmem>>, vector<3136x256xbf16>
    %cst = arith.constant dense<0.000000e+00> : vector<2x256xf32>
    %5 = tpu.matmul %3, %4, %cst {dimension_numbers = #tpu.dot_dimension_numbers<[1], [0], [0], [1], [0, 0, 1, 1], [], []>} : vector<2x3136xbf16>, vector<3136x256xbf16>, vector<2x256xf32> -> vector<2x256xf32>
    %c0_4 = arith.constant 0 : index
    %c0_5 = arith.constant 0 : index
    %6 = vector.load %arg4[%c0_4, %c0_5] : memref<1x256xf32, #tpu.memory_space<vmem>>, vector<1x256xf32>
    %7 = vector.broadcast %6 : vector<1x256xf32> to vector<2x256xf32>
    %8 = arith.addf %5, %7 : vector<2x256xf32>
    %cst_6 = arith.constant 0.000000e+00 : f32
    %9 = vector.broadcast %cst_6 : f32 to vector<2x256xf32>
    %10 = arith.maximumf %8, %9 : vector<2x256xf32>
    %c0_7 = arith.constant 0 : index
    %c0_8 = arith.constant 0 : index
    %11 = vector.load %arg10[%c0_7, %c0_8] : memref<2x256xf32, #tpu.memory_space<vmem>>, vector<2x256xf32>
    %12 = arith.truncf %10 : vector<2x256xf32> to vector<2x256xbf16>
    %c0_9 = arith.constant 0 : index
    %c0_10 = arith.constant 0 : index
    %13 = vector.load %arg5[%c0_9, %c0_10] : memref<256x256xbf16, #tpu.memory_space<vmem>>, vector<256x256xbf16>
    %cst_11 = arith.constant dense<0.000000e+00> : vector<2x256xf32>
    %14 = tpu.matmul %12, %13, %cst_11 {dimension_numbers = #tpu.dot_dimension_numbers<[1], [0], [0], [1], [0, 0, 1, 1], [], []>} : vector<2x256xbf16>, vector<256x256xbf16>, vector<2x256xf32> -> vector<2x256xf32>
    %15 = arith.addf %11, %14 : vector<2x256xf32>
    %c0_12 = arith.constant 0 : index
    %c0_13 = arith.constant 0 : index
    %16 = vector.load %arg10[%c0_12, %c0_13] : memref<2x256xf32, #tpu.memory_space<vmem>>, vector<2x256xf32>
    tpu.vector_store %arg10[%c0_12, %c0_13], %15 {strides = array<i32>} : memref<2x256xf32, #tpu.memory_space<vmem>>, vector<2x256xf32>,
    %c3_i32 = arith.constant 3 : i32
    %17 = arith.cmpi eq, %arg1, %c3_i32 : i32
    %18 = arith.extui %17 : i1 to i32
    %c0_i32_14 = arith.constant 0 : i32
    %19 = arith.cmpi ne, %18, %c0_i32_14 : i32
    scf.if %19 {
      %c0_15 = arith.constant 0 : index
      %c0_16 = arith.constant 0 : index
      %20 = vector.load %arg10[%c0_15, %c0_16] : memref<2x256xf32, #tpu.memory_space<vmem>>, vector<2x256xf32>
      %c0_17 = arith.constant 0 : index
      %c0_18 = arith.constant 0 : index
      %21 = vector.load %arg6[%c0_17, %c0_18] : memref<1x256xf32, #tpu.memory_space<vmem>>, vector<1x256xf32>
      %22 = vector.broadcast %21 : vector<1x256xf32> to vector<2x256xf32>
      %23 = arith.addf %20, %22 : vector<2x256xf32>
      %24 = vector.extract_strided_slice %23 {offsets = [0, 0], sizes = [2, 128], strides = [1, 1]} : vector<2x256xf32> to vector<2x128xf32>
      %25 = vector.extract_strided_slice %23 {offsets = [0, 128], sizes = [2, 128], strides = [1, 1]} : vector<2x256xf32> to vector<2x128xf32>
      %26 = tpu.iota {dimensions = array<i32: 1>} : vector<2x128xi32>
      %c6_i32 = arith.constant 6 : i32
      %27 = vector.broadcast %c6_i32 : i32 to vector<2x128xi32>
      %28 = arith.cmpi slt, %26, %27 : vector<2x128xi32>
      %cst_19 = arith.constant 0xFF800000 : f32
      %29 = vector.broadcast %cst_19 : f32 to vector<2x128xf32>
      %30 = arith.select %28, %25, %29 : vector<2x128xi1>, vector<2x128xf32>
      %cst_20 = arith.constant dense<0xFF800000> : vector<2xf32>
      %31 = vector.multi_reduction <maximumf>, %30, %cst_20 [1] : vector<2x128xf32> to vector<2xf32>
      %32 = vector.shape_cast %31 : vector<2xf32> to vector<2x1xf32>
      %33 = vector.broadcast %32 : vector<2x1xf32> to vector<2x128xf32>
      %34 = arith.subf %30, %33 : vector<2x128xf32>
      %35 = math.exp %34 : vector<2x128xf32>
      %cst_21 = arith.constant dense<0.000000e+00> : vector<2xf32>
      %36 = vector.multi_reduction <add>, %35, %cst_21 [1] : vector<2x128xf32> to vector<2xf32>
      %37 = vector.shape_cast %36 : vector<2xf32> to vector<2x1xf32>
      %38 = math.log %37 : vector<2x1xf32>
      %39 = arith.addf %32, %38 : vector<2x1xf32>
      %40 = vector.extract_strided_slice %24 {offsets = [0, 0], sizes = [2, 6], strides = [1, 1]} : vector<2x128xf32> to vector<2x6xf32>
      %c0_22 = arith.constant 0 : index
      %c0_23 = arith.constant 0 : index
      %41 = vector.load %arg7[%c0_22, %c0_23] : memref<2x6xf32, #tpu.memory_space<vmem>>, vector<2x6xf32>
      tpu.vector_store %arg7[%c0_22, %c0_23], %40 {strides = array<i32>} : memref<2x6xf32, #tpu.memory_space<vmem>>, vector<2x6xf32>,
      %42 = vector.extract_strided_slice %25 {offsets = [0, 0], sizes = [2, 6], strides = [1, 1]} : vector<2x128xf32> to vector<2x6xf32>
      %c0_24 = arith.constant 0 : index
      %c0_25 = arith.constant 0 : index
      %43 = vector.load %arg9[%c0_24, %c0_25] : memref<2x6xf32, #tpu.memory_space<vmem>>, vector<2x6xf32>
      tpu.vector_store %arg9[%c0_24, %c0_25], %42 {strides = array<i32>} : memref<2x6xf32, #tpu.memory_space<vmem>>, vector<2x6xf32>,
      %44 = vector.broadcast %39 : vector<2x1xf32> to vector<2x128xf32>
      %45 = arith.subf %25, %44 : vector<2x128xf32>
      %46 = vector.extract_strided_slice %45 {offsets = [0, 0], sizes = [2, 6], strides = [1, 1]} : vector<2x128xf32> to vector<2x6xf32>
      %c0_26 = arith.constant 0 : index
      %c0_27 = arith.constant 0 : index
      %47 = vector.load %arg8[%c0_26, %c0_27] : memref<2x6xf32, #tpu.memory_space<vmem>>, vector<2x6xf32>
      tpu.vector_store %arg8[%c0_26, %c0_27], %46 {strides = array<i32>} : memref<2x6xf32, #tpu.memory_space<vmem>>, vector<2x6xf32>,
    } else {
    }
    return
  }
  func.func @transform_0(%arg0: i32, %arg1: i32) -> (i32, i32) {
    %c0_i32 = arith.constant 0 : i32
    %c0_i32_0 = arith.constant 0 : i32
    return %arg0, %c0_i32 : i32, i32
  }
  func.func @transform_1(%arg0: i32, %arg1: i32) -> (i32, i32) {
    %c0_i32 = arith.constant 0 : i32
    %c0_i32_0 = arith.constant 0 : i32
    return %c0_i32, %arg1 : i32, i32
  }
  func.func @transform_2(%arg0: i32, %arg1: i32) -> (i32, i32) {
    %c0_i32 = arith.constant 0 : i32
    %c0_i32_0 = arith.constant 0 : i32
    return %c0_i32, %arg1 : i32, i32
  }
  func.func @transform_3(%arg0: i32, %arg1: i32) -> (i32, i32) {
    %c0_i32 = arith.constant 0 : i32
    %c0_i32_0 = arith.constant 0 : i32
    return %arg1, %c0_i32 : i32, i32
  }
  func.func @transform_4(%arg0: i32, %arg1: i32) -> (i32, i32) {
    %c0_i32 = arith.constant 0 : i32
    %c0_i32_0 = arith.constant 0 : i32
    %c0_i32_1 = arith.constant 0 : i32
    return %c0_i32, %c0_i32_0 : i32, i32
  }
  func.func @transform_5(%arg0: i32, %arg1: i32) -> (i32, i32) {
    %c0_i32 = arith.constant 0 : i32
    %c0_i32_0 = arith.constant 0 : i32
    return %arg0, %c0_i32 : i32, i32
  }
  func.func @transform_6(%arg0: i32, %arg1: i32) -> (i32, i32) {
    %c0_i32 = arith.constant 0 : i32
    %c0_i32_0 = arith.constant 0 : i32
    return %arg0, %c0_i32 : i32, i32
  }
  func.func @transform_7(%arg0: i32, %arg1: i32) -> (i32, i32) {
    %c0_i32 = arith.constant 0 : i32
    %c0_i32_0 = arith.constant 0 : i32
    return %arg0, %c0_i32 : i32, i32
  }
}

</mosaic_0001>

<bundles_post_ra>
// kernel: conv_forward.4
= control target key start
LH: loop header
LB: loop body
LE: loop exit
PB: predicated region body
PF: predicated region fallthrough
CT: control target
= control target key end

     0   :  { %s2230_s12 = smov 0   ;;  %s2232_s13 = smov 0   ;;  %s2781_s0 = inlined_call_operand.vmem [shape: bf16[800,256], index: 0, kind: input, shape index: {}]   ;;  %s2782_s1 = inlined_call_operand.vmem [shape: bf16[256,32], index: 1, kind: input, shape index: {}]   ;;  %s2783_s2 = inlined_call_operand.vmem [shape: f32[1,32], index: 2, kind: input, shape index: {}]   ;;  %s2784_s3 = inlined_call_operand.vmem [shape: bf16[800,32], index: 3, kind: output, shape index: {}]  }
   0x1   :  { %s2234_s14 = smov 0  }
   0x2 LB: > { %s2243_s15 = sadd.s32 4294967295, %s2176_s14   ;;  %s2245_s16 = sadd.s32 1, %s2176_s14   ;;  %s2176_s14 = sphi %s2234_s14, %s2793_s14   ;;  %s2172_s13 = sphi %s2232_s13, %s2792_s13   ;;  %s2168_s12 = sphi %s2230_s12, %s2791_s12  }
   0x3   : > { %s85_s17 = ssub.s32 %s2176_s14, %s2245_s16  ;;  %s88_s18 = sadd.s32 1, %s2172_s13 }
   0x4   : > { %p86_p0 = scmp.eq.s32.totalorder %s85_s17, 0  ;;  %p98_p1 = scmp.ne.s32.totalorder %s2172_s13, %s2168_s12 }
   0x5   : > { %p99_p2 = scmp.eq.s32.totalorder %s2243_s15, 1  ;;  %p1590_p3 = scmp.ge.s32.totalorder %s2176_s14, 1 }
   0x6   : > { %s2253_s19 = scalar_select %p86_p0, %s2172_s13, %s88_s18  }
   0x7   : > { %p2255_p4 = por %p99_p2, %p98_p1  ;;  %p149_p5 = scmp.lt.s32.totalorder %s2176_s14, 3 }
   0x9   : > { %p150_p6 = pnand %p1590_p3, %p149_p5 }
   0xa   : > { %s2278_s6 = sshll.u32 (!%p150_p6), %s2243_s15, 6  ;;  %s175_s18 = sand.u32 (!%p150_p6), 1, %s2168_s12  }
   0xb   : > { %153 = sbr.rel (%p150_p6) target bundleno = 501 (0x1f5), region = 32  ;;  %p184_p7 = scmp.lt.s32.totalorder (!%p150_p6), %s2278_s6, 99 }
  0x10   : > { %v2004_v0 = vld [vmem:[%s2782_s1 + $0x38] sm:$0xff]  ;;  %v2003_v2 = vld [vmem:[%s2782_s1 + $0x30] sm:$0xff]  ;;  %v2002_v4 = vld [vmem:[%s2782_s1 + $0x28] sm:$0xff]  ;;  %s185_s21 = scalar_select %p184_p7, %s2278_s6, 99  ;;  %vm1182_vm0 = vcmask 257024  }
  0x11   : > { %v2012_v1 = vld [vmem:[%s2782_s1 + $0x78] sm:$0xff]  ;;  %716 = vmatpush.bf16.msra.mxu0 %v2004_v0  ;;  %2016 = vmatpush.bf16.msra.mxu2 %v2004_v0  ;;  %v2011_v3 = vld [vmem:[%s2782_s1 + $0x70] sm:$0xff]  ;;  %v2010_v5 = vld [vmem:[%s2782_s1 + $0x68] sm:$0xff]  ;;  %s1255_s24 = ssub.s32 (%p2255_p4), 100, %s2278_s6  ;;  %s2013_s25 = sshll.u32 (%p2255_p4), %s2243_s15, 8 }
  0x12   : > { %885 = vmatpush.bf16.msra.mxu1 %v2012_v1  ;;  %2024 = vmatpush.bf16.msra.mxu3 %v2012_v1  ;;  %v2001_v6 = vld [vmem:[%s2782_s1 + $0x20] sm:$0xff]  ;;  %v2000_v8 = vld [vmem:[%s2782_s1 + $0x18] sm:$0xff]  ;;  %v1999_v10 = vld [vmem:[%s2782_s1 + $0x10] sm:$0xff]  ;;  %s1932_s26 = sshll.u32 %s185_s21, 3  ;;  %s1591_s21 = sshll.u32 %s175_s18, 8 }
  0x13   : > { %v2009_v7 = vld [vmem:[%s2782_s1 + $0x60] sm:$0xff]  ;;  %v2008_v9 = vld [vmem:[%s2782_s1 + $0x58] sm:$0xff]  ;;  %v2007_v11 = vld [vmem:[%s2782_s1 + $0x50] sm:$0xff]  ;;  %s2306_s4 = scalar_lea.vmem %s2781_s0, %s1932_s26  ;;  %s2397_s12 = scalar_lea.vmem [#allocation2], %s1591_s21  }
  0x14   : > { %v1998_v12 = vld [vmem:[%s2782_s1 + $0x8] sm:$0xff]  ;;  %v1997_v14 = vld [vmem:[%s2782_s1] sm:$0xff]  ;;  %v1605_v28 = vld [vmem:[%s2306_s4 + $0x10] sm:$0xf]  ;;  %p1256_p8 = scmp.lt.s32.totalorder (%p2255_p4), %s1255_s24, 64  ;;  %s2646_s28 = scalar_lea.vmem (%p2255_p4), %s2784_s3, %s2013_s25  }
  0x15   : > { %717 = vmatpush.bf16.msra.mxu0 %v2003_v2  ;;  %2017 = vmatpush.bf16.msra.mxu2 %v2003_v2  ;;  %v2006_v13 = vld [vmem:[%s2782_s1 + $0x48] sm:$0xff]  ;;  %v2005_v15 = vld [vmem:[%s2782_s1 + $0x40] sm:$0xff]  ;;  %v1936_v29 = vld [vmem:[%s2306_s4 + $0x14] sm:$0xf0] }
  0x16   : > { %886 = vmatpush.bf16.msra.mxu1 %v2011_v3  ;;  %2025 = vmatpush.bf16.msra.mxu3 %v2011_v3  ;;  %v1597_v16 = vld [vmem:[%s2306_s4] sm:$0xf]  ;;  %v1934_v17 = vld [vmem:[%s2306_s4 + $0x4] sm:$0xf0]  ;;  %v1933_v20 = vld [vmem:[%s2306_s4 + $0x4] sm:$0xf]  ;;  %v1606_v36 = vor.u32 %v1936_v29, %v1605_v28 }
  0x17   : > { %v1725_v18 = vld [vmem:[%s2306_s4 + $0x100] sm:$0xf]  ;;  %v1966_v19 = vld [vmem:[%s2306_s4 + $0x104] sm:$0xf0]  ;;  %v1599_v21 = vld [vmem:[%s2306_s4 + $0x8] sm:$0xf0]  ;;  %v1598_v24 = vor.u32 %v1934_v17, %v1597_v16 }
  0x18   : > { %v1965_v22 = vld [vmem:[%s2306_s4 + $0x104] sm:$0xf]  ;;  %v1727_v23 = vld [vmem:[%s2306_s4 + $0x108] sm:$0xf0]  ;;  %v1726_v25 = vor.u32 %v1966_v19, %v1725_v18  ;;  %v1602_v26 = vor.u32 %v1933_v20, %v1599_v21  ;;  %v1733_v30 = vld [vmem:[%s2306_s4 + $0x110] sm:$0xf] }
  0x19   : > { %718 = vmatpush.bf16.msra.mxu0 %v2002_v4  ;;  %2018 = vmatpush.bf16.msra.mxu2 %v2002_v4  ;;  %v1730_v27 = vor.u32 %v1965_v22, %v1727_v23  ;;  %v1968_v31 = vld [vmem:[%s2306_s4 + $0x114] sm:$0xf0]  ;;  %v1935_v32 = vld [vmem:[%s2306_s4 + $0x14] sm:$0xf]  ;;  %v1607_v33 = vld [vmem:[%s2306_s4 + $0x18] sm:$0xf0] }
  0x1a   : > { %887 = vmatpush.bf16.msra.mxu1 %v2010_v5  ;;  %2026 = vmatpush.bf16.msra.mxu3 %v2010_v5  ;;  %v1967_v34 = vld [vmem:[%s2306_s4 + $0x114] sm:$0xf]  ;;  %v1735_v35 = vld [vmem:[%s2306_s4 + $0x118] sm:$0xf0]  ;;  %v1734_v37 = vor.u32 %v1968_v31, %v1733_v30  ;;  %v1610_v38 = vor.u32 %v1935_v32, %v1607_v33  ;;  %v1613_v40 = vld [vmem:[%s2306_s4 + $0x20] sm:$0xf] }
  0x1b   : > { %v1738_v39 = vor.u32 %v1967_v34, %v1735_v35  ;;  %v1938_v41 = vld [vmem:[%s2306_s4 + $0x24] sm:$0xf0]  ;;  %v1741_v42 = vld [vmem:[%s2306_s4 + $0x120] sm:$0xf]  ;;  %v1937_v44 = vld [vmem:[%s2306_s4 + $0x24] sm:$0xf] }
  0x1c   : > { %v1970_v43 = vld [vmem:[%s2306_s4 + $0x124] sm:$0xf0]  ;;  %v1615_v45 = vld [vmem:[%s2306_s4 + $0x28] sm:$0xf0]  ;;  %v1969_v46 = vld [vmem:[%s2306_s4 + $0x124] sm:$0xf]  ;;  %v1614_v48 = vor.u32 %v1938_v41, %v1613_v40 }
  0x1d   : > { %719 = vmatpush.bf16.msra.mxu0 %v2001_v6  ;;  %2019 = vmatpush.bf16.msra.mxu2 %v2001_v6  ;;  %v1743_v47 = vld [vmem:[%s2306_s4 + $0x128] sm:$0xf0]  ;;  %v1742_v49 = vor.u32 %v1970_v43, %v1741_v42  ;;  %v1618_v50 = vor.u32 %v1937_v44, %v1615_v45  ;;  %v1621_v52 = vld [vmem:[%s2306_s4 + $0x30] sm:$0xf]  ;;  %v1940_v53 = vld [vmem:[%s2306_s4 + $0x34] sm:$0xf0] }
  0x1e   : > { %888 = vmatpush.bf16.msra.mxu1 %v2009_v7  ;;  %2027 = vmatpush.bf16.msra.mxu3 %v2009_v7  ;;  %v1746_v51 = vor.u32 %v1969_v46, %v1743_v47  ;;  %v1749_v54 = vld [vmem:[%s2306_s4 + $0x130] sm:$0xf]  ;;  %v1972_v55 = vld [vmem:[%s2306_s4 + $0x134] sm:$0xf0]  ;;  %v1939_v56 = vld [vmem:[%s2306_s4 + $0x34] sm:$0xf]  ;;  %v1622_v60 = vor.u32 %v1940_v53, %v1621_v52 }
  0x1f   : > { %v1623_v57 = vld [vmem:[%s2306_s4 + $0x38] sm:$0xf0]  ;;  %v1971_v58 = vld [vmem:[%s2306_s4 + $0x134] sm:$0xf]  ;;  %v1750_v61 = vor.u32 %v1972_v55, %v1749_v54  ;;  %v1629_v0 = vld [vmem:[%s2306_s4 + $0x40] sm:$0xf] }
  0x20   : > { %v1751_v59 = vld [vmem:[%s2306_s4 + $0x138] sm:$0xf0]  ;;  %v1626_v62 = vor.u32 %v1939_v56, %v1623_v57  ;;  %v1942_v1 = vld [vmem:[%s2306_s4 + $0x44] sm:$0xf0]  ;;  %v1757_v2 = vld [vmem:[%s2306_s4 + $0x140] sm:$0xf] }
  0x21   : > { %720 = vmatpush.bf16.msra.mxu0 %v2000_v8  ;;  %2020 = vmatpush.bf16.msra.mxu2 %v2000_v8  ;;  %v1754_v63 = vor.u32 %v1971_v58, %v1751_v59  ;;  %v1974_v3 = vld [vmem:[%s2306_s4 + $0x144] sm:$0xf0]  ;;  %v1941_v4 = vld [vmem:[%s2306_s4 + $0x44] sm:$0xf]  ;;  %v1631_v5 = vld [vmem:[%s2306_s4 + $0x48] sm:$0xf0]  ;;  %v1630_v8 = vor.u32 %v1942_v1, %v1629_v0 }
  0x22   : > { %889 = vmatpush.bf16.msra.mxu1 %v2008_v9  ;;  %2028 = vmatpush.bf16.msra.mxu3 %v2008_v9  ;;  %v1973_v6 = vld [vmem:[%s2306_s4 + $0x144] sm:$0xf]  ;;  %v1759_v7 = vld [vmem:[%s2306_s4 + $0x148] sm:$0xf0]  ;;  %v1758_v9 = vor.u32 %v1974_v3, %v1757_v2  ;;  %v1943_v16 = vld [vmem:[%s2306_s4 + $0x54] sm:$0xf] }
  0x23   : > { %v1639_v17 = vld [vmem:[%s2306_s4 + $0x58] sm:$0xf0]  ;;  %v1975_v18 = vld [vmem:[%s2306_s4 + $0x154] sm:$0xf]  ;;  %v1945_v28 = vld [vmem:[%s2306_s4 + $0x64] sm:$0xf] }
  0x24   : > { %v1767_v19 = vld [vmem:[%s2306_s4 + $0x158] sm:$0xf0]  ;;  %v1642_v22 = vor.u32 %v1943_v16, %v1639_v17  ;;  %v1647_v29 = vld [vmem:[%s2306_s4 + $0x68] sm:$0xf0]  ;;  %v1977_v30 = vld [vmem:[%s2306_s4 + $0x164] sm:$0xf] }
  0x25   : > { %721 = vmatpush.bf16.msra.mxu0 %v1999_v10  ;;  %2021 = vmatpush.bf16.msra.mxu2 %v1999_v10  ;;  %v1634_v10 = vor.u32 %v1941_v4, %v1631_v5  ;;  %v1770_v23 = vor.u32 %v1975_v18, %v1767_v19  ;;  %v1775_v31 = vld [vmem:[%s2306_s4 + $0x168] sm:$0xf0]  ;;  %v1650_v34 = vor.u32 %v1945_v28, %v1647_v29  ;;  %v1947_v40 = vld [vmem:[%s2306_s4 + $0x74] sm:$0xf]  ;;  %v1655_v41 = vld [vmem:[%s2306_s4 + $0x78] sm:$0xf0] }
  0x26   : > { %890 = vmatpush.bf16.msra.mxu1 %v2007_v11  ;;  %2029 = vmatpush.bf16.msra.mxu3 %v2007_v11  ;;  %v1762_v11 = vor.u32 %v1973_v6, %v1759_v7  ;;  %v1778_v35 = vor.u32 %v1977_v30, %v1775_v31  ;;  %v1979_v42 = vld [vmem:[%s2306_s4 + $0x174] sm:$0xf]  ;;  %v1783_v43 = vld [vmem:[%s2306_s4 + $0x178] sm:$0xf0]  ;;  %v1658_v46 = vor.u32 %v1947_v40, %v1655_v41  ;;  %v1982_v52 = vld [vmem:[%s2306_s4 + $0x184] sm:$0xf0] }
  0x27   : > { %v1786_v47 = vor.u32 %v1979_v42, %v1783_v43  ;;  %v1949_v53 = vld [vmem:[%s2306_s4 + $0x84] sm:$0xf]  ;;  %v1663_v54 = vld [vmem:[%s2306_s4 + $0x88] sm:$0xf0]  ;;  %v1951_v16 = vld [vmem:[%s2306_s4 + $0x94] sm:$0xf] }
  0x28   : > { %v1981_v55 = vld [vmem:[%s2306_s4 + $0x184] sm:$0xf]  ;;  %v1791_v56 = vld [vmem:[%s2306_s4 + $0x188] sm:$0xf0]  ;;  %v1671_v17 = vld [vmem:[%s2306_s4 + $0x98] sm:$0xf0] }
  0x29   : > { %722 = vmatpush.bf16.msra.mxu0 %v1998_v12  ;;  %2022 = vmatpush.bf16.msra.mxu2 %v1998_v12  ;;  %v1637_v12 = vld [vmem:[%s2306_s4 + $0x50] sm:$0xf]  ;;  %v1674_v29 = vor.u32 %v1951_v16, %v1671_v17 }
  0x2a   : > { %891 = vmatpush.bf16.msra.mxu1 %v2006_v13  ;;  %2030 = vmatpush.bf16.msra.mxu3 %v2006_v13  ;;  %v1944_v13 = vld [vmem:[%s2306_s4 + $0x54] sm:$0xf0] }
  0x2b   : > { %v1638_v20 = vor.u32 %v1944_v13, %v1637_v12  ;;  %v1952_v13 = vld [vmem:[%s2306_s4 + $0x94] sm:$0xf0] }
  0x2d   : > { %723 = vmatpush.bf16.msra.mxu0 %v1997_v14  ;;  %2023 = vmatpush.bf16.msra.mxu2 %v1997_v14  ;;  %v1765_v14 = vld [vmem:[%s2306_s4 + $0x150] sm:$0xf] }
  0x2e   : > { %892 = vmatpush.bf16.msra.mxu1 %v2005_v15  ;;  %2031 = vmatpush.bf16.msra.mxu3 %v2005_v15  ;;  %v1976_v15 = vld [vmem:[%s2306_s4 + $0x154] sm:$0xf0] }
  0x2f   : > { %v1766_v21 = vor.u32 %v1976_v15, %v1765_v14  ;;  %v1797_v14 = vld [vmem:[%s2306_s4 + $0x190] sm:$0xf]  ;;  %v1984_v15 = vld [vmem:[%s2306_s4 + $0x194] sm:$0xf0] }
  0x30   : > { %724 = vmatmul.bf16.vlgmr.msra.gmra.mxu0 %v1598_v24  ;;  %804 = vmatmul.bf16.vlgmr.msra.gmra.mxu2 %v1726_v25  ;;  %v1645_v24 = vld [vmem:[%s2306_s4 + $0x60] sm:$0xf]  ;;  %v1946_v25 = vld [vmem:[%s2306_s4 + $0x64] sm:$0xf0] }
  0x31   : > { %893 = vmatmul.bf16.vlgmr.msra.gmra.mxu1 %v1602_v26  ;;  %973 = vmatmul.bf16.vlgmr.msra.gmra.mxu3 %v1730_v27  ;;  %v1773_v26 = vld [vmem:[%s2306_s4 + $0x160] sm:$0xf]  ;;  %v1978_v27 = vld [vmem:[%s2306_s4 + $0x164] sm:$0xf0]  ;;  %v1646_v32 = vor.u32 %v1946_v25, %v1645_v24 }
  0x32   : > { %v1774_v33 = vor.u32 %v1978_v27, %v1773_v26  ;;  %v1798_v27 = vor.u32 %v1984_v15, %v1797_v14 }
  0x40   : > { %729 = vmatmul.bf16.gmra.mxu0 %v1606_v36  ;;  %809 = vmatmul.bf16.gmra.mxu2 %v1734_v37  ;;  %v1653_v36 = vld [vmem:[%s2306_s4 + $0x70] sm:$0xf]  ;;  %v1948_v37 = vld [vmem:[%s2306_s4 + $0x74] sm:$0xf0] }
  0x41   : > { %898 = vmatmul.bf16.gmra.mxu1 %v1610_v38  ;;  %978 = vmatmul.bf16.gmra.mxu3 %v1738_v39  ;;  %v1781_v38 = vld [vmem:[%s2306_s4 + $0x170] sm:$0xf]  ;;  %v1980_v39 = vld [vmem:[%s2306_s4 + $0x174] sm:$0xf0]  ;;  %v1654_v44 = vor.u32 %v1948_v37, %v1653_v36 }
  0x42   : > { %v1782_v45 = vor.u32 %v1980_v39, %v1781_v38 }
  0x50   : > { %734 = vmatmul.bf16.gmra.mxu0 %v1614_v48  ;;  %814 = vmatmul.bf16.gmra.mxu2 %v1742_v49  ;;  %v2384_v48 = vld [vmem:[%s2783_s2] ss:$0 sm:$0xff] }
  0x51   : > { %903 = vmatmul.bf16.gmra.mxu1 %v1618_v50  ;;  %983 = vmatmul.bf16.gmra.mxu3 %v1746_v51  ;;  %v1661_v49 = vld [vmem:[%s2306_s4 + $0x80] sm:$0xf]  ;;  %v1950_v50 = vld [vmem:[%s2306_s4 + $0x84] sm:$0xf0] }
  0x52   : > { %v1789_v51 = vld [vmem:[%s2306_s4 + $0x180] sm:$0xf]  ;;  %v1662_v57 = vor.u32 %v1950_v50, %v1661_v49  ;;  %v1954_v50 = vld [vmem:[%s2306_s4 + $0xa4] sm:$0xf0] }
  0x53   : > { %v1790_v58 = vor.u32 %v1982_v52, %v1789_v51  ;;  %v1805_v51 = vld [vmem:[%s2306_s4 + $0x1a0] sm:$0xf]  ;;  %v1986_v52 = vld [vmem:[%s2306_s4 + $0x1a4] sm:$0xf0] }
  0x60   : > { %739 = vmatmul.bf16.gmra.mxu0 %v1622_v60  ;;  %819 = vmatmul.bf16.gmra.mxu2 %v1750_v61  ;;  %v1666_v60 = vor.u32 %v1949_v53, %v1663_v54  ;;  %v1794_v61 = vor.u32 %v1981_v55, %v1791_v56  ;;  %v1953_v53 = vld [vmem:[%s2306_s4 + $0xa4] sm:$0xf]  ;;  %v1679_v54 = vld [vmem:[%s2306_s4 + $0xa8] sm:$0xf0] }
  0x61   : > { %908 = vmatmul.bf16.gmra.mxu1 %v1626_v62  ;;  %988 = vmatmul.bf16.gmra.mxu3 %v1754_v63 }
  0x70   : > { %744 = vmatmul.bf16.gmra.mxu0 %v1630_v8  ;;  %824 = vmatmul.bf16.gmra.mxu2 %v1758_v9 }
  0x71   : > { %913 = vmatmul.bf16.gmra.mxu1 %v1634_v10  ;;  %993 = vmatmul.bf16.gmra.mxu3 %v1762_v11  ;;  %v1669_v10 = vld [vmem:[%s2306_s4 + $0x90] sm:$0xf] }
  0x72   : > { %v1670_v26 = vor.u32 %v1952_v13, %v1669_v10 }
  0x80   : > { %749 = vmatmul.bf16.gmra.mxu0 %v1638_v20  ;;  %829 = vmatmul.bf16.gmra.mxu2 %v1766_v21  ;;  %v1983_v20 = vld [vmem:[%s2306_s4 + $0x194] sm:$0xf]  ;;  %v1799_v21 = vld [vmem:[%s2306_s4 + $0x198] sm:$0xf0] }
  0x81   : > { %918 = vmatmul.bf16.gmra.mxu1 %v1642_v22  ;;  %998 = vmatmul.bf16.gmra.mxu3 %v1770_v23  ;;  %v1802_v30 = vor.u32 %v1983_v20, %v1799_v21 }
  0x90   : > { %754 = vmatmul.bf16.gmra.mxu0 %v1646_v32  ;;  %834 = vmatmul.bf16.gmra.mxu2 %v1774_v33 }
  0x91   : > { %923 = vmatmul.bf16.gmra.mxu1 %v1650_v34  ;;  %1003 = vmatmul.bf16.gmra.mxu3 %v1778_v35 }
  0xa0   : > { %759 = vmatmul.bf16.gmra.mxu0 %v1654_v44  ;;  %839 = vmatmul.bf16.gmra.mxu2 %v1782_v45 }
  0xa1   : > { %928 = vmatmul.bf16.gmra.mxu1 %v1658_v46  ;;  %1008 = vmatmul.bf16.gmra.mxu3 %v1786_v47  ;;  %v1677_v46 = vld [vmem:[%s2306_s4 + $0xa0] sm:$0xf] }
  0xad   : > { %v725_v59 = vpop.f32.mrf.mxu0 }
  0xae   : > { %v726_v62 = vadd.f32 %v2384_v48, %v725_v59  ;;  %v894_v63 = vpop.f32.mrf.mxu1 }
  0xb0   : > { %v895_v0 = vadd.f32 %v894_v63, %v726_v62  ;;  %764 = vmatmul.bf16.gmra.mxu0 %v1662_v57  ;;  %844 = vmatmul.bf16.gmra.mxu2 %v1790_v58  ;;  %v1985_v57 = vld [vmem:[%s2306_s4 + $0x1a4] sm:$0xf]  ;;  %v1807_v58 = vld [vmem:[%s2306_s4 + $0x1a8] sm:$0xf0]  ;;  %v1678_v63 = vor.u32 %v1954_v50, %v1677_v46 }
  0xb1   : > { %933 = vmatmul.bf16.gmra.mxu1 %v1666_v60  ;;  %1013 = vmatmul.bf16.gmra.mxu3 %v1794_v61 }
  0xb2   : > { %v1054_v1 = vmax.f32 %v895_v0, 0.0  ;;  %v1806_v0 = vor.u32 %v1986_v52, %v1805_v51 }
  0xb3   : > { %v805_v2 = vpop.f32.mrf.mxu2 }
  0xb4   : > { %v1118_v3 = vpack.c.bf16 %v1054_v1, %v1054_v1  ;;  %v806_v4 = vadd.f32 %v2384_v48, %v805_v2  ;;  %v974_v5 = vpop.f32.mrf.mxu3  ;;  %v1682_v2 = vor.u32 %v1953_v53, %v1679_v54 }
  0xb5   : > { %v727_v6 = vpop.f32.mrf.mxu0 }
  0xb6   : > { %1183 = vst.msk [vmem:[%s2397_s12] sm:$0xf] %vm1182_vm0, %v1118_v3  ;;  %v975_v7 = vadd.f32 %v974_v5, %v806_v4  ;;  %v728_v8 = vadd.f32 %v2384_v48, %v727_v6  ;;  %v896_v9 = vpop.f32.mrf.mxu1  ;;  %v1810_v3 = vor.u32 %v1985_v57, %v1807_v58 }
  0xb8   : > { %v1086_v11 = vmax.f32 %v975_v7, 0.0  ;;  %v897_v12 = vadd.f32 %v896_v9, %v728_v8 }
  0xba   : > { %v1150_v18 = vpack.c.bf16 %v1086_v11, %v1086_v11  ;;  %v1055_v19 = vmax.f32 %v897_v12, 0.0 }
  0xbb   : > { %v807_v22 = vpop.f32.mrf.mxu2 }
  0xbc   : > { %1215 = vst.msk [vmem:[%s2397_s12 + $0x80] sm:$0xf] %vm1182_vm0, %v1150_v18  ;;  %v1119_v23 = vpack.c.bf16 %v1055_v19, %v1055_v19  ;;  %v808_v24 = vadd.f32 %v2384_v48, %v807_v22  ;;  %v976_v25 = vpop.f32.mrf.mxu3  ;;  %v1685_v19 = vld [vmem:[%s2306_s4 + $0xb0] sm:$0xf]  ;;  %v1956_v22 = vld [vmem:[%s2306_s4 + $0xb4] sm:$0xf0] }
  0xbd   : > { %v730_v28 = vpop.f32.mrf.mxu0 }
  0xbe   : > { %1184 = vst.msk [vmem:[%s2397_s12 + $0x4] sm:$0xf] %vm1182_vm0, %v1119_v23  ;;  %v977_v31 = vadd.f32 %v976_v25, %v808_v24  ;;  %v731_v32 = vadd.f32 %v2384_v48, %v730_v28  ;;  %v899_v33 = vpop.f32.mrf.mxu1  ;;  %v1813_v23 = vld [vmem:[%s2306_s4 + $0x1b0] sm:$0xf]  ;;  %v1988_v24 = vld [vmem:[%s2306_s4 + $0x1b4] sm:$0xf0] }
  0xbf   : > { %v1955_v25 = vld [vmem:[%s2306_s4 + $0xb4] sm:$0xf] }
  0xc0   : > { %v1087_v34 = vmax.f32 %v977_v31, 0.0  ;;  %v900_v35 = vadd.f32 %v899_v33, %v731_v32  ;;  %769 = vmatmul.bf16.gmra.mxu0 %v1670_v26  ;;  %849 = vmatmul.bf16.gmra.mxu2 %v1798_v27  ;;  %v1687_v26 = vld [vmem:[%s2306_s4 + $0xb8] sm:$0xf0] }
  0xc1   : > { %938 = vmatmul.bf16.gmra.mxu1 %v1674_v29  ;;  %1018 = vmatmul.bf16.gmra.mxu3 %v1802_v30  ;;  %v1987_v29 = vld [vmem:[%s2306_s4 + $0x1b4] sm:$0xf]  ;;  %v1815_v30 = vld [vmem:[%s2306_s4 + $0x1b8] sm:$0xf0] }
  0xc2   : > { %v1151_v36 = vpack.c.bf16 %v1087_v34, %v1087_v34  ;;  %v1056_v37 = vmax.f32 %v900_v35, 0.0  ;;  %v1686_v35 = vor.u32 %v1956_v22, %v1685_v19 }
  0xc3   : > { %v810_v38 = vpop.f32.mrf.mxu2 }
  0xc4   : > { %1216 = vst.msk [vmem:[%s2397_s12 + $0x84] sm:$0xf] %vm1182_vm0, %v1151_v36  ;;  %v1120_v39 = vpack.c.bf16 %v1056_v37, %v1056_v37  ;;  %v811_v40 = vadd.f32 %v2384_v48, %v810_v38  ;;  %v979_v41 = vpop.f32.mrf.mxu3  ;;  %v1814_v36 = vor.u32 %v1988_v24, %v1813_v23  ;;  %v1690_v38 = vor.u32 %v1955_v25, %v1687_v26 }
  0xc5   : > { %v732_v42 = vpop.f32.mrf.mxu0 }
  0xc6   : > { %1185 = vst.msk [vmem:[%s2397_s12 + $0x8] sm:$0xf] %vm1182_vm0, %v1120_v39  ;;  %v980_v43 = vadd.f32 %v979_v41, %v811_v40  ;;  %v733_v44 = vadd.f32 %v2384_v48, %v732_v42  ;;  %v901_v45 = vpop.f32.mrf.mxu1  ;;  %v1818_v39 = vor.u32 %v1987_v29, %v1815_v30 }
  0xc8   : > { %v1088_v47 = vmax.f32 %v980_v43, 0.0  ;;  %v902_v49 = vadd.f32 %v901_v45, %v733_v44 }
  0xca   : > { %v1152_v55 = vpack.c.bf16 %v1088_v47, %v1088_v47  ;;  %v1057_v56 = vmax.f32 %v902_v49, 0.0 }
  0xcb   : > { %v812_v59 = vpop.f32.mrf.mxu2 }
  0xcc   : > { %1217 = vst.msk [vmem:[%s2397_s12 + $0x88] sm:$0xf] %vm1182_vm0, %v1152_v55  ;;  %v1121_v60 = vpack.c.bf16 %v1057_v56, %v1057_v56  ;;  %v813_v61 = vadd.f32 %v2384_v48, %v812_v59  ;;  %v981_v62 = vpop.f32.mrf.mxu3  ;;  %v1693_v56 = vld [vmem:[%s2306_s4 + $0xc0] sm:$0xf]  ;;  %v1958_v59 = vld [vmem:[%s2306_s4 + $0xc4] sm:$0xf0] }
  0xcd   : > { %v735_v1 = vpop.f32.mrf.mxu0 }
  0xce   : > { %1186 = vst.msk [vmem:[%s2397_s12 + $0xc] sm:$0xf] %vm1182_vm0, %v1121_v60  ;;  %v982_v4 = vadd.f32 %v981_v62, %v813_v61  ;;  %v736_v5 = vadd.f32 %v2384_v48, %v735_v1  ;;  %v904_v6 = vpop.f32.mrf.mxu1  ;;  %v1821_v60 = vld [vmem:[%s2306_s4 + $0x1c0] sm:$0xf]  ;;  %v1990_v61 = vld [vmem:[%s2306_s4 + $0x1c4] sm:$0xf0] }
  0xcf   : > { %v1957_v62 = vld [vmem:[%s2306_s4 + $0xc4] sm:$0xf] }
  0xd0   : > { %v1089_v7 = vmax.f32 %v982_v4, 0.0  ;;  %v905_v8 = vadd.f32 %v904_v6, %v736_v5  ;;  %774 = vmatmul.bf16.gmra.mxu0 %v1678_v63  ;;  %854 = vmatmul.bf16.gmra.mxu2 %v1806_v0  ;;  %v1695_v63 = vld [vmem:[%s2306_s4 + $0xc8] sm:$0xf0] }
  0xd1   : > { %943 = vmatmul.bf16.gmra.mxu1 %v1682_v2  ;;  %1023 = vmatmul.bf16.gmra.mxu3 %v1810_v3  ;;  %v1989_v2 = vld [vmem:[%s2306_s4 + $0x1c4] sm:$0xf]  ;;  %v1823_v3 = vld [vmem:[%s2306_s4 + $0x1c8] sm:$0xf0] }
  0xd2   : > { %v1153_v9 = vpack.c.bf16 %v1089_v7, %v1089_v7  ;;  %v1058_v10 = vmax.f32 %v905_v8, 0.0  ;;  %v1694_v8 = vor.u32 %v1958_v59, %v1693_v56 }
  0xd3   : > { %v815_v11 = vpop.f32.mrf.mxu2 }
  0xd4   : > { %1218 = vst.msk [vmem:[%s2397_s12 + $0x8c] sm:$0xf] %vm1182_vm0, %v1153_v9  ;;  %v1122_v12 = vpack.c.bf16 %v1058_v10, %v1058_v10  ;;  %v816_v13 = vadd.f32 %v2384_v48, %v815_v11  ;;  %v984_v14 = vpop.f32.mrf.mxu3  ;;  %v1822_v9 = vor.u32 %v1990_v61, %v1821_v60  ;;  %v1698_v11 = vor.u32 %v1957_v62, %v1695_v63 }
  0xd5   : > { %v737_v15 = vpop.f32.mrf.mxu0 }
  0xd6   : > { %1187 = vst.msk [vmem:[%s2397_s12 + $0x10] sm:$0xf] %vm1182_vm0, %v1122_v12  ;;  %v985_v16 = vadd.f32 %v984_v14, %v816_v13  ;;  %v738_v17 = vadd.f32 %v2384_v48, %v737_v15  ;;  %v906_v18 = vpop.f32.mrf.mxu1  ;;  %v1826_v12 = vor.u32 %v1989_v2, %v1823_v3 }
  0xd8   : > { %v1090_v20 = vmax.f32 %v985_v16, 0.0  ;;  %v907_v21 = vadd.f32 %v906_v18, %v738_v17 }
  0xda   : > { %v1154_v27 = vpack.c.bf16 %v1090_v20, %v1090_v20  ;;  %v1059_v28 = vmax.f32 %v907_v21, 0.0 }
  0xdb   : > { %v817_v31 = vpop.f32.mrf.mxu2 }
  0xdc   : > { %1219 = vst.msk [vmem:[%s2397_s12 + $0x90] sm:$0xf] %vm1182_vm0, %v1154_v27  ;;  %v1123_v32 = vpack.c.bf16 %v1059_v28, %v1059_v28  ;;  %v818_v33 = vadd.f32 %v2384_v48, %v817_v31  ;;  %v986_v34 = vpop.f32.mrf.mxu3  ;;  %v1701_v28 = vld [vmem:[%s2306_s4 + $0xd0] sm:$0xf]  ;;  %v1960_v31 = vld [vmem:[%s2306_s4 + $0xd4] sm:$0xf0] }
  0xdd   : > { %v740_v37 = vpop.f32.mrf.mxu0 }
  0xde   : > { %1188 = vst.msk [vmem:[%s2397_s12 + $0x14] sm:$0xf] %vm1182_vm0, %v1123_v32  ;;  %v987_v40 = vadd.f32 %v986_v34, %v818_v33  ;;  %v741_v41 = vadd.f32 %v2384_v48, %v740_v37  ;;  %v909_v42 = vpop.f32.mrf.mxu1  ;;  %v1829_v32 = vld [vmem:[%s2306_s4 + $0x1d0] sm:$0xf]  ;;  %v1992_v33 = vld [vmem:[%s2306_s4 + $0x1d4] sm:$0xf0] }
  0xdf   : > { %v1959_v34 = vld [vmem:[%s2306_s4 + $0xd4] sm:$0xf] }
  0xe0   : > { %v1091_v43 = vmax.f32 %v987_v40, 0.0  ;;  %v910_v44 = vadd.f32 %v909_v42, %v741_v41  ;;  %779 = vmatmul.bf16.gmra.mxu0 %v1686_v35  ;;  %859 = vmatmul.bf16.gmra.mxu2 %v1814_v36  ;;  %v1703_v35 = vld [vmem:[%s2306_s4 + $0xd8] sm:$0xf0] }
  0xe1   : > { %948 = vmatmul.bf16.gmra.mxu1 %v1690_v38  ;;  %1028 = vmatmul.bf16.gmra.mxu3 %v1818_v39  ;;  %v1991_v38 = vld [vmem:[%s2306_s4 + $0x1d4] sm:$0xf]  ;;  %v1831_v39 = vld [vmem:[%s2306_s4 + $0x1d8] sm:$0xf0] }
  0xe2   : > { %v1155_v45 = vpack.c.bf16 %v1091_v43, %v1091_v43  ;;  %v1060_v46 = vmax.f32 %v910_v44, 0.0  ;;  %v1702_v44 = vor.u32 %v1960_v31, %v1701_v28 }
  0xe3   : > { %v820_v47 = vpop.f32.mrf.mxu2 }
  0xe4   : > { %1220 = vst.msk [vmem:[%s2397_s12 + $0x94] sm:$0xf] %vm1182_vm0, %v1155_v45  ;;  %v1124_v49 = vpack.c.bf16 %v1060_v46, %v1060_v46  ;;  %v821_v50 = vadd.f32 %v2384_v48, %v820_v47  ;;  %v989_v51 = vpop.f32.mrf.mxu3  ;;  %v1830_v45 = vor.u32 %v1992_v33, %v1829_v32  ;;  %v1706_v47 = vor.u32 %v1959_v34, %v1703_v35 }
  0xe5   : > { %v742_v52 = vpop.f32.mrf.mxu0 }
  0xe6   : > { %1189 = vst.msk [vmem:[%s2397_s12 + $0x18] sm:$0xf] %vm1182_vm0, %v1124_v49  ;;  %v990_v53 = vadd.f32 %v989_v51, %v821_v50  ;;  %v743_v54 = vadd.f32 %v2384_v48, %v742_v52  ;;  %v911_v55 = vpop.f32.mrf.mxu1  ;;  %v1834_v49 = vor.u32 %v1991_v38, %v1831_v39 }
  0xe8   : > { %v1092_v57 = vmax.f32 %v990_v53, 0.0  ;;  %v912_v58 = vadd.f32 %v911_v55, %v743_v54 }
  0xea   : > { %v1156_v0 = vpack.c.bf16 %v1092_v57, %v1092_v57  ;;  %v1061_v1 = vmax.f32 %v912_v58, 0.0 }
  0xeb   : > { %v822_v4 = vpop.f32.mrf.mxu2 }
  0xec   : > { %1221 = vst.msk [vmem:[%s2397_s12 + $0x98] sm:$0xf] %vm1182_vm0, %v1156_v0  ;;  %v1125_v5 = vpack.c.bf16 %v1061_v1, %v1061_v1  ;;  %v823_v6 = vadd.f32 %v2384_v48, %v822_v4  ;;  %v991_v7 = vpop.f32.mrf.mxu3  ;;  %v1709_v1 = vld [vmem:[%s2306_s4 + $0xe0] sm:$0xf]  ;;  %v1962_v4 = vld [vmem:[%s2306_s4 + $0xe4] sm:$0xf0] }
  0xed   : > { %v745_v10 = vpop.f32.mrf.mxu0 }
  0xee   : > { %1190 = vst.msk [vmem:[%s2397_s12 + $0x1c] sm:$0xf] %vm1182_vm0, %v1125_v5  ;;  %v992_v13 = vadd.f32 %v991_v7, %v823_v6  ;;  %v746_v14 = vadd.f32 %v2384_v48, %v745_v10  ;;  %v914_v15 = vpop.f32.mrf.mxu1  ;;  %v1837_v5 = vld [vmem:[%s2306_s4 + $0x1e0] sm:$0xf]  ;;  %v1994_v6 = vld [vmem:[%s2306_s4 + $0x1e4] sm:$0xf0] }
  0xef   : > { %v1961_v7 = vld [vmem:[%s2306_s4 + $0xe4] sm:$0xf] }
  0xf0   : > { %v1093_v16 = vmax.f32 %v992_v13, 0.0  ;;  %v915_v17 = vadd.f32 %v914_v15, %v746_v14  ;;  %784 = vmatmul.bf16.gmra.mxu0 %v1694_v8  ;;  %864 = vmatmul.bf16.gmra.mxu2 %v1822_v9  ;;  %v1711_v8 = vld [vmem:[%s2306_s4 + $0xe8] sm:$0xf0] }
  0xf1   : > { %953 = vmatmul.bf16.gmra.mxu1 %v1698_v11  ;;  %1033 = vmatmul.bf16.gmra.mxu3 %v1826_v12  ;;  %v1993_v11 = vld [vmem:[%s2306_s4 + $0x1e4] sm:$0xf]  ;;  %v1839_v12 = vld [vmem:[%s2306_s4 + $0x1e8] sm:$0xf0] }
  0xf2   : > { %v1157_v18 = vpack.c.bf16 %v1093_v16, %v1093_v16  ;;  %v1062_v19 = vmax.f32 %v915_v17, 0.0  ;;  %v1710_v17 = vor.u32 %v1962_v4, %v1709_v1 }
  0xf3   : > { %v825_v20 = vpop.f32.mrf.mxu2 }
  0xf4   : > { %1222 = vst.msk [vmem:[%s2397_s12 + $0x9c] sm:$0xf] %vm1182_vm0, %v1157_v18  ;;  %v1126_v21 = vpack.c.bf16 %v1062_v19, %v1062_v19  ;;  %v826_v22 = vadd.f32 %v2384_v48, %v825_v20  ;;  %v994_v23 = vpop.f32.mrf.mxu3  ;;  %v1838_v18 = vor.u32 %v1994_v6, %v1837_v5  ;;  %v1714_v20 = vor.u32 %v1961_v7, %v1711_v8 }
  0xf5   : > { %v747_v24 = vpop.f32.mrf.mxu0 }
  0xf6   : > { %1191 = vst.msk [vmem:[%s2397_s12 + $0x20] sm:$0xf] %vm1182_vm0, %v1126_v21  ;;  %v995_v25 = vadd.f32 %v994_v23, %v826_v22  ;;  %v748_v26 = vadd.f32 %v2384_v48, %v747_v24  ;;  %v916_v27 = vpop.f32.mrf.mxu1  ;;  %v1842_v21 = vor.u32 %v1993_v11, %v1839_v12 }
  0xf8   : > { %v1094_v29 = vmax.f32 %v995_v25, 0.0  ;;  %v917_v30 = vadd.f32 %v916_v27, %v748_v26 }
  0xfa   : > { %v1158_v36 = vpack.c.bf16 %v1094_v29, %v1094_v29  ;;  %v1063_v37 = vmax.f32 %v917_v30, 0.0 }
  0xfb   : > { %v827_v40 = vpop.f32.mrf.mxu2 }
  0xfc   : > { %1223 = vst.msk [vmem:[%s2397_s12 + $0xa0] sm:$0xf] %vm1182_vm0, %v1158_v36  ;;  %v1127_v41 = vpack.c.bf16 %v1063_v37, %v1063_v37  ;;  %v828_v42 = vadd.f32 %v2384_v48, %v827_v40  ;;  %v996_v43 = vpop.f32.mrf.mxu3  ;;  %v1717_v37 = vld [vmem:[%s2306_s4 + $0xf0] sm:$0xf]  ;;  %v1964_v40 = vld [vmem:[%s2306_s4 + $0xf4] sm:$0xf0] }
  0xfd   : > { %v750_v46 = vpop.f32.mrf.mxu0 }
  0xfe   : > { %1192 = vst.msk [vmem:[%s2397_s12 + $0x24] sm:$0xf] %vm1182_vm0, %v1127_v41  ;;  %v997_v50 = vadd.f32 %v996_v43, %v828_v42  ;;  %v751_v51 = vadd.f32 %v2384_v48, %v750_v46  ;;  %v919_v52 = vpop.f32.mrf.mxu1  ;;  %v1845_v41 = vld [vmem:[%s2306_s4 + $0x1f0] sm:$0xf]  ;;  %v1996_v42 = vld [vmem:[%s2306_s4 + $0x1f4] sm:$0xf0] }
  0xff   : > { %v1963_v43 = vld [vmem:[%s2306_s4 + $0xf4] sm:$0xf] }
 0x100   : > { %v1095_v53 = vmax.f32 %v997_v50, 0.0  ;;  %v920_v54 = vadd.f32 %v919_v52, %v751_v51  ;;  %789 = vmatmul.bf16.gmra.mxu0 %v1702_v44  ;;  %869 = vmatmul.bf16.gmra.mxu2 %v1830_v45  ;;  %v1719_v44 = vld [vmem:[%s2306_s4 + $0xf8] sm:$0xf0] }
 0x101   : > { %958 = vmatmul.bf16.gmra.mxu1 %v1706_v47  ;;  %1038 = vmatmul.bf16.gmra.mxu3 %v1834_v49  ;;  %v1995_v47 = vld [vmem:[%s2306_s4 + $0x1f4] sm:$0xf]  ;;  %v1847_v49 = vld [vmem:[%s2306_s4 + $0x1f8] sm:$0xf0] }
 0x102   : > { %v1159_v55 = vpack.c.bf16 %v1095_v53, %v1095_v53  ;;  %v1064_v56 = vmax.f32 %v920_v54, 0.0  ;;  %v1718_v54 = vor.u32 %v1964_v40, %v1717_v37 }
 0x103   : > { %v830_v57 = vpop.f32.mrf.mxu2 }
 0x104   : > { %1224 = vst.msk [vmem:[%s2397_s12 + $0xa4] sm:$0xf] %vm1182_vm0, %v1159_v55  ;;  %v1128_v58 = vpack.c.bf16 %v1064_v56, %v1064_v56  ;;  %v831_v59 = vadd.f32 %v2384_v48, %v830_v57  ;;  %v999_v60 = vpop.f32.mrf.mxu3  ;;  %v1846_v55 = vor.u32 %v1996_v42, %v1845_v41  ;;  %v1722_v57 = vor.u32 %v1963_v43, %v1719_v44 }
 0x105   : > { %v752_v61 = vpop.f32.mrf.mxu0 }
 0x106   : > { %1193 = vst.msk [vmem:[%s2397_s12 + $0x28] sm:$0xf] %vm1182_vm0, %v1128_v58  ;;  %v1000_v62 = vadd.f32 %v999_v60, %v831_v59  ;;  %v753_v63 = vadd.f32 %v2384_v48, %v752_v61  ;;  %v921_v0 = vpop.f32.mrf.mxu1  ;;  %v1850_v58 = vor.u32 %v1995_v47, %v1847_v49 }
 0x108   : > { %v1096_v2 = vmax.f32 %v1000_v62, 0.0  ;;  %v922_v3 = vadd.f32 %v921_v0, %v753_v63 }
 0x10a   : > { %v1160_v9 = vpack.c.bf16 %v1096_v2, %v1096_v2  ;;  %v1065_v10 = vmax.f32 %v922_v3, 0.0 }
 0x10b   : > { %v832_v13 = vpop.f32.mrf.mxu2 }
 0x10c   : > { %1225 = vst.msk [vmem:[%s2397_s12 + $0xa8] sm:$0xf] %vm1182_vm0, %v1160_v9  ;;  %v1129_v14 = vpack.c.bf16 %v1065_v10, %v1065_v10  ;;  %v833_v15 = vadd.f32 %v2384_v48, %v832_v13  ;;  %v1001_v16 = vpop.f32.mrf.mxu3 }
 0x10d   : > { %v755_v19 = vpop.f32.mrf.mxu0 }
 0x10e   : > { %1194 = vst.msk [vmem:[%s2397_s12 + $0x2c] sm:$0xf] %vm1182_vm0, %v1129_v14  ;;  %v1002_v22 = vadd.f32 %v1001_v16, %v833_v15  ;;  %v756_v23 = vadd.f32 %v2384_v48, %v755_v19  ;;  %v924_v24 = vpop.f32.mrf.mxu1 }
 0x110   : > { %v1097_v25 = vmax.f32 %v1002_v22, 0.0  ;;  %v925_v26 = vadd.f32 %v924_v24, %v756_v23  ;;  %794 = vmatmul.bf16.gmra.mxu0 %v1710_v17  ;;  %874 = vmatmul.bf16.gmra.mxu2 %v1838_v18 }
 0x111   : > { %963 = vmatmul.bf16.gmra.mxu1 %v1714_v20  ;;  %1043 = vmatmul.bf16.gmra.mxu3 %v1842_v21 }
 0x112   : > { %v1161_v27 = vpack.c.bf16 %v1097_v25, %v1097_v25  ;;  %v1066_v28 = vmax.f32 %v925_v26, 0.0 }
 0x113   : > { %v835_v29 = vpop.f32.mrf.mxu2 }
 0x114   : > { %1226 = vst.msk [vmem:[%s2397_s12 + $0xac] sm:$0xf] %vm1182_vm0, %v1161_v27  ;;  %v1130_v30 = vpack.c.bf16 %v1066_v28, %v1066_v28  ;;  %v836_v31 = vadd.f32 %v2384_v48, %v835_v29  ;;  %v1004_v32 = vpop.f32.mrf.mxu3 }
 0x115   : > { %v757_v33 = vpop.f32.mrf.mxu0 }
 0x116   : > { %1195 = vst.msk [vmem:[%s2397_s12 + $0x30] sm:$0xf] %vm1182_vm0, %v1130_v30  ;;  %v1005_v34 = vadd.f32 %v1004_v32, %v836_v31  ;;  %v758_v35 = vadd.f32 %v2384_v48, %v757_v33  ;;  %v926_v36 = vpop.f32.mrf.mxu1 }
 0x118   : > { %v1098_v38 = vmax.f32 %v1005_v34, 0.0  ;;  %v927_v39 = vadd.f32 %v926_v36, %v758_v35 }
 0x11a   : > { %v1162_v45 = vpack.c.bf16 %v1098_v38, %v1098_v38  ;;  %v1067_v46 = vmax.f32 %v927_v39, 0.0 }
 0x11b   : > { %v837_v50 = vpop.f32.mrf.mxu2 }
 0x11c   : > { %1227 = vst.msk [vmem:[%s2397_s12 + $0xb0] sm:$0xf] %vm1182_vm0, %v1162_v45  ;;  %v1131_v51 = vpack.c.bf16 %v1067_v46, %v1067_v46  ;;  %v838_v52 = vadd.f32 %v2384_v48, %v837_v50  ;;  %v1006_v53 = vpop.f32.mrf.mxu3 }
 0x11d   : > { %v760_v56 = vpop.f32.mrf.mxu0 }
 0x11e   : > { %1196 = vst.msk [vmem:[%s2397_s12 + $0x34] sm:$0xf] %vm1182_vm0, %v1131_v51  ;;  %v1007_v59 = vadd.f32 %v1006_v53, %v838_v52  ;;  %v761_v60 = vadd.f32 %v2384_v48, %v760_v56  ;;  %v929_v61 = vpop.f32.mrf.mxu1 }
 0x120   : > { %v1099_v62 = vmax.f32 %v1007_v59, 0.0  ;;  %v930_v63 = vadd.f32 %v929_v61, %v761_v60  ;;  %799 = vmatmul.bf16.gmra.mxu0 %v1718_v54  ;;  %879 = vmatmul.bf16.gmra.mxu2 %v1846_v55 }
 0x121   : > { %968 = vmatmul.bf16.gmra.mxu1 %v1722_v57  ;;  %1048 = vmatmul.bf16.gmra.mxu3 %v1850_v58 }
 0x122   : > { %v1163_v0 = vpack.c.bf16 %v1099_v62, %v1099_v62  ;;  %v1068_v1 = vmax.f32 %v930_v63, 0.0 }
 0x123   : > { %v840_v2 = vpop.f32.mrf.mxu2 }
 0x124   : > { %1228 = vst.msk [vmem:[%s2397_s12 + $0xb4] sm:$0xf] %vm1182_vm0, %v1163_v0  ;;  %v1132_v3 = vpack.c.bf16 %v1068_v1, %v1068_v1  ;;  %v841_v4 = vadd.f32 %v2384_v48, %v840_v2  ;;  %v1009_v5 = vpop.f32.mrf.mxu3 }
 0x125   : > { %v762_v6 = vpop.f32.mrf.mxu0 }
 0x126   : > { %1197 = vst.msk [vmem:[%s2397_s12 + $0x38] sm:$0xf] %vm1182_vm0, %v1132_v3  ;;  %v1010_v7 = vadd.f32 %v1009_v5, %v841_v4  ;;  %v763_v8 = vadd.f32 %v2384_v48, %v762_v6  ;;  %v931_v9 = vpop.f32.mrf.mxu1 }
 0x128   : > { %v1100_v10 = vmax.f32 %v1010_v7, 0.0  ;;  %v932_v11 = vadd.f32 %v931_v9, %v763_v8 }
 0x12a   : > { %v1164_v12 = vpack.c.bf16 %v1100_v10, %v1100_v10  ;;  %v1069_v13 = vmax.f32 %v932_v11, 0.0 }
 0x12b   : > { %v842_v14 = vpop.f32.mrf.mxu2 }
 0x12c   : > { %1229 = vst.msk [vmem:[%s2397_s12 + $0xb8] sm:$0xf] %vm1182_vm0, %v1164_v12  ;;  %v1133_v15 = vpack.c.bf16 %v1069_v13, %v1069_v13  ;;  %v843_v16 = vadd.f32 %v2384_v48, %v842_v14  ;;  %v1011_v17 = vpop.f32.mrf.mxu3 }
 0x12d   : > { %v765_v18 = vpop.f32.mrf.mxu0 }
 0x12e   : > { %1198 = vst.msk [vmem:[%s2397_s12 + $0x3c] sm:$0xf] %vm1182_vm0, %v1133_v15  ;;  %v1012_v19 = vadd.f32 %v1011_v17, %v843_v16  ;;  %v766_v20 = vadd.f32 %v2384_v48, %v765_v18  ;;  %v934_v21 = vpop.f32.mrf.mxu1 }
 0x130   : > { %v1101_v22 = vmax.f32 %v1012_v19, 0.0  ;;  %v935_v23 = vadd.f32 %v934_v21, %v766_v20 }
 0x132   : > { %v1165_v24 = vpack.c.bf16 %v1101_v22, %v1101_v22  ;;  %v1070_v25 = vmax.f32 %v935_v23, 0.0 }
 0x133   : > { %v845_v26 = vpop.f32.mrf.mxu2 }
 0x134   : > { %1230 = vst.msk [vmem:[%s2397_s12 + $0xbc] sm:$0xf] %vm1182_vm0, %v1165_v24  ;;  %v1134_v27 = vpack.c.bf16 %v1070_v25, %v1070_v25  ;;  %v846_v28 = vadd.f32 %v2384_v48, %v845_v26  ;;  %v1014_v29 = vpop.f32.mrf.mxu3 }
 0x135   : > { %v767_v30 = vpop.f32.mrf.mxu0 }
 0x136   : > { %1199 = vst.msk [vmem:[%s2397_s12 + $0x40] sm:$0xf] %vm1182_vm0, %v1134_v27  ;;  %v1015_v31 = vadd.f32 %v1014_v29, %v846_v28  ;;  %v768_v32 = vadd.f32 %v2384_v48, %v767_v30  ;;  %v936_v33 = vpop.f32.mrf.mxu1 }
 0x138   : > { %v1102_v34 = vmax.f32 %v1015_v31, 0.0  ;;  %v937_v35 = vadd.f32 %v936_v33, %v768_v32 }
 0x13a   : > { %v1166_v36 = vpack.c.bf16 %v1102_v34, %v1102_v34  ;;  %v1071_v37 = vmax.f32 %v937_v35, 0.0 }
 0x13b   : > { %v847_v38 = vpop.f32.mrf.mxu2 }
 0x13c   : > { %1231 = vst.msk [vmem:[%s2397_s12 + $0xc0] sm:$0xf] %vm1182_vm0, %v1166_v36  ;;  %v1135_v39 = vpack.c.bf16 %v1071_v37, %v1071_v37  ;;  %v848_v40 = vadd.f32 %v2384_v48, %v847_v38  ;;  %v1016_v41 = vpop.f32.mrf.mxu3 }
 0x13d   : > { %v770_v42 = vpop.f32.mrf.mxu0 }
 0x13e   : > { %1200 = vst.msk [vmem:[%s2397_s12 + $0x44] sm:$0xf] %vm1182_vm0, %v1135_v39  ;;  %v1017_v43 = vadd.f32 %v1016_v41, %v848_v40  ;;  %v771_v44 = vadd.f32 %v2384_v48, %v770_v42  ;;  %v939_v45 = vpop.f32.mrf.mxu1 }
 0x140   : > { %v1103_v46 = vmax.f32 %v1017_v43, 0.0  ;;  %v940_v47 = vadd.f32 %v939_v45, %v771_v44 }
 0x142   : > { %v1167_v49 = vpack.c.bf16 %v1103_v46, %v1103_v46  ;;  %v1072_v50 = vmax.f32 %v940_v47, 0.0 }
 0x143   : > { %v850_v51 = vpop.f32.mrf.mxu2 }
 0x144   : > { %1232 = vst.msk [vmem:[%s2397_s12 + $0xc4] sm:$0xf] %vm1182_vm0, %v1167_v49  ;;  %v1136_v52 = vpack.c.bf16 %v1072_v50, %v1072_v50  ;;  %v851_v53 = vadd.f32 %v2384_v48, %v850_v51  ;;  %v1019_v54 = vpop.f32.mrf.mxu3 }
 0x145   : > { %v772_v55 = vpop.f32.mrf.mxu0 }
 0x146   : > { %1201 = vst.msk [vmem:[%s2397_s12 + $0x48] sm:$0xf] %vm1182_vm0, %v1136_v52  ;;  %v1020_v56 = vadd.f32 %v1019_v54, %v851_v53  ;;  %v773_v57 = vadd.f32 %v2384_v48, %v772_v55  ;;  %v941_v58 = vpop.f32.mrf.mxu1 }
 0x148   : > { %v1104_v59 = vmax.f32 %v1020_v56, 0.0  ;;  %v942_v60 = vadd.f32 %v941_v58, %v773_v57 }
 0x14a   : > { %v1168_v61 = vpack.c.bf16 %v1104_v59, %v1104_v59  ;;  %v1073_v62 = vmax.f32 %v942_v60, 0.0 }
 0x14b   : > { %v852_v63 = vpop.f32.mrf.mxu2 }
 0x14c   : > { %1233 = vst.msk [vmem:[%s2397_s12 + $0xc8] sm:$0xf] %vm1182_vm0, %v1168_v61  ;;  %v1137_v0 = vpack.c.bf16 %v1073_v62, %v1073_v62  ;;  %v853_v1 = vadd.f32 %v2384_v48, %v852_v63  ;;  %v1021_v2 = vpop.f32.mrf.mxu3 }
 0x14d   : > { %v775_v3 = vpop.f32.mrf.mxu0 }
 0x14e   : > { %1202 = vst.msk [vmem:[%s2397_s12 + $0x4c] sm:$0xf] %vm1182_vm0, %v1137_v0  ;;  %v1022_v4 = vadd.f32 %v1021_v2, %v853_v1  ;;  %v776_v5 = vadd.f32 %v2384_v48, %v775_v3  ;;  %v944_v6 = vpop.f32.mrf.mxu1 }
 0x150   : > { %v1105_v7 = vmax.f32 %v1022_v4, 0.0  ;;  %v945_v8 = vadd.f32 %v944_v6, %v776_v5 }
 0x152   : > { %v1169_v9 = vpack.c.bf16 %v1105_v7, %v1105_v7  ;;  %v1074_v10 = vmax.f32 %v945_v8, 0.0 }
 0x153   : > { %v855_v11 = vpop.f32.mrf.mxu2 }
 0x154   : > { %1234 = vst.msk [vmem:[%s2397_s12 + $0xcc] sm:$0xf] %vm1182_vm0, %v1169_v9  ;;  %v1138_v12 = vpack.c.bf16 %v1074_v10, %v1074_v10  ;;  %v856_v13 = vadd.f32 %v2384_v48, %v855_v11  ;;  %v1024_v14 = vpop.f32.mrf.mxu3 }
 0x155   : > { %v777_v15 = vpop.f32.mrf.mxu0 }
 0x156   : > { %1203 = vst.msk [vmem:[%s2397_s12 + $0x50] sm:$0xf] %vm1182_vm0, %v1138_v12  ;;  %v1025_v16 = vadd.f32 %v1024_v14, %v856_v13  ;;  %v778_v17 = vadd.f32 %v2384_v48, %v777_v15  ;;  %v946_v18 = vpop.f32.mrf.mxu1 }
 0x158   : > { %v1106_v19 = vmax.f32 %v1025_v16, 0.0  ;;  %v947_v20 = vadd.f32 %v946_v18, %v778_v17 }
 0x15a   : > { %v1170_v21 = vpack.c.bf16 %v1106_v19, %v1106_v19  ;;  %v1075_v22 = vmax.f32 %v947_v20, 0.0 }
 0x15b   : > { %v857_v23 = vpop.f32.mrf.mxu2 }
 0x15c   : > { %1235 = vst.msk [vmem:[%s2397_s12 + $0xd0] sm:$0xf] %vm1182_vm0, %v1170_v21  ;;  %v1139_v24 = vpack.c.bf16 %v1075_v22, %v1075_v22  ;;  %v858_v25 = vadd.f32 %v2384_v48, %v857_v23  ;;  %v1026_v26 = vpop.f32.mrf.mxu3 }
 0x15d   : > { %v780_v27 = vpop.f32.mrf.mxu0 }
 0x15e   : > { %1204 = vst.msk [vmem:[%s2397_s12 + $0x54] sm:$0xf] %vm1182_vm0, %v1139_v24  ;;  %v1027_v28 = vadd.f32 %v1026_v26, %v858_v25  ;;  %v781_v29 = vadd.f32 %v2384_v48, %v780_v27  ;;  %v949_v30 = vpop.f32.mrf.mxu1 }
 0x160   : > { %v1107_v31 = vmax.f32 %v1027_v28, 0.0  ;;  %v950_v32 = vadd.f32 %v949_v30, %v781_v29 }
 0x162   : > { %v1171_v33 = vpack.c.bf16 %v1107_v31, %v1107_v31  ;;  %v1076_v34 = vmax.f32 %v950_v32, 0.0 }
 0x163   : > { %v860_v35 = vpop.f32.mrf.mxu2 }
 0x164   : > { %1236 = vst.msk [vmem:[%s2397_s12 + $0xd4] sm:$0xf] %vm1182_vm0, %v1171_v33  ;;  %v1140_v36 = vpack.c.bf16 %v1076_v34, %v1076_v34  ;;  %v861_v37 = vadd.f32 %v2384_v48, %v860_v35  ;;  %v1029_v38 = vpop.f32.mrf.mxu3  ;;  %v2121_v34 = vld [vmem:[%s2783_s2] ss:$0 sm:$0xff] }
 0x165   : > { %v782_v39 = vpop.f32.mrf.mxu0 }
 0x166   : > { %1205 = vst.msk [vmem:[%s2397_s12 + $0x58] sm:$0xf] %vm1182_vm0, %v1140_v36  ;;  %v1030_v40 = vadd.f32 %v1029_v38, %v861_v37  ;;  %v783_v41 = vadd.f32 %v2384_v48, %v782_v39  ;;  %v951_v42 = vpop.f32.mrf.mxu1 }
 0x168   : > { %v1108_v43 = vmax.f32 %v1030_v40, 0.0  ;;  %v952_v44 = vadd.f32 %v951_v42, %v783_v41 }
 0x16a   : > { %v1172_v45 = vpack.c.bf16 %v1108_v43, %v1108_v43  ;;  %v1077_v46 = vmax.f32 %v952_v44, 0.0 }
 0x16b   : > { %v862_v47 = vpop.f32.mrf.mxu2 }
 0x16c   : > { %1237 = vst.msk [vmem:[%s2397_s12 + $0xd8] sm:$0xf] %vm1182_vm0, %v1172_v45  ;;  %v1141_v49 = vpack.c.bf16 %v1077_v46, %v1077_v46  ;;  %v863_v50 = vadd.f32 %v2384_v48, %v862_v47  ;;  %v1031_v51 = vpop.f32.mrf.mxu3 }
 0x16d   : > { %v785_v52 = vpop.f32.mrf.mxu0 }
 0x16e   : > { %1206 = vst.msk [vmem:[%s2397_s12 + $0x5c] sm:$0xf] %vm1182_vm0, %v1141_v49  ;;  %v1032_v53 = vadd.f32 %v1031_v51, %v863_v50  ;;  %v786_v54 = vadd.f32 %v2384_v48, %v785_v52  ;;  %v954_v55 = vpop.f32.mrf.mxu1 }
 0x170   : > { %v1109_v56 = vmax.f32 %v1032_v53, 0.0  ;;  %v955_v57 = vadd.f32 %v954_v55, %v786_v54 }
 0x172   : > { %v1173_v58 = vpack.c.bf16 %v1109_v56, %v1109_v56  ;;  %v1078_v59 = vmax.f32 %v955_v57, 0.0 }
 0x173   : > { %v865_v60 = vpop.f32.mrf.mxu2 }
 0x174   : > { %1238 = vst.msk [vmem:[%s2397_s12 + $0xdc] sm:$0xf] %vm1182_vm0, %v1173_v58  ;;  %v1142_v61 = vpack.c.bf16 %v1078_v59, %v1078_v59  ;;  %v866_v62 = vadd.f32 %v2384_v48, %v865_v60  ;;  %v1034_v63 = vpop.f32.mrf.mxu3 }
 0x175   : > { %v787_v0 = vpop.f32.mrf.mxu0 }
 0x176   : > { %1207 = vst.msk [vmem:[%s2397_s12 + $0x60] sm:$0xf] %vm1182_vm0, %v1142_v61  ;;  %v1035_v1 = vadd.f32 %v1034_v63, %v866_v62  ;;  %v788_v2 = vadd.f32 %v2384_v48, %v787_v0  ;;  %v956_v3 = vpop.f32.mrf.mxu1 }
 0x178   : > { %v1110_v4 = vmax.f32 %v1035_v1, 0.0  ;;  %v957_v5 = vadd.f32 %v956_v3, %v788_v2 }
 0x17a   : > { %v1174_v6 = vpack.c.bf16 %v1110_v4, %v1110_v4  ;;  %v1079_v7 = vmax.f32 %v957_v5, 0.0 }
 0x17b   : > { %v867_v8 = vpop.f32.mrf.mxu2 }
 0x17c   : > { %1239 = vst.msk [vmem:[%s2397_s12 + $0xe0] sm:$0xf] %vm1182_vm0, %v1174_v6  ;;  %v1143_v9 = vpack.c.bf16 %v1079_v7, %v1079_v7  ;;  %v868_v10 = vadd.f32 %v2384_v48, %v867_v8  ;;  %v1036_v11 = vpop.f32.mrf.mxu3 }
 0x17d   : > { %v790_v12 = vpop.f32.mrf.mxu0 }
 0x17e   : > { %1208 = vst.msk [vmem:[%s2397_s12 + $0x64] sm:$0xf] %vm1182_vm0, %v1143_v9  ;;  %v1037_v13 = vadd.f32 %v1036_v11, %v868_v10  ;;  %v791_v14 = vadd.f32 %v2384_v48, %v790_v12  ;;  %v959_v15 = vpop.f32.mrf.mxu1 }
 0x180   : > { %v1111_v16 = vmax.f32 %v1037_v13, 0.0  ;;  %v960_v17 = vadd.f32 %v959_v15, %v791_v14 }
 0x182   : > { %v1175_v18 = vpack.c.bf16 %v1111_v16, %v1111_v16  ;;  %v1080_v19 = vmax.f32 %v960_v17, 0.0 }
 0x183   : > { %v870_v20 = vpop.f32.mrf.mxu2 }
 0x184   : > { %1240 = vst.msk [vmem:[%s2397_s12 + $0xe4] sm:$0xf] %vm1182_vm0, %v1175_v18  ;;  %v1144_v21 = vpack.c.bf16 %v1080_v19, %v1080_v19  ;;  %v871_v22 = vadd.f32 %v2384_v48, %v870_v20  ;;  %v1039_v23 = vpop.f32.mrf.mxu3 }
 0x185   : > { %v792_v24 = vpop.f32.mrf.mxu0 }
 0x186   : > { %1209 = vst.msk [vmem:[%s2397_s12 + $0x68] sm:$0xf] %vm1182_vm0, %v1144_v21  ;;  %v1040_v25 = vadd.f32 %v1039_v23, %v871_v22  ;;  %v793_v26 = vadd.f32 %v2384_v48, %v792_v24  ;;  %v961_v27 = vpop.f32.mrf.mxu1 }
 0x188   : > { %v1112_v28 = vmax.f32 %v1040_v25, 0.0  ;;  %v962_v29 = vadd.f32 %v961_v27, %v793_v26 }
 0x18a   : > { %v1176_v30 = vpack.c.bf16 %v1112_v28, %v1112_v28  ;;  %v1081_v31 = vmax.f32 %v962_v29, 0.0 }
 0x18b   : > { %v872_v32 = vpop.f32.mrf.mxu2 }
 0x18c   : > { %1241 = vst.msk [vmem:[%s2397_s12 + $0xe8] sm:$0xf] %vm1182_vm0, %v1176_v30  ;;  %v1145_v33 = vpack.c.bf16 %v1081_v31, %v1081_v31  ;;  %v873_v35 = vadd.f32 %v2121_v34, %v872_v32  ;;  %v1041_v36 = vpop.f32.mrf.mxu3 }
 0x18d   : > { %v795_v37 = vpop.f32.mrf.mxu0 }
 0x18e   : > { %1210 = vst.msk [vmem:[%s2397_s12 + $0x6c] sm:$0xf] %vm1182_vm0, %v1145_v33  ;;  %v1042_v48 = vadd.f32 %v1041_v36, %v873_v35  ;;  %v796_v38 = vadd.f32 %v2121_v34, %v795_v37  ;;  %v964_v39 = vpop.f32.mrf.mxu1 }
 0x190   : > { %v1113_v40 = vmax.f32 %v1042_v48, 0.0  ;;  %v965_v41 = vadd.f32 %v964_v39, %v796_v38 }
 0x192   : > { %v1177_v42 = vpack.c.bf16 %v1113_v40, %v1113_v40  ;;  %v1082_v43 = vmax.f32 %v965_v41, 0.0 }
 0x193   : > { %v875_v44 = vpop.f32.mrf.mxu2 }
 0x194   : > { %1242 = vst.msk [vmem:[%s2397_s12 + $0xec] sm:$0xf] %vm1182_vm0, %v1177_v42  ;;  %v1146_v45 = vpack.c.bf16 %v1082_v43, %v1082_v43  ;;  %v876_v46 = vadd.f32 %v2121_v34, %v875_v44  ;;  %v1044_v47 = vpop.f32.mrf.mxu3 }
 0x195   : > { %v797_v49 = vpop.f32.mrf.mxu0 }
 0x196   : > { %1211 = vst.msk [vmem:[%s2397_s12 + $0x70] sm:$0xf] %vm1182_vm0, %v1146_v45  ;;  %v1045_v50 = vadd.f32 %v1044_v47, %v876_v46  ;;  %v798_v51 = vadd.f32 %v2121_v34, %v797_v49  ;;  %v966_v52 = vpop.f32.mrf.mxu1 }
 0x198   : > { %v1114_v53 = vmax.f32 %v1045_v50, 0.0  ;;  %v967_v54 = vadd.f32 %v966_v52, %v798_v51 }
 0x19a   : > { %v1178_v55 = vpack.c.bf16 %v1114_v53, %v1114_v53  ;;  %v1083_v56 = vmax.f32 %v967_v54, 0.0 }
 0x19b   : > { %v877_v57 = vpop.f32.mrf.mxu2 }
 0x19c   : > { %1243 = vst.msk [vmem:[%s2397_s12 + $0xf0] sm:$0xf] %vm1182_vm0, %v1178_v55  ;;  %v1147_v58 = vpack.c.bf16 %v1083_v56, %v1083_v56  ;;  %v878_v59 = vadd.f32 %v2121_v34, %v877_v57  ;;  %v1046_v60 = vpop.f32.mrf.mxu3 }
 0x19d   : > { %v800_v61 = vpop.f32.mrf.mxu0 }
 0x19e   : > { %1212 = vst.msk [vmem:[%s2397_s12 + $0x74] sm:$0xf] %vm1182_vm0, %v1147_v58  ;;  %v1047_v62 = vadd.f32 %v1046_v60, %v878_v59  ;;  %v801_v63 = vadd.f32 %v2121_v34, %v800_v61  ;;  %v969_v0 = vpop.f32.mrf.mxu1 }
 0x1a0   : > { %v1115_v1 = vmax.f32 %v1047_v62, 0.0  ;;  %v970_v2 = vadd.f32 %v969_v0, %v801_v63 }
 0x1a2   : > { %v1179_v3 = vpack.c.bf16 %v1115_v1, %v1115_v1  ;;  %v1084_v4 = vmax.f32 %v970_v2, 0.0 }
 0x1a3   : > { %v880_v5 = vpop.f32.mrf.mxu2 }
 0x1a4   : > { %1244 = vst.msk [vmem:[%s2397_s12 + $0xf4] sm:$0xf] %vm1182_vm0, %v1179_v3  ;;  %v1148_v6 = vpack.c.bf16 %v1084_v4, %v1084_v4  ;;  %v881_v7 = vadd.f32 %v2121_v34, %v880_v5  ;;  %v1049_v8 = vpop.f32.mrf.mxu3 }
 0x1a5   : > { %v802_v9 = vpop.f32.mrf.mxu0 }
 0x1a6   : > { %1213 = vst.msk [vmem:[%s2397_s12 + $0x78] sm:$0xf] %vm1182_vm0, %v1148_v6  ;;  %v1050_v10 = vadd.f32 %v1049_v8, %v881_v7  ;;  %v803_v11 = vadd.f32 %v2121_v34, %v802_v9  ;;  %v971_v12 = vpop.f32.mrf.mxu1 }
 0x1a8   : > { %v1116_v13 = vmax.f32 %v1050_v10, 0.0  ;;  %v972_v14 = vadd.f32 %v971_v12, %v803_v11 }
 0x1aa   : > { %v1180_v15 = vpack.c.bf16 %v1116_v13, %v1116_v13  ;;  %v1085_v16 = vmax.f32 %v972_v14, 0.0 }
 0x1ab   : > { %v882_v17 = vpop.f32.mrf.mxu2 }
 0x1ac   : > { %1245 = vst.msk [vmem:[%s2397_s12 + $0xf8] sm:$0xf] %vm1182_vm0, %v1180_v15  ;;  %v1149_v18 = vpack.c.bf16 %v1085_v16, %v1085_v16  ;;  %v883_v19 = vadd.f32 %v2121_v34, %v882_v17  ;;  %v1051_v20 = vpop.f32.mrf.mxu3 }
 0x1ae   : > { %1214 = vst.msk [vmem:[%s2397_s12 + $0x7c] sm:$0xf] %vm1182_vm0, %v1149_v18  ;;  %v1052_v21 = vadd.f32 %v1051_v20, %v883_v19 }
 0x1b0   : > { %v1117_v22 = vmax.f32 %v1052_v21, 0.0  ;;  %1253 = sbr.rel (!%p2255_p4) target bundleno = 501 (0x1f5), region = 36 }
 0x1b2   : > { %v1181_v23 = vpack.c.bf16 %v1117_v22, %v1117_v22 }
 0x1b4   : > { %1246 = vst.msk [vmem:[%s2397_s12 + $0xfc] sm:$0xf] %vm1182_vm0, %v1181_v23 }
 0x1b5   : > { %s2795_s24 = smov (!%p1256_p8, %s1255_s24), 64 }
 0x1b6   : > { %s1917_s29 = sshll.u32 %s2795_s24, 2 }
 0x1b7   : > { %p1920_p9 = scmp.eq.s32.totalorder %s1917_s29, 0 }
 0x1b8   : > { %s2652_s30 = sshrl.u32 (!%p1920_p9), %s2795_s24, 5 }
 0x1b9   : > { %1264 = sbr.rel (%p1920_p9) target bundleno = 501 (0x1f5), region = 40  ;;  %p1921_p10 = scmp.le.s32.totalorder (!%p1920_p9), %s2652_s30, 0 }
 0x1be   : > { %1543 = sbr.rel (%p1921_p10) target bundleno = 484 (0x1e4), region = 112  ;;  %s2786_s15 = smov (!%p1921_p10), %s2646_s28 }
 0x1bf   : > { %s2787_s20 = smov (!%p1921_p10), %s2397_s12  ;;  %s2661_s6 = smov (!%p1921_p10), 0  }
 0x1c0   : > { %s2663_s4 = smov (!%p1921_p10), 0  }
 0x1c3 LB: >> { %v1281_v24 = vld [vmem:[%s2184_s20] sm:$0xf]  ;;  %v1283_v25 = vld [vmem:[%s2184_s20 + $0x4] sm:$0xf]  ;;  %v1285_v26 = vld [vmem:[%s2184_s20 + $0x8] sm:$0xf]  ;;  %s2192_s4 = sphi %s2663_s4, %s1275_s4   ;;  %s2188_s6 = sphi %s2661_s6, %s2790_s6   ;;  %s2184_s20 = sphi %s2787_s20, %s2789_s20   ;;  %s2180_s15 = sphi %s2786_s15, %s2788_s15  }
 0x1c4   : >> { %1282 = vst [vmem:[%s2180_s15] sm:$0xf] %v1281_v24  ;;  %v1287_v27 = vld [vmem:[%s2184_s20 + $0xc] sm:$0xf]  ;;  %v1289_v28 = vld [vmem:[%s2184_s20 + $0x10] sm:$0xf]  ;;  %s1345_s5 = sadd.s32 1, %s2188_s6 }
 0x1c5   : >> { %1284 = vst [vmem:[%s2180_s15 + $0x4] sm:$0xf] %v1283_v25  ;;  %v1291_v29 = vld [vmem:[%s2184_s20 + $0x14] sm:$0xf]  ;;  %v1293_v30 = vld [vmem:[%s2184_s20 + $0x18] sm:$0xf]  ;;  %p1346_p11 = scmp.ge.s32.totalorder %s1345_s5, %s2652_s30 }
 0x1c6   : >> { %1286 = vst [vmem:[%s2180_s15 + $0x8] sm:$0xf] %v1285_v26  ;;  %v1295_v31 = vld [vmem:[%s2184_s20 + $0x1c] sm:$0xf]  ;;  %v1297_v32 = vld [vmem:[%s2184_s20 + $0x20] sm:$0xf] }
 0x1c7   : >> { %1288 = vst [vmem:[%s2180_s15 + $0xc] sm:$0xf] %v1287_v27  ;;  %v1299_v33 = vld [vmem:[%s2184_s20 + $0x24] sm:$0xf]  ;;  %v1301_v34 = vld [vmem:[%s2184_s20 + $0x28] sm:$0xf] }
 0x1c8   : >> { %1290 = vst [vmem:[%s2180_s15 + $0x10] sm:$0xf] %v1289_v28  ;;  %v1303_v35 = vld [vmem:[%s2184_s20 + $0x2c] sm:$0xf]  ;;  %v1305_v36 = vld [vmem:[%s2184_s20 + $0x30] sm:$0xf] }
 0x1c9   : >> { %1292 = vst [vmem:[%s2180_s15 + $0x14] sm:$0xf] %v1291_v29  ;;  %v1307_v37 = vld [vmem:[%s2184_s20 + $0x34] sm:$0xf]  ;;  %v1309_v48 = vld [vmem:[%s2184_s20 + $0x38] sm:$0xf] }
 0x1ca   : >> { %1294 = vst [vmem:[%s2180_s15 + $0x18] sm:$0xf] %v1293_v30  ;;  %v1311_v38 = vld [vmem:[%s2184_s20 + $0x3c] sm:$0xf]  ;;  %v1313_v39 = vld [vmem:[%s2184_s20 + $0x40] sm:$0xf] }
 0x1cb   : >> { %1296 = vst [vmem:[%s2180_s15 + $0x1c] sm:$0xf] %v1295_v31  ;;  %v1315_v40 = vld [vmem:[%s2184_s20 + $0x44] sm:$0xf]  ;;  %s2797_s5 = smov (%p1346_p11, %s1345_s5), 0  ;;  %s1275_s4 = sadd.s32 1, %s2192_s4  }
 0x1cc   : >> { %1298 = vst [vmem:[%s2180_s15 + $0x20] sm:$0xf] %v1297_v32  ;;  %v1317_v41 = vld [vmem:[%s2184_s20 + $0x48] sm:$0xf]  ;;  %v1319_v42 = vld [vmem:[%s2184_s20 + $0x4c] sm:$0xf]  ;;  %p1274_p12 = scmp.ge.s32.totalorder %s1275_s4, %s2652_s30  ;;  %s2790_s6 = smov %s2797_s5 }
 0x1cd   : >> { %1300 = vst [vmem:[%s2180_s15 + $0x24] sm:$0xf] %v1299_v33  ;;  %s1922_s7 = sshll.u32 %s2797_s5, 7  ;;  %v1321_v43 = vld [vmem:[%s2184_s20 + $0x50] sm:$0xf] }
 0x1ce   : >> { %1302 = vst [vmem:[%s2180_s15 + $0x28] sm:$0xf] %v1301_v34  ;;  %s2722_s8 = scalar_lea.vmem %s2397_s12, %s1922_s7 [#allocation2]   ;;  %s1351_s9 = scalar_lea.vmem %s2646_s28, %s1922_s7   ;;  %v1323_v44 = vld [vmem:[%s2184_s20 + $0x54] sm:$0xf]  ;;  %v1325_v45 = vld [vmem:[%s2184_s20 + $0x58] sm:$0xf] }
 0x1cf   : >> { %1304 = vst [vmem:[%s2180_s15 + $0x2c] sm:$0xf] %v1303_v35  ;;  %v1327_v46 = vld [vmem:[%s2184_s20 + $0x5c] sm:$0xf]  ;;  %v1329_v47 = vld [vmem:[%s2184_s20 + $0x60] sm:$0xf] }
 0x1d0   : >> { %1306 = vst [vmem:[%s2180_s15 + $0x30] sm:$0xf] %v1305_v36  ;;  %v1331_v49 = vld [vmem:[%s2184_s20 + $0x64] sm:$0xf]  ;;  %v1333_v50 = vld [vmem:[%s2184_s20 + $0x68] sm:$0xf] }
 0x1d1   : >> { %1308 = vst [vmem:[%s2180_s15 + $0x34] sm:$0xf] %v1307_v37  ;;  %v1335_v51 = vld [vmem:[%s2184_s20 + $0x6c] sm:$0xf]  ;;  %v1337_v52 = vld [vmem:[%s2184_s20 + $0x70] sm:$0xf] }
 0x1d2   : >> { %1310 = vst [vmem:[%s2180_s15 + $0x38] sm:$0xf] %v1309_v48  ;;  %v1339_v53 = vld [vmem:[%s2184_s20 + $0x74] sm:$0xf]  ;;  %v1341_v54 = vld [vmem:[%s2184_s20 + $0x78] sm:$0xf] }
 0x1d3   : >> { %1312 = vst [vmem:[%s2180_s15 + $0x3c] sm:$0xf] %v1311_v38  ;;  %v1343_v55 = vld [vmem:[%s2184_s20 + $0x7c] sm:$0xf]  ;;  %s2789_s20 = smov %s2722_s8 }
 0x1d4   : >> { %1314 = vst [vmem:[%s2180_s15 + $0x40] sm:$0xf] %v1313_v39 }
 0x1d5   : >> { %1316 = vst [vmem:[%s2180_s15 + $0x44] sm:$0xf] %v1315_v40 }
 0x1d6   : >> { %1318 = vst [vmem:[%s2180_s15 + $0x48] sm:$0xf] %v1317_v41 }
 0x1d7   : >> { %1320 = vst [vmem:[%s2180_s15 + $0x4c] sm:$0xf] %v1319_v42 }
 0x1d8   : >> { %1322 = vst [vmem:[%s2180_s15 + $0x50] sm:$0xf] %v1321_v43 }
 0x1d9   : >> { %1324 = vst [vmem:[%s2180_s15 + $0x54] sm:$0xf] %v1323_v44 }
 0x1da   : >> { %1326 = vst [vmem:[%s2180_s15 + $0x58] sm:$0xf] %v1325_v45 }
 0x1db   : >> { %1328 = vst [vmem:[%s2180_s15 + $0x5c] sm:$0xf] %v1327_v46 }
 0x1dc   : >> { %1330 = vst [vmem:[%s2180_s15 + $0x60] sm:$0xf] %v1329_v47 }
 0x1dd   : >> { %1332 = vst [vmem:[%s2180_s15 + $0x64] sm:$0xf] %v1331_v49 }
 0x1de   : >> { %1334 = vst [vmem:[%s2180_s15 + $0x68] sm:$0xf] %v1333_v50 }
 0x1df   : >> { %1336 = vst [vmem:[%s2180_s15 + $0x6c] sm:$0xf] %v1335_v51  ;;  %1277 = sbr.rel (!%p1274_p12) target bundleno = 451 (0x1c3), region = 118 }
 0x1e0   : >> { %1338 = vst [vmem:[%s2180_s15 + $0x70] sm:$0xf] %v1337_v52 }
 0x1e1   : >> { %1340 = vst [vmem:[%s2180_s15 + $0x74] sm:$0xf] %v1339_v53 }
 0x1e2   : >> { %1342 = vst [vmem:[%s2180_s15 + $0x78] sm:$0xf] %v1341_v54 }
 0x1e3   : >> { %1344 = vst [vmem:[%s2180_s15 + $0x7c] sm:$0xf] %v1343_v55  ;;  %s2788_s15 = smov %s1351_s9 }
 0x1e4 PF: > { %s2763_s10 = sand.u32 31, %s2795_s24   ;;  %s2014_s11 = sshll.u32 %s2652_s30, 7 }
 0x1e5   : > { %s1356_s14 = scalar_lea.vmem %s2397_s12, %s2014_s11 [#allocation2]   ;;  %s1358_s17 = scalar_lea.vmem %s2646_s28, %s2014_s11  }
 0x1e6   : > { %p1927_p13 = scmp.le.s32.totalorder %s2763_s10, 0 }
 0x1e7   : > { %s2194_s18 = smov (!%p1927_p13), %s1358_s17   ;;  %s2198_s21 = smov (!%p1927_p13), %s1356_s14  }
 0x1e8   : > { %1557 = sbr.rel (%p1927_p13) target bundleno = 501 (0x1f5), region = 123  ;;  %s2202_s22 = smov (!%p1927_p13), 0  }
 0x1e9   : > { %s2206_s23 = smov (!%p1927_p13), 0  }
 0x1ed LB: >> { %v1368_v56 = vld [vmem:[%s2200_s21] sm:$0xf]  ;;  %s1370_s24 = sadd.s32 1, %s2204_s22  ;;  %s1362_s23 = sadd.s32 1, %s2208_s23   ;;  %s2208_s23 = sphi %s2206_s23, %s1362_s23   ;;  %s2204_s22 = sphi %s2202_s22, %s2203_s22   ;;  %s2200_s21 = sphi %s2198_s21, %s1375_s21   ;;  %s2196_s18 = sphi %s2194_s18, %s1376_s18  }
 0x1ee   : >> { %1369 = vst [vmem:[%s2196_s18] sm:$0xf] %v1368_v56  ;;  %p1371_p0 = scmp.ge.s32.totalorder %s1370_s24, %s2763_s10  ;;  %p1361_p1 = scmp.ge.s32.totalorder %s1362_s23, %s2763_s10 }
 0x1f0   : >> { %s2799_s24 = smov (%p1371_p0, %s1370_s24), 0  ;;  %1364 = sbr.rel (!%p1361_p1) target bundleno = 493 (0x1ed), region = 129 }
 0x1f1   : >> { %s1928_s12 = sshll.u32 %s2799_s24, 2  ;;  %s2203_s22 = smov %s2799_s24  }
 0x1f2   : >> { %s1375_s21 = scalar_lea.vmem %s1356_s14, %s1928_s12 [#allocation2]   ;;  %s1376_s18 = scalar_lea.vmem %s1358_s17, %s1928_s12  }
 0x1f5 PF: > { %p10_p2 = scmp.ge.s32.totalorder %s2245_s16, 4   ;;  %s2791_s12 = smov %s2172_s13 }
 0x1f6   : > { %s2792_s13 = smov %s2253_s19  ;;  %s2793_s14 = smov %s2245_s16 }
 0x1f7   :  { %12 = sbr.rel (!%p10_p2) target bundleno = 2 (0x2), region = 140 }

// kernel: conv_forward.5
= control target key start
LH: loop header
LB: loop body
LE: loop exit
PB: predicated region body
PF: predicated region fallthrough
CT: control target
= control target key end

     0   :  { %s1525_s12 = smov 0   ;;  %s1527_s13 = smov 0   ;;  %s1819_s0 = inlined_call_operand.vmem [shape: bf16[162,512], index: 0, kind: input, shape index: {}]   ;;  %s1820_s1 = inlined_call_operand.vmem [shape: bf16[512,64], index: 1, kind: input, shape index: {}]   ;;  %s1821_s2 = inlined_call_operand.vmem [shape: f32[1,64], index: 2, kind: input, shape index: {}]   ;;  %s1822_s3 = inlined_call_operand.vmem [shape: bf16[162,64], index: 3, kind: output, shape index: {}]  }
   0x1   :  { %s1529_s14 = smov 0  }
   0x2 LB: > { %s1538_s15 = sadd.s32 4294967295, %s1471_s14   ;;  %s1540_s16 = sadd.s32 1, %s1471_s14   ;;  %s1471_s14 = sphi %s1529_s14, %s1830_s14   ;;  %s1467_s13 = sphi %s1527_s13, %s1829_s13   ;;  %s1463_s12 = sphi %s1525_s12, %s1828_s12  }
   0x3   : > { %s85_s17 = ssub.s32 %s1471_s14, %s1540_s16  ;;  %s88_s18 = sadd.s32 1, %s1467_s13 }
   0x4   : > { %p86_p0 = scmp.eq.s32.totalorder %s85_s17, 0  ;;  %p98_p1 = scmp.ne.s32.totalorder %s1467_s13, %s1463_s12 }
   0x5   : > { %p99_p2 = scmp.eq.s32.totalorder %s1538_s15, 1  ;;  %p1043_p3 = scmp.ge.s32.totalorder %s1471_s14, 1 }
   0x6   : > { %s1548_s19 = scalar_select %p86_p0, %s1467_s13, %s88_s18  }
   0x7   : > { %p1550_p4 = por %p99_p2, %p98_p1  ;;  %p149_p5 = scmp.lt.s32.totalorder %s1471_s14, 3 }
   0x9   : > { %p150_p6 = pnand %p1043_p3, %p149_p5 }
   0xa   : > { %s1591_s24 = smul.u32 (!%p150_p6), 11, %s1538_s15  ;;  %s175_s5 = sand.u32 (!%p150_p6), 1, %s1463_s12  }
   0xb   : > { %153 = sbr.rel (%p150_p6) target bundleno = 330 (0x14a), region = 32 }
   0xc   : > { %p184_p7 = scmp.lt.s32.totalorder (!%p150_p6), %s1591_s24, 20  ;;  %s1320_s6 = smul.u32 (!%p150_p6), 44, %s175_s5 }
   0xe   : > { %s1710_s7 = scalar_lea.vmem (!%p150_p6), [#allocation2], %s1320_s6  }
  0x10   : > { %v1294_v0 = vld [vmem:[%s1820_s1 + $0x38] sm:$0xff]  ;;  %v1293_v4 = vld [vmem:[%s1820_s1 + $0x30] sm:$0xff]  ;;  %v1292_v8 = vld [vmem:[%s1820_s1 + $0x28] sm:$0xff]  ;;  %s185_s18 = scalar_select %p184_p7, %s1591_s24, 20  ;;  %vm770_vm0 = vcmask 519168  }
  0x11   : > { %v1302_v1 = vld [vmem:[%s1820_s1 + $0x78] sm:$0xff]  ;;  %596 = vmatpush.bf16.msra.mxu0 %v1294_v0  ;;  %v1301_v5 = vld [vmem:[%s1820_s1 + $0x70] sm:$0xff]  ;;  %v1300_v9 = vld [vmem:[%s1820_s1 + $0x68] sm:$0xff]  ;;  %s790_s12 = ssub.s32 (%p1550_p4), 21, %s1591_s24  ;;  %s1319_s8 = smul.u32 (%p1550_p4), 44, %s1538_s15 }
  0x12   : > { %v1310_v2 = vld [vmem:[%s1820_s1 + $0xb8] sm:$0xff]  ;;  %634 = vmatpush.bf16.msra.mxu1 %v1302_v1  ;;  %v1309_v6 = vld [vmem:[%s1820_s1 + $0xb0] sm:$0xff]  ;;  %v1308_v10 = vld [vmem:[%s1820_s1 + $0xa8] sm:$0xff]  ;;  %s1266_s30 = sshll.u32 %s185_s18, 4  ;;  %p791_p8 = scmp.lt.s32.totalorder (%p1550_p4), %s790_s12, 11 }
  0x13   : > { %v1318_v3 = vld [vmem:[%s1820_s1 + $0xf8] sm:$0xff]  ;;  %672 = vmatpush.bf16.msra.mxu2 %v1310_v2  ;;  %v1317_v7 = vld [vmem:[%s1820_s1 + $0xf0] sm:$0xff]  ;;  %v1316_v11 = vld [vmem:[%s1820_s1 + $0xe8] sm:$0xff]  ;;  %s1640_s10 = scalar_lea.vmem %s1819_s0, %s1266_s30  ;;  %s1750_s11 = scalar_lea.vmem (%p1550_p4), %s1822_s3, %s1319_s8  }
  0x14   : > { %710 = vmatpush.bf16.msra.mxu3 %v1318_v3  ;;  %v1291_v12 = vld [vmem:[%s1820_s1 + $0x20] sm:$0xff]  ;;  %v1290_v16 = vld [vmem:[%s1820_s1 + $0x18] sm:$0xff]  ;;  %v1289_v20 = vld [vmem:[%s1820_s1 + $0x10] sm:$0xff] }
  0x15   : > { %597 = vmatpush.bf16.msra.mxu0 %v1293_v4  ;;  %v1299_v13 = vld [vmem:[%s1820_s1 + $0x60] sm:$0xff]  ;;  %v1298_v17 = vld [vmem:[%s1820_s1 + $0x58] sm:$0xff]  ;;  %v1297_v21 = vld [vmem:[%s1820_s1 + $0x50] sm:$0xff] }
  0x16   : > { %635 = vmatpush.bf16.msra.mxu1 %v1301_v5  ;;  %v1307_v14 = vld [vmem:[%s1820_s1 + $0xa0] sm:$0xff]  ;;  %v1306_v18 = vld [vmem:[%s1820_s1 + $0x98] sm:$0xff]  ;;  %v1305_v22 = vld [vmem:[%s1820_s1 + $0x90] sm:$0xff] }
  0x17   : > { %673 = vmatpush.bf16.msra.mxu2 %v1309_v6  ;;  %v1315_v15 = vld [vmem:[%s1820_s1 + $0xe0] sm:$0xff]  ;;  %v1314_v19 = vld [vmem:[%s1820_s1 + $0xd8] sm:$0xff]  ;;  %v1313_v23 = vld [vmem:[%s1820_s1 + $0xd0] sm:$0xff] }
  0x18   : > { %711 = vmatpush.bf16.msra.mxu3 %v1317_v7  ;;  %v1288_v24 = vld [vmem:[%s1820_s1 + $0x8] sm:$0xff]  ;;  %v1287_v28 = vld [vmem:[%s1820_s1] sm:$0xff]  ;;  %v1269_v33 = vld [vmem:[%s1640_s10 + $0xc] sm:$0xf0] }
  0x19   : > { %598 = vmatpush.bf16.msra.mxu0 %v1292_v8  ;;  %v1296_v25 = vld [vmem:[%s1820_s1 + $0x48] sm:$0xff]  ;;  %v1295_v29 = vld [vmem:[%s1820_s1 + $0x40] sm:$0xff]  ;;  %v1050_v35 = vld [vmem:[%s1640_s10 + $0x10] sm:$0xf0] }
  0x1a   : > { %636 = vmatpush.bf16.msra.mxu1 %v1300_v9  ;;  %v1304_v26 = vld [vmem:[%s1820_s1 + $0x88] sm:$0xff]  ;;  %v1303_v30 = vld [vmem:[%s1820_s1 + $0x80] sm:$0xff]  ;;  %v1270_v37 = vld [vmem:[%s1640_s10 + $0x14] sm:$0xf0] }
  0x1b   : > { %674 = vmatpush.bf16.msra.mxu2 %v1308_v10  ;;  %v1312_v27 = vld [vmem:[%s1820_s1 + $0xc8] sm:$0xff]  ;;  %v1311_v31 = vld [vmem:[%s1820_s1 + $0xc0] sm:$0xff]  ;;  %v1058_v39 = vld [vmem:[%s1640_s10 + $0x18] sm:$0xf0] }
  0x1c   : > { %712 = vmatpush.bf16.msra.mxu3 %v1316_v11  ;;  %v1048_v32 = vld [vmem:[%s1640_s10] sm:$0xf]  ;;  %v1267_v34 = vld [vmem:[%s1640_s10 + $0x4] sm:$0xf]  ;;  %v1056_v36 = vld [vmem:[%s1640_s10 + $0x8] sm:$0xf] }
  0x1d   : > { %599 = vmatpush.bf16.msra.mxu0 %v1291_v12  ;;  %v1268_v38 = vld [vmem:[%s1640_s10 + $0xc] sm:$0xf]  ;;  %v1049_v40 = vor.u32 %v1269_v33, %v1048_v32  ;;  %v1053_v41 = vor.u32 %v1267_v34, %v1050_v35  ;;  %v1057_v42 = vor.u32 %v1270_v37, %v1056_v36  ;;  %v1064_v44 = vld [vmem:[%s1640_s10 + $0x20] sm:$0xf]  ;;  %v1273_v45 = vld [vmem:[%s1640_s10 + $0x2c] sm:$0xf0] }
  0x1e   : > { %637 = vmatpush.bf16.msra.mxu1 %v1299_v13  ;;  %v1061_v43 = vor.u32 %v1268_v38, %v1058_v39  ;;  %v1271_v46 = vld [vmem:[%s1640_s10 + $0x24] sm:$0xf]  ;;  %v1066_v47 = vld [vmem:[%s1640_s10 + $0x30] sm:$0xf0]  ;;  %v1072_v48 = vld [vmem:[%s1640_s10 + $0x28] sm:$0xf]  ;;  %v1065_v52 = vor.u32 %v1273_v45, %v1064_v44 }
  0x1f   : > { %675 = vmatpush.bf16.msra.mxu2 %v1307_v14  ;;  %v1274_v49 = vld [vmem:[%s1640_s10 + $0x34] sm:$0xf0]  ;;  %v1272_v50 = vld [vmem:[%s1640_s10 + $0x2c] sm:$0xf]  ;;  %v1074_v51 = vld [vmem:[%s1640_s10 + $0x38] sm:$0xf0]  ;;  %v1069_v53 = vor.u32 %v1271_v46, %v1066_v47 }
  0x20   : > { %713 = vmatpush.bf16.msra.mxu3 %v1315_v15  ;;  %v1073_v54 = vor.u32 %v1274_v49, %v1072_v48  ;;  %v1077_v55 = vor.u32 %v1272_v50, %v1074_v51  ;;  %v1080_v56 = vld [vmem:[%s1640_s10 + $0x40] sm:$0xf]  ;;  %v1277_v57 = vld [vmem:[%s1640_s10 + $0x4c] sm:$0xf0]  ;;  %v1275_v58 = vld [vmem:[%s1640_s10 + $0x44] sm:$0xf] }
  0x21   : > { %600 = vmatpush.bf16.msra.mxu0 %v1290_v16  ;;  %v1082_v59 = vld [vmem:[%s1640_s10 + $0x50] sm:$0xf0]  ;;  %v1088_v60 = vld [vmem:[%s1640_s10 + $0x48] sm:$0xf]  ;;  %v1278_v61 = vld [vmem:[%s1640_s10 + $0x54] sm:$0xf0]  ;;  %v1081_v0 = vor.u32 %v1277_v57, %v1080_v56 }
  0x22   : > { %638 = vmatpush.bf16.msra.mxu1 %v1298_v17  ;;  %v1276_v62 = vld [vmem:[%s1640_s10 + $0x4c] sm:$0xf]  ;;  %v1090_v63 = vld [vmem:[%s1640_s10 + $0x58] sm:$0xf0]  ;;  %v1085_v1 = vor.u32 %v1275_v58, %v1082_v59  ;;  %v1089_v2 = vor.u32 %v1278_v61, %v1088_v60  ;;  %v1096_v4 = vld [vmem:[%s1640_s10 + $0x60] sm:$0xf] }
  0x23   : > { %676 = vmatpush.bf16.msra.mxu2 %v1306_v18  ;;  %v1093_v3 = vor.u32 %v1276_v62, %v1090_v63  ;;  %v1281_v5 = vld [vmem:[%s1640_s10 + $0x6c] sm:$0xf0]  ;;  %v1279_v6 = vld [vmem:[%s1640_s10 + $0x64] sm:$0xf]  ;;  %v1098_v7 = vld [vmem:[%s1640_s10 + $0x70] sm:$0xf0] }
  0x24   : > { %714 = vmatpush.bf16.msra.mxu3 %v1314_v19  ;;  %v1104_v8 = vld [vmem:[%s1640_s10 + $0x68] sm:$0xf]  ;;  %v1282_v9 = vld [vmem:[%s1640_s10 + $0x74] sm:$0xf0]  ;;  %v1280_v10 = vld [vmem:[%s1640_s10 + $0x6c] sm:$0xf]  ;;  %v1097_v12 = vor.u32 %v1281_v5, %v1096_v4  ;;  %v1101_v13 = vor.u32 %v1279_v6, %v1098_v7 }
  0x25   : > { %601 = vmatpush.bf16.msra.mxu0 %v1289_v20  ;;  %v1106_v11 = vld [vmem:[%s1640_s10 + $0x78] sm:$0xf0]  ;;  %v1105_v14 = vor.u32 %v1282_v9, %v1104_v8  ;;  %v1112_v16 = vld [vmem:[%s1640_s10 + $0x80] sm:$0xf]  ;;  %v1285_v17 = vld [vmem:[%s1640_s10 + $0x8c] sm:$0xf0] }
  0x26   : > { %639 = vmatpush.bf16.msra.mxu1 %v1297_v21  ;;  %v1109_v15 = vor.u32 %v1280_v10, %v1106_v11  ;;  %v1283_v18 = vld [vmem:[%s1640_s10 + $0x84] sm:$0xf]  ;;  %v1114_v19 = vld [vmem:[%s1640_s10 + $0x90] sm:$0xf0]  ;;  %v1120_v20 = vld [vmem:[%s1640_s10 + $0x88] sm:$0xf] }
  0x27   : > { %677 = vmatpush.bf16.msra.mxu2 %v1305_v22  ;;  %v1286_v21 = vld [vmem:[%s1640_s10 + $0x94] sm:$0xf0]  ;;  %v1284_v22 = vld [vmem:[%s1640_s10 + $0x8c] sm:$0xf]  ;;  %v1705_v38 = vld [vmem:[%s1821_s2] ss:$0 sm:$0xff] }
  0x28   : > { %715 = vmatpush.bf16.msra.mxu3 %v1313_v23  ;;  %v1122_v23 = vld [vmem:[%s1640_s10 + $0x98] sm:$0xf0] }
  0x29   : > { %602 = vmatpush.bf16.msra.mxu0 %v1288_v24  ;;  %v1113_v24 = vor.u32 %v1285_v17, %v1112_v16 }
  0x2a   : > { %640 = vmatpush.bf16.msra.mxu1 %v1296_v25  ;;  %v1117_v25 = vor.u32 %v1283_v18, %v1114_v19 }
  0x2b   : > { %678 = vmatpush.bf16.msra.mxu2 %v1304_v26  ;;  %v1121_v26 = vor.u32 %v1286_v21, %v1120_v20 }
  0x2c   : > { %716 = vmatpush.bf16.msra.mxu3 %v1312_v27  ;;  %v1125_v27 = vor.u32 %v1284_v22, %v1122_v23 }
  0x2d   : > { %603 = vmatpush.bf16.msra.mxu0 %v1287_v28  ;;  %v220_v28 = vld [vmem:[%s1640_s10 + $0xa0] sm:$0xff] }
  0x2e   : > { %641 = vmatpush.bf16.msra.mxu1 %v1295_v29  ;;  %v221_v29 = vld [vmem:[%s1640_s10 + $0xa8] sm:$0xff] }
  0x2f   : > { %679 = vmatpush.bf16.msra.mxu2 %v1303_v30  ;;  %v352_v30 = vunpack.c.l.b16 %v220_v28  ;;  %v354_v32 = vunpack.c.l.b16 %v221_v29  ;;  %v355_v33 = vunpack.c.h.b16 %v221_v29 }
  0x30   : > { %717 = vmatpush.bf16.msra.mxu3 %v1311_v31  ;;  %604 = vmatmul.bf16.vlgmr.msra.gmra.mxu0 %v1049_v40  ;;  %v353_v31 = vunpack.c.h.b16 %v220_v28 }
  0x31   : > { %642 = vmatmul.bf16.vlgmr.msra.gmra.mxu1 %v1053_v41  ;;  %v376_v34 = vpack.c.b16 %v352_v30, %v352_v30  ;;  %v378_v36 = vpack.c.b16 %v354_v32, %v354_v32  ;;  %v379_v37 = vpack.c.b16 %v355_v33, %v355_v33 }
  0x32   : > { %680 = vmatmul.bf16.vlgmr.msra.gmra.mxu2 %v1057_v42  ;;  %v377_v35 = vpack.c.b16 %v353_v31, %v353_v31 }
  0x33   : > { %718 = vmatmul.bf16.vlgmr.msra.gmra.mxu3 %v1061_v43 }
  0x40   : > { %609 = vmatmul.bf16.gmra.mxu0 %v1065_v52 }
  0x41   : > { %647 = vmatmul.bf16.gmra.mxu1 %v1069_v53 }
  0x42   : > { %685 = vmatmul.bf16.gmra.mxu2 %v1073_v54 }
  0x43   : > { %723 = vmatmul.bf16.gmra.mxu3 %v1077_v55 }
  0x50   : > { %614 = vmatmul.bf16.gmra.mxu0 %v1081_v0 }
  0x51   : > { %652 = vmatmul.bf16.gmra.mxu1 %v1085_v1 }
  0x52   : > { %690 = vmatmul.bf16.gmra.mxu2 %v1089_v2 }
  0x53   : > { %728 = vmatmul.bf16.gmra.mxu3 %v1093_v3 }
  0x60   : > { %619 = vmatmul.bf16.gmra.mxu0 %v1097_v12 }
  0x61   : > { %657 = vmatmul.bf16.gmra.mxu1 %v1101_v13 }
  0x62   : > { %695 = vmatmul.bf16.gmra.mxu2 %v1105_v14 }
  0x63   : > { %733 = vmatmul.bf16.gmra.mxu3 %v1109_v15 }
  0x70   : > { %624 = vmatmul.bf16.gmra.mxu0 %v1113_v24 }
  0x71   : > { %662 = vmatmul.bf16.gmra.mxu1 %v1117_v25 }
  0x72   : > { %700 = vmatmul.bf16.gmra.mxu2 %v1121_v26 }
  0x73   : > { %738 = vmatmul.bf16.gmra.mxu3 %v1125_v27 }
  0x80   : > { %629 = vmatmul.bf16.gmra.mxu0 %v376_v34 }
  0x81   : > { %667 = vmatmul.bf16.gmra.mxu1 %v377_v35 }
  0x82   : > { %705 = vmatmul.bf16.gmra.mxu2 %v378_v36 }
  0x83   : > { %743 = vmatmul.bf16.gmra.mxu3 %v379_v37 }
  0xad   : > { %v605_v39 = vpop.f32.mrf.mxu0 }
  0xae   : > { %v643_v40 = vpop.f32.mrf.mxu1  ;;  %v606_v41 = vadd.f32 %v1705_v38, %v605_v39 }
  0xb0   : > { %v644_v42 = vadd.f32 %v643_v40, %v606_v41 }
  0xb5   : > { %v681_v43 = vpop.f32.mrf.mxu2  ;;  %v607_v46 = vpop.f32.mrf.mxu0 }
  0xb6   : > { %v719_v44 = vpop.f32.mrf.mxu3  ;;  %v682_v45 = vadd.f32 %v681_v43, %v644_v42  ;;  %v645_v47 = vpop.f32.mrf.mxu1  ;;  %v608_v49 = vadd.f32 %v1705_v38, %v607_v46 }
  0xb8   : > { %v720_v48 = vadd.f32 %v719_v44, %v682_v45  ;;  %v646_v52 = vadd.f32 %v645_v47, %v608_v49 }
  0xba   : > { %v748_v50 = vmax.f32 %v720_v48, 0.0 }
  0xbc   : > { %v759_v51 = vpack.c.bf16 %v748_v50, %v748_v50 }
  0xbd   : > { %v683_v53 = vpop.f32.mrf.mxu2  ;;  %v610_v56 = vpop.f32.mrf.mxu0 }
  0xbe   : > { %v721_v54 = vpop.f32.mrf.mxu3  ;;  %771 = vst.msk [vmem:[%s1710_s7] sm:$0xf] %vm770_vm0, %v759_v51  ;;  %v684_v55 = vadd.f32 %v683_v53, %v646_v52  ;;  %v648_v57 = vpop.f32.mrf.mxu1  ;;  %v611_v58 = vadd.f32 %v1705_v38, %v610_v56 }
  0xc0   : > { %v722_v59 = vadd.f32 %v721_v54, %v684_v55  ;;  %v649_v61 = vadd.f32 %v648_v57, %v611_v58 }
  0xc2   : > { %v749_v60 = vmax.f32 %v722_v59, 0.0 }
  0xc4   : > { %v760_v62 = vpack.c.bf16 %v749_v60, %v749_v60 }
  0xc5   : > { %v686_v63 = vpop.f32.mrf.mxu2  ;;  %v612_v2 = vpop.f32.mrf.mxu0 }
  0xc6   : > { %v724_v0 = vpop.f32.mrf.mxu3  ;;  %772 = vst.msk [vmem:[%s1710_s7 + $0x4] sm:$0xf] %vm770_vm0, %v760_v62  ;;  %v687_v1 = vadd.f32 %v686_v63, %v649_v61  ;;  %v650_v3 = vpop.f32.mrf.mxu1  ;;  %v613_v5 = vadd.f32 %v1705_v38, %v612_v2 }
  0xc8   : > { %v725_v4 = vadd.f32 %v724_v0, %v687_v1  ;;  %v651_v8 = vadd.f32 %v650_v3, %v613_v5 }
  0xca   : > { %v750_v6 = vmax.f32 %v725_v4, 0.0 }
  0xcc   : > { %v761_v7 = vpack.c.bf16 %v750_v6, %v750_v6 }
  0xcd   : > { %v688_v9 = vpop.f32.mrf.mxu2  ;;  %v615_v12 = vpop.f32.mrf.mxu0 }
  0xce   : > { %v726_v10 = vpop.f32.mrf.mxu3  ;;  %773 = vst.msk [vmem:[%s1710_s7 + $0x8] sm:$0xf] %vm770_vm0, %v761_v7  ;;  %v689_v11 = vadd.f32 %v688_v9, %v651_v8  ;;  %v653_v13 = vpop.f32.mrf.mxu1  ;;  %v616_v14 = vadd.f32 %v1705_v38, %v615_v12 }
  0xd0   : > { %v727_v15 = vadd.f32 %v726_v10, %v689_v11  ;;  %v654_v17 = vadd.f32 %v653_v13, %v616_v14 }
  0xd2   : > { %v751_v16 = vmax.f32 %v727_v15, 0.0 }
  0xd4   : > { %v762_v18 = vpack.c.bf16 %v751_v16, %v751_v16 }
  0xd5   : > { %v691_v19 = vpop.f32.mrf.mxu2  ;;  %v617_v22 = vpop.f32.mrf.mxu0 }
  0xd6   : > { %v729_v20 = vpop.f32.mrf.mxu3  ;;  %774 = vst.msk [vmem:[%s1710_s7 + $0xc] sm:$0xf] %vm770_vm0, %v762_v18  ;;  %v692_v21 = vadd.f32 %v691_v19, %v654_v17  ;;  %v655_v23 = vpop.f32.mrf.mxu1  ;;  %v618_v25 = vadd.f32 %v1705_v38, %v617_v22 }
  0xd8   : > { %v730_v24 = vadd.f32 %v729_v20, %v692_v21  ;;  %v656_v28 = vadd.f32 %v655_v23, %v618_v25 }
  0xda   : > { %v752_v26 = vmax.f32 %v730_v24, 0.0 }
  0xdc   : > { %v763_v27 = vpack.c.bf16 %v752_v26, %v752_v26 }
  0xdd   : > { %v693_v29 = vpop.f32.mrf.mxu2  ;;  %v620_v32 = vpop.f32.mrf.mxu0 }
  0xde   : > { %v731_v30 = vpop.f32.mrf.mxu3  ;;  %775 = vst.msk [vmem:[%s1710_s7 + $0x10] sm:$0xf] %vm770_vm0, %v763_v27  ;;  %v694_v31 = vadd.f32 %v693_v29, %v656_v28  ;;  %v658_v33 = vpop.f32.mrf.mxu1  ;;  %v621_v34 = vadd.f32 %v1705_v38, %v620_v32 }
  0xe0   : > { %v732_v35 = vadd.f32 %v731_v30, %v694_v31  ;;  %v659_v37 = vadd.f32 %v658_v33, %v621_v34 }
  0xe2   : > { %v753_v36 = vmax.f32 %v732_v35, 0.0 }
  0xe4   : > { %v764_v39 = vpack.c.bf16 %v753_v36, %v753_v36 }
  0xe5   : > { %v696_v40 = vpop.f32.mrf.mxu2  ;;  %v622_v43 = vpop.f32.mrf.mxu0 }
  0xe6   : > { %v734_v41 = vpop.f32.mrf.mxu3  ;;  %776 = vst.msk [vmem:[%s1710_s7 + $0x14] sm:$0xf] %vm770_vm0, %v764_v39  ;;  %v697_v42 = vadd.f32 %v696_v40, %v659_v37  ;;  %v660_v44 = vpop.f32.mrf.mxu1  ;;  %v623_v46 = vadd.f32 %v1705_v38, %v622_v43 }
  0xe8   : > { %v735_v45 = vadd.f32 %v734_v41, %v697_v42  ;;  %v661_v49 = vadd.f32 %v660_v44, %v623_v46 }
  0xea   : > { %v754_v47 = vmax.f32 %v735_v45, 0.0 }
  0xec   : > { %v765_v48 = vpack.c.bf16 %v754_v47, %v754_v47 }
  0xed   : > { %v698_v50 = vpop.f32.mrf.mxu2  ;;  %v625_v53 = vpop.f32.mrf.mxu0 }
  0xee   : > { %v736_v51 = vpop.f32.mrf.mxu3  ;;  %777 = vst.msk [vmem:[%s1710_s7 + $0x18] sm:$0xf] %vm770_vm0, %v765_v48  ;;  %v699_v52 = vadd.f32 %v698_v50, %v661_v49  ;;  %v663_v54 = vpop.f32.mrf.mxu1  ;;  %v626_v55 = vadd.f32 %v1705_v38, %v625_v53 }
  0xf0   : > { %v737_v56 = vadd.f32 %v736_v51, %v699_v52  ;;  %v664_v58 = vadd.f32 %v663_v54, %v626_v55 }
  0xf2   : > { %v755_v57 = vmax.f32 %v737_v56, 0.0 }
  0xf4   : > { %v766_v59 = vpack.c.bf16 %v755_v57, %v755_v57 }
  0xf5   : > { %v701_v60 = vpop.f32.mrf.mxu2  ;;  %v627_v63 = vpop.f32.mrf.mxu0 }
  0xf6   : > { %v739_v61 = vpop.f32.mrf.mxu3  ;;  %778 = vst.msk [vmem:[%s1710_s7 + $0x1c] sm:$0xf] %vm770_vm0, %v766_v59  ;;  %v702_v62 = vadd.f32 %v701_v60, %v664_v58  ;;  %v665_v0 = vpop.f32.mrf.mxu1  ;;  %v628_v2 = vadd.f32 %v1705_v38, %v627_v63 }
  0xf8   : > { %v740_v1 = vadd.f32 %v739_v61, %v702_v62  ;;  %v666_v5 = vadd.f32 %v665_v0, %v628_v2 }
  0xfa   : > { %v756_v3 = vmax.f32 %v740_v1, 0.0 }
  0xfc   : > { %v767_v4 = vpack.c.bf16 %v756_v3, %v756_v3 }
  0xfd   : > { %v703_v6 = vpop.f32.mrf.mxu2  ;;  %v630_v9 = vpop.f32.mrf.mxu0 }
  0xfe   : > { %v741_v7 = vpop.f32.mrf.mxu3  ;;  %779 = vst.msk [vmem:[%s1710_s7 + $0x20] sm:$0xf] %vm770_vm0, %v767_v4  ;;  %v704_v8 = vadd.f32 %v703_v6, %v666_v5  ;;  %v668_v10 = vpop.f32.mrf.mxu1  ;;  %v631_v11 = vadd.f32 %v1705_v38, %v630_v9 }
 0x100   : > { %v742_v12 = vadd.f32 %v741_v7, %v704_v8  ;;  %v669_v14 = vadd.f32 %v668_v10, %v631_v11 }
 0x102   : > { %v757_v13 = vmax.f32 %v742_v12, 0.0 }
 0x104   : > { %v768_v15 = vpack.c.bf16 %v757_v13, %v757_v13 }
 0x105   : > { %v706_v16 = vpop.f32.mrf.mxu2  ;;  %v632_v19 = vpop.f32.mrf.mxu0 }
 0x106   : > { %v744_v17 = vpop.f32.mrf.mxu3  ;;  %780 = vst.msk [vmem:[%s1710_s7 + $0x24] sm:$0xf] %vm770_vm0, %v768_v15  ;;  %v707_v18 = vadd.f32 %v706_v16, %v669_v14  ;;  %v670_v20 = vpop.f32.mrf.mxu1 }
 0x108   : > { %v745_v21 = vadd.f32 %v744_v17, %v707_v18 }
 0x10a   : > { %v758_v22 = vmax.f32 %v745_v21, 0.0  ;;  %788 = sbr.rel (!%p1550_p4) target bundleno = 330 (0x14a), region = 36 }
 0x10c   : > { %v769_v23 = vpack.c.bf16 %v758_v22, %v758_v22 }
 0x10d   : > { %v708_v24 = vpop.f32.mrf.mxu2 }
 0x10e   : > { %v746_v25 = vpop.f32.mrf.mxu3  ;;  %781 = vst.msk [vmem:[%s1710_s7 + $0x28] sm:$0xf] %vm770_vm0, %v769_v23 }
 0x10f   : > { %s1832_s12 = smov (!%p791_p8, %s790_s12), 11 }
 0x110   : > { %s1254_s14 = sshll.u32 %s1832_s12, 2 }
 0x111   : > { %p1257_p9 = scmp.eq.s32.totalorder %s1254_s14, 0 }
 0x112   : > { %1411 = sdivrem.u32 (!%p1257_p9), %s1832_s12, 11 }
 0x113   : > { %799 = sbr.rel (%p1257_p9) target bundleno = 330 (0x14a), region = 40 }
 0x11b   : > { %s1756_s20 = spop.drf %1411 }
 0x11c   : > { %s1413_s17 = spop.drf %1411  ;;  %p1258_p10 = scmp.le.s32.totalorder %s1756_s20, 0 }
 0x11d   : > { %s1824_s15 = smov (!%p1258_p10), %s1750_s11  ;;  %s1825_s24 = smov (!%p1258_p10), %s1710_s7 }
 0x11e   : > { %996 = sbr.rel (%p1258_p10) target bundleno = 304 (0x130), region = 112  ;;  %s1765_s18 = smov (!%p1258_p10), 0  }
 0x11f   : > { %s1767_s21 = smov (!%p1258_p10), 0  }
 0x123 LB: >> { %v817_v38 = vld [vmem:[%s1479_s24] sm:$0xf]  ;;  %v819_v26 = vld [vmem:[%s1479_s24 + $0x4] sm:$0xf]  ;;  %v821_v27 = vld [vmem:[%s1479_s24 + $0x8] sm:$0xf]  ;;  %s1487_s21 = sphi %s1767_s21, %s811_s21   ;;  %s1483_s18 = sphi %s1765_s18, %s1827_s18   ;;  %s1479_s24 = sphi %s1825_s24, %s844_s24   ;;  %s1475_s15 = sphi %s1824_s15, %s1826_s15  }
 0x124   : >> { %818 = vst [vmem:[%s1475_s15] sm:$0xf] %v817_v38  ;;  %v823_v28 = vld [vmem:[%s1479_s24 + $0xc] sm:$0xf]  ;;  %s839_s22 = sadd.s32 1, %s1483_s18  ;;  %v825_v29 = vld [vmem:[%s1479_s24 + $0x10] sm:$0xf] }
 0x125   : >> { %820 = vst [vmem:[%s1475_s15 + $0x4] sm:$0xf] %v819_v26  ;;  %p840_p11 = scmp.ge.s32.totalorder %s839_s22, %s1756_s20  ;;  %v827_v30 = vld [vmem:[%s1479_s24 + $0x14] sm:$0xf]  ;;  %v829_v31 = vld [vmem:[%s1479_s24 + $0x18] sm:$0xf] }
 0x126   : >> { %822 = vst [vmem:[%s1475_s15 + $0x8] sm:$0xf] %v821_v27  ;;  %v831_v32 = vld [vmem:[%s1479_s24 + $0x1c] sm:$0xf]  ;;  %v833_v33 = vld [vmem:[%s1479_s24 + $0x20] sm:$0xf] }
 0x127   : >> { %824 = vst [vmem:[%s1475_s15 + $0xc] sm:$0xf] %v823_v28  ;;  %s1834_s22 = smov (%p840_p11, %s839_s22), 0  ;;  %v835_v34 = vld [vmem:[%s1479_s24 + $0x24] sm:$0xf]  ;;  %s811_s21 = sadd.s32 1, %s1487_s21  }
 0x128   : >> { %826 = vst [vmem:[%s1475_s15 + $0x10] sm:$0xf] %v825_v29  ;;  %s842_s23 = smul.u32 44, %s1834_s22  ;;  %v837_v35 = vld [vmem:[%s1479_s24 + $0x28] sm:$0xf]  ;;  %p810_p12 = scmp.ge.s32.totalorder %s811_s21, %s1756_s20 }
 0x129   : >> { %828 = vst [vmem:[%s1475_s15 + $0x14] sm:$0xf] %v827_v30  ;;  %s1827_s18 = smov %s1834_s22 }
 0x12a   : >> { %830 = vst [vmem:[%s1475_s15 + $0x18] sm:$0xf] %v829_v31  ;;  %s844_s24 = scalar_lea.vmem %s1710_s7, %s842_s23 [#allocation2]   ;;  %s845_s25 = scalar_lea.vmem %s1750_s11, %s842_s23  }
 0x12b   : >> { %832 = vst [vmem:[%s1475_s15 + $0x1c] sm:$0xf] %v831_v32  ;;  %813 = sbr.rel (!%p810_p12) target bundleno = 291 (0x123), region = 118 }
 0x12c   : >> { %834 = vst [vmem:[%s1475_s15 + $0x20] sm:$0xf] %v833_v33 }
 0x12d   : >> { %836 = vst [vmem:[%s1475_s15 + $0x24] sm:$0xf] %v835_v34 }
 0x12e   : >> { %838 = vst [vmem:[%s1475_s15 + $0x28] sm:$0xf] %v837_v35  ;;  %s1826_s15 = smov %s845_s25 }
 0x130 PF: > { %1414 = sdivrem.u32 %s1832_s12, 11 }
 0x131   : > { %s1259_s26 = smul.u32 44, %s1756_s20 }
 0x133   : > { %s1804_s27 = scalar_lea.vmem %s1710_s7, %s1259_s26 [#allocation2]   ;;  %s852_s28 = scalar_lea.vmem %s1750_s11, %s1259_s26  }
 0x139   : > { %s1415_s29 = spop.drf %1414 }
 0x13a   : > { %s1416_s30 = spop.drf %1414 }
 0x13b   : > { %p1261_p13 = scmp.le.s32.totalorder %s1416_s30, 0 }
 0x13c   : > { %s1489_s4 = smov (!%p1261_p13), %s852_s28   ;;  %s1493_s5 = smov (!%p1261_p13), %s1804_s27  }
 0x13d   : > { %1010 = sbr.rel (%p1261_p13) target bundleno = 330 (0x14a), region = 123  ;;  %s1497_s6 = smov (!%p1261_p13), 0  }
 0x13e   : > { %s1501_s8 = smov (!%p1261_p13), 0  }
 0x142 LB: >> { %v862_v36 = vld [vmem:[%s1495_s5] sm:$0xf]  ;;  %s864_s7 = sadd.s32 1, %s1499_s6  ;;  %s856_s8 = sadd.s32 1, %s1503_s8   ;;  %s1503_s8 = sphi %s1501_s8, %s856_s8   ;;  %s1499_s6 = sphi %s1497_s6, %s1498_s6   ;;  %s1495_s5 = sphi %s1493_s5, %s869_s5   ;;  %s1491_s4 = sphi %s1489_s4, %s870_s4  }
 0x143   : >> { %863 = vst [vmem:[%s1491_s4] sm:$0xf] %v862_v36  ;;  %p865_p0 = scmp.ge.s32.totalorder %s864_s7, %s1416_s30  ;;  %p855_p1 = scmp.ge.s32.totalorder %s856_s8, %s1416_s30 }
 0x145   : >> { %s1836_s7 = smov (%p865_p0, %s864_s7), 0  ;;  %858 = sbr.rel (!%p855_p1) target bundleno = 322 (0x142), region = 129 }
 0x146   : >> { %s1262_s12 = sshll.u32 %s1836_s7, 2  ;;  %s1498_s6 = smov %s1836_s7  }
 0x147   : >> { %s869_s5 = scalar_lea.vmem %s1804_s27, %s1262_s12 [#allocation2]   ;;  %s870_s4 = scalar_lea.vmem %s852_s28, %s1262_s12  }
 0x14a PF: > { %p10_p2 = scmp.ge.s32.totalorder %s1540_s16, 4   ;;  %s1828_s12 = smov %s1467_s13 }
 0x14b   : > { %s1829_s13 = smov %s1548_s19  ;;  %s1830_s14 = smov %s1540_s16 }
 0x14c   :  { %12 = sbr.rel (!%p10_p2) target bundleno = 2 (0x2), region = 140 }

// kernel: conv_forward.6
= control target key start
LH: loop header
LB: loop body
LE: loop exit
PB: predicated region body
PF: predicated region fallthrough
CT: control target
= control target key end

     0   :  { %s1522_s12 = smov 0   ;;  %s1524_s13 = smov 0   ;;  %s1805_s0 = inlined_call_operand.vmem [shape: bf16[98,576], index: 0, kind: input, shape index: {}]   ;;  %s1806_s1 = inlined_call_operand.vmem [shape: bf16[576,64], index: 1, kind: input, shape index: {}]   ;;  %s1807_s2 = inlined_call_operand.vmem [shape: f32[1,64], index: 2, kind: input, shape index: {}]   ;;  %s1808_s3 = inlined_call_operand.vmem [shape: bf16[98,64], index: 3, kind: output, shape index: {}]  }
   0x1   :  { %s1526_s14 = smov 0  }
   0x2 LB: > { %s1535_s15 = sadd.s32 4294967295, %s1468_s14   ;;  %s1537_s16 = sadd.s32 1, %s1468_s14   ;;  %s1468_s14 = sphi %s1526_s14, %s1815_s14   ;;  %s1464_s13 = sphi %s1524_s13, %s1814_s13   ;;  %s1460_s12 = sphi %s1522_s12, %s1813_s12  }
   0x3   : > { %s85_s17 = ssub.s32 %s1468_s14, %s1537_s16  ;;  %s88_s18 = sadd.s32 1, %s1464_s13 }
   0x4   : > { %p86_p0 = scmp.eq.s32.totalorder %s85_s17, 0  ;;  %p98_p1 = scmp.ne.s32.totalorder %s1464_s13, %s1460_s12 }
   0x5   : > { %p99_p2 = scmp.eq.s32.totalorder %s1535_s15, 1  ;;  %p1026_p3 = scmp.ge.s32.totalorder %s1468_s14, 1 }
   0x6   : > { %s1545_s19 = scalar_select %p86_p0, %s1464_s13, %s88_s18  }
   0x7   : > { %p1547_p4 = por %p99_p2, %p98_p1  ;;  %p149_p5 = scmp.lt.s32.totalorder %s1468_s14, 3 }
   0x9   : > { %p150_p6 = pnand %p1026_p3, %p149_p5 }
   0xa   : > { %s1564_s29 = smul.u32 (!%p150_p6), 7, %s1535_s15  ;;  %s175_s21 = sand.u32 (!%p150_p6), 1, %s1460_s12  }
   0xb   : > { %153 = sbr.rel (%p150_p6) target bundleno = 328 (0x148), region = 32 }
   0xc   : > { %p184_p7 = scmp.lt.s32.totalorder (!%p150_p6), %s1564_s29, 12 }
  0x10   : > { %v1270_v0 = vld [vmem:[%s1806_s1 + $0x38] sm:$0xff]  ;;  %v1269_v1 = vld [vmem:[%s1806_s1 + $0x30] sm:$0xff]  ;;  %v1268_v4 = vld [vmem:[%s1806_s1 + $0x28] sm:$0xff]  ;;  %s185_s11 = scalar_select %p184_p7, %s1564_s29, 12  ;;  %vm606_vm0 = vcmask 523264   ;;  %vm773_vm1 = vcmask 519168  }
  0x11   : > { %1300 = vmatpush.bf16.msra.mxu1 %v1270_v0  ;;  %1301 = vmatpush.bf16.msra.mxu2 %v1270_v0  ;;  %v1294_v2 = vld [vmem:[%s1806_s1 + $0xf8] sm:$0xff]  ;;  %v1293_v3 = vld [vmem:[%s1806_s1 + $0xf0] sm:$0xff]  ;;  %v1292_v5 = vld [vmem:[%s1806_s1 + $0xe8] sm:$0xff]  ;;  %s789_s12 = ssub.s32 (%p1547_p4), 13, %s1564_s29  ;;  %s1299_s24 = smul.u32 (%p1547_p4), 28, %s1535_s15 }
  0x12   : > { %619 = vmatpush.bf16.msra.mxu0 %v1270_v0  ;;  %703 = vmatpush.bf16.msra.mxu3 %v1294_v2  ;;  %v1267_v6 = vld [vmem:[%s1806_s1 + $0x20] sm:$0xff]  ;;  %v1266_v8 = vld [vmem:[%s1806_s1 + $0x18] sm:$0xff]  ;;  %s1317_s22 = smul.u32 20, %s185_s11  ;;  %v1265_v10 = vld [vmem:[%s1806_s1 + $0x10] sm:$0xff]  ;;  %p790_p8 = scmp.lt.s32.totalorder (%p1547_p4), %s789_s12, 7 }
  0x13   : > { %v1291_v7 = vld [vmem:[%s1806_s1 + $0xe0] sm:$0xff]  ;;  %v1290_v9 = vld [vmem:[%s1806_s1 + $0xd8] sm:$0xff]  ;;  %v1289_v11 = vld [vmem:[%s1806_s1 + $0xd0] sm:$0xff]  ;;  %s1752_s27 = scalar_lea.vmem (%p1547_p4), %s1808_s3, %s1299_s24  }
  0x14   : > { %s1595_s30 = scalar_lea.vmem %s1805_s0, %s1317_s22  ;;  %v1264_v12 = vld [vmem:[%s1806_s1 + $0x8] sm:$0xff]  ;;  %v1263_v16 = vld [vmem:[%s1806_s1] sm:$0xff]  ;;  %v1286_v19 = vld [vmem:[%s1806_s1 + $0xb8] sm:$0xff]  ;;  %s1316_s22 = smul.u32 28, %s175_s21 }
  0x15   : > { %1302 = vmatpush.bf16.msra.mxu1 %v1269_v1  ;;  %1303 = vmatpush.bf16.msra.mxu2 %v1269_v1  ;;  %v1601_v13 = vld [vmem:[%s1595_s30 + $0x78] sm:$0xff]  ;;  %v1288_v14 = vld [vmem:[%s1806_s1 + $0xc8] sm:$0xff]  ;;  %v1030_v21 = vld [vmem:[%s1595_s30] sm:$0xf] }
  0x16   : > { %620 = vmatpush.bf16.msra.mxu0 %v1269_v1  ;;  %704 = vmatpush.bf16.msra.mxu3 %v1293_v3  ;;  %v349_v15 = vunpack.c.l.b16 %v1601_v13  ;;  %v1050_v17 = vld [vmem:[%s1595_s30 + $0x28] sm:$0xf]  ;;  %v1255_v18 = vld [vmem:[%s1595_s30 + $0x38] sm:$0xf0]  ;;  %v1287_v22 = vld [vmem:[%s1806_s1 + $0xc0] sm:$0xff]  ;;  %s1722_s23 = scalar_lea.vmem [#allocation2], %s1316_s22  }
  0x17   : > { %v1278_v20 = vld [vmem:[%s1806_s1 + $0x78] sm:$0xff]  ;;  %v1051_v23 = vor.u32 %v1255_v18, %v1050_v17  ;;  %v1250_v25 = vld [vmem:[%s1595_s30 + $0x10] sm:$0xf0]  ;;  %v1249_v26 = vld [vmem:[%s1595_s30 + $0xc] sm:$0xf] }
  0x18   : > { %v369_v24 = vpack.c.b16 %v349_v15, %v349_v15  ;;  %v1040_v27 = vld [vmem:[%s1595_s30 + $0x1c] sm:$0xf0]  ;;  %v1298_v28 = vld [vmem:[%s1806_s1 + $0x118] sm:$0xff]  ;;  %v1285_v29 = vld [vmem:[%s1806_s1 + $0xb0] sm:$0xff]  ;;  %v1031_v31 = vor.u32 %v1250_v25, %v1030_v21 }
  0x19   : > { %1304 = vmatpush.bf16.msra.mxu1 %v1268_v4  ;;  %1305 = vmatpush.bf16.msra.mxu2 %v1268_v4  ;;  %v1277_v30 = vld [vmem:[%s1806_s1 + $0x70] sm:$0xff]  ;;  %v1043_v32 = vor.u32 %v1249_v26, %v1040_v27  ;;  %v1284_v34 = vld [vmem:[%s1806_s1 + $0xa8] sm:$0xff]  ;;  %v1283_v37 = vld [vmem:[%s1806_s1 + $0xa0] sm:$0xff] }
  0x1a   : > { %621 = vmatpush.bf16.msra.mxu0 %v1268_v4  ;;  %705 = vmatpush.bf16.msra.mxu3 %v1292_v5  ;;  %v1297_v33 = vld [vmem:[%s1806_s1 + $0x110] sm:$0xff]  ;;  %v1276_v35 = vld [vmem:[%s1806_s1 + $0x68] sm:$0xff]  ;;  %v1275_v38 = vld [vmem:[%s1806_s1 + $0x60] sm:$0xff] }
  0x1b   : > { %v1296_v36 = vld [vmem:[%s1806_s1 + $0x108] sm:$0xff]  ;;  %v1070_v39 = vld [vmem:[%s1595_s30 + $0x50] sm:$0xf]  ;;  %v1260_v40 = vld [vmem:[%s1595_s30 + $0x60] sm:$0xf0] }
  0x1c   : > { %v1295_v41 = vld [vmem:[%s1806_s1 + $0x100] sm:$0xff]  ;;  %v1282_v42 = vld [vmem:[%s1806_s1 + $0x98] sm:$0xff]  ;;  %v1046_v44 = vld [vmem:[%s1595_s30 + $0x10] sm:$0xf]  ;;  %v1071_v45 = vor.u32 %v1260_v40, %v1070_v39 }
  0x1d   : > { %1306 = vmatpush.bf16.msra.mxu1 %v1267_v6  ;;  %1307 = vmatpush.bf16.msra.mxu2 %v1267_v6  ;;  %v1274_v43 = vld [vmem:[%s1806_s1 + $0x58] sm:$0xff]  ;;  %v1252_v46 = vld [vmem:[%s1595_s30 + $0x20] sm:$0xf0]  ;;  %v1254_v47 = vld [vmem:[%s1595_s30 + $0x34] sm:$0xf] }
  0x1e   : > { %622 = vmatpush.bf16.msra.mxu0 %v1267_v6  ;;  %706 = vmatpush.bf16.msra.mxu3 %v1291_v7  ;;  %v1060_v48 = vld [vmem:[%s1595_s30 + $0x44] sm:$0xf0]  ;;  %v1281_v49 = vld [vmem:[%s1806_s1 + $0x90] sm:$0xff]  ;;  %v1047_v51 = vor.u32 %v1252_v46, %v1046_v44  ;;  %v1279_v55 = vld [vmem:[%s1806_s1 + $0x80] sm:$0xff] }
  0x1f   : > { %v1273_v50 = vld [vmem:[%s1806_s1 + $0x50] sm:$0xff]  ;;  %v1063_v52 = vor.u32 %v1254_v47, %v1060_v48  ;;  %v1280_v53 = vld [vmem:[%s1806_s1 + $0x88] sm:$0xff]  ;;  %v1271_v56 = vld [vmem:[%s1806_s1 + $0x40] sm:$0xff] }
  0x20   : > { %v1272_v54 = vld [vmem:[%s1806_s1 + $0x48] sm:$0xff]  ;;  %v1251_v58 = vld [vmem:[%s1595_s30 + $0x18] sm:$0xf0]  ;;  %v1248_v60 = vld [vmem:[%s1595_s30 + $0x4] sm:$0xf] }
  0x21   : > { %1308 = vmatpush.bf16.msra.mxu1 %v1266_v8  ;;  %1309 = vmatpush.bf16.msra.mxu2 %v1266_v8  ;;  %v1038_v57 = vld [vmem:[%s1595_s30 + $0x8] sm:$0xf]  ;;  %v1032_v61 = vld [vmem:[%s1595_s30 + $0x14] sm:$0xf0]  ;;  %v1257_v0 = vld [vmem:[%s1595_s30 + $0x48] sm:$0xf0] }
  0x22   : > { %623 = vmatpush.bf16.msra.mxu0 %v1266_v8  ;;  %707 = vmatpush.bf16.msra.mxu3 %v1290_v9  ;;  %v1039_v59 = vor.u32 %v1251_v58, %v1038_v57  ;;  %v1066_v62 = vld [vmem:[%s1595_s30 + $0x38] sm:$0xf]  ;;  %v1035_v63 = vor.u32 %v1248_v60, %v1032_v61  ;;  %v1259_v1 = vld [vmem:[%s1595_s30 + $0x5c] sm:$0xf]  ;;  %v1080_v2 = vld [vmem:[%s1595_s30 + $0x6c] sm:$0xf0] }
  0x23   : > { %v1067_v3 = vor.u32 %v1257_v0, %v1066_v62  ;;  %v1083_v4 = vor.u32 %v1259_v1, %v1080_v2  ;;  %v1058_v5 = vld [vmem:[%s1595_s30 + $0x30] sm:$0xf]  ;;  %v1256_v6 = vld [vmem:[%s1595_s30 + $0x40] sm:$0xf0]  ;;  %v1253_v9 = vld [vmem:[%s1595_s30 + $0x2c] sm:$0xf] }
  0x24   : > { %v220_v7 = vld [vmem:[%s1595_s30 + $0x80] sm:$0xff]  ;;  %v1059_v8 = vor.u32 %v1256_v6, %v1058_v5  ;;  %v1262_v15 = vld [vmem:[%s1595_s30 + $0x70] sm:$0xf0]  ;;  %v1078_v18 = vld [vmem:[%s1595_s30 + $0x58] sm:$0xf] }
  0x25   : > { %1310 = vmatpush.bf16.msra.mxu1 %v1265_v10  ;;  %1311 = vmatpush.bf16.msra.mxu2 %v1265_v10  ;;  %v351_v27 = vunpack.c.l.b16 %v220_v7 }
  0x26   : > { %624 = vmatpush.bf16.msra.mxu0 %v1265_v10  ;;  %708 = vmatpush.bf16.msra.mxu3 %v1289_v11  ;;  %v1052_v10 = vld [vmem:[%s1595_s30 + $0x3c] sm:$0xf0]  ;;  %v352_v11 = vunpack.c.h.b16 %v220_v7 }
  0x28   : > { %v372_v17 = vpack.c.b16 %v352_v11, %v352_v11 }
  0x29   : > { %1312 = vmatpush.bf16.msra.mxu1 %v1264_v12  ;;  %1313 = vmatpush.bf16.msra.mxu2 %v1264_v12 }
  0x2a   : > { %625 = vmatpush.bf16.msra.mxu0 %v1264_v12  ;;  %709 = vmatpush.bf16.msra.mxu3 %v1288_v14  ;;  %v1055_v12 = vor.u32 %v1253_v9, %v1052_v10  ;;  %v1086_v14 = vld [vmem:[%s1595_s30 + $0x60] sm:$0xf] }
  0x2d   : > { %1314 = vmatpush.bf16.msra.mxu1 %v1263_v16  ;;  %1315 = vmatpush.bf16.msra.mxu2 %v1263_v16 }
  0x2e   : > { %626 = vmatpush.bf16.msra.mxu0 %v1263_v16  ;;  %710 = vmatpush.bf16.msra.mxu3 %v1287_v22  ;;  %v1087_v16 = vor.u32 %v1262_v15, %v1086_v14  ;;  %v1258_v22 = vld [vmem:[%s1595_s30 + $0x54] sm:$0xf] }
  0x30   : > { %632 = vmatmul.bf16.vlgmr.msra.gmra.mxu1 %v1051_v23  ;;  %642 = vmatmul.bf16.vlgmr.msra.gmra.mxu2 %v369_v24  ;;  %v1072_v23 = vld [vmem:[%s1595_s30 + $0x64] sm:$0xf0] }
  0x31   : > { %675 = vmatpush.bf16.msrb.mxu2 %v1286_v19  ;;  %647 = vmatpush.bf16.msrb.mxu1 %v1278_v20  ;;  %v1261_v19 = vld [vmem:[%s1595_s30 + $0x68] sm:$0xf0]  ;;  %v221_v20 = vld [vmem:[%s1595_s30 + $0x88] sm:$0xf]  ;;  %v1075_v25 = vor.u32 %v1258_v22, %v1072_v23 }
  0x32   : > { %735 = vmatpush.bf16.msrb.mxu0 %v1298_v28  ;;  %711 = vmatmul.bf16.vlgmr.msra.gmra.mxu3 %v1043_v32  ;;  %v1079_v21 = vor.u32 %v1261_v19, %v1078_v18  ;;  %v353_v24 = vunpack.c.l.b16 %v221_v20  ;;  %v350_v28 = vunpack.c.h.b16 %v1601_v13 }
  0x33   : > { %627 = vmatmul.bf16.vlgmr.msra.gmra.mxu0 %v1031_v31 }
  0x34   : > { %v373_v26 = vpack.c.b16 %v353_v24, %v353_v24 }
  0x35   : > { %676 = vmatpush.bf16.msrb.mxu2 %v1285_v29  ;;  %648 = vmatpush.bf16.msrb.mxu1 %v1277_v30  ;;  %v371_v29 = vpack.c.b16 %v351_v27, %v351_v27  ;;  %v370_v30 = vpack.c.b16 %v350_v28, %v350_v28 }
  0x36   : > { %736 = vmatpush.bf16.msrb.mxu0 %v1297_v33 }
  0x39   : > { %677 = vmatpush.bf16.msrb.mxu2 %v1284_v34  ;;  %649 = vmatpush.bf16.msrb.mxu1 %v1276_v35 }
  0x3a   : > { %737 = vmatpush.bf16.msrb.mxu0 %v1296_v36 }
  0x3d   : > { %678 = vmatpush.bf16.msrb.mxu2 %v1283_v37  ;;  %650 = vmatpush.bf16.msrb.mxu1 %v1275_v38 }
  0x3e   : > { %738 = vmatpush.bf16.msrb.mxu0 %v1295_v41 }
  0x40   : > { %637 = vmatmul.bf16.gmra.mxu1 %v1071_v45 }
  0x41   : > { %679 = vmatpush.bf16.msrb.mxu2 %v1282_v42  ;;  %651 = vmatpush.bf16.msrb.mxu1 %v1274_v43  ;;  %v1717_v43 = vld [vmem:[%s1807_s2] ss:$0 sm:$0xff] }
  0x42   : > { %716 = vmatmul.bf16.gmra.mxu3 %v1063_v52 }
  0x43   : > { %1232 = vmatmul.msk.bf16.vlgmr.msrb.gmra.mxu0 %vm606_vm0, %v1047_v51 }
  0x45   : > { %680 = vmatpush.bf16.msrb.mxu2 %v1281_v49  ;;  %652 = vmatpush.bf16.msrb.mxu1 %v1273_v50 }
  0x49   : > { %681 = vmatpush.bf16.msrb.mxu2 %v1280_v53  ;;  %653 = vmatpush.bf16.msrb.mxu1 %v1272_v54 }
  0x4d   : > { %682 = vmatpush.bf16.msrb.mxu2 %v1279_v55  ;;  %654 = vmatpush.bf16.msrb.mxu1 %v1271_v56 }
  0x50   : > { %683 = vmatmul.bf16.vlgmr.msrb.gmra.mxu2 %v1039_v59  ;;  %655 = vmatmul.bf16.vlgmr.msrb.gmra.mxu1 %v1035_v63 }
  0x52   : > { %721 = vmatmul.bf16.gmra.mxu3 %v1083_v4 }
  0x53   : > { %1233 = vmatmul.msk.bf16.gmra.mxu0 %vm606_vm0, %v1067_v3 }
  0x60   : > { %688 = vmatmul.bf16.gmra.mxu2 %v1059_v8  ;;  %660 = vmatmul.bf16.gmra.mxu1 %v1055_v12 }
  0x62   : > { %726 = vmatmul.bf16.gmra.mxu3 %v372_v17 }
  0x63   : > { %1234 = vmatmul.msk.bf16.gmra.mxu0 %vm606_vm0, %v1087_v16 }
  0x70   : > { %693 = vmatmul.bf16.gmra.mxu2 %v1079_v21  ;;  %665 = vmatmul.bf16.gmra.mxu1 %v1075_v25 }
  0x73   : > { %1235 = vmatmul.msk.bf16.gmra.mxu0 %vm606_vm0, %v373_v26 }
  0x80   : > { %698 = vmatmul.bf16.gmra.mxu2 %v371_v29  ;;  %670 = vmatmul.bf16.gmra.mxu1 %v370_v30 }
  0xad   : > { %v633_v31 = vpop.f32.mrf.mxu1 }
  0xae   : > { %v634_v63 = vadd.f32 %v1717_v43, %v633_v31 }
  0xb0   : > { %v628_v32 = vpop.f32.mrf.mxu0 }
  0xb1   : > { %v629_v44 = vadd.f32 %v1717_v43, %v628_v32 }
  0xb3   : > { %v1710_v33 = vpop.f32.mrf.mxu2 }
  0xb5   : > { %v635_v34 = vpop.f32.mrf.mxu1  ;;  %v712_v35 = vpop.f32.mrf.mxu3 }
  0xb6   : > { %v636_v10 = vadd.f32 %v1717_v43, %v635_v34 }
  0xb8   : > { %v630_v36 = vpop.f32.mrf.mxu0 }
  0xb9   : > { %v631_v52 = vadd.f32 %v1717_v43, %v630_v36 }
  0xbb   : > { %v645_v37 = vpop.f32.mrf.mxu2 }
  0xbd   : > { %v638_v38 = vpop.f32.mrf.mxu1  ;;  %v714_v39 = vpop.f32.mrf.mxu3 }
  0xbe   : > { %v639_v22 = vadd.f32 %v1717_v43, %v638_v38 }
  0xc0   : > { %v740_v40 = vpop.f32.mrf.mxu0 }
  0xc5   : > { %v1712_v41 = vpop.f32.mrf.mxu1  ;;  %v717_v42 = vpop.f32.mrf.mxu3 }
  0xc6   : > { %v641_v34 = vadd.f32 %v1717_v43, %v1712_v41 }
  0xc8   : > { %v742_v13 = vpop.f32.mrf.mxu0 }
  0xcd   : > { %v656_v45 = vpop.f32.mrf.mxu1  ;;  %v719_v47 = vpop.f32.mrf.mxu3 }
  0xce   : > { %v657_v46 = vadd.f32 %v656_v45, %v629_v44  ;;  %v644_v45 = vadd.f32 %v1717_v43, %v1710_v33 }
  0xd0   : > { %v745_v49 = vpop.f32.mrf.mxu0 }
  0xd3   : > { %v684_v48 = vpop.f32.mrf.mxu2 }
  0xd4   : > { %v685_v50 = vadd.f32 %v684_v48, %v657_v46 }
  0xd5   : > { %v658_v54 = vpop.f32.mrf.mxu1  ;;  %v722_v56 = vpop.f32.mrf.mxu3 }
  0xd6   : > { %v713_v51 = vadd.f32 %v712_v35, %v685_v50  ;;  %v659_v55 = vadd.f32 %v658_v54, %v631_v52 }
  0xd8   : > { %v741_v53 = vadd.f32 %v740_v40, %v713_v51  ;;  %v747_v59 = vpop.f32.mrf.mxu0 }
  0xda   : > { %v759_v57 = vmax.f32 %v741_v53, 0.0 }
  0xdb   : > { %v686_v58 = vpop.f32.mrf.mxu2 }
  0xdc   : > { %v766_v60 = vpack.c.bf16 %v759_v57, %v759_v57  ;;  %v687_v61 = vadd.f32 %v686_v58, %v659_v55 }
  0xdd   : > { %v661_v1 = vpop.f32.mrf.mxu1  ;;  %v724_v3 = vpop.f32.mrf.mxu3 }
  0xde   : > { %774 = vst.msk [vmem:[%s1722_s23] sm:$0xf] %vm773_vm1, %v766_v60  ;;  %v715_v62 = vadd.f32 %v714_v39, %v687_v61  ;;  %v662_v2 = vadd.f32 %v661_v1, %v634_v63 }
  0xe0   : > { %v743_v0 = vadd.f32 %v742_v13, %v715_v62  ;;  %v750_v6 = vpop.f32.mrf.mxu0 }
  0xe2   : > { %v760_v4 = vmax.f32 %v743_v0, 0.0 }
  0xe3   : > { %v689_v5 = vpop.f32.mrf.mxu2 }
  0xe4   : > { %v767_v7 = vpack.c.bf16 %v760_v4, %v760_v4  ;;  %v690_v8 = vadd.f32 %v689_v5, %v662_v2 }
  0xe5   : > { %v663_v12 = vpop.f32.mrf.mxu1  ;;  %v727_v15 = vpop.f32.mrf.mxu3 }
  0xe6   : > { %775 = vst.msk [vmem:[%s1722_s23 + $0x4] sm:$0xf] %vm773_vm1, %v767_v7  ;;  %v718_v9 = vadd.f32 %v717_v42, %v690_v8  ;;  %v664_v14 = vadd.f32 %v663_v12, %v636_v10 }
  0xe8   : > { %v746_v11 = vadd.f32 %v745_v49, %v718_v9  ;;  %v752_v18 = vpop.f32.mrf.mxu0 }
  0xea   : > { %v761_v16 = vmax.f32 %v746_v11, 0.0 }
  0xeb   : > { %v691_v17 = vpop.f32.mrf.mxu2 }
  0xec   : > { %v768_v19 = vpack.c.bf16 %v761_v16, %v761_v16  ;;  %v692_v20 = vadd.f32 %v691_v17, %v664_v14 }
  0xed   : > { %v666_v24 = vpop.f32.mrf.mxu1  ;;  %v729_v26 = vpop.f32.mrf.mxu3 }
  0xee   : > { %776 = vst.msk [vmem:[%s1722_s23 + $0x8] sm:$0xf] %vm773_vm1, %v768_v19  ;;  %v720_v21 = vadd.f32 %v719_v47, %v692_v20  ;;  %v667_v25 = vadd.f32 %v666_v24, %v639_v22 }
  0xf0   : > { %v748_v23 = vadd.f32 %v747_v59, %v720_v21  ;;  %v755_v29 = vpop.f32.mrf.mxu0 }
  0xf2   : > { %v762_v27 = vmax.f32 %v748_v23, 0.0 }
  0xf3   : > { %v694_v28 = vpop.f32.mrf.mxu2 }
  0xf4   : > { %v769_v30 = vpack.c.bf16 %v762_v27, %v762_v27  ;;  %v695_v31 = vadd.f32 %v694_v28, %v667_v25 }
  0xf5   : > { %v668_v36 = vpop.f32.mrf.mxu1 }
  0xf6   : > { %777 = vst.msk [vmem:[%s1722_s23 + $0xc] sm:$0xf] %vm773_vm1, %v769_v30  ;;  %v723_v32 = vadd.f32 %v722_v56, %v695_v31  ;;  %v669_v37 = vadd.f32 %v668_v36, %v641_v34 }
  0xf8   : > { %v751_v35 = vadd.f32 %v750_v6, %v723_v32  ;;  %v757_v40 = vpop.f32.mrf.mxu0 }
  0xfa   : > { %v763_v38 = vmax.f32 %v751_v35, 0.0 }
  0xfb   : > { %v696_v39 = vpop.f32.mrf.mxu2 }
  0xfc   : > { %v770_v42 = vpack.c.bf16 %v763_v38, %v763_v38  ;;  %v697_v13 = vadd.f32 %v696_v39, %v669_v37 }
  0xfd   : > { %v671_v47 = vpop.f32.mrf.mxu1 }
  0xfe   : > { %778 = vst.msk [vmem:[%s1722_s23 + $0x10] sm:$0xf] %vm773_vm1, %v770_v42  ;;  %v725_v44 = vadd.f32 %v724_v3, %v697_v13  ;;  %v672_v48 = vadd.f32 %v671_v47, %v644_v45 }
 0x100   : > { %v753_v46 = vadd.f32 %v752_v18, %v725_v44 }
 0x102   : > { %v764_v41 = vmax.f32 %v753_v46, 0.0 }
 0x103   : > { %v699_v49 = vpop.f32.mrf.mxu2 }
 0x104   : > { %v771_v50 = vpack.c.bf16 %v764_v41, %v764_v41  ;;  %v700_v51 = vadd.f32 %v699_v49, %v672_v48 }
 0x105   : > { %v673_v54 = vpop.f32.mrf.mxu1 }
 0x106   : > { %779 = vst.msk [vmem:[%s1722_s23 + $0x14] sm:$0xf] %vm773_vm1, %v771_v50  ;;  %v728_v52 = vadd.f32 %v727_v15, %v700_v51 }
 0x108   : > { %v756_v53 = vadd.f32 %v755_v29, %v728_v52 }
 0x10a   : > { %v765_v55 = vmax.f32 %v756_v53, 0.0  ;;  %787 = sbr.rel (!%p1547_p4) target bundleno = 328 (0x148), region = 36 }
 0x10b   : > { %v701_v56 = vpop.f32.mrf.mxu2 }
 0x10c   : > { %v772_v57 = vpack.c.bf16 %v765_v55, %v765_v55 }
 0x10e   : > { %780 = vst.msk [vmem:[%s1722_s23 + $0x18] sm:$0xf] %vm773_vm1, %v772_v57 }
 0x10f   : > { %s1817_s12 = smov (!%p790_p8, %s789_s12), 7 }
 0x110   : > { %s1236_s28 = sshll.u32 %s1817_s12, 2 }
 0x111   : > { %p1239_p9 = scmp.eq.s32.totalorder %s1236_s28, 0 }
 0x112   : > { %1408 = sdivrem.u32 (!%p1239_p9), %s1817_s12, 7 }
 0x113   : > { %798 = sbr.rel (%p1239_p9) target bundleno = 328 (0x148), region = 40 }
 0x11b   : > { %s1758_s20 = spop.drf %1408 }
 0x11c   : > { %s1410_s4 = spop.drf %1408  ;;  %p1240_p10 = scmp.le.s32.totalorder %s1758_s20, 0 }
 0x11d   : > { %s1810_s15 = smov (!%p1240_p10), %s1752_s27  ;;  %s1811_s29 = smov (!%p1240_p10), %s1722_s23 }
 0x11e   : > { %979 = sbr.rel (%p1240_p10) target bundleno = 302 (0x12e), region = 112  ;;  %s1767_s5 = smov (!%p1240_p10), 0  }
 0x11f   : > { %s1769_s6 = smov (!%p1240_p10), 0  }
 0x123 LB: >> { %v816_v33 = vld [vmem:[%s1476_s29] sm:$0xf]  ;;  %v818_v43 = vld [vmem:[%s1476_s29 + $0x4] sm:$0xf]  ;;  %v820_v58 = vld [vmem:[%s1476_s29 + $0x8] sm:$0xf]  ;;  %s1484_s6 = sphi %s1769_s6, %s810_s6   ;;  %s1480_s5 = sphi %s1767_s5, %s1812_s5   ;;  %s1476_s29 = sphi %s1811_s29, %s835_s29   ;;  %s1472_s15 = sphi %s1810_s15, %s836_s15  }
 0x124   : >> { %817 = vst [vmem:[%s1472_s15] sm:$0xf] %v816_v33  ;;  %v822_v59 = vld [vmem:[%s1476_s29 + $0xc] sm:$0xf]  ;;  %s830_s7 = sadd.s32 1, %s1480_s5  ;;  %v824_v60 = vld [vmem:[%s1476_s29 + $0x10] sm:$0xf] }
 0x125   : >> { %819 = vst [vmem:[%s1472_s15 + $0x4] sm:$0xf] %v818_v43  ;;  %p831_p11 = scmp.ge.s32.totalorder %s830_s7, %s1758_s20  ;;  %v826_v61 = vld [vmem:[%s1476_s29 + $0x14] sm:$0xf]  ;;  %v828_v62 = vld [vmem:[%s1476_s29 + $0x18] sm:$0xf] }
 0x126   : >> { %821 = vst [vmem:[%s1472_s15 + $0x8] sm:$0xf] %v820_v58  ;;  %s810_s6 = sadd.s32 1, %s1484_s6  }
 0x127   : >> { %823 = vst [vmem:[%s1472_s15 + $0xc] sm:$0xf] %v822_v59  ;;  %s1819_s7 = smov (%p831_p11, %s830_s7), 0  ;;  %p809_p12 = scmp.ge.s32.totalorder %s810_s6, %s1758_s20 }
 0x128   : >> { %825 = vst [vmem:[%s1472_s15 + $0x10] sm:$0xf] %v824_v60  ;;  %s833_s8 = smul.u32 28, %s1819_s7  ;;  %s1812_s5 = smov %s1819_s7 }
 0x129   : >> { %827 = vst [vmem:[%s1472_s15 + $0x14] sm:$0xf] %v826_v61  ;;  %812 = sbr.rel (!%p809_p12) target bundleno = 291 (0x123), region = 118 }
 0x12a   : >> { %829 = vst [vmem:[%s1472_s15 + $0x18] sm:$0xf] %v828_v62  ;;  %s835_s29 = scalar_lea.vmem %s1722_s23, %s833_s8 [#allocation2]   ;;  %s836_s15 = scalar_lea.vmem %s1752_s27, %s833_s8  }
 0x12e PF: > { %1411 = sdivrem.u32 %s1817_s12, 7 }
 0x12f   : > { %s1241_s9 = smul.u32 28, %s1758_s20 }
 0x131   : > { %s1790_s10 = scalar_lea.vmem %s1722_s23, %s1241_s9 [#allocation2]   ;;  %s843_s11 = scalar_lea.vmem %s1752_s27, %s1241_s9  }
 0x137   : > { %s1412_s14 = spop.drf %1411 }
 0x138   : > { %s1413_s17 = spop.drf %1411 }
 0x139   : > { %p1243_p13 = scmp.le.s32.totalorder %s1413_s17, 0 }
 0x13a   : > { %s1486_s30 = smov (!%p1243_p13), %s843_s11   ;;  %s1490_s18 = smov (!%p1243_p13), %s1790_s10  }
 0x13b   : > { %993 = sbr.rel (%p1243_p13) target bundleno = 328 (0x148), region = 123  ;;  %s1494_s21 = smov (!%p1243_p13), 0  }
 0x13c   : > { %s1498_s22 = smov (!%p1243_p13), 0  }
 0x140 LB: >> { %v853_v63 = vld [vmem:[%s1492_s18] sm:$0xf]  ;;  %s855_s23 = sadd.s32 1, %s1496_s21  ;;  %s847_s22 = sadd.s32 1, %s1500_s22   ;;  %s1500_s22 = sphi %s1498_s22, %s847_s22   ;;  %s1496_s21 = sphi %s1494_s21, %s1495_s21   ;;  %s1492_s18 = sphi %s1490_s18, %s860_s18   ;;  %s1488_s30 = sphi %s1486_s30, %s861_s30  }
 0x141   : >> { %854 = vst [vmem:[%s1488_s30] sm:$0xf] %v853_v63  ;;  %p856_p0 = scmp.ge.s32.totalorder %s855_s23, %s1413_s17  ;;  %p846_p1 = scmp.ge.s32.totalorder %s847_s22, %s1413_s17 }
 0x143   : >> { %s1821_s23 = smov (%p856_p0, %s855_s23), 0  ;;  %849 = sbr.rel (!%p846_p1) target bundleno = 320 (0x140), region = 129 }
 0x144   : >> { %s1244_s12 = sshll.u32 %s1821_s23, 2  ;;  %s1495_s21 = smov %s1821_s23  }
 0x145   : >> { %s860_s18 = scalar_lea.vmem %s1790_s10, %s1244_s12 [#allocation2]   ;;  %s861_s30 = scalar_lea.vmem %s843_s11, %s1244_s12  }
 0x148 PF: > { %p10_p2 = scmp.ge.s32.totalorder %s1537_s16, 4   ;;  %s1813_s12 = smov %s1464_s13 }
 0x149   : > { %s1814_s13 = smov %s1545_s19  ;;  %s1815_s14 = smov %s1537_s16 }
 0x14a   :  { %12 = sbr.rel (!%p10_p2) target bundleno = 2 (0x2), region = 140 }

// kernel: conv_forward.7
= control target key start
LH: loop header
LB: loop body
LE: loop exit
PB: predicated region body
PF: predicated region fallthrough
CT: control target
= control target key end

     0   :  { %13 = vsyncpa [#allocation5], 0  ;;  %s11394_s0 = inlined_call_operand.vmem [shape: bf16[2,3136], index: 0, kind: input, shape index: {}]   ;;  %s11395_s1 = inlined_call_operand.vmem [shape: bf16[3136,1024], index: 1, kind: input, shape index: {}]   ;;  %s11396_s2 = inlined_call_operand.vmem [shape: f32[1,1024], index: 2, kind: input, shape index: {}]   ;;  %s11397_s3 = inlined_call_operand.vmem [shape: bf16[1024,256], index: 3, kind: input, shape index: {}]   ;;  %s11398_s4 = inlined_call_operand.vmem [shape: f32[1,256], index: 4, kind: input, shape index: {}]   ;;  %s11399_s5 = inlined_call_operand.hbm [shape: f32[2,6], index: 5, kind: output, shape index: {0}]   ;;  %s11400_s6 = inlined_call_operand.hbm [shape: f32[2,6], index: 6, kind: output, shape index: {1}]   ;;  %s11401_s7 = inlined_call_operand.hbm [shape: f32[2,6], index: 7, kind: output, shape index: {2}]  }
   0x1   :  { %14 = vsyncpa [#allocation7], 0  ;;  %s9490_s24 = smov 0   ;;  %s9492_s25 = smov 0  }
   0x2   :  { %s9494_s26 = smov 0   ;;  %s9496_s27 = smov 0  }
   0x3   :  { %s9498_s28 = smov 0  }
   0x4 LB: > { %s7099_s29 = sadd.s32 4294967295, %s9444_s28   ;;  %s29_s30 = sadd.s32 1, %s9440_s27  ;;  %s9444_s28 = sphi %s9498_s28, %s20_s28   ;;  %s9440_s27 = sphi %s9496_s27, %s11406_s27   ;;  %s9436_s26 = sphi %s9494_s26, %s11405_s26   ;;  %s9432_s25 = sphi %s9492_s25, %s11404_s25   ;;  %s9428_s24 = sphi %s9490_s24, %s11403_s24  }
   0x5   : > { %p30_p0 = scmp.ge.s32.totalorder %s29_s30, 4  ;;  %p72_p1 = scmp.ne.s32.totalorder %s9432_s25, %s9428_s24 }
   0x6   : > { %p73_p2 = scmp.eq.s32.totalorder %s9444_s28, 0  ;;  %s65_s9 = sadd.s32 1, %s9432_s25 }
   0x7   : > { %s11408_s30 = smov (%p30_p0, %s29_s30), 0  ;;  %p7102_p5 = scmp.ge.s32.totalorder %s9444_s28, 4 }
   0x8   : > { %p74_p3 = por %p73_p2, %p72_p1  ;;  %s62_s8 = ssub.s32 %s9440_s27, %s11408_s30 }
   0x9   : > { %p63_p4 = scmp.eq.s32.totalorder %s62_s8, 0  ;;  %259 = sbr.rel (%p7102_p5) target bundleno = 410 (0x19a), region = 24 }
   0xb   : > { %s9526_s10 = scalar_select %p63_p4, %s9432_s25, %s65_s9  }
   0xe   : > { %262 = sbr.rel (!%p74_p3) target bundleno = 410 (0x19a), region = 28  ;;  %s264_s11 = sand.u32 (%p74_p3), 1, %s9432_s25  }
   0xf   : > { %s8818_s12 = sshll.u32 (%p74_p3), %s9440_s27, 3  ;;  %s9244_s13 = smul.u32 (%p74_p3), 3136, %s264_s11 }
  0x10   : > { %s9534_s16 = scalar_lea.vmem (%p74_p3), %s11395_s1, %s8818_s12 }
  0x11   : > { %v1081_v0 = vld [vmem:[%s9534_s16] sm:$0xff] (%p74_p3)  ;;  %s9539_s17 = scalar_lea.vmem (%p74_p3), [#allocation3], %s9244_s13 }
  0x12   : > { %v1083_v1 = vld [vmem:[%s9534_s16 + $0x20] sm:$0xff] (%p74_p3)  ;;  %1082 = vst [vmem:[%s9539_s17] sm:$0xff] (%p74_p3), %v1081_v0 }
  0x13   : > { %v1085_v2 = vld [vmem:[%s9534_s16 + $0x40] sm:$0xff]  ;;  %1084 = vst [vmem:[%s9539_s17 + $0x8] sm:$0xff] %v1083_v1 }
  0x14   : > { %v1087_v3 = vld [vmem:[%s9534_s16 + $0x60] sm:$0xff]  ;;  %1086 = vst [vmem:[%s9539_s17 + $0x10] sm:$0xff] %v1085_v2 }
  0x15   : > { %v1089_v4 = vld [vmem:[%s9534_s16 + $0x80] sm:$0xff]  ;;  %1088 = vst [vmem:[%s9539_s17 + $0x18] sm:$0xff] %v1087_v3 }
  0x16   : > { %v1091_v5 = vld [vmem:[%s9534_s16 + $0xa0] sm:$0xff]  ;;  %1090 = vst [vmem:[%s9539_s17 + $0x20] sm:$0xff] %v1089_v4 }
  0x17   : > { %v1093_v6 = vld [vmem:[%s9534_s16 + $0xc0] sm:$0xff]  ;;  %1092 = vst [vmem:[%s9539_s17 + $0x28] sm:$0xff] %v1091_v5 }
  0x18   : > { %v1095_v7 = vld [vmem:[%s9534_s16 + $0xe0] sm:$0xff]  ;;  %1094 = vst [vmem:[%s9539_s17 + $0x30] sm:$0xff] %v1093_v6 }
  0x19   : > { %v1097_v8 = vld [vmem:[%s9534_s16 + $0x100] sm:$0xff]  ;;  %1096 = vst [vmem:[%s9539_s17 + $0x38] sm:$0xff] %v1095_v7 }
  0x1a   : > { %v1099_v9 = vld [vmem:[%s9534_s16 + $0x120] sm:$0xff]  ;;  %1098 = vst [vmem:[%s9539_s17 + $0x40] sm:$0xff] %v1097_v8 }
  0x1b   : > { %v1101_v10 = vld [vmem:[%s9534_s16 + $0x140] sm:$0xff]  ;;  %1100 = vst [vmem:[%s9539_s17 + $0x48] sm:$0xff] %v1099_v9 }
  0x1c   : > { %v1103_v11 = vld [vmem:[%s9534_s16 + $0x160] sm:$0xff]  ;;  %1102 = vst [vmem:[%s9539_s17 + $0x50] sm:$0xff] %v1101_v10 }
  0x1d   : > { %v1105_v12 = vld [vmem:[%s9534_s16 + $0x180] sm:$0xff]  ;;  %1104 = vst [vmem:[%s9539_s17 + $0x58] sm:$0xff] %v1103_v11 }
  0x1e   : > { %v1107_v13 = vld [vmem:[%s9534_s16 + $0x1a0] sm:$0xff]  ;;  %1106 = vst [vmem:[%s9539_s17 + $0x60] sm:$0xff] %v1105_v12 }
  0x1f   : > { %v1109_v14 = vld [vmem:[%s9534_s16 + $0x1c0] sm:$0xff]  ;;  %1108 = vst [vmem:[%s9539_s17 + $0x68] sm:$0xff] %v1107_v13 }
  0x20   : > { %v1111_v15 = vld [vmem:[%s9534_s16 + $0x1e0] sm:$0xff]  ;;  %1110 = vst [vmem:[%s9539_s17 + $0x70] sm:$0xff] %v1109_v14 }
  0x21   : > { %v1113_v16 = vld [vmem:[%s9534_s16 + $0x200] sm:$0xff]  ;;  %1112 = vst [vmem:[%s9539_s17 + $0x78] sm:$0xff] %v1111_v15 }
  0x22   : > { %v1115_v17 = vld [vmem:[%s9534_s16 + $0x220] sm:$0xff]  ;;  %1114 = vst [vmem:[%s9539_s17 + $0x80] sm:$0xff] %v1113_v16 }
  0x23   : > { %v1117_v18 = vld [vmem:[%s9534_s16 + $0x240] sm:$0xff]  ;;  %1116 = vst [vmem:[%s9539_s17 + $0x88] sm:$0xff] %v1115_v17 }
  0x24   : > { %v1119_v19 = vld [vmem:[%s9534_s16 + $0x260] sm:$0xff]  ;;  %1118 = vst [vmem:[%s9539_s17 + $0x90] sm:$0xff] %v1117_v18 }
  0x25   : > { %v1121_v20 = vld [vmem:[%s9534_s16 + $0x280] sm:$0xff]  ;;  %1120 = vst [vmem:[%s9539_s17 + $0x98] sm:$0xff] %v1119_v19 }
  0x26   : > { %v1123_v21 = vld [vmem:[%s9534_s16 + $0x2a0] sm:$0xff]  ;;  %1122 = vst [vmem:[%s9539_s17 + $0xa0] sm:$0xff] %v1121_v20 }
  0x27   : > { %v1125_v22 = vld [vmem:[%s9534_s16 + $0x2c0] sm:$0xff]  ;;  %1124 = vst [vmem:[%s9539_s17 + $0xa8] sm:$0xff] %v1123_v21 }
  0x28   : > { %v1127_v23 = vld [vmem:[%s9534_s16 + $0x2e0] sm:$0xff]  ;;  %1126 = vst [vmem:[%s9539_s17 + $0xb0] sm:$0xff] %v1125_v22 }
  0x29   : > { %v1129_v24 = vld [vmem:[%s9534_s16 + $0x300] sm:$0xff]  ;;  %1128 = vst [vmem:[%s9539_s17 + $0xb8] sm:$0xff] %v1127_v23 }
  0x2a   : > { %v1131_v25 = vld [vmem:[%s9534_s16 + $0x320] sm:$0xff]  ;;  %1130 = vst [vmem:[%s9539_s17 + $0xc0] sm:$0xff] %v1129_v24 }
  0x2b   : > { %v1133_v26 = vld [vmem:[%s9534_s16 + $0x340] sm:$0xff]  ;;  %1132 = vst [vmem:[%s9539_s17 + $0xc8] sm:$0xff] %v1131_v25 }
  0x2c   : > { %v1135_v27 = vld [vmem:[%s9534_s16 + $0x360] sm:$0xff]  ;;  %1134 = vst [vmem:[%s9539_s17 + $0xd0] sm:$0xff] %v1133_v26 }
  0x2d   : > { %v1137_v28 = vld [vmem:[%s9534_s16 + $0x380] sm:$0xff]  ;;  %1136 = vst [vmem:[%s9539_s17 + $0xd8] sm:$0xff] %v1135_v27 }
  0x2e   : > { %v1139_v29 = vld [vmem:[%s9534_s16 + $0x3a0] sm:$0xff]  ;;  %1138 = vst [vmem:[%s9539_s17 + $0xe0] sm:$0xff] %v1137_v28 }
  0x2f   : > { %v1141_v30 = vld [vmem:[%s9534_s16 + $0x3c0] sm:$0xff]  ;;  %1140 = vst [vmem:[%s9539_s17 + $0xe8] sm:$0xff] %v1139_v29 }
  0x30   : > { %v1143_v31 = vld [vmem:[%s9534_s16 + $0x3e0] sm:$0xff]  ;;  %1142 = vst [vmem:[%s9539_s17 + $0xf0] sm:$0xff] %v1141_v30 }
  0x31   : > { %v1145_v32 = vld [vmem:[%s9534_s16 + $0x400] sm:$0xff]  ;;  %1144 = vst [vmem:[%s9539_s17 + $0xf8] sm:$0xff] %v1143_v31 }
  0x32   : > { %v1147_v33 = vld [vmem:[%s9534_s16 + $0x420] sm:$0xff]  ;;  %1146 = vst [vmem:[%s9539_s17 + $0x100] sm:$0xff] %v1145_v32 }
  0x33   : > { %v1149_v34 = vld [vmem:[%s9534_s16 + $0x440] sm:$0xff]  ;;  %1148 = vst [vmem:[%s9539_s17 + $0x108] sm:$0xff] %v1147_v33 }
  0x34   : > { %v1151_v35 = vld [vmem:[%s9534_s16 + $0x460] sm:$0xff]  ;;  %1150 = vst [vmem:[%s9539_s17 + $0x110] sm:$0xff] %v1149_v34 }
  0x35   : > { %v1153_v36 = vld [vmem:[%s9534_s16 + $0x480] sm:$0xff]  ;;  %1152 = vst [vmem:[%s9539_s17 + $0x118] sm:$0xff] %v1151_v35 }
  0x36   : > { %v1155_v37 = vld [vmem:[%s9534_s16 + $0x4a0] sm:$0xff]  ;;  %1154 = vst [vmem:[%s9539_s17 + $0x120] sm:$0xff] %v1153_v36 }
  0x37   : > { %v1157_v38 = vld [vmem:[%s9534_s16 + $0x4c0] sm:$0xff]  ;;  %1156 = vst [vmem:[%s9539_s17 + $0x128] sm:$0xff] %v1155_v37 }
  0x38   : > { %v1159_v39 = vld [vmem:[%s9534_s16 + $0x4e0] sm:$0xff]  ;;  %1158 = vst [vmem:[%s9539_s17 + $0x130] sm:$0xff] %v1157_v38 }
  0x39   : > { %v1161_v40 = vld [vmem:[%s9534_s16 + $0x500] sm:$0xff]  ;;  %1160 = vst [vmem:[%s9539_s17 + $0x138] sm:$0xff] %v1159_v39 }
  0x3a   : > { %v1163_v41 = vld [vmem:[%s9534_s16 + $0x520] sm:$0xff]  ;;  %1162 = vst [vmem:[%s9539_s17 + $0x140] sm:$0xff] %v1161_v40 }
  0x3b   : > { %v1165_v42 = vld [vmem:[%s9534_s16 + $0x540] sm:$0xff]  ;;  %1164 = vst [vmem:[%s9539_s17 + $0x148] sm:$0xff] %v1163_v41 }
  0x3c   : > { %v1167_v43 = vld [vmem:[%s9534_s16 + $0x560] sm:$0xff]  ;;  %1166 = vst [vmem:[%s9539_s17 + $0x150] sm:$0xff] %v1165_v42 }
  0x3d   : > { %v1169_v44 = vld [vmem:[%s9534_s16 + $0x580] sm:$0xff]  ;;  %1168 = vst [vmem:[%s9539_s17 + $0x158] sm:$0xff] %v1167_v43 }
  0x3e   : > { %v1171_v45 = vld [vmem:[%s9534_s16 + $0x5a0] sm:$0xff]  ;;  %1170 = vst [vmem:[%s9539_s17 + $0x160] sm:$0xff] %v1169_v44 }
  0x3f   : > { %v1173_v46 = vld [vmem:[%s9534_s16 + $0x5c0] sm:$0xff]  ;;  %1172 = vst [vmem:[%s9539_s17 + $0x168] sm:$0xff] %v1171_v45 }
  0x40   : > { %v1175_v47 = vld [vmem:[%s9534_s16 + $0x5e0] sm:$0xff]  ;;  %1174 = vst [vmem:[%s9539_s17 + $0x170] sm:$0xff] %v1173_v46 }
  0x41   : > { %v1177_v48 = vld [vmem:[%s9534_s16 + $0x600] sm:$0xff]  ;;  %1176 = vst [vmem:[%s9539_s17 + $0x178] sm:$0xff] %v1175_v47 }
  0x42   : > { %v1179_v49 = vld [vmem:[%s9534_s16 + $0x620] sm:$0xff]  ;;  %1178 = vst [vmem:[%s9539_s17 + $0x180] sm:$0xff] %v1177_v48 }
  0x43   : > { %v1181_v50 = vld [vmem:[%s9534_s16 + $0x640] sm:$0xff]  ;;  %1180 = vst [vmem:[%s9539_s17 + $0x188] sm:$0xff] %v1179_v49 }
  0x44   : > { %v1183_v51 = vld [vmem:[%s9534_s16 + $0x660] sm:$0xff]  ;;  %1182 = vst [vmem:[%s9539_s17 + $0x190] sm:$0xff] %v1181_v50 }
  0x45   : > { %v1185_v52 = vld [vmem:[%s9534_s16 + $0x680] sm:$0xff]  ;;  %1184 = vst [vmem:[%s9539_s17 + $0x198] sm:$0xff] %v1183_v51 }
  0x46   : > { %v1187_v53 = vld [vmem:[%s9534_s16 + $0x6a0] sm:$0xff]  ;;  %1186 = vst [vmem:[%s9539_s17 + $0x1a0] sm:$0xff] %v1185_v52 }
  0x47   : > { %v1189_v54 = vld [vmem:[%s9534_s16 + $0x6c0] sm:$0xff]  ;;  %1188 = vst [vmem:[%s9539_s17 + $0x1a8] sm:$0xff] %v1187_v53 }
  0x48   : > { %v1191_v55 = vld [vmem:[%s9534_s16 + $0x6e0] sm:$0xff]  ;;  %1190 = vst [vmem:[%s9539_s17 + $0x1b0] sm:$0xff] %v1189_v54 }
  0x49   : > { %v1193_v56 = vld [vmem:[%s9534_s16 + $0x700] sm:$0xff]  ;;  %1192 = vst [vmem:[%s9539_s17 + $0x1b8] sm:$0xff] %v1191_v55 }
  0x4a   : > { %v1195_v57 = vld [vmem:[%s9534_s16 + $0x720] sm:$0xff]  ;;  %1194 = vst [vmem:[%s9539_s17 + $0x1c0] sm:$0xff] %v1193_v56 }
  0x4b   : > { %v1197_v58 = vld [vmem:[%s9534_s16 + $0x740] sm:$0xff]  ;;  %1196 = vst [vmem:[%s9539_s17 + $0x1c8] sm:$0xff] %v1195_v57 }
  0x4c   : > { %v1199_v59 = vld [vmem:[%s9534_s16 + $0x760] sm:$0xff]  ;;  %1198 = vst [vmem:[%s9539_s17 + $0x1d0] sm:$0xff] %v1197_v58 }
  0x4d   : > { %v1201_v60 = vld [vmem:[%s9534_s16 + $0x780] sm:$0xff]  ;;  %1200 = vst [vmem:[%s9539_s17 + $0x1d8] sm:$0xff] %v1199_v59 }
  0x4e   : > { %v1203_v61 = vld [vmem:[%s9534_s16 + $0x7a0] sm:$0xff]  ;;  %1202 = vst [vmem:[%s9539_s17 + $0x1e0] sm:$0xff] %v1201_v60 }
  0x4f   : > { %v1205_v62 = vld [vmem:[%s9534_s16 + $0x7c0] sm:$0xff]  ;;  %1204 = vst [vmem:[%s9539_s17 + $0x1e8] sm:$0xff] %v1203_v61 }
  0x50   : > { %v1207_v63 = vld [vmem:[%s9534_s16 + $0x7e0] sm:$0xff]  ;;  %1206 = vst [vmem:[%s9539_s17 + $0x1f0] sm:$0xff] %v1205_v62 }
  0x51   : > { %v1209_v0 = vld [vmem:[%s9534_s16 + $0x800] sm:$0xff]  ;;  %1208 = vst [vmem:[%s9539_s17 + $0x1f8] sm:$0xff] %v1207_v63 }
  0x52   : > { %v1211_v1 = vld [vmem:[%s9534_s16 + $0x820] sm:$0xff]  ;;  %1210 = vst [vmem:[%s9539_s17 + $0x200] sm:$0xff] %v1209_v0 }
  0x53   : > { %v1213_v2 = vld [vmem:[%s9534_s16 + $0x840] sm:$0xff]  ;;  %1212 = vst [vmem:[%s9539_s17 + $0x208] sm:$0xff] %v1211_v1 }
  0x54   : > { %v1215_v3 = vld [vmem:[%s9534_s16 + $0x860] sm:$0xff]  ;;  %1214 = vst [vmem:[%s9539_s17 + $0x210] sm:$0xff] %v1213_v2 }
  0x55   : > { %v1217_v4 = vld [vmem:[%s9534_s16 + $0x880] sm:$0xff]  ;;  %1216 = vst [vmem:[%s9539_s17 + $0x218] sm:$0xff] %v1215_v3 }
  0x56   : > { %v1219_v5 = vld [vmem:[%s9534_s16 + $0x8a0] sm:$0xff]  ;;  %1218 = vst [vmem:[%s9539_s17 + $0x220] sm:$0xff] %v1217_v4 }
  0x57   : > { %v1221_v6 = vld [vmem:[%s9534_s16 + $0x8c0] sm:$0xff]  ;;  %1220 = vst [vmem:[%s9539_s17 + $0x228] sm:$0xff] %v1219_v5 }
  0x58   : > { %v1223_v7 = vld [vmem:[%s9534_s16 + $0x8e0] sm:$0xff]  ;;  %1222 = vst [vmem:[%s9539_s17 + $0x230] sm:$0xff] %v1221_v6 }
  0x59   : > { %v1225_v8 = vld [vmem:[%s9534_s16 + $0x900] sm:$0xff]  ;;  %1224 = vst [vmem:[%s9539_s17 + $0x238] sm:$0xff] %v1223_v7 }
  0x5a   : > { %v1227_v9 = vld [vmem:[%s9534_s16 + $0x920] sm:$0xff]  ;;  %1226 = vst [vmem:[%s9539_s17 + $0x240] sm:$0xff] %v1225_v8 }
  0x5b   : > { %v1229_v10 = vld [vmem:[%s9534_s16 + $0x940] sm:$0xff]  ;;  %1228 = vst [vmem:[%s9539_s17 + $0x248] sm:$0xff] %v1227_v9 }
  0x5c   : > { %v1231_v11 = vld [vmem:[%s9534_s16 + $0x960] sm:$0xff]  ;;  %1230 = vst [vmem:[%s9539_s17 + $0x250] sm:$0xff] %v1229_v10 }
  0x5d   : > { %v1233_v12 = vld [vmem:[%s9534_s16 + $0x980] sm:$0xff]  ;;  %1232 = vst [vmem:[%s9539_s17 + $0x258] sm:$0xff] %v1231_v11 }
  0x5e   : > { %v1235_v13 = vld [vmem:[%s9534_s16 + $0x9a0] sm:$0xff]  ;;  %1234 = vst [vmem:[%s9539_s17 + $0x260] sm:$0xff] %v1233_v12 }
  0x5f   : > { %v1237_v14 = vld [vmem:[%s9534_s16 + $0x9c0] sm:$0xff]  ;;  %1236 = vst [vmem:[%s9539_s17 + $0x268] sm:$0xff] %v1235_v13 }
  0x60   : > { %v1239_v15 = vld [vmem:[%s9534_s16 + $0x9e0] sm:$0xff]  ;;  %1238 = vst [vmem:[%s9539_s17 + $0x270] sm:$0xff] %v1237_v14 }
  0x61   : > { %v1241_v16 = vld [vmem:[%s9534_s16 + $0xa00] sm:$0xff]  ;;  %1240 = vst [vmem:[%s9539_s17 + $0x278] sm:$0xff] %v1239_v15 }
  0x62   : > { %v1243_v17 = vld [vmem:[%s9534_s16 + $0xa20] sm:$0xff]  ;;  %1242 = vst [vmem:[%s9539_s17 + $0x280] sm:$0xff] %v1241_v16 }
  0x63   : > { %v1245_v18 = vld [vmem:[%s9534_s16 + $0xa40] sm:$0xff]  ;;  %1244 = vst [vmem:[%s9539_s17 + $0x288] sm:$0xff] %v1243_v17 }
  0x64   : > { %v1247_v19 = vld [vmem:[%s9534_s16 + $0xa60] sm:$0xff]  ;;  %1246 = vst [vmem:[%s9539_s17 + $0x290] sm:$0xff] %v1245_v18 }
  0x65   : > { %v1249_v20 = vld [vmem:[%s9534_s16 + $0xa80] sm:$0xff]  ;;  %1248 = vst [vmem:[%s9539_s17 + $0x298] sm:$0xff] %v1247_v19 }
  0x66   : > { %v1251_v21 = vld [vmem:[%s9534_s16 + $0xaa0] sm:$0xff]  ;;  %1250 = vst [vmem:[%s9539_s17 + $0x2a0] sm:$0xff] %v1249_v20 }
  0x67   : > { %v1253_v22 = vld [vmem:[%s9534_s16 + $0xac0] sm:$0xff]  ;;  %1252 = vst [vmem:[%s9539_s17 + $0x2a8] sm:$0xff] %v1251_v21 }
  0x68   : > { %v1255_v23 = vld [vmem:[%s9534_s16 + $0xae0] sm:$0xff]  ;;  %1254 = vst [vmem:[%s9539_s17 + $0x2b0] sm:$0xff] %v1253_v22 }
  0x69   : > { %v1257_v24 = vld [vmem:[%s9534_s16 + $0xb00] sm:$0xff]  ;;  %1256 = vst [vmem:[%s9539_s17 + $0x2b8] sm:$0xff] %v1255_v23 }
  0x6a   : > { %v1259_v25 = vld [vmem:[%s9534_s16 + $0xb20] sm:$0xff]  ;;  %1258 = vst [vmem:[%s9539_s17 + $0x2c0] sm:$0xff] %v1257_v24 }
  0x6b   : > { %v1261_v26 = vld [vmem:[%s9534_s16 + $0xb40] sm:$0xff]  ;;  %1260 = vst [vmem:[%s9539_s17 + $0x2c8] sm:$0xff] %v1259_v25 }
  0x6c   : > { %v1263_v27 = vld [vmem:[%s9534_s16 + $0xb60] sm:$0xff]  ;;  %1262 = vst [vmem:[%s9539_s17 + $0x2d0] sm:$0xff] %v1261_v26 }
  0x6d   : > { %v1265_v28 = vld [vmem:[%s9534_s16 + $0xb80] sm:$0xff]  ;;  %1264 = vst [vmem:[%s9539_s17 + $0x2d8] sm:$0xff] %v1263_v27 }
  0x6e   : > { %v1267_v29 = vld [vmem:[%s9534_s16 + $0xba0] sm:$0xff]  ;;  %1266 = vst [vmem:[%s9539_s17 + $0x2e0] sm:$0xff] %v1265_v28 }
  0x6f   : > { %v1269_v30 = vld [vmem:[%s9534_s16 + $0xbc0] sm:$0xff]  ;;  %1268 = vst [vmem:[%s9539_s17 + $0x2e8] sm:$0xff] %v1267_v29 }
  0x70   : > { %v1271_v31 = vld [vmem:[%s9534_s16 + $0xbe0] sm:$0xff]  ;;  %1270 = vst [vmem:[%s9539_s17 + $0x2f0] sm:$0xff] %v1269_v30 }
  0x71   : > { %v1273_v32 = vld [vmem:[%s9534_s16 + $0xc00] sm:$0xff]  ;;  %1272 = vst [vmem:[%s9539_s17 + $0x2f8] sm:$0xff] %v1271_v31 }
  0x72   : > { %v1275_v33 = vld [vmem:[%s9534_s16 + $0xc20] sm:$0xff]  ;;  %1274 = vst [vmem:[%s9539_s17 + $0x300] sm:$0xff] %v1273_v32 }
  0x73   : > { %v1277_v34 = vld [vmem:[%s9534_s16 + $0xc40] sm:$0xff]  ;;  %1276 = vst [vmem:[%s9539_s17 + $0x308] sm:$0xff] %v1275_v33 }
  0x74   : > { %v1279_v35 = vld [vmem:[%s9534_s16 + $0xc60] sm:$0xff]  ;;  %1278 = vst [vmem:[%s9539_s17 + $0x310] sm:$0xff] %v1277_v34 }
  0x75   : > { %v1281_v36 = vld [vmem:[%s9534_s16 + $0xc80] sm:$0xff]  ;;  %1280 = vst [vmem:[%s9539_s17 + $0x318] sm:$0xff] %v1279_v35 }
  0x76   : > { %v1283_v37 = vld [vmem:[%s9534_s16 + $0xca0] sm:$0xff]  ;;  %1282 = vst [vmem:[%s9539_s17 + $0x320] sm:$0xff] %v1281_v36 }
  0x77   : > { %v1285_v38 = vld [vmem:[%s9534_s16 + $0xcc0] sm:$0xff]  ;;  %1284 = vst [vmem:[%s9539_s17 + $0x328] sm:$0xff] %v1283_v37 }
  0x78   : > { %v1287_v39 = vld [vmem:[%s9534_s16 + $0xce0] sm:$0xff]  ;;  %1286 = vst [vmem:[%s9539_s17 + $0x330] sm:$0xff] %v1285_v38 }
  0x79   : > { %v1289_v40 = vld [vmem:[%s9534_s16 + $0xd00] sm:$0xff]  ;;  %1288 = vst [vmem:[%s9539_s17 + $0x338] sm:$0xff] %v1287_v39 }
  0x7a   : > { %v1291_v41 = vld [vmem:[%s9534_s16 + $0xd20] sm:$0xff]  ;;  %1290 = vst [vmem:[%s9539_s17 + $0x340] sm:$0xff] %v1289_v40 }
  0x7b   : > { %v1293_v42 = vld [vmem:[%s9534_s16 + $0xd40] sm:$0xff]  ;;  %1292 = vst [vmem:[%s9539_s17 + $0x348] sm:$0xff] %v1291_v41 }
  0x7c   : > { %v1295_v43 = vld [vmem:[%s9534_s16 + $0xd60] sm:$0xff]  ;;  %1294 = vst [vmem:[%s9539_s17 + $0x350] sm:$0xff] %v1293_v42 }
  0x7d   : > { %v1297_v44 = vld [vmem:[%s9534_s16 + $0xd80] sm:$0xff]  ;;  %1296 = vst [vmem:[%s9539_s17 + $0x358] sm:$0xff] %v1295_v43 }
  0x7e   : > { %v1299_v45 = vld [vmem:[%s9534_s16 + $0xda0] sm:$0xff]  ;;  %1298 = vst [vmem:[%s9539_s17 + $0x360] sm:$0xff] %v1297_v44 }
  0x7f   : > { %v1301_v46 = vld [vmem:[%s9534_s16 + $0xdc0] sm:$0xff]  ;;  %1300 = vst [vmem:[%s9539_s17 + $0x368] sm:$0xff] %v1299_v45 }
  0x80   : > { %v1303_v47 = vld [vmem:[%s9534_s16 + $0xde0] sm:$0xff]  ;;  %1302 = vst [vmem:[%s9539_s17 + $0x370] sm:$0xff] %v1301_v46 }
  0x81   : > { %v1305_v48 = vld [vmem:[%s9534_s16 + $0xe00] sm:$0xff]  ;;  %1304 = vst [vmem:[%s9539_s17 + $0x378] sm:$0xff] %v1303_v47 }
  0x82   : > { %v1307_v49 = vld [vmem:[%s9534_s16 + $0xe20] sm:$0xff]  ;;  %1306 = vst [vmem:[%s9539_s17 + $0x380] sm:$0xff] %v1305_v48 }
  0x83   : > { %v1309_v50 = vld [vmem:[%s9534_s16 + $0xe40] sm:$0xff]  ;;  %1308 = vst [vmem:[%s9539_s17 + $0x388] sm:$0xff] %v1307_v49 }
  0x84   : > { %v1311_v51 = vld [vmem:[%s9534_s16 + $0xe60] sm:$0xff]  ;;  %1310 = vst [vmem:[%s9539_s17 + $0x390] sm:$0xff] %v1309_v50 }
  0x85   : > { %v1313_v52 = vld [vmem:[%s9534_s16 + $0xe80] sm:$0xff]  ;;  %1312 = vst [vmem:[%s9539_s17 + $0x398] sm:$0xff] %v1311_v51 }
  0x86   : > { %v1315_v53 = vld [vmem:[%s9534_s16 + $0xea0] sm:$0xff]  ;;  %1314 = vst [vmem:[%s9539_s17 + $0x3a0] sm:$0xff] %v1313_v52 }
  0x87   : > { %v1317_v54 = vld [vmem:[%s9534_s16 + $0xec0] sm:$0xff]  ;;  %1316 = vst [vmem:[%s9539_s17 + $0x3a8] sm:$0xff] %v1315_v53 }
  0x88   : > { %v1319_v55 = vld [vmem:[%s9534_s16 + $0xee0] sm:$0xff]  ;;  %1318 = vst [vmem:[%s9539_s17 + $0x3b0] sm:$0xff] %v1317_v54 }
  0x89   : > { %v1321_v56 = vld [vmem:[%s9534_s16 + $0xf00] sm:$0xff]  ;;  %1320 = vst [vmem:[%s9539_s17 + $0x3b8] sm:$0xff] %v1319_v55 }
  0x8a   : > { %v1323_v57 = vld [vmem:[%s9534_s16 + $0xf20] sm:$0xff]  ;;  %1322 = vst [vmem:[%s9539_s17 + $0x3c0] sm:$0xff] %v1321_v56 }
  0x8b   : > { %v1325_v58 = vld [vmem:[%s9534_s16 + $0xf40] sm:$0xff]  ;;  %1324 = vst [vmem:[%s9539_s17 + $0x3c8] sm:$0xff] %v1323_v57 }
  0x8c   : > { %v1327_v59 = vld [vmem:[%s9534_s16 + $0xf60] sm:$0xff]  ;;  %1326 = vst [vmem:[%s9539_s17 + $0x3d0] sm:$0xff] %v1325_v58 }
  0x8d   : > { %v1329_v60 = vld [vmem:[%s9534_s16 + $0xf80] sm:$0xff]  ;;  %1328 = vst [vmem:[%s9539_s17 + $0x3d8] sm:$0xff] %v1327_v59 }
  0x8e   : > { %v1331_v61 = vld [vmem:[%s9534_s16 + $0xfa0] sm:$0xff]  ;;  %1330 = vst [vmem:[%s9539_s17 + $0x3e0] sm:$0xff] %v1329_v60 }
  0x8f   : > { %v1333_v62 = vld [vmem:[%s9534_s16 + $0xfc0] sm:$0xff]  ;;  %1332 = vst [vmem:[%s9539_s17 + $0x3e8] sm:$0xff] %v1331_v61 }
  0x90   : > { %v1335_v63 = vld [vmem:[%s9534_s16 + $0xfe0] sm:$0xff]  ;;  %1334 = vst [vmem:[%s9539_s17 + $0x3f0] sm:$0xff] %v1333_v62 }
  0x91   : > { %v1337_v0 = vld [vmem:[%s9534_s16 + $0x1000] sm:$0xff]  ;;  %1336 = vst [vmem:[%s9539_s17 + $0x3f8] sm:$0xff] %v1335_v63 }
  0x92   : > { %v1339_v1 = vld [vmem:[%s9534_s16 + $0x1020] sm:$0xff]  ;;  %1338 = vst [vmem:[%s9539_s17 + $0x400] sm:$0xff] %v1337_v0 }
  0x93   : > { %v1341_v2 = vld [vmem:[%s9534_s16 + $0x1040] sm:$0xff]  ;;  %1340 = vst [vmem:[%s9539_s17 + $0x408] sm:$0xff] %v1339_v1 }
  0x94   : > { %v1343_v3 = vld [vmem:[%s9534_s16 + $0x1060] sm:$0xff]  ;;  %1342 = vst [vmem:[%s9539_s17 + $0x410] sm:$0xff] %v1341_v2 }
  0x95   : > { %v1345_v4 = vld [vmem:[%s9534_s16 + $0x1080] sm:$0xff]  ;;  %1344 = vst [vmem:[%s9539_s17 + $0x418] sm:$0xff] %v1343_v3 }
  0x96   : > { %v1347_v5 = vld [vmem:[%s9534_s16 + $0x10a0] sm:$0xff]  ;;  %1346 = vst [vmem:[%s9539_s17 + $0x420] sm:$0xff] %v1345_v4 }
  0x97   : > { %v1349_v6 = vld [vmem:[%s9534_s16 + $0x10c0] sm:$0xff]  ;;  %1348 = vst [vmem:[%s9539_s17 + $0x428] sm:$0xff] %v1347_v5 }
  0x98   : > { %v1351_v7 = vld [vmem:[%s9534_s16 + $0x10e0] sm:$0xff]  ;;  %1350 = vst [vmem:[%s9539_s17 + $0x430] sm:$0xff] %v1349_v6 }
  0x99   : > { %v1353_v8 = vld [vmem:[%s9534_s16 + $0x1100] sm:$0xff]  ;;  %1352 = vst [vmem:[%s9539_s17 + $0x438] sm:$0xff] %v1351_v7 }
  0x9a   : > { %v1355_v9 = vld [vmem:[%s9534_s16 + $0x1120] sm:$0xff]  ;;  %1354 = vst [vmem:[%s9539_s17 + $0x440] sm:$0xff] %v1353_v8 }
  0x9b   : > { %v1357_v10 = vld [vmem:[%s9534_s16 + $0x1140] sm:$0xff]  ;;  %1356 = vst [vmem:[%s9539_s17 + $0x448] sm:$0xff] %v1355_v9 }
  0x9c   : > { %v1359_v11 = vld [vmem:[%s9534_s16 + $0x1160] sm:$0xff]  ;;  %1358 = vst [vmem:[%s9539_s17 + $0x450] sm:$0xff] %v1357_v10 }
  0x9d   : > { %v1361_v12 = vld [vmem:[%s9534_s16 + $0x1180] sm:$0xff]  ;;  %1360 = vst [vmem:[%s9539_s17 + $0x458] sm:$0xff] %v1359_v11 }
  0x9e   : > { %v1363_v13 = vld [vmem:[%s9534_s16 + $0x11a0] sm:$0xff]  ;;  %1362 = vst [vmem:[%s9539_s17 + $0x460] sm:$0xff] %v1361_v12 }
  0x9f   : > { %v1365_v14 = vld [vmem:[%s9534_s16 + $0x11c0] sm:$0xff]  ;;  %1364 = vst [vmem:[%s9539_s17 + $0x468] sm:$0xff] %v1363_v13 }
  0xa0   : > { %v1367_v15 = vld [vmem:[%s9534_s16 + $0x11e0] sm:$0xff]  ;;  %1366 = vst [vmem:[%s9539_s17 + $0x470] sm:$0xff] %v1365_v14 }
  0xa1   : > { %v1369_v16 = vld [vmem:[%s9534_s16 + $0x1200] sm:$0xff]  ;;  %1368 = vst [vmem:[%s9539_s17 + $0x478] sm:$0xff] %v1367_v15 }
  0xa2   : > { %v1371_v17 = vld [vmem:[%s9534_s16 + $0x1220] sm:$0xff]  ;;  %1370 = vst [vmem:[%s9539_s17 + $0x480] sm:$0xff] %v1369_v16 }
  0xa3   : > { %v1373_v18 = vld [vmem:[%s9534_s16 + $0x1240] sm:$0xff]  ;;  %1372 = vst [vmem:[%s9539_s17 + $0x488] sm:$0xff] %v1371_v17 }
  0xa4   : > { %v1375_v19 = vld [vmem:[%s9534_s16 + $0x1260] sm:$0xff]  ;;  %1374 = vst [vmem:[%s9539_s17 + $0x490] sm:$0xff] %v1373_v18 }
  0xa5   : > { %v1377_v20 = vld [vmem:[%s9534_s16 + $0x1280] sm:$0xff]  ;;  %1376 = vst [vmem:[%s9539_s17 + $0x498] sm:$0xff] %v1375_v19 }
  0xa6   : > { %v1379_v21 = vld [vmem:[%s9534_s16 + $0x12a0] sm:$0xff]  ;;  %1378 = vst [vmem:[%s9539_s17 + $0x4a0] sm:$0xff] %v1377_v20 }
  0xa7   : > { %v1381_v22 = vld [vmem:[%s9534_s16 + $0x12c0] sm:$0xff]  ;;  %1380 = vst [vmem:[%s9539_s17 + $0x4a8] sm:$0xff] %v1379_v21 }
  0xa8   : > { %v1383_v23 = vld [vmem:[%s9534_s16 + $0x12e0] sm:$0xff]  ;;  %1382 = vst [vmem:[%s9539_s17 + $0x4b0] sm:$0xff] %v1381_v22 }
  0xa9   : > { %v1385_v24 = vld [vmem:[%s9534_s16 + $0x1300] sm:$0xff]  ;;  %1384 = vst [vmem:[%s9539_s17 + $0x4b8] sm:$0xff] %v1383_v23 }
  0xaa   : > { %v1387_v25 = vld [vmem:[%s9534_s16 + $0x1320] sm:$0xff]  ;;  %1386 = vst [vmem:[%s9539_s17 + $0x4c0] sm:$0xff] %v1385_v24 }
  0xab   : > { %v1389_v26 = vld [vmem:[%s9534_s16 + $0x1340] sm:$0xff]  ;;  %1388 = vst [vmem:[%s9539_s17 + $0x4c8] sm:$0xff] %v1387_v25 }
  0xac   : > { %v1391_v27 = vld [vmem:[%s9534_s16 + $0x1360] sm:$0xff]  ;;  %1390 = vst [vmem:[%s9539_s17 + $0x4d0] sm:$0xff] %v1389_v26 }
  0xad   : > { %v1393_v28 = vld [vmem:[%s9534_s16 + $0x1380] sm:$0xff]  ;;  %1392 = vst [vmem:[%s9539_s17 + $0x4d8] sm:$0xff] %v1391_v27 }
  0xae   : > { %v1395_v29 = vld [vmem:[%s9534_s16 + $0x13a0] sm:$0xff]  ;;  %1394 = vst [vmem:[%s9539_s17 + $0x4e0] sm:$0xff] %v1393_v28 }
  0xaf   : > { %v1397_v30 = vld [vmem:[%s9534_s16 + $0x13c0] sm:$0xff]  ;;  %1396 = vst [vmem:[%s9539_s17 + $0x4e8] sm:$0xff] %v1395_v29 }
  0xb0   : > { %v1399_v31 = vld [vmem:[%s9534_s16 + $0x13e0] sm:$0xff]  ;;  %1398 = vst [vmem:[%s9539_s17 + $0x4f0] sm:$0xff] %v1397_v30 }
  0xb1   : > { %v1401_v32 = vld [vmem:[%s9534_s16 + $0x1400] sm:$0xff]  ;;  %1400 = vst [vmem:[%s9539_s17 + $0x4f8] sm:$0xff] %v1399_v31 }
  0xb2   : > { %v1403_v33 = vld [vmem:[%s9534_s16 + $0x1420] sm:$0xff]  ;;  %1402 = vst [vmem:[%s9539_s17 + $0x500] sm:$0xff] %v1401_v32 }
  0xb3   : > { %v1405_v34 = vld [vmem:[%s9534_s16 + $0x1440] sm:$0xff]  ;;  %1404 = vst [vmem:[%s9539_s17 + $0x508] sm:$0xff] %v1403_v33 }
  0xb4   : > { %v1407_v35 = vld [vmem:[%s9534_s16 + $0x1460] sm:$0xff]  ;;  %1406 = vst [vmem:[%s9539_s17 + $0x510] sm:$0xff] %v1405_v34 }
  0xb5   : > { %v1409_v36 = vld [vmem:[%s9534_s16 + $0x1480] sm:$0xff]  ;;  %1408 = vst [vmem:[%s9539_s17 + $0x518] sm:$0xff] %v1407_v35 }
  0xb6   : > { %v1411_v37 = vld [vmem:[%s9534_s16 + $0x14a0] sm:$0xff]  ;;  %1410 = vst [vmem:[%s9539_s17 + $0x520] sm:$0xff] %v1409_v36 }
  0xb7   : > { %v1413_v38 = vld [vmem:[%s9534_s16 + $0x14c0] sm:$0xff]  ;;  %1412 = vst [vmem:[%s9539_s17 + $0x528] sm:$0xff] %v1411_v37 }
  0xb8   : > { %v1415_v39 = vld [vmem:[%s9534_s16 + $0x14e0] sm:$0xff]  ;;  %1414 = vst [vmem:[%s9539_s17 + $0x530] sm:$0xff] %v1413_v38 }
  0xb9   : > { %v1417_v40 = vld [vmem:[%s9534_s16 + $0x1500] sm:$0xff]  ;;  %1416 = vst [vmem:[%s9539_s17 + $0x538] sm:$0xff] %v1415_v39 }
  0xba   : > { %v1419_v41 = vld [vmem:[%s9534_s16 + $0x1520] sm:$0xff]  ;;  %1418 = vst [vmem:[%s9539_s17 + $0x540] sm:$0xff] %v1417_v40 }
  0xbb   : > { %v1421_v42 = vld [vmem:[%s9534_s16 + $0x1540] sm:$0xff]  ;;  %1420 = vst [vmem:[%s9539_s17 + $0x548] sm:$0xff] %v1419_v41 }
  0xbc   : > { %v1423_v43 = vld [vmem:[%s9534_s16 + $0x1560] sm:$0xff]  ;;  %1422 = vst [vmem:[%s9539_s17 + $0x550] sm:$0xff] %v1421_v42 }
  0xbd   : > { %v1425_v44 = vld [vmem:[%s9534_s16 + $0x1580] sm:$0xff]  ;;  %1424 = vst [vmem:[%s9539_s17 + $0x558] sm:$0xff] %v1423_v43 }
  0xbe   : > { %v1427_v45 = vld [vmem:[%s9534_s16 + $0x15a0] sm:$0xff]  ;;  %1426 = vst [vmem:[%s9539_s17 + $0x560] sm:$0xff] %v1425_v44 }
  0xbf   : > { %v1429_v46 = vld [vmem:[%s9534_s16 + $0x15c0] sm:$0xff]  ;;  %1428 = vst [vmem:[%s9539_s17 + $0x568] sm:$0xff] %v1427_v45 }
  0xc0   : > { %v1431_v47 = vld [vmem:[%s9534_s16 + $0x15e0] sm:$0xff]  ;;  %1430 = vst [vmem:[%s9539_s17 + $0x570] sm:$0xff] %v1429_v46 }
  0xc1   : > { %v1433_v48 = vld [vmem:[%s9534_s16 + $0x1600] sm:$0xff]  ;;  %1432 = vst [vmem:[%s9539_s17 + $0x578] sm:$0xff] %v1431_v47 }
  0xc2   : > { %v1435_v49 = vld [vmem:[%s9534_s16 + $0x1620] sm:$0xff]  ;;  %1434 = vst [vmem:[%s9539_s17 + $0x580] sm:$0xff] %v1433_v48 }
  0xc3   : > { %v1437_v50 = vld [vmem:[%s9534_s16 + $0x1640] sm:$0xff]  ;;  %1436 = vst [vmem:[%s9539_s17 + $0x588] sm:$0xff] %v1435_v49 }
  0xc4   : > { %v1439_v51 = vld [vmem:[%s9534_s16 + $0x1660] sm:$0xff]  ;;  %1438 = vst [vmem:[%s9539_s17 + $0x590] sm:$0xff] %v1437_v50 }
  0xc5   : > { %v1441_v52 = vld [vmem:[%s9534_s16 + $0x1680] sm:$0xff]  ;;  %1440 = vst [vmem:[%s9539_s17 + $0x598] sm:$0xff] %v1439_v51 }
  0xc6   : > { %v1443_v53 = vld [vmem:[%s9534_s16 + $0x16a0] sm:$0xff]  ;;  %1442 = vst [vmem:[%s9539_s17 + $0x5a0] sm:$0xff] %v1441_v52 }
  0xc7   : > { %v1445_v54 = vld [vmem:[%s9534_s16 + $0x16c0] sm:$0xff]  ;;  %1444 = vst [vmem:[%s9539_s17 + $0x5a8] sm:$0xff] %v1443_v53 }
  0xc8   : > { %v1447_v55 = vld [vmem:[%s9534_s16 + $0x16e0] sm:$0xff]  ;;  %1446 = vst [vmem:[%s9539_s17 + $0x5b0] sm:$0xff] %v1445_v54 }
  0xc9   : > { %v1449_v56 = vld [vmem:[%s9534_s16 + $0x1700] sm:$0xff]  ;;  %1448 = vst [vmem:[%s9539_s17 + $0x5b8] sm:$0xff] %v1447_v55 }
  0xca   : > { %v1451_v57 = vld [vmem:[%s9534_s16 + $0x1720] sm:$0xff]  ;;  %1450 = vst [vmem:[%s9539_s17 + $0x5c0] sm:$0xff] %v1449_v56 }
  0xcb   : > { %v1453_v58 = vld [vmem:[%s9534_s16 + $0x1740] sm:$0xff]  ;;  %1452 = vst [vmem:[%s9539_s17 + $0x5c8] sm:$0xff] %v1451_v57 }
  0xcc   : > { %v1455_v59 = vld [vmem:[%s9534_s16 + $0x1760] sm:$0xff]  ;;  %1454 = vst [vmem:[%s9539_s17 + $0x5d0] sm:$0xff] %v1453_v58 }
  0xcd   : > { %v1457_v60 = vld [vmem:[%s9534_s16 + $0x1780] sm:$0xff]  ;;  %1456 = vst [vmem:[%s9539_s17 + $0x5d8] sm:$0xff] %v1455_v59 }
  0xce   : > { %v1459_v61 = vld [vmem:[%s9534_s16 + $0x17a0] sm:$0xff]  ;;  %1458 = vst [vmem:[%s9539_s17 + $0x5e0] sm:$0xff] %v1457_v60 }
  0xcf   : > { %v1461_v62 = vld [vmem:[%s9534_s16 + $0x17c0] sm:$0xff]  ;;  %1460 = vst [vmem:[%s9539_s17 + $0x5e8] sm:$0xff] %v1459_v61 }
  0xd0   : > { %v1463_v63 = vld [vmem:[%s9534_s16 + $0x17e0] sm:$0xff]  ;;  %1462 = vst [vmem:[%s9539_s17 + $0x5f0] sm:$0xff] %v1461_v62 }
  0xd1   : > { %v1465_v0 = vld [vmem:[%s9534_s16 + $0x1800] sm:$0xff]  ;;  %1464 = vst [vmem:[%s9539_s17 + $0x5f8] sm:$0xff] %v1463_v63 }
  0xd2   : > { %v1467_v1 = vld [vmem:[%s9534_s16 + $0x1820] sm:$0xff]  ;;  %1466 = vst [vmem:[%s9539_s17 + $0x600] sm:$0xff] %v1465_v0 }
  0xd3   : > { %v1469_v2 = vld [vmem:[%s9534_s16 + $0x1840] sm:$0xff]  ;;  %1468 = vst [vmem:[%s9539_s17 + $0x608] sm:$0xff] %v1467_v1 }
  0xd4   : > { %v1471_v3 = vld [vmem:[%s9534_s16 + $0x1860] sm:$0xff]  ;;  %1470 = vst [vmem:[%s9539_s17 + $0x610] sm:$0xff] %v1469_v2 }
  0xd5   : > { %v1473_v4 = vld [vmem:[%s9534_s16 + $0x1880] sm:$0xff]  ;;  %1472 = vst [vmem:[%s9539_s17 + $0x618] sm:$0xff] %v1471_v3 }
  0xd6   : > { %v1475_v5 = vld [vmem:[%s9534_s16 + $0x18a0] sm:$0xff]  ;;  %1474 = vst [vmem:[%s9539_s17 + $0x620] sm:$0xff] %v1473_v4 }
  0xd7   : > { %v1477_v6 = vld [vmem:[%s9534_s16 + $0x18c0] sm:$0xff]  ;;  %1476 = vst [vmem:[%s9539_s17 + $0x628] sm:$0xff] %v1475_v5 }
  0xd8   : > { %v1479_v7 = vld [vmem:[%s9534_s16 + $0x18e0] sm:$0xff]  ;;  %1478 = vst [vmem:[%s9539_s17 + $0x630] sm:$0xff] %v1477_v6 }
  0xd9   : > { %v1481_v8 = vld [vmem:[%s9534_s16 + $0x1900] sm:$0xff]  ;;  %1480 = vst [vmem:[%s9539_s17 + $0x638] sm:$0xff] %v1479_v7 }
  0xda   : > { %v1483_v9 = vld [vmem:[%s9534_s16 + $0x1920] sm:$0xff]  ;;  %1482 = vst [vmem:[%s9539_s17 + $0x640] sm:$0xff] %v1481_v8 }
  0xdb   : > { %v1485_v10 = vld [vmem:[%s9534_s16 + $0x1940] sm:$0xff]  ;;  %1484 = vst [vmem:[%s9539_s17 + $0x648] sm:$0xff] %v1483_v9 }
  0xdc   : > { %v1487_v11 = vld [vmem:[%s9534_s16 + $0x1960] sm:$0xff]  ;;  %1486 = vst [vmem:[%s9539_s17 + $0x650] sm:$0xff] %v1485_v10 }
  0xdd   : > { %v1489_v12 = vld [vmem:[%s9534_s16 + $0x1980] sm:$0xff]  ;;  %1488 = vst [vmem:[%s9539_s17 + $0x658] sm:$0xff] %v1487_v11 }
  0xde   : > { %v1491_v13 = vld [vmem:[%s9534_s16 + $0x19a0] sm:$0xff]  ;;  %1490 = vst [vmem:[%s9539_s17 + $0x660] sm:$0xff] %v1489_v12 }
  0xdf   : > { %v1493_v14 = vld [vmem:[%s9534_s16 + $0x19c0] sm:$0xff]  ;;  %1492 = vst [vmem:[%s9539_s17 + $0x668] sm:$0xff] %v1491_v13 }
  0xe0   : > { %v1495_v15 = vld [vmem:[%s9534_s16 + $0x19e0] sm:$0xff]  ;;  %1494 = vst [vmem:[%s9539_s17 + $0x670] sm:$0xff] %v1493_v14 }
  0xe1   : > { %v1497_v16 = vld [vmem:[%s9534_s16 + $0x1a00] sm:$0xff]  ;;  %1496 = vst [vmem:[%s9539_s17 + $0x678] sm:$0xff] %v1495_v15 }
  0xe2   : > { %v1499_v17 = vld [vmem:[%s9534_s16 + $0x1a20] sm:$0xff]  ;;  %1498 = vst [vmem:[%s9539_s17 + $0x680] sm:$0xff] %v1497_v16 }
  0xe3   : > { %v1501_v18 = vld [vmem:[%s9534_s16 + $0x1a40] sm:$0xff]  ;;  %1500 = vst [vmem:[%s9539_s17 + $0x688] sm:$0xff] %v1499_v17 }
  0xe4   : > { %v1503_v19 = vld [vmem:[%s9534_s16 + $0x1a60] sm:$0xff]  ;;  %1502 = vst [vmem:[%s9539_s17 + $0x690] sm:$0xff] %v1501_v18 }
  0xe5   : > { %v1505_v20 = vld [vmem:[%s9534_s16 + $0x1a80] sm:$0xff]  ;;  %1504 = vst [vmem:[%s9539_s17 + $0x698] sm:$0xff] %v1503_v19 }
  0xe6   : > { %v1507_v21 = vld [vmem:[%s9534_s16 + $0x1aa0] sm:$0xff]  ;;  %1506 = vst [vmem:[%s9539_s17 + $0x6a0] sm:$0xff] %v1505_v20 }
  0xe7   : > { %v1509_v22 = vld [vmem:[%s9534_s16 + $0x1ac0] sm:$0xff]  ;;  %1508 = vst [vmem:[%s9539_s17 + $0x6a8] sm:$0xff] %v1507_v21 }
  0xe8   : > { %v1511_v23 = vld [vmem:[%s9534_s16 + $0x1ae0] sm:$0xff]  ;;  %1510 = vst [vmem:[%s9539_s17 + $0x6b0] sm:$0xff] %v1509_v22 }
  0xe9   : > { %v1513_v24 = vld [vmem:[%s9534_s16 + $0x1b00] sm:$0xff]  ;;  %1512 = vst [vmem:[%s9539_s17 + $0x6b8] sm:$0xff] %v1511_v23 }
  0xea   : > { %v1515_v25 = vld [vmem:[%s9534_s16 + $0x1b20] sm:$0xff]  ;;  %1514 = vst [vmem:[%s9539_s17 + $0x6c0] sm:$0xff] %v1513_v24 }
  0xeb   : > { %v1517_v26 = vld [vmem:[%s9534_s16 + $0x1b40] sm:$0xff]  ;;  %1516 = vst [vmem:[%s9539_s17 + $0x6c8] sm:$0xff] %v1515_v25 }
  0xec   : > { %v1519_v27 = vld [vmem:[%s9534_s16 + $0x1b60] sm:$0xff]  ;;  %1518 = vst [vmem:[%s9539_s17 + $0x6d0] sm:$0xff] %v1517_v26 }
  0xed   : > { %v1521_v28 = vld [vmem:[%s9534_s16 + $0x1b80] sm:$0xff]  ;;  %1520 = vst [vmem:[%s9539_s17 + $0x6d8] sm:$0xff] %v1519_v27 }
  0xee   : > { %v1523_v29 = vld [vmem:[%s9534_s16 + $0x1ba0] sm:$0xff]  ;;  %1522 = vst [vmem:[%s9539_s17 + $0x6e0] sm:$0xff] %v1521_v28 }
  0xef   : > { %v1525_v30 = vld [vmem:[%s9534_s16 + $0x1bc0] sm:$0xff]  ;;  %1524 = vst [vmem:[%s9539_s17 + $0x6e8] sm:$0xff] %v1523_v29 }
  0xf0   : > { %v1527_v31 = vld [vmem:[%s9534_s16 + $0x1be0] sm:$0xff]  ;;  %1526 = vst [vmem:[%s9539_s17 + $0x6f0] sm:$0xff] %v1525_v30 }
  0xf1   : > { %v1529_v32 = vld [vmem:[%s9534_s16 + $0x1c00] sm:$0xff]  ;;  %1528 = vst [vmem:[%s9539_s17 + $0x6f8] sm:$0xff] %v1527_v31 }
  0xf2   : > { %v1531_v33 = vld [vmem:[%s9534_s16 + $0x1c20] sm:$0xff]  ;;  %1530 = vst [vmem:[%s9539_s17 + $0x700] sm:$0xff] %v1529_v32 }
  0xf3   : > { %v1533_v34 = vld [vmem:[%s9534_s16 + $0x1c40] sm:$0xff]  ;;  %1532 = vst [vmem:[%s9539_s17 + $0x708] sm:$0xff] %v1531_v33 }
  0xf4   : > { %v1535_v35 = vld [vmem:[%s9534_s16 + $0x1c60] sm:$0xff]  ;;  %1534 = vst [vmem:[%s9539_s17 + $0x710] sm:$0xff] %v1533_v34 }
  0xf5   : > { %v1537_v36 = vld [vmem:[%s9534_s16 + $0x1c80] sm:$0xff]  ;;  %1536 = vst [vmem:[%s9539_s17 + $0x718] sm:$0xff] %v1535_v35 }
  0xf6   : > { %v1539_v37 = vld [vmem:[%s9534_s16 + $0x1ca0] sm:$0xff]  ;;  %1538 = vst [vmem:[%s9539_s17 + $0x720] sm:$0xff] %v1537_v36 }
  0xf7   : > { %v1541_v38 = vld [vmem:[%s9534_s16 + $0x1cc0] sm:$0xff]  ;;  %1540 = vst [vmem:[%s9539_s17 + $0x728] sm:$0xff] %v1539_v37 }
  0xf8   : > { %v1543_v39 = vld [vmem:[%s9534_s16 + $0x1ce0] sm:$0xff]  ;;  %1542 = vst [vmem:[%s9539_s17 + $0x730] sm:$0xff] %v1541_v38 }
  0xf9   : > { %v1545_v40 = vld [vmem:[%s9534_s16 + $0x1d00] sm:$0xff]  ;;  %1544 = vst [vmem:[%s9539_s17 + $0x738] sm:$0xff] %v1543_v39 }
  0xfa   : > { %v1547_v41 = vld [vmem:[%s9534_s16 + $0x1d20] sm:$0xff]  ;;  %1546 = vst [vmem:[%s9539_s17 + $0x740] sm:$0xff] %v1545_v40 }
  0xfb   : > { %v1549_v42 = vld [vmem:[%s9534_s16 + $0x1d40] sm:$0xff]  ;;  %1548 = vst [vmem:[%s9539_s17 + $0x748] sm:$0xff] %v1547_v41 }
  0xfc   : > { %v1551_v43 = vld [vmem:[%s9534_s16 + $0x1d60] sm:$0xff]  ;;  %1550 = vst [vmem:[%s9539_s17 + $0x750] sm:$0xff] %v1549_v42 }
  0xfd   : > { %v1553_v44 = vld [vmem:[%s9534_s16 + $0x1d80] sm:$0xff]  ;;  %1552 = vst [vmem:[%s9539_s17 + $0x758] sm:$0xff] %v1551_v43 }
  0xfe   : > { %v1555_v45 = vld [vmem:[%s9534_s16 + $0x1da0] sm:$0xff]  ;;  %1554 = vst [vmem:[%s9539_s17 + $0x760] sm:$0xff] %v1553_v44 }
  0xff   : > { %v1557_v46 = vld [vmem:[%s9534_s16 + $0x1dc0] sm:$0xff]  ;;  %1556 = vst [vmem:[%s9539_s17 + $0x768] sm:$0xff] %v1555_v45 }
 0x100   : > { %v1559_v47 = vld [vmem:[%s9534_s16 + $0x1de0] sm:$0xff]  ;;  %1558 = vst [vmem:[%s9539_s17 + $0x770] sm:$0xff] %v1557_v46 }
 0x101   : > { %v1561_v48 = vld [vmem:[%s9534_s16 + $0x1e00] sm:$0xff]  ;;  %1560 = vst [vmem:[%s9539_s17 + $0x778] sm:$0xff] %v1559_v47 }
 0x102   : > { %v1563_v49 = vld [vmem:[%s9534_s16 + $0x1e20] sm:$0xff]  ;;  %1562 = vst [vmem:[%s9539_s17 + $0x780] sm:$0xff] %v1561_v48 }
 0x103   : > { %v1565_v50 = vld [vmem:[%s9534_s16 + $0x1e40] sm:$0xff]  ;;  %1564 = vst [vmem:[%s9539_s17 + $0x788] sm:$0xff] %v1563_v49 }
 0x104   : > { %v1567_v51 = vld [vmem:[%s9534_s16 + $0x1e60] sm:$0xff]  ;;  %1566 = vst [vmem:[%s9539_s17 + $0x790] sm:$0xff] %v1565_v50 }
 0x105   : > { %v1569_v52 = vld [vmem:[%s9534_s16 + $0x1e80] sm:$0xff]  ;;  %1568 = vst [vmem:[%s9539_s17 + $0x798] sm:$0xff] %v1567_v51 }
 0x106   : > { %v1571_v53 = vld [vmem:[%s9534_s16 + $0x1ea0] sm:$0xff]  ;;  %1570 = vst [vmem:[%s9539_s17 + $0x7a0] sm:$0xff] %v1569_v52 }
 0x107   : > { %v1573_v54 = vld [vmem:[%s9534_s16 + $0x1ec0] sm:$0xff]  ;;  %1572 = vst [vmem:[%s9539_s17 + $0x7a8] sm:$0xff] %v1571_v53 }
 0x108   : > { %v1575_v55 = vld [vmem:[%s9534_s16 + $0x1ee0] sm:$0xff]  ;;  %1574 = vst [vmem:[%s9539_s17 + $0x7b0] sm:$0xff] %v1573_v54 }
 0x109   : > { %v1577_v56 = vld [vmem:[%s9534_s16 + $0x1f00] sm:$0xff]  ;;  %1576 = vst [vmem:[%s9539_s17 + $0x7b8] sm:$0xff] %v1575_v55 }
 0x10a   : > { %v1579_v57 = vld [vmem:[%s9534_s16 + $0x1f20] sm:$0xff]  ;;  %1578 = vst [vmem:[%s9539_s17 + $0x7c0] sm:$0xff] %v1577_v56 }
 0x10b   : > { %v1581_v58 = vld [vmem:[%s9534_s16 + $0x1f40] sm:$0xff]  ;;  %1580 = vst [vmem:[%s9539_s17 + $0x7c8] sm:$0xff] %v1579_v57 }
 0x10c   : > { %v1583_v59 = vld [vmem:[%s9534_s16 + $0x1f60] sm:$0xff]  ;;  %1582 = vst [vmem:[%s9539_s17 + $0x7d0] sm:$0xff] %v1581_v58 }
 0x10d   : > { %v1585_v60 = vld [vmem:[%s9534_s16 + $0x1f80] sm:$0xff]  ;;  %1584 = vst [vmem:[%s9539_s17 + $0x7d8] sm:$0xff] %v1583_v59 }
 0x10e   : > { %v1587_v61 = vld [vmem:[%s9534_s16 + $0x1fa0] sm:$0xff]  ;;  %1586 = vst [vmem:[%s9539_s17 + $0x7e0] sm:$0xff] %v1585_v60 }
 0x10f   : > { %v1589_v62 = vld [vmem:[%s9534_s16 + $0x1fc0] sm:$0xff]  ;;  %1588 = vst [vmem:[%s9539_s17 + $0x7e8] sm:$0xff] %v1587_v61 }
 0x110   : > { %v1591_v63 = vld [vmem:[%s9534_s16 + $0x1fe0] sm:$0xff]  ;;  %1590 = vst [vmem:[%s9539_s17 + $0x7f0] sm:$0xff] %v1589_v62 }
 0x111   : > { %v1593_v0 = vld [vmem:[%s9534_s16 + $0x2000] sm:$0xff]  ;;  %1592 = vst [vmem:[%s9539_s17 + $0x7f8] sm:$0xff] %v1591_v63 }
 0x112   : > { %v1595_v1 = vld [vmem:[%s9534_s16 + $0x2020] sm:$0xff]  ;;  %1594 = vst [vmem:[%s9539_s17 + $0x800] sm:$0xff] %v1593_v0 }
 0x113   : > { %v1597_v2 = vld [vmem:[%s9534_s16 + $0x2040] sm:$0xff]  ;;  %1596 = vst [vmem:[%s9539_s17 + $0x808] sm:$0xff] %v1595_v1 }
 0x114   : > { %v1599_v3 = vld [vmem:[%s9534_s16 + $0x2060] sm:$0xff]  ;;  %1598 = vst [vmem:[%s9539_s17 + $0x810] sm:$0xff] %v1597_v2 }
 0x115   : > { %v1601_v4 = vld [vmem:[%s9534_s16 + $0x2080] sm:$0xff]  ;;  %1600 = vst [vmem:[%s9539_s17 + $0x818] sm:$0xff] %v1599_v3 }
 0x116   : > { %v1603_v5 = vld [vmem:[%s9534_s16 + $0x20a0] sm:$0xff]  ;;  %1602 = vst [vmem:[%s9539_s17 + $0x820] sm:$0xff] %v1601_v4 }
 0x117   : > { %v1605_v6 = vld [vmem:[%s9534_s16 + $0x20c0] sm:$0xff]  ;;  %1604 = vst [vmem:[%s9539_s17 + $0x828] sm:$0xff] %v1603_v5 }
 0x118   : > { %v1607_v7 = vld [vmem:[%s9534_s16 + $0x20e0] sm:$0xff]  ;;  %1606 = vst [vmem:[%s9539_s17 + $0x830] sm:$0xff] %v1605_v6 }
 0x119   : > { %v1609_v8 = vld [vmem:[%s9534_s16 + $0x2100] sm:$0xff]  ;;  %1608 = vst [vmem:[%s9539_s17 + $0x838] sm:$0xff] %v1607_v7 }
 0x11a   : > { %v1611_v9 = vld [vmem:[%s9534_s16 + $0x2120] sm:$0xff]  ;;  %1610 = vst [vmem:[%s9539_s17 + $0x840] sm:$0xff] %v1609_v8 }
 0x11b   : > { %v1613_v10 = vld [vmem:[%s9534_s16 + $0x2140] sm:$0xff]  ;;  %1612 = vst [vmem:[%s9539_s17 + $0x848] sm:$0xff] %v1611_v9 }
 0x11c   : > { %v1615_v11 = vld [vmem:[%s9534_s16 + $0x2160] sm:$0xff]  ;;  %1614 = vst [vmem:[%s9539_s17 + $0x850] sm:$0xff] %v1613_v10 }
 0x11d   : > { %v1617_v12 = vld [vmem:[%s9534_s16 + $0x2180] sm:$0xff]  ;;  %1616 = vst [vmem:[%s9539_s17 + $0x858] sm:$0xff] %v1615_v11 }
 0x11e   : > { %v1619_v13 = vld [vmem:[%s9534_s16 + $0x21a0] sm:$0xff]  ;;  %1618 = vst [vmem:[%s9539_s17 + $0x860] sm:$0xff] %v1617_v12 }
 0x11f   : > { %v1621_v14 = vld [vmem:[%s9534_s16 + $0x21c0] sm:$0xff]  ;;  %1620 = vst [vmem:[%s9539_s17 + $0x868] sm:$0xff] %v1619_v13 }
 0x120   : > { %v1623_v15 = vld [vmem:[%s9534_s16 + $0x21e0] sm:$0xff]  ;;  %1622 = vst [vmem:[%s9539_s17 + $0x870] sm:$0xff] %v1621_v14 }
 0x121   : > { %v1625_v16 = vld [vmem:[%s9534_s16 + $0x2200] sm:$0xff]  ;;  %1624 = vst [vmem:[%s9539_s17 + $0x878] sm:$0xff] %v1623_v15 }
 0x122   : > { %v1627_v17 = vld [vmem:[%s9534_s16 + $0x2220] sm:$0xff]  ;;  %1626 = vst [vmem:[%s9539_s17 + $0x880] sm:$0xff] %v1625_v16 }
 0x123   : > { %v1629_v18 = vld [vmem:[%s9534_s16 + $0x2240] sm:$0xff]  ;;  %1628 = vst [vmem:[%s9539_s17 + $0x888] sm:$0xff] %v1627_v17 }
 0x124   : > { %v1631_v19 = vld [vmem:[%s9534_s16 + $0x2260] sm:$0xff]  ;;  %1630 = vst [vmem:[%s9539_s17 + $0x890] sm:$0xff] %v1629_v18 }
 0x125   : > { %v1633_v20 = vld [vmem:[%s9534_s16 + $0x2280] sm:$0xff]  ;;  %1632 = vst [vmem:[%s9539_s17 + $0x898] sm:$0xff] %v1631_v19 }
 0x126   : > { %v1635_v21 = vld [vmem:[%s9534_s16 + $0x22a0] sm:$0xff]  ;;  %1634 = vst [vmem:[%s9539_s17 + $0x8a0] sm:$0xff] %v1633_v20 }
 0x127   : > { %v1637_v22 = vld [vmem:[%s9534_s16 + $0x22c0] sm:$0xff]  ;;  %1636 = vst [vmem:[%s9539_s17 + $0x8a8] sm:$0xff] %v1635_v21 }
 0x128   : > { %v1639_v23 = vld [vmem:[%s9534_s16 + $0x22e0] sm:$0xff]  ;;  %1638 = vst [vmem:[%s9539_s17 + $0x8b0] sm:$0xff] %v1637_v22 }
 0x129   : > { %v1641_v24 = vld [vmem:[%s9534_s16 + $0x2300] sm:$0xff]  ;;  %1640 = vst [vmem:[%s9539_s17 + $0x8b8] sm:$0xff] %v1639_v23 }
 0x12a   : > { %v1643_v25 = vld [vmem:[%s9534_s16 + $0x2320] sm:$0xff]  ;;  %1642 = vst [vmem:[%s9539_s17 + $0x8c0] sm:$0xff] %v1641_v24 }
 0x12b   : > { %v1645_v26 = vld [vmem:[%s9534_s16 + $0x2340] sm:$0xff]  ;;  %1644 = vst [vmem:[%s9539_s17 + $0x8c8] sm:$0xff] %v1643_v25 }
 0x12c   : > { %v1647_v27 = vld [vmem:[%s9534_s16 + $0x2360] sm:$0xff]  ;;  %1646 = vst [vmem:[%s9539_s17 + $0x8d0] sm:$0xff] %v1645_v26 }
 0x12d   : > { %v1649_v28 = vld [vmem:[%s9534_s16 + $0x2380] sm:$0xff]  ;;  %1648 = vst [vmem:[%s9539_s17 + $0x8d8] sm:$0xff] %v1647_v27 }
 0x12e   : > { %v1651_v29 = vld [vmem:[%s9534_s16 + $0x23a0] sm:$0xff]  ;;  %1650 = vst [vmem:[%s9539_s17 + $0x8e0] sm:$0xff] %v1649_v28 }
 0x12f   : > { %v1653_v30 = vld [vmem:[%s9534_s16 + $0x23c0] sm:$0xff]  ;;  %1652 = vst [vmem:[%s9539_s17 + $0x8e8] sm:$0xff] %v1651_v29 }
 0x130   : > { %v1655_v31 = vld [vmem:[%s9534_s16 + $0x23e0] sm:$0xff]  ;;  %1654 = vst [vmem:[%s9539_s17 + $0x8f0] sm:$0xff] %v1653_v30 }
 0x131   : > { %v1657_v32 = vld [vmem:[%s9534_s16 + $0x2400] sm:$0xff]  ;;  %1656 = vst [vmem:[%s9539_s17 + $0x8f8] sm:$0xff] %v1655_v31 }
 0x132   : > { %v1659_v33 = vld [vmem:[%s9534_s16 + $0x2420] sm:$0xff]  ;;  %1658 = vst [vmem:[%s9539_s17 + $0x900] sm:$0xff] %v1657_v32 }
 0x133   : > { %v1661_v34 = vld [vmem:[%s9534_s16 + $0x2440] sm:$0xff]  ;;  %1660 = vst [vmem:[%s9539_s17 + $0x908] sm:$0xff] %v1659_v33 }
 0x134   : > { %v1663_v35 = vld [vmem:[%s9534_s16 + $0x2460] sm:$0xff]  ;;  %1662 = vst [vmem:[%s9539_s17 + $0x910] sm:$0xff] %v1661_v34 }
 0x135   : > { %v1665_v36 = vld [vmem:[%s9534_s16 + $0x2480] sm:$0xff]  ;;  %1664 = vst [vmem:[%s9539_s17 + $0x918] sm:$0xff] %v1663_v35 }
 0x136   : > { %v1667_v37 = vld [vmem:[%s9534_s16 + $0x24a0] sm:$0xff]  ;;  %1666 = vst [vmem:[%s9539_s17 + $0x920] sm:$0xff] %v1665_v36 }
 0x137   : > { %v1669_v38 = vld [vmem:[%s9534_s16 + $0x24c0] sm:$0xff]  ;;  %1668 = vst [vmem:[%s9539_s17 + $0x928] sm:$0xff] %v1667_v37 }
 0x138   : > { %v1671_v39 = vld [vmem:[%s9534_s16 + $0x24e0] sm:$0xff]  ;;  %1670 = vst [vmem:[%s9539_s17 + $0x930] sm:$0xff] %v1669_v38 }
 0x139   : > { %v1673_v40 = vld [vmem:[%s9534_s16 + $0x2500] sm:$0xff]  ;;  %1672 = vst [vmem:[%s9539_s17 + $0x938] sm:$0xff] %v1671_v39 }
 0x13a   : > { %v1675_v41 = vld [vmem:[%s9534_s16 + $0x2520] sm:$0xff]  ;;  %1674 = vst [vmem:[%s9539_s17 + $0x940] sm:$0xff] %v1673_v40 }
 0x13b   : > { %v1677_v42 = vld [vmem:[%s9534_s16 + $0x2540] sm:$0xff]  ;;  %1676 = vst [vmem:[%s9539_s17 + $0x948] sm:$0xff] %v1675_v41 }
 0x13c   : > { %v1679_v43 = vld [vmem:[%s9534_s16 + $0x2560] sm:$0xff]  ;;  %1678 = vst [vmem:[%s9539_s17 + $0x950] sm:$0xff] %v1677_v42 }
 0x13d   : > { %v1681_v44 = vld [vmem:[%s9534_s16 + $0x2580] sm:$0xff]  ;;  %1680 = vst [vmem:[%s9539_s17 + $0x958] sm:$0xff] %v1679_v43 }
 0x13e   : > { %v1683_v45 = vld [vmem:[%s9534_s16 + $0x25a0] sm:$0xff]  ;;  %1682 = vst [vmem:[%s9539_s17 + $0x960] sm:$0xff] %v1681_v44 }
 0x13f   : > { %v1685_v46 = vld [vmem:[%s9534_s16 + $0x25c0] sm:$0xff]  ;;  %1684 = vst [vmem:[%s9539_s17 + $0x968] sm:$0xff] %v1683_v45 }
 0x140   : > { %v1687_v47 = vld [vmem:[%s9534_s16 + $0x25e0] sm:$0xff]  ;;  %1686 = vst [vmem:[%s9539_s17 + $0x970] sm:$0xff] %v1685_v46 }
 0x141   : > { %v1689_v48 = vld [vmem:[%s9534_s16 + $0x2600] sm:$0xff]  ;;  %1688 = vst [vmem:[%s9539_s17 + $0x978] sm:$0xff] %v1687_v47 }
 0x142   : > { %v1691_v49 = vld [vmem:[%s9534_s16 + $0x2620] sm:$0xff]  ;;  %1690 = vst [vmem:[%s9539_s17 + $0x980] sm:$0xff] %v1689_v48 }
 0x143   : > { %v1693_v50 = vld [vmem:[%s9534_s16 + $0x2640] sm:$0xff]  ;;  %1692 = vst [vmem:[%s9539_s17 + $0x988] sm:$0xff] %v1691_v49 }
 0x144   : > { %v1695_v51 = vld [vmem:[%s9534_s16 + $0x2660] sm:$0xff]  ;;  %1694 = vst [vmem:[%s9539_s17 + $0x990] sm:$0xff] %v1693_v50 }
 0x145   : > { %v1697_v52 = vld [vmem:[%s9534_s16 + $0x2680] sm:$0xff]  ;;  %1696 = vst [vmem:[%s9539_s17 + $0x998] sm:$0xff] %v1695_v51 }
 0x146   : > { %v1699_v53 = vld [vmem:[%s9534_s16 + $0x26a0] sm:$0xff]  ;;  %1698 = vst [vmem:[%s9539_s17 + $0x9a0] sm:$0xff] %v1697_v52 }
 0x147   : > { %v1701_v54 = vld [vmem:[%s9534_s16 + $0x26c0] sm:$0xff]  ;;  %1700 = vst [vmem:[%s9539_s17 + $0x9a8] sm:$0xff] %v1699_v53 }
 0x148   : > { %v1703_v55 = vld [vmem:[%s9534_s16 + $0x26e0] sm:$0xff]  ;;  %1702 = vst [vmem:[%s9539_s17 + $0x9b0] sm:$0xff] %v1701_v54 }
 0x149   : > { %v1705_v56 = vld [vmem:[%s9534_s16 + $0x2700] sm:$0xff]  ;;  %1704 = vst [vmem:[%s9539_s17 + $0x9b8] sm:$0xff] %v1703_v55 }
 0x14a   : > { %v1707_v57 = vld [vmem:[%s9534_s16 + $0x2720] sm:$0xff]  ;;  %1706 = vst [vmem:[%s9539_s17 + $0x9c0] sm:$0xff] %v1705_v56 }
 0x14b   : > { %v1709_v58 = vld [vmem:[%s9534_s16 + $0x2740] sm:$0xff]  ;;  %1708 = vst [vmem:[%s9539_s17 + $0x9c8] sm:$0xff] %v1707_v57 }
 0x14c   : > { %v1711_v59 = vld [vmem:[%s9534_s16 + $0x2760] sm:$0xff]  ;;  %1710 = vst [vmem:[%s9539_s17 + $0x9d0] sm:$0xff] %v1709_v58 }
 0x14d   : > { %v1713_v60 = vld [vmem:[%s9534_s16 + $0x2780] sm:$0xff]  ;;  %1712 = vst [vmem:[%s9539_s17 + $0x9d8] sm:$0xff] %v1711_v59 }
 0x14e   : > { %v1715_v61 = vld [vmem:[%s9534_s16 + $0x27a0] sm:$0xff]  ;;  %1714 = vst [vmem:[%s9539_s17 + $0x9e0] sm:$0xff] %v1713_v60 }
 0x14f   : > { %v1717_v62 = vld [vmem:[%s9534_s16 + $0x27c0] sm:$0xff]  ;;  %1716 = vst [vmem:[%s9539_s17 + $0x9e8] sm:$0xff] %v1715_v61 }
 0x150   : > { %v1719_v63 = vld [vmem:[%s9534_s16 + $0x27e0] sm:$0xff]  ;;  %1718 = vst [vmem:[%s9539_s17 + $0x9f0] sm:$0xff] %v1717_v62 }
 0x151   : > { %v1721_v0 = vld [vmem:[%s9534_s16 + $0x2800] sm:$0xff]  ;;  %1720 = vst [vmem:[%s9539_s17 + $0x9f8] sm:$0xff] %v1719_v63 }
 0x152   : > { %v1723_v1 = vld [vmem:[%s9534_s16 + $0x2820] sm:$0xff]  ;;  %1722 = vst [vmem:[%s9539_s17 + $0xa00] sm:$0xff] %v1721_v0 }
 0x153   : > { %v1725_v2 = vld [vmem:[%s9534_s16 + $0x2840] sm:$0xff]  ;;  %1724 = vst [vmem:[%s9539_s17 + $0xa08] sm:$0xff] %v1723_v1 }
 0x154   : > { %v1727_v3 = vld [vmem:[%s9534_s16 + $0x2860] sm:$0xff]  ;;  %1726 = vst [vmem:[%s9539_s17 + $0xa10] sm:$0xff] %v1725_v2 }
 0x155   : > { %v1729_v4 = vld [vmem:[%s9534_s16 + $0x2880] sm:$0xff]  ;;  %1728 = vst [vmem:[%s9539_s17 + $0xa18] sm:$0xff] %v1727_v3 }
 0x156   : > { %v1731_v5 = vld [vmem:[%s9534_s16 + $0x28a0] sm:$0xff]  ;;  %1730 = vst [vmem:[%s9539_s17 + $0xa20] sm:$0xff] %v1729_v4 }
 0x157   : > { %v1733_v6 = vld [vmem:[%s9534_s16 + $0x28c0] sm:$0xff]  ;;  %1732 = vst [vmem:[%s9539_s17 + $0xa28] sm:$0xff] %v1731_v5 }
 0x158   : > { %v1735_v7 = vld [vmem:[%s9534_s16 + $0x28e0] sm:$0xff]  ;;  %1734 = vst [vmem:[%s9539_s17 + $0xa30] sm:$0xff] %v1733_v6 }
 0x159   : > { %v1737_v8 = vld [vmem:[%s9534_s16 + $0x2900] sm:$0xff]  ;;  %1736 = vst [vmem:[%s9539_s17 + $0xa38] sm:$0xff] %v1735_v7 }
 0x15a   : > { %v1739_v9 = vld [vmem:[%s9534_s16 + $0x2920] sm:$0xff]  ;;  %1738 = vst [vmem:[%s9539_s17 + $0xa40] sm:$0xff] %v1737_v8 }
 0x15b   : > { %v1741_v10 = vld [vmem:[%s9534_s16 + $0x2940] sm:$0xff]  ;;  %1740 = vst [vmem:[%s9539_s17 + $0xa48] sm:$0xff] %v1739_v9 }
 0x15c   : > { %v1743_v11 = vld [vmem:[%s9534_s16 + $0x2960] sm:$0xff]  ;;  %1742 = vst [vmem:[%s9539_s17 + $0xa50] sm:$0xff] %v1741_v10 }
 0x15d   : > { %v1745_v12 = vld [vmem:[%s9534_s16 + $0x2980] sm:$0xff]  ;;  %1744 = vst [vmem:[%s9539_s17 + $0xa58] sm:$0xff] %v1743_v11 }
 0x15e   : > { %v1747_v13 = vld [vmem:[%s9534_s16 + $0x29a0] sm:$0xff]  ;;  %1746 = vst [vmem:[%s9539_s17 + $0xa60] sm:$0xff] %v1745_v12 }
 0x15f   : > { %v1749_v14 = vld [vmem:[%s9534_s16 + $0x29c0] sm:$0xff]  ;;  %1748 = vst [vmem:[%s9539_s17 + $0xa68] sm:$0xff] %v1747_v13 }
 0x160   : > { %v1751_v15 = vld [vmem:[%s9534_s16 + $0x29e0] sm:$0xff]  ;;  %1750 = vst [vmem:[%s9539_s17 + $0xa70] sm:$0xff] %v1749_v14 }
 0x161   : > { %v1753_v16 = vld [vmem:[%s9534_s16 + $0x2a00] sm:$0xff]  ;;  %1752 = vst [vmem:[%s9539_s17 + $0xa78] sm:$0xff] %v1751_v15 }
 0x162   : > { %v1755_v17 = vld [vmem:[%s9534_s16 + $0x2a20] sm:$0xff]  ;;  %1754 = vst [vmem:[%s9539_s17 + $0xa80] sm:$0xff] %v1753_v16 }
 0x163   : > { %v1757_v18 = vld [vmem:[%s9534_s16 + $0x2a40] sm:$0xff]  ;;  %1756 = vst [vmem:[%s9539_s17 + $0xa88] sm:$0xff] %v1755_v17 }
 0x164   : > { %v1759_v19 = vld [vmem:[%s9534_s16 + $0x2a60] sm:$0xff]  ;;  %1758 = vst [vmem:[%s9539_s17 + $0xa90] sm:$0xff] %v1757_v18 }
 0x165   : > { %v1761_v20 = vld [vmem:[%s9534_s16 + $0x2a80] sm:$0xff]  ;;  %1760 = vst [vmem:[%s9539_s17 + $0xa98] sm:$0xff] %v1759_v19 }
 0x166   : > { %v1763_v21 = vld [vmem:[%s9534_s16 + $0x2aa0] sm:$0xff]  ;;  %1762 = vst [vmem:[%s9539_s17 + $0xaa0] sm:$0xff] %v1761_v20 }
 0x167   : > { %v1765_v22 = vld [vmem:[%s9534_s16 + $0x2ac0] sm:$0xff]  ;;  %1764 = vst [vmem:[%s9539_s17 + $0xaa8] sm:$0xff] %v1763_v21 }
 0x168   : > { %v1767_v23 = vld [vmem:[%s9534_s16 + $0x2ae0] sm:$0xff]  ;;  %1766 = vst [vmem:[%s9539_s17 + $0xab0] sm:$0xff] %v1765_v22 }
 0x169   : > { %v1769_v24 = vld [vmem:[%s9534_s16 + $0x2b00] sm:$0xff]  ;;  %1768 = vst [vmem:[%s9539_s17 + $0xab8] sm:$0xff] %v1767_v23 }
 0x16a   : > { %v1771_v25 = vld [vmem:[%s9534_s16 + $0x2b20] sm:$0xff]  ;;  %1770 = vst [vmem:[%s9539_s17 + $0xac0] sm:$0xff] %v1769_v24 }
 0x16b   : > { %v1773_v26 = vld [vmem:[%s9534_s16 + $0x2b40] sm:$0xff]  ;;  %1772 = vst [vmem:[%s9539_s17 + $0xac8] sm:$0xff] %v1771_v25 }
 0x16c   : > { %v1775_v27 = vld [vmem:[%s9534_s16 + $0x2b60] sm:$0xff]  ;;  %1774 = vst [vmem:[%s9539_s17 + $0xad0] sm:$0xff] %v1773_v26 }
 0x16d   : > { %v1777_v28 = vld [vmem:[%s9534_s16 + $0x2b80] sm:$0xff]  ;;  %1776 = vst [vmem:[%s9539_s17 + $0xad8] sm:$0xff] %v1775_v27 }
 0x16e   : > { %v1779_v29 = vld [vmem:[%s9534_s16 + $0x2ba0] sm:$0xff]  ;;  %1778 = vst [vmem:[%s9539_s17 + $0xae0] sm:$0xff] %v1777_v28 }
 0x16f   : > { %v1781_v30 = vld [vmem:[%s9534_s16 + $0x2bc0] sm:$0xff]  ;;  %1780 = vst [vmem:[%s9539_s17 + $0xae8] sm:$0xff] %v1779_v29 }
 0x170   : > { %v1783_v31 = vld [vmem:[%s9534_s16 + $0x2be0] sm:$0xff]  ;;  %1782 = vst [vmem:[%s9539_s17 + $0xaf0] sm:$0xff] %v1781_v30 }
 0x171   : > { %v1785_v32 = vld [vmem:[%s9534_s16 + $0x2c00] sm:$0xff]  ;;  %1784 = vst [vmem:[%s9539_s17 + $0xaf8] sm:$0xff] %v1783_v31 }
 0x172   : > { %v1787_v33 = vld [vmem:[%s9534_s16 + $0x2c20] sm:$0xff]  ;;  %1786 = vst [vmem:[%s9539_s17 + $0xb00] sm:$0xff] %v1785_v32 }
 0x173   : > { %v1789_v34 = vld [vmem:[%s9534_s16 + $0x2c40] sm:$0xff]  ;;  %1788 = vst [vmem:[%s9539_s17 + $0xb08] sm:$0xff] %v1787_v33 }
 0x174   : > { %v1791_v35 = vld [vmem:[%s9534_s16 + $0x2c60] sm:$0xff]  ;;  %1790 = vst [vmem:[%s9539_s17 + $0xb10] sm:$0xff] %v1789_v34 }
 0x175   : > { %v1793_v36 = vld [vmem:[%s9534_s16 + $0x2c80] sm:$0xff]  ;;  %1792 = vst [vmem:[%s9539_s17 + $0xb18] sm:$0xff] %v1791_v35 }
 0x176   : > { %v1795_v37 = vld [vmem:[%s9534_s16 + $0x2ca0] sm:$0xff]  ;;  %1794 = vst [vmem:[%s9539_s17 + $0xb20] sm:$0xff] %v1793_v36 }
 0x177   : > { %v1797_v38 = vld [vmem:[%s9534_s16 + $0x2cc0] sm:$0xff]  ;;  %1796 = vst [vmem:[%s9539_s17 + $0xb28] sm:$0xff] %v1795_v37 }
 0x178   : > { %v1799_v39 = vld [vmem:[%s9534_s16 + $0x2ce0] sm:$0xff]  ;;  %1798 = vst [vmem:[%s9539_s17 + $0xb30] sm:$0xff] %v1797_v38 }
 0x179   : > { %v1801_v40 = vld [vmem:[%s9534_s16 + $0x2d00] sm:$0xff]  ;;  %1800 = vst [vmem:[%s9539_s17 + $0xb38] sm:$0xff] %v1799_v39 }
 0x17a   : > { %v1803_v41 = vld [vmem:[%s9534_s16 + $0x2d20] sm:$0xff]  ;;  %1802 = vst [vmem:[%s9539_s17 + $0xb40] sm:$0xff] %v1801_v40 }
 0x17b   : > { %v1805_v42 = vld [vmem:[%s9534_s16 + $0x2d40] sm:$0xff]  ;;  %1804 = vst [vmem:[%s9539_s17 + $0xb48] sm:$0xff] %v1803_v41 }
 0x17c   : > { %v1807_v43 = vld [vmem:[%s9534_s16 + $0x2d60] sm:$0xff]  ;;  %1806 = vst [vmem:[%s9539_s17 + $0xb50] sm:$0xff] %v1805_v42 }
 0x17d   : > { %v1809_v44 = vld [vmem:[%s9534_s16 + $0x2d80] sm:$0xff]  ;;  %1808 = vst [vmem:[%s9539_s17 + $0xb58] sm:$0xff] %v1807_v43 }
 0x17e   : > { %v1811_v45 = vld [vmem:[%s9534_s16 + $0x2da0] sm:$0xff]  ;;  %1810 = vst [vmem:[%s9539_s17 + $0xb60] sm:$0xff] %v1809_v44 }
 0x17f   : > { %v1813_v46 = vld [vmem:[%s9534_s16 + $0x2dc0] sm:$0xff]  ;;  %1812 = vst [vmem:[%s9539_s17 + $0xb68] sm:$0xff] %v1811_v45 }
 0x180   : > { %v1815_v47 = vld [vmem:[%s9534_s16 + $0x2de0] sm:$0xff]  ;;  %1814 = vst [vmem:[%s9539_s17 + $0xb70] sm:$0xff] %v1813_v46 }
 0x181   : > { %v1817_v48 = vld [vmem:[%s9534_s16 + $0x2e00] sm:$0xff]  ;;  %1816 = vst [vmem:[%s9539_s17 + $0xb78] sm:$0xff] %v1815_v47 }
 0x182   : > { %v1819_v49 = vld [vmem:[%s9534_s16 + $0x2e20] sm:$0xff]  ;;  %1818 = vst [vmem:[%s9539_s17 + $0xb80] sm:$0xff] %v1817_v48 }
 0x183   : > { %v1821_v50 = vld [vmem:[%s9534_s16 + $0x2e40] sm:$0xff]  ;;  %1820 = vst [vmem:[%s9539_s17 + $0xb88] sm:$0xff] %v1819_v49 }
 0x184   : > { %v1823_v51 = vld [vmem:[%s9534_s16 + $0x2e60] sm:$0xff]  ;;  %1822 = vst [vmem:[%s9539_s17 + $0xb90] sm:$0xff] %v1821_v50 }
 0x185   : > { %v1825_v52 = vld [vmem:[%s9534_s16 + $0x2e80] sm:$0xff]  ;;  %1824 = vst [vmem:[%s9539_s17 + $0xb98] sm:$0xff] %v1823_v51 }
 0x186   : > { %v1827_v53 = vld [vmem:[%s9534_s16 + $0x2ea0] sm:$0xff]  ;;  %1826 = vst [vmem:[%s9539_s17 + $0xba0] sm:$0xff] %v1825_v52 }
 0x187   : > { %v1829_v54 = vld [vmem:[%s9534_s16 + $0x2ec0] sm:$0xff]  ;;  %1828 = vst [vmem:[%s9539_s17 + $0xba8] sm:$0xff] %v1827_v53 }
 0x188   : > { %v1831_v55 = vld [vmem:[%s9534_s16 + $0x2ee0] sm:$0xff]  ;;  %1830 = vst [vmem:[%s9539_s17 + $0xbb0] sm:$0xff] %v1829_v54 }
 0x189   : > { %v1833_v56 = vld [vmem:[%s9534_s16 + $0x2f00] sm:$0xff]  ;;  %1832 = vst [vmem:[%s9539_s17 + $0xbb8] sm:$0xff] %v1831_v55 }
 0x18a   : > { %v1835_v57 = vld [vmem:[%s9534_s16 + $0x2f20] sm:$0xff]  ;;  %1834 = vst [vmem:[%s9539_s17 + $0xbc0] sm:$0xff] %v1833_v56 }
 0x18b   : > { %v1837_v58 = vld [vmem:[%s9534_s16 + $0x2f40] sm:$0xff]  ;;  %1836 = vst [vmem:[%s9539_s17 + $0xbc8] sm:$0xff] %v1835_v57 }
 0x18c   : > { %v1839_v59 = vld [vmem:[%s9534_s16 + $0x2f60] sm:$0xff]  ;;  %1838 = vst [vmem:[%s9539_s17 + $0xbd0] sm:$0xff] %v1837_v58 }
 0x18d   : > { %v1841_v60 = vld [vmem:[%s9534_s16 + $0x2f80] sm:$0xff]  ;;  %1840 = vst [vmem:[%s9539_s17 + $0xbd8] sm:$0xff] %v1839_v59 }
 0x18e   : > { %v1843_v61 = vld [vmem:[%s9534_s16 + $0x2fa0] sm:$0xff]  ;;  %1842 = vst [vmem:[%s9539_s17 + $0xbe0] sm:$0xff] %v1841_v60 }
 0x18f   : > { %v1845_v62 = vld [vmem:[%s9534_s16 + $0x2fc0] sm:$0xff]  ;;  %1844 = vst [vmem:[%s9539_s17 + $0xbe8] sm:$0xff] %v1843_v61 }
 0x190   : > { %v1847_v63 = vld [vmem:[%s9534_s16 + $0x2fe0] sm:$0xff]  ;;  %1846 = vst [vmem:[%s9539_s17 + $0xbf0] sm:$0xff] %v1845_v62 }
 0x191   : > { %v1849_v0 = vld [vmem:[%s9534_s16 + $0x3000] sm:$0xff]  ;;  %1848 = vst [vmem:[%s9539_s17 + $0xbf8] sm:$0xff] %v1847_v63 }
 0x192   : > { %v1851_v1 = vld [vmem:[%s9534_s16 + $0x3020] sm:$0xff]  ;;  %1850 = vst [vmem:[%s9539_s17 + $0xc00] sm:$0xff] %v1849_v0 }
 0x193   : > { %v1853_v2 = vld [vmem:[%s9534_s16 + $0x3040] sm:$0xff]  ;;  %1852 = vst [vmem:[%s9539_s17 + $0xc08] sm:$0xff] %v1851_v1 }
 0x194   : > { %v1855_v3 = vld [vmem:[%s9534_s16 + $0x3060] sm:$0xff]  ;;  %1854 = vst [vmem:[%s9539_s17 + $0xc10] sm:$0xff] %v1853_v2 }
 0x195   : > { %v1857_v4 = vld [vmem:[%s9534_s16 + $0x3080] sm:$0xff]  ;;  %1856 = vst [vmem:[%s9539_s17 + $0xc18] sm:$0xff] %v1855_v3 }
 0x196   : > { %v1859_v5 = vld [vmem:[%s9534_s16 + $0x30a0] sm:$0xff]  ;;  %1858 = vst [vmem:[%s9539_s17 + $0xc20] sm:$0xff] %v1857_v4 }
 0x197   : > { %v1861_v6 = vld [vmem:[%s9534_s16 + $0x30c0] sm:$0xff]  ;;  %1860 = vst [vmem:[%s9539_s17 + $0xc28] sm:$0xff] %v1859_v5 }
 0x198   : > { %v1863_v7 = vld [vmem:[%s9534_s16 + $0x30e0] sm:$0xff]  ;;  %1862 = vst [vmem:[%s9539_s17 + $0xc30] sm:$0xff] %v1861_v6 }
 0x199   : > { %1864 = vst [vmem:[%s9539_s17 + $0xc38] sm:$0xff] %v1863_v7 }
 0x19a PF: > { %p7105_p6 = scmp.ge.s32.totalorder %s9444_s28, 1  ;;  %p3490_p7 = scmp.lt.s32.totalorder %s9444_s28, 5 }
 0x19c   : > { %p3491_p8 = pnand %p7105_p6, %p3490_p7 }
 0x19d   : > { %s3497_s18 = sand.u32 (!%p3491_p8), 1, %s9428_s24   ;;  %s7106_s19 = sshll.u32 (!%p3491_p8), %s9436_s26, 1 }
 0x19e   : > { %3494 = sbr.rel (%p3491_p8) target bundleno = 1393 (0x571), region = 88  ;;  %p3543_p9 = scmp.lt.s32.totalorder (!%p3491_p8), %s7106_s19, 7 }
 0x19f   : > { %s9245_s20 = smul.u32 (!%p3491_p8), 3136, %s3497_s18  ;;  %s7107_s21 = sshll.u32 (!%p3491_p8), %s9436_s26, 5 }
 0x1a0   : > { %p3548_p10 = scmp.lt.s32.totalorder (!%p3491_p8), %s7107_s21, 127  ;;  %p7110_p11 = scmp.ne.s32.totalorder (!%p3491_p8), %s9436_s26, 0 }
 0x1a1   : > { %s10337_s14 = scalar_lea.vmem (!%p3491_p8), [#allocation3], %s9245_s20 }
 0x1a3   : > { %s11410_s19 = smov (!%p3543_p9, %s7106_s19), 7  ;;  %s11412_s21 = smov (!%p3548_p10, %s7107_s21), 127 }
 0x1a4   : > { %s10330_s8 = scalar_lea.vmem %s11396_s2, %s11410_s19  ;;  %s8819_s9 = sshll.u32 %s11412_s21, 3 }
 0x1a5   : > { %s10335_s13 = scalar_lea.vmem %s11397_s3, %s8819_s9  ;;  %3558 = sbr.rel (%p7110_p11) target bundleno = 428 (0x1ac), region = 96 }
 0x1aa   : > { %v9446_v8 = vmov 0.0  }
 0x1ab   : > { %3559 = vst [vmem:[#allocation2] sm:$0xf] %v9446_v8 }
 0x1ac PF: > { %v7169_v9 = vld [vmem:[%s10337_s14 + $0x70] sm:$0xf]  ;;  %v8835_v10 = vld [vmem:[%s10337_s14 + $0x74] sm:$0xf0]  ;;  %v7161_v20 = vld [vmem:[%s10337_s14 + $0x60] sm:$0xf] }
 0x1ad   : > { %v7233_v11 = vld [vmem:[%s10337_s14 + $0xf0] sm:$0xf]  ;;  %v7170_v12 = vor.u32 %v8835_v10, %v7169_v9  ;;  %v8851_v13 = vld [vmem:[%s10337_s14 + $0xf4] sm:$0xf0]  ;;  %v8833_v22 = vld [vmem:[%s10337_s14 + $0x64] sm:$0xf0] }
 0x1ae   : > { %v7297_v14 = vld [vmem:[%s10337_s14 + $0x170] sm:$0xf]  ;;  %v8867_v15 = vld [vmem:[%s10337_s14 + $0x174] sm:$0xf0]  ;;  %v7234_v16 = vor.u32 %v8851_v13, %v7233_v11  ;;  %v7225_v23 = vld [vmem:[%s10337_s14 + $0xe0] sm:$0xf]  ;;  %v7162_v25 = vor.u32 %v8833_v22, %v7161_v20 }
 0x1af   : > { %v7298_v17 = vor.u32 %v8867_v15, %v7297_v14  ;;  %v7361_v18 = vld [vmem:[%s10337_s14 + $0x1f0] sm:$0xf]  ;;  %v8883_v19 = vld [vmem:[%s10337_s14 + $0x1f4] sm:$0xf0]  ;;  %5982 = vmatpush.bf16.msra.mxu0 %v7170_v12  ;;  %v8849_v24 = vld [vmem:[%s10337_s14 + $0xe4] sm:$0xf0] }
 0x1b0   : > { %v7362_v21 = vor.u32 %v8883_v19, %v7361_v18  ;;  %5995 = vmatpush.bf16.msra.mxu1 %v7234_v16  ;;  %v7226_v26 = vor.u32 %v8849_v24, %v7225_v23  ;;  %v7289_v27 = vld [vmem:[%s10337_s14 + $0x160] sm:$0xf]  ;;  %v8865_v28 = vld [vmem:[%s10337_s14 + $0x164] sm:$0xf0]  ;;  %v7153_v32 = vld [vmem:[%s10337_s14 + $0x50] sm:$0xf] }
 0x1b1   : > { %6008 = vmatpush.bf16.msra.mxu2 %v7298_v17  ;;  %v7353_v29 = vld [vmem:[%s10337_s14 + $0x1e0] sm:$0xf]  ;;  %v7290_v30 = vor.u32 %v8865_v28, %v7289_v27  ;;  %v8881_v31 = vld [vmem:[%s10337_s14 + $0x1e4] sm:$0xf0]  ;;  %v8831_v33 = vld [vmem:[%s10337_s14 + $0x54] sm:$0xf0] }
 0x1b2   : > { %6021 = vmatpush.bf16.msra.mxu3 %v7362_v21  ;;  %v7354_v34 = vor.u32 %v8881_v31, %v7353_v29  ;;  %v7217_v35 = vld [vmem:[%s10337_s14 + $0xd0] sm:$0xf]  ;;  %v8847_v36 = vld [vmem:[%s10337_s14 + $0xd4] sm:$0xf0]  ;;  %v7154_v38 = vor.u32 %v8831_v33, %v7153_v32  ;;  %v7145_v44 = vld [vmem:[%s10337_s14 + $0x40] sm:$0xf] }
 0x1b3   : > { %v7281_v37 = vld [vmem:[%s10337_s14 + $0x150] sm:$0xf]  ;;  %5983 = vmatpush.bf16.msra.mxu0 %v7162_v25  ;;  %v8863_v39 = vld [vmem:[%s10337_s14 + $0x154] sm:$0xf0]  ;;  %v7218_v42 = vor.u32 %v8847_v36, %v7217_v35  ;;  %v8829_v45 = vld [vmem:[%s10337_s14 + $0x44] sm:$0xf0] }
 0x1b4   : > { %v7345_v40 = vld [vmem:[%s10337_s14 + $0x1d0] sm:$0xf]  ;;  %v8879_v41 = vld [vmem:[%s10337_s14 + $0x1d4] sm:$0xf0]  ;;  %5996 = vmatpush.bf16.msra.mxu1 %v7226_v26  ;;  %v7282_v43 = vor.u32 %v8863_v39, %v7281_v37  ;;  %v7209_v46 = vld [vmem:[%s10337_s14 + $0xc0] sm:$0xf]  ;;  %v7146_v53 = vor.u32 %v8829_v45, %v7145_v44 }
 0x1b5   : > { %6009 = vmatpush.bf16.msra.mxu2 %v7290_v30  ;;  %v7346_v47 = vor.u32 %v8879_v41, %v7345_v40  ;;  %v8845_v48 = vld [vmem:[%s10337_s14 + $0xc4] sm:$0xf0]  ;;  %v7273_v49 = vld [vmem:[%s10337_s14 + $0x140] sm:$0xf]  ;;  %v7137_v56 = vld [vmem:[%s10337_s14 + $0x30] sm:$0xf] }
 0x1b6   : > { %6022 = vmatpush.bf16.msra.mxu3 %v7354_v34  ;;  %v8861_v50 = vld [vmem:[%s10337_s14 + $0x144] sm:$0xf0]  ;;  %v7337_v51 = vld [vmem:[%s10337_s14 + $0x1c0] sm:$0xf]  ;;  %v7210_v54 = vor.u32 %v8845_v48, %v7209_v46  ;;  %v8827_v57 = vld [vmem:[%s10337_s14 + $0x34] sm:$0xf0] }
 0x1b7   : > { %v8877_v52 = vld [vmem:[%s10337_s14 + $0x1c4] sm:$0xf0]  ;;  %5984 = vmatpush.bf16.msra.mxu0 %v7154_v38  ;;  %v7274_v55 = vor.u32 %v8861_v50, %v7273_v49  ;;  %v7201_v58 = vld [vmem:[%s10337_s14 + $0xb0] sm:$0xf]  ;;  %v8843_v60 = vld [vmem:[%s10337_s14 + $0xb4] sm:$0xf0]  ;;  %v7138_v1 = vor.u32 %v8827_v57, %v7137_v56 }
 0x1b8   : > { %5997 = vmatpush.bf16.msra.mxu1 %v7218_v42  ;;  %v7338_v59 = vor.u32 %v8877_v52, %v7337_v51  ;;  %v7265_v61 = vld [vmem:[%s10337_s14 + $0x130] sm:$0xf]  ;;  %v8859_v62 = vld [vmem:[%s10337_s14 + $0x134] sm:$0xf0]  ;;  %v7202_v2 = vor.u32 %v8843_v60, %v7201_v58  ;;  %v7129_v4 = vld [vmem:[%s10337_s14 + $0x20] sm:$0xf] }
 0x1b9   : > { %6010 = vmatpush.bf16.msra.mxu2 %v7282_v43  ;;  %v7329_v63 = vld [vmem:[%s10337_s14 + $0x1b0] sm:$0xf]  ;;  %v8875_v0 = vld [vmem:[%s10337_s14 + $0x1b4] sm:$0xf0]  ;;  %v7266_v3 = vor.u32 %v8859_v62, %v7265_v61  ;;  %v8825_v5 = vld [vmem:[%s10337_s14 + $0x24] sm:$0xf0] }
 0x1ba   : > { %6023 = vmatpush.bf16.msra.mxu3 %v7346_v47  ;;  %v7193_v6 = vld [vmem:[%s10337_s14 + $0xa0] sm:$0xf]  ;;  %v7330_v7 = vor.u32 %v8875_v0, %v7329_v63  ;;  %v8841_v8 = vld [vmem:[%s10337_s14 + $0xa4] sm:$0xf0]  ;;  %v7130_v13 = vor.u32 %v8825_v5, %v7129_v4  ;;  %v7121_v16 = vld [vmem:[%s10337_s14 + $0x10] sm:$0xf] }
 0x1bb   : > { %5985 = vmatpush.bf16.msra.mxu0 %v7146_v53  ;;  %v7257_v9 = vld [vmem:[%s10337_s14 + $0x120] sm:$0xf]  ;;  %v8857_v10 = vld [vmem:[%s10337_s14 + $0x124] sm:$0xf0]  ;;  %v7194_v14 = vor.u32 %v8841_v8, %v7193_v6  ;;  %v8823_v17 = vld [vmem:[%s10337_s14 + $0x14] sm:$0xf0] }
 0x1bc   : > { %5998 = vmatpush.bf16.msra.mxu1 %v7210_v54  ;;  %v7321_v11 = vld [vmem:[%s10337_s14 + $0x1a0] sm:$0xf]  ;;  %v8873_v12 = vld [vmem:[%s10337_s14 + $0x1a4] sm:$0xf0]  ;;  %v7258_v15 = vor.u32 %v8857_v10, %v7257_v9  ;;  %v7185_v18 = vld [vmem:[%s10337_s14 + $0x90] sm:$0xf]  ;;  %v7122_v25 = vor.u32 %v8823_v17, %v7121_v16 }
 0x1bd   : > { %6011 = vmatpush.bf16.msra.mxu2 %v7274_v55  ;;  %v7322_v19 = vor.u32 %v8873_v12, %v7321_v11  ;;  %v8839_v20 = vld [vmem:[%s10337_s14 + $0x94] sm:$0xf0]  ;;  %v7249_v21 = vld [vmem:[%s10337_s14 + $0x110] sm:$0xf]  ;;  %v7113_v26 = vld [vmem:[%s10337_s14] sm:$0xf] }
 0x1be   : > { %6024 = vmatpush.bf16.msra.mxu3 %v7338_v59  ;;  %v8855_v22 = vld [vmem:[%s10337_s14 + $0x114] sm:$0xf0]  ;;  %v7313_v23 = vld [vmem:[%s10337_s14 + $0x190] sm:$0xf]  ;;  %v8821_v27 = vld [vmem:[%s10337_s14 + $0x4] sm:$0xf0]  ;;  %v7186_v28 = vor.u32 %v8839_v20, %v7185_v18 }
 0x1bf   : > { %5986 = vmatpush.bf16.msra.mxu0 %v7138_v1  ;;  %v8871_v24 = vld [vmem:[%s10337_s14 + $0x194] sm:$0xf0]  ;;  %v7250_v29 = vor.u32 %v8855_v22, %v7249_v21  ;;  %v7177_v30 = vld [vmem:[%s10337_s14 + $0x80] sm:$0xf]  ;;  %v8837_v31 = vld [vmem:[%s10337_s14 + $0x84] sm:$0xf0]  ;;  %v7114_v40 = vor.u32 %v8821_v27, %v7113_v26 }
 0x1c0   : > { %5999 = vmatpush.bf16.msra.mxu1 %v7202_v2  ;;  %v7241_v32 = vld [vmem:[%s10337_s14 + $0x100] sm:$0xf]  ;;  %v7314_v33 = vor.u32 %v8871_v24, %v7313_v23  ;;  %v8853_v34 = vld [vmem:[%s10337_s14 + $0x104] sm:$0xf0]  ;;  %v7425_v37 = vld [vmem:[%s10337_s14 + $0x270] sm:$0xf]  ;;  %v7178_v44 = vor.u32 %v8837_v31, %v7177_v30 }
 0x1c1   : > { %6012 = vmatpush.bf16.msra.mxu2 %v7266_v3  ;;  %v7305_v35 = vld [vmem:[%s10337_s14 + $0x180] sm:$0xf]  ;;  %v8869_v36 = vld [vmem:[%s10337_s14 + $0x184] sm:$0xf0]  ;;  %v8899_v38 = vld [vmem:[%s10337_s14 + $0x274] sm:$0xf0]  ;;  %v7242_v45 = vor.u32 %v8853_v34, %v7241_v32 }
 0x1c2   : > { %6025 = vmatpush.bf16.msra.mxu3 %v7330_v7  ;;  %v7489_v39 = vld [vmem:[%s10337_s14 + $0x2f0] sm:$0xf]  ;;  %v8915_v41 = vld [vmem:[%s10337_s14 + $0x2f4] sm:$0xf0]  ;;  %v7306_v48 = vor.u32 %v8869_v36, %v7305_v35  ;;  %v7426_v49 = vor.u32 %v8899_v38, %v7425_v37  ;;  %v7417_v52 = vld [vmem:[%s10337_s14 + $0x260] sm:$0xf] }
 0x1c3   : > { %5987 = vmatpush.bf16.msra.mxu0 %v7130_v13  ;;  %v7553_v42 = vld [vmem:[%s10337_s14 + $0x370] sm:$0xf]  ;;  %v8931_v43 = vld [vmem:[%s10337_s14 + $0x374] sm:$0xf0]  ;;  %v7490_v50 = vor.u32 %v8915_v41, %v7489_v39  ;;  %v8897_v53 = vld [vmem:[%s10337_s14 + $0x264] sm:$0xf0] }
 0x1c4   : > { %6000 = vmatpush.bf16.msra.mxu1 %v7194_v14  ;;  %v7617_v46 = vld [vmem:[%s10337_s14 + $0x3f0] sm:$0xf]  ;;  %v8947_v47 = vld [vmem:[%s10337_s14 + $0x3f4] sm:$0xf0]  ;;  %v7554_v51 = vor.u32 %v8931_v43, %v7553_v42  ;;  %v7481_v54 = vld [vmem:[%s10337_s14 + $0x2e0] sm:$0xf]  ;;  %v7418_v61 = vor.u32 %v8897_v53, %v7417_v52 }
 0x1c5   : > { %6013 = vmatpush.bf16.msra.mxu2 %v7258_v15  ;;  %v7618_v55 = vor.u32 %v8947_v47, %v7617_v46  ;;  %v8913_v56 = vld [vmem:[%s10337_s14 + $0x2e4] sm:$0xf0]  ;;  %v7545_v57 = vld [vmem:[%s10337_s14 + $0x360] sm:$0xf]  ;;  %v7409_v62 = vld [vmem:[%s10337_s14 + $0x250] sm:$0xf] }
 0x1c6   : > { %6026 = vmatpush.bf16.msra.mxu3 %v7322_v19  ;;  %v8929_v58 = vld [vmem:[%s10337_s14 + $0x364] sm:$0xf0]  ;;  %v7609_v59 = vld [vmem:[%s10337_s14 + $0x3e0] sm:$0xf]  ;;  %v8895_v63 = vld [vmem:[%s10337_s14 + $0x254] sm:$0xf0]  ;;  %v7482_v0 = vor.u32 %v8913_v56, %v7481_v54 }
 0x1c7   : > { %5988 = vmatpush.bf16.msra.mxu0 %v7122_v25  ;;  %v8945_v60 = vld [vmem:[%s10337_s14 + $0x3e4] sm:$0xf0]  ;;  %v7546_v1 = vor.u32 %v8929_v58, %v7545_v57  ;;  %v7473_v2 = vld [vmem:[%s10337_s14 + $0x2d0] sm:$0xf]  ;;  %v8911_v3 = vld [vmem:[%s10337_s14 + $0x2d4] sm:$0xf0]  ;;  %v7410_v10 = vor.u32 %v8895_v63, %v7409_v62 }
 0x1c8   : > { %6001 = vmatpush.bf16.msra.mxu1 %v7186_v28  ;;  %v3560_v4 = vld [vmem:[%s11394_s0] sm:$0xff]  ;;  %v7610_v5 = vor.u32 %v8945_v60, %v7609_v59  ;;  %v7537_v6 = vld [vmem:[%s10337_s14 + $0x350] sm:$0xf]  ;;  %v7474_v11 = vor.u32 %v8911_v3, %v7473_v2  ;;  %v7401_v13 = vld [vmem:[%s10337_s14 + $0x240] sm:$0xf]  ;;  %vm5979_vm0 = vcmask 523264  }
 0x1c9   : > { %6014 = vmatpush.bf16.msra.mxu2 %v7250_v29  ;;  %v8927_v7 = vld [vmem:[%s10337_s14 + $0x354] sm:$0xf0]  ;;  %3963 = vst [vmem:[#allocation1] ss:$9 sm:$0xff] %v3560_v4  ;;  %v7601_v8 = vld [vmem:[%s10337_s14 + $0x3d0] sm:$0xf] }
 0x1ca   : > { %6027 = vmatpush.bf16.msra.mxu3 %v7314_v33  ;;  %v8943_v9 = vld [vmem:[%s10337_s14 + $0x3d4] sm:$0xf0]  ;;  %v7538_v12 = vor.u32 %v8927_v7, %v7537_v6  ;;  %v8893_v14 = vld [vmem:[%s10337_s14 + $0x244] sm:$0xf0]  ;;  %v7465_v15 = vld [vmem:[%s10337_s14 + $0x2c0] sm:$0xf] }
 0x1cb   : > { %5989 = vmatpush.bf16.msra.mxu0 %v7114_v40  ;;  %v7602_v16 = vor.u32 %v8943_v9, %v7601_v8  ;;  %v8909_v17 = vld [vmem:[%s10337_s14 + $0x2c4] sm:$0xf0]  ;;  %v7529_v18 = vld [vmem:[%s10337_s14 + $0x340] sm:$0xf]  ;;  %v7393_v22 = vld [vmem:[%s10337_s14 + $0x230] sm:$0xf]  ;;  %v7402_v23 = vor.u32 %v8893_v14, %v7401_v13 }
 0x1cc   : > { %6002 = vmatpush.bf16.msra.mxu1 %v7178_v44  ;;  %v8925_v19 = vld [vmem:[%s10337_s14 + $0x344] sm:$0xf0]  ;;  %v7593_v20 = vld [vmem:[%s10337_s14 + $0x3c0] sm:$0xf]  ;;  %v8891_v24 = vld [vmem:[%s10337_s14 + $0x234] sm:$0xf0]  ;;  %v7466_v27 = vor.u32 %v8909_v17, %v7465_v15 }
 0x1cd   : > { %6015 = vmatpush.bf16.msra.mxu2 %v7242_v45  ;;  %v8941_v21 = vld [vmem:[%s10337_s14 + $0x3c4] sm:$0xf0]  ;;  %v7457_v25 = vld [vmem:[%s10337_s14 + $0x2b0] sm:$0xf]  ;;  %v8907_v26 = vld [vmem:[%s10337_s14 + $0x2b4] sm:$0xf0]  ;;  %v7530_v28 = vor.u32 %v8925_v19, %v7529_v18  ;;  %v7394_v38 = vor.u32 %v8891_v24, %v7393_v22 }
 0x1ce   : > { %6028 = vmatpush.bf16.msra.mxu3 %v7306_v48  ;;  %v7594_v32 = vor.u32 %v8941_v21, %v7593_v20  ;;  %v7521_v33 = vld [vmem:[%s10337_s14 + $0x330] sm:$0xf]  ;;  %v8923_v34 = vld [vmem:[%s10337_s14 + $0x334] sm:$0xf0]  ;;  %v7385_v39 = vld [vmem:[%s10337_s14 + $0x220] sm:$0xf]  ;;  %v7458_v40 = vor.u32 %v8907_v26, %v7457_v25 }
 0x1cf   : > { %6034 = vmatpush.bf16.msrb.mxu0 %v7426_v49  ;;  %v7585_v36 = vld [vmem:[%s10337_s14 + $0x3b0] sm:$0xf]  ;;  %v8939_v37 = vld [vmem:[%s10337_s14 + $0x3b4] sm:$0xf0]  ;;  %v7522_v41 = vor.u32 %v8923_v34, %v7521_v33  ;;  %v8889_v42 = vld [vmem:[%s10337_s14 + $0x224] sm:$0xf0] }
 0x1d0   : > { %6047 = vmatpush.bf16.msrb.mxu1 %v7490_v50  ;;  %v10443_v29 = vld [vmem:[#allocation1 + $0x12] sm:$0xff]  ;;  %v10445_v30 = vld [vmem:[#allocation1] sm:$0xff]  ;;  %v10452_v35 = vld [vmem:[#allocation1 + $0x9] sm:$0xff]  ;;  %v7586_v45 = vor.u32 %v8939_v37, %v7585_v36  ;;  %v7386_v52 = vor.u32 %v8889_v42, %v7385_v39  ;;  %vm6884_vm1 = vcmask 1041408   ;;  %p8809_p12 = scmp.ne.s32.totalorder %s9436_s26, 3 }
 0x1d1   : > { %6060 = vmatpush.bf16.msrb.mxu2 %v7554_v51  ;;  %v10447_v31 = vld [vmem:[#allocation1 + $0x1b] sm:$0xff]  ;;  %5990 = vmatmul.bf16.vlgmr.msra.gmra.mxu0 %v10445_v30  ;;  %v7449_v43 = vld [vmem:[%s10337_s14 + $0x2a0] sm:$0xf]  ;;  %v8905_v44 = vld [vmem:[%s10337_s14 + $0x2a4] sm:$0xf0] }
 0x1d2   : > { %6073 = vmatpush.bf16.msrb.mxu3 %v7618_v55  ;;  %6016 = vmatmul.bf16.vlgmr.msra.gmra.mxu2 %v10443_v29  ;;  %v7513_v46 = vld [vmem:[%s10337_s14 + $0x320] sm:$0xf]  ;;  %v8921_v47 = vld [vmem:[%s10337_s14 + $0x324] sm:$0xf0]  ;;  %v7377_v50 = vld [vmem:[%s10337_s14 + $0x210] sm:$0xf]  ;;  %v7450_v56 = vor.u32 %v8905_v44, %v7449_v43 }
 0x1d3   : > { %6035 = vmatpush.bf16.msrb.mxu0 %v7418_v61  ;;  %6029 = vmatmul.bf16.vlgmr.msra.gmra.mxu3 %v10447_v31  ;;  %v7577_v48 = vld [vmem:[%s10337_s14 + $0x3a0] sm:$0xf]  ;;  %v8937_v49 = vld [vmem:[%s10337_s14 + $0x3a4] sm:$0xf0]  ;;  %v8887_v51 = vld [vmem:[%s10337_s14 + $0x214] sm:$0xf0]  ;;  %v7514_v57 = vor.u32 %v8921_v47, %v7513_v46 }
 0x1d4   : > { %6048 = vmatpush.bf16.msrb.mxu1 %v7482_v0  ;;  %v7441_v53 = vld [vmem:[%s10337_s14 + $0x290] sm:$0xf]  ;;  %v8903_v54 = vld [vmem:[%s10337_s14 + $0x294] sm:$0xf0]  ;;  %v7578_v61 = vor.u32 %v8937_v49, %v7577_v48  ;;  %v3561_v63 = vld [vmem:[%s11394_s0 + $0x8] sm:$0xff]  ;;  %v7378_v3 = vor.u32 %v8887_v51, %v7377_v50 }
 0x1d5   : > { %6061 = vmatpush.bf16.msrb.mxu2 %v7546_v1  ;;  %6003 = vmatmul.bf16.vlgmr.msra.gmra.mxu1 %v10452_v35  ;;  %v7505_v55 = vld [vmem:[%s10337_s14 + $0x310] sm:$0xf]  ;;  %v8919_v58 = vld [vmem:[%s10337_s14 + $0x314] sm:$0xf0]  ;;  %v10482_v0 = vld [vmem:[#allocation1 + $0x2d] sm:$0xff]  ;;  %v7442_v6 = vor.u32 %v8903_v54, %v7441_v53 }
 0x1d6   : > { %6074 = vmatpush.bf16.msrb.mxu3 %v7610_v5  ;;  %v10473_v59 = vld [vmem:[#allocation1 + $0x36] sm:$0xff]  ;;  %v10475_v60 = vld [vmem:[#allocation1 + $0x24] sm:$0xff]  ;;  %v7369_v4 = vld [vmem:[%s10337_s14 + $0x200] sm:$0xf]  ;;  %v7506_v7 = vor.u32 %v8919_v58, %v7505_v55 }
 0x1d7   : > { %6036 = vmatpush.bf16.msrb.mxu0 %v7410_v10  ;;  %v10477_v62 = vld [vmem:[#allocation1 + $0x3f] sm:$0xff]  ;;  %v8885_v5 = vld [vmem:[%s10337_s14 + $0x204] sm:$0xf0]  ;;  %v7433_v8 = vld [vmem:[%s10337_s14 + $0x280] sm:$0xf] }
 0x1d8   : > { %6049 = vmatpush.bf16.msrb.mxu1 %v7474_v11  ;;  %v7569_v1 = vld [vmem:[%s10337_s14 + $0x390] sm:$0xf]  ;;  %v8935_v2 = vld [vmem:[%s10337_s14 + $0x394] sm:$0xf0]  ;;  %3973 = vst [vmem:[#allocation1] ss:$9 sm:$0xff] %v3561_v63  ;;  %v7370_v18 = vor.u32 %v8885_v5, %v7369_v4 }
 0x1d9   : > { %6062 = vmatpush.bf16.msrb.mxu2 %v7538_v12  ;;  %v8901_v9 = vld [vmem:[%s10337_s14 + $0x284] sm:$0xf0]  ;;  %v7497_v10 = vld [vmem:[%s10337_s14 + $0x300] sm:$0xf]  ;;  %v7570_v11 = vor.u32 %v8935_v2, %v7569_v1  ;;  %v7681_v15 = vld [vmem:[%s10337_s14 + $0x470] sm:$0xf] }
 0x1da   : > { %6075 = vmatpush.bf16.msrb.mxu3 %v7602_v16  ;;  %v8917_v12 = vld [vmem:[%s10337_s14 + $0x304] sm:$0xf0]  ;;  %v7561_v13 = vld [vmem:[%s10337_s14 + $0x380] sm:$0xf]  ;;  %v8963_v16 = vld [vmem:[%s10337_s14 + $0x474] sm:$0xf0]  ;;  %v7434_v22 = vor.u32 %v8901_v9, %v7433_v8 }
 0x1db   : > { %6037 = vmatpush.bf16.msrb.mxu0 %v7402_v23  ;;  %v8933_v14 = vld [vmem:[%s10337_s14 + $0x384] sm:$0xf0]  ;;  %v7745_v17 = vld [vmem:[%s10337_s14 + $0x4f0] sm:$0xf]  ;;  %v8979_v19 = vld [vmem:[%s10337_s14 + $0x4f4] sm:$0xf0]  ;;  %v7498_v23 = vor.u32 %v8917_v12, %v7497_v10 }
 0x1dc   : > { %6050 = vmatpush.bf16.msrb.mxu1 %v7466_v27  ;;  %v7809_v20 = vld [vmem:[%s10337_s14 + $0x570] sm:$0xf]  ;;  %v8995_v21 = vld [vmem:[%s10337_s14 + $0x574] sm:$0xf0]  ;;  %v7562_v26 = vor.u32 %v8933_v14, %v7561_v13  ;;  %v7682_v27 = vor.u32 %v8963_v16, %v7681_v15  ;;  %v7673_v33 = vld [vmem:[%s10337_s14 + $0x460] sm:$0xf] }
 0x1dd   : > { %6063 = vmatpush.bf16.msrb.mxu2 %v7530_v28  ;;  %v7873_v24 = vld [vmem:[%s10337_s14 + $0x5f0] sm:$0xf]  ;;  %v9011_v25 = vld [vmem:[%s10337_s14 + $0x5f4] sm:$0xf0]  ;;  %v7746_v28 = vor.u32 %v8979_v19, %v7745_v17  ;;  %v8961_v34 = vld [vmem:[%s10337_s14 + $0x464] sm:$0xf0] }
 0x1de   : > { %6076 = vmatpush.bf16.msrb.mxu3 %v7594_v32  ;;  %v7810_v32 = vor.u32 %v8995_v21, %v7809_v20  ;;  %v7737_v36 = vld [vmem:[%s10337_s14 + $0x4e0] sm:$0xf]  ;;  %v7874_v37 = vor.u32 %v9011_v25, %v7873_v24  ;;  %v9009_v42 = vld [vmem:[%s10337_s14 + $0x5e4] sm:$0xf0]  ;;  %v7674_v43 = vor.u32 %v8961_v34, %v7673_v33  ;;  %v7665_v46 = vld [vmem:[%s10337_s14 + $0x450] sm:$0xf] }
 0x1df   : > { %6038 = vmatpush.bf16.msrb.mxu0 %v7394_v38  ;;  %v8977_v38 = vld [vmem:[%s10337_s14 + $0x4e4] sm:$0xf0]  ;;  %v7801_v39 = vld [vmem:[%s10337_s14 + $0x560] sm:$0xf]  ;;  %v8959_v47 = vld [vmem:[%s10337_s14 + $0x454] sm:$0xf0] }
 0x1e0   : > { %6051 = vmatpush.bf16.msrb.mxu1 %v7458_v40  ;;  %v8993_v40 = vld [vmem:[%s10337_s14 + $0x564] sm:$0xf0]  ;;  %v7738_v44 = vor.u32 %v8977_v38, %v7737_v36  ;;  %v7729_v48 = vld [vmem:[%s10337_s14 + $0x4d0] sm:$0xf]  ;;  %v8975_v50 = vld [vmem:[%s10337_s14 + $0x4d4] sm:$0xf0]  ;;  %v7666_v55 = vor.u32 %v8959_v47, %v7665_v46 }
 0x1e1   : > { %6064 = vmatpush.bf16.msrb.mxu2 %v7522_v41  ;;  %v7865_v41 = vld [vmem:[%s10337_s14 + $0x5e0] sm:$0xf]  ;;  %v7793_v51 = vld [vmem:[%s10337_s14 + $0x550] sm:$0xf]  ;;  %v9007_v54 = vld [vmem:[%s10337_s14 + $0x5d4] sm:$0xf0] }
 0x1e2   : > { %6077 = vmatpush.bf16.msrb.mxu3 %v7586_v45  ;;  %v7802_v45 = vor.u32 %v8993_v40, %v7801_v39  ;;  %v7866_v49 = vor.u32 %v9009_v42, %v7865_v41  ;;  %v7857_v53 = vld [vmem:[%s10337_s14 + $0x5d0] sm:$0xf]  ;;  %v7657_v58 = vld [vmem:[%s10337_s14 + $0x440] sm:$0xf]  ;;  %v8973_v2 = vld [vmem:[%s10337_s14 + $0x4c4] sm:$0xf0] }
 0x1e3   : > { %6039 = vmatpush.bf16.msrb.mxu0 %v7386_v52  ;;  %v8991_v52 = vld [vmem:[%s10337_s14 + $0x554] sm:$0xf0]  ;;  %v7721_v63 = vld [vmem:[%s10337_s14 + $0x4c0] sm:$0xf]  ;;  %v7858_v1 = vor.u32 %v9007_v54, %v7857_v53  ;;  %v8989_v4 = vld [vmem:[%s10337_s14 + $0x544] sm:$0xf0] }
 0x1e4   : > { %6052 = vmatpush.bf16.msrb.mxu1 %v7450_v56  ;;  %v7730_v56 = vor.u32 %v8975_v50, %v7729_v48  ;;  %v7849_v5 = vld [vmem:[%s10337_s14 + $0x5c0] sm:$0xf]  ;;  %v7722_v8 = vor.u32 %v8973_v2, %v7721_v63  ;;  %v7649_v10 = vld [vmem:[%s10337_s14 + $0x430] sm:$0xf]  ;;  %v8971_v14 = vld [vmem:[%s10337_s14 + $0x4b4] sm:$0xf0] }
 0x1e5   : > { %6065 = vmatpush.bf16.msrb.mxu2 %v7514_v57  ;;  %v7794_v57 = vor.u32 %v8991_v52, %v7793_v51  ;;  %v7713_v12 = vld [vmem:[%s10337_s14 + $0x4b0] sm:$0xf]  ;;  %v8987_v16 = vld [vmem:[%s10337_s14 + $0x534] sm:$0xf0]  ;;  %v7705_v24 = vld [vmem:[%s10337_s14 + $0x4a0] sm:$0xf] }
 0x1e6   : > { %6078 = vmatpush.bf16.msrb.mxu3 %v7578_v61  ;;  %v8957_v61 = vld [vmem:[%s10337_s14 + $0x444] sm:$0xf0]  ;;  %v7777_v15 = vld [vmem:[%s10337_s14 + $0x530] sm:$0xf]  ;;  %v7714_v20 = vor.u32 %v8971_v14, %v7713_v12  ;;  %v8951_v39 = vld [vmem:[%s10337_s14 + $0x414] sm:$0xf0] }
 0x1e7   : > { %6040 = vmatpush.bf16.msrb.mxu0 %v7378_v3  ;;  %v7785_v3 = vld [vmem:[%s10337_s14 + $0x540] sm:$0xf]  ;;  %v7841_v17 = vld [vmem:[%s10337_s14 + $0x5b0] sm:$0xf]  ;;  %v7778_v21 = vor.u32 %v8987_v16, %v7777_v15  ;;  %v9001_v33 = vld [vmem:[%s10337_s14 + $0x5a4] sm:$0xf0] }
 0x1e8   : > { %6053 = vmatpush.bf16.msrb.mxu1 %v7442_v6  ;;  %v9005_v6 = vld [vmem:[%s10337_s14 + $0x5c4] sm:$0xf0]  ;;  %v7786_v9 = vor.u32 %v8989_v4, %v7785_v3  ;;  %v7633_v38 = vld [vmem:[%s10337_s14 + $0x410] sm:$0xf]  ;;  %v8967_v42 = vld [vmem:[%s10337_s14 + $0x494] sm:$0xf0] }
 0x1e9   : > { %6066 = vmatpush.bf16.msrb.mxu2 %v7506_v7  ;;  %v7658_v7 = vor.u32 %v8957_v61, %v7657_v58  ;;  %v7850_v13 = vor.u32 %v9005_v6, %v7849_v5  ;;  %v7697_v40 = vld [vmem:[%s10337_s14 + $0x490] sm:$0xf]  ;;  %v8999_v46 = vld [vmem:[%s10337_s14 + $0x594] sm:$0xf0]  ;;  %v7634_v47 = vor.u32 %v8951_v39, %v7633_v38  ;;  %v7625_v48 = vld [vmem:[%s10337_s14 + $0x400] sm:$0xf] }
 0x1ea   : > { %6079 = vmatpush.bf16.msrb.mxu3 %v7570_v11  ;;  %v8955_v11 = vld [vmem:[%s10337_s14 + $0x434] sm:$0xf0]  ;;  %v7698_v50 = vor.u32 %v8967_v42, %v7697_v40  ;;  %v7689_v52 = vld [vmem:[%s10337_s14 + $0x480] sm:$0xf]  ;;  %v8965_v53 = vld [vmem:[%s10337_s14 + $0x484] sm:$0xf0] }
 0x1eb   : > { %6041 = vmatpush.bf16.msrb.mxu0 %v7370_v18  ;;  %v9003_v18 = vld [vmem:[%s10337_s14 + $0x5b4] sm:$0xf0]  ;;  %v7650_v19 = vor.u32 %v8955_v11, %v7649_v10  ;;  %v7753_v54 = vld [vmem:[%s10337_s14 + $0x500] sm:$0xf]  ;;  %v8997_v58 = vld [vmem:[%s10337_s14 + $0x584] sm:$0xf0]  ;;  %v7690_v6 = vor.u32 %v8965_v53, %v7689_v52 }
 0x1ec   : > { %6054 = vmatpush.bf16.msrb.mxu1 %v7434_v22  ;;  %v7641_v22 = vld [vmem:[%s10337_s14 + $0x420] sm:$0xf]  ;;  %v7842_v25 = vor.u32 %v9003_v18, %v7841_v17  ;;  %v7937_v61 = vld [vmem:[%s10337_s14 + $0x670] sm:$0xf]  ;;  %v9027_v63 = vld [vmem:[%s10337_s14 + $0x674] sm:$0xf0] }
 0x1ed   : > { %6067 = vmatpush.bf16.msrb.mxu2 %v7498_v23  ;;  %v8953_v23 = vld [vmem:[%s10337_s14 + $0x424] sm:$0xf0]  ;;  %v9043_v3 = vld [vmem:[%s10337_s14 + $0x6f4] sm:$0xf0]  ;;  %v8065_v4 = vld [vmem:[%s10337_s14 + $0x770] sm:$0xf]  ;;  %v7938_v11 = vor.u32 %v9027_v63, %v7937_v61 }
 0x1ee   : > { %6080 = vmatpush.bf16.msrb.mxu3 %v7562_v26  ;;  %6042 = vmatmul.bf16.vlgmr.msrb.gmra.mxu0 %v10475_v60  ;;  %v8969_v26 = vld [vmem:[%s10337_s14 + $0x4a4] sm:$0xf0]  ;;  %v7642_v34 = vor.u32 %v8953_v23, %v7641_v22  ;;  %v9059_v5 = vld [vmem:[%s10337_s14 + $0x774] sm:$0xf0]  ;;  %v7929_v14 = vld [vmem:[%s10337_s14 + $0x660] sm:$0xf] }
 0x1ef   : > { %6086 = vmatpush.bf16.msra.mxu0 %v7682_v27  ;;  %6055 = vmatmul.bf16.vlgmr.msrb.gmra.mxu1 %v10482_v0  ;;  %v7769_v27 = vld [vmem:[%s10337_s14 + $0x520] sm:$0xf]  ;;  %v7706_v36 = vor.u32 %v8969_v26, %v7705_v24  ;;  %v9025_v15 = vld [vmem:[%s10337_s14 + $0x664] sm:$0xf0]  ;;  %v10584_v26 = vld [vmem:[#allocation1 + $0x1b] sm:$0xff] }
 0x1f0   : > { %6099 = vmatpush.bf16.msra.mxu1 %v7746_v28  ;;  %6068 = vmatmul.bf16.vlgmr.msrb.gmra.mxu2 %v10473_v59  ;;  %v8985_v28 = vld [vmem:[%s10337_s14 + $0x524] sm:$0xf0]  ;;  %v7993_v16 = vld [vmem:[%s10337_s14 + $0x6e0] sm:$0xf]  ;;  %v9039_v38 = vld [vmem:[%s10337_s14 + $0x6d4] sm:$0xf0] }
 0x1f1   : > { %6112 = vmatpush.bf16.msra.mxu2 %v7810_v32  ;;  %6081 = vmatmul.bf16.vlgmr.msrb.gmra.mxu3 %v10477_v62  ;;  %v7833_v32 = vld [vmem:[%s10337_s14 + $0x5a0] sm:$0xf]  ;;  %v9041_v18 = vld [vmem:[%s10337_s14 + $0x6e4] sm:$0xf0]  ;;  %v8049_v39 = vld [vmem:[%s10337_s14 + $0x750] sm:$0xf] }
 0x1f2   : > { %6125 = vmatpush.bf16.msra.mxu3 %v7874_v37  ;;  %v7770_v37 = vor.u32 %v8985_v28, %v7769_v27  ;;  %v7834_v41 = vor.u32 %v9001_v33, %v7833_v32  ;;  %v8121_v22 = vld [vmem:[%s10337_s14 + $0x7e0] sm:$0xf]  ;;  %v9073_v23 = vld [vmem:[%s10337_s14 + $0x7e4] sm:$0xf0]  ;;  %v7930_v27 = vor.u32 %v9025_v15, %v7929_v14  ;;  %v7994_v28 = vor.u32 %v9041_v18, %v7993_v16  ;;  %v7921_v33 = vld [vmem:[%s10337_s14 + $0x650] sm:$0xf] }
 0x1f3   : > { %6087 = vmatpush.bf16.msra.mxu0 %v7674_v43  ;;  %v7761_v43 = vld [vmem:[%s10337_s14 + $0x510] sm:$0xf]  ;;  %v10580_v24 = vld [vmem:[#allocation1 + $0x12] sm:$0xff]  ;;  %v9055_v40 = vld [vmem:[%s10337_s14 + $0x754] sm:$0xf0] }
 0x1f4   : > { %6100 = vmatpush.bf16.msra.mxu1 %v7738_v44  ;;  %v8983_v44 = vld [vmem:[%s10337_s14 + $0x514] sm:$0xf0]  ;;  %v9053_v52 = vld [vmem:[%s10337_s14 + $0x744] sm:$0xf0]  ;;  %v8105_v53 = vld [vmem:[%s10337_s14 + $0x7c0] sm:$0xf] }
 0x1f5   : > { %6113 = vmatpush.bf16.msra.mxu2 %v7802_v45  ;;  %v7825_v45 = vld [vmem:[%s10337_s14 + $0x590] sm:$0xf]  ;;  %v7762_v51 = vor.u32 %v8983_v44, %v7761_v43  ;;  %v9071_v42 = vld [vmem:[%s10337_s14 + $0x7d4] sm:$0xf0]  ;;  %v9033_v14 = vld [vmem:[%s10337_s14 + $0x6a4] sm:$0xf0] }
 0x1f6   : > { %6126 = vmatpush.bf16.msra.mxu3 %v7866_v49  ;;  %v8949_v49 = vld [vmem:[%s10337_s14 + $0x404] sm:$0xf0]  ;;  %v9019_v61 = vld [vmem:[%s10337_s14 + $0x634] sm:$0xf0]  ;;  %v7969_v63 = vld [vmem:[%s10337_s14 + $0x6b0] sm:$0xf] }
 0x1f7   : > { %6088 = vmatpush.bf16.msra.mxu0 %v7666_v55  ;;  %v7826_v55 = vor.u32 %v8999_v46, %v7825_v45  ;;  %v7626_v2 = vor.u32 %v8949_v49, %v7625_v48  ;;  %v8050_v45 = vor.u32 %v9055_v40, %v8049_v39  ;;  %v7913_v46 = vld [vmem:[%s10337_s14 + $0x640] sm:$0xf]  ;;  %v9049_v16 = vld [vmem:[%s10337_s14 + $0x724] sm:$0xf0] }
 0x1f8   : > { %6101 = vmatpush.bf16.msra.mxu1 %v7730_v56  ;;  %v8981_v56 = vld [vmem:[%s10337_s14 + $0x504] sm:$0xf0]  ;;  %v7977_v48 = vld [vmem:[%s10337_s14 + $0x6c0] sm:$0xf] }
 0x1f9   : > { %6114 = vmatpush.bf16.msra.mxu2 %v7794_v57  ;;  %v7817_v57 = vld [vmem:[%s10337_s14 + $0x580] sm:$0xf]  ;;  %v9065_v18 = vld [vmem:[%s10337_s14 + $0x7a4] sm:$0xf0] }
 0x1fa   : > { %6127 = vmatpush.bf16.msra.mxu3 %v7858_v1  ;;  %v8001_v1 = vld [vmem:[%s10337_s14 + $0x6f0] sm:$0xf]  ;;  %v7818_v10 = vor.u32 %v8997_v58, %v7817_v57  ;;  %v8025_v15 = vld [vmem:[%s10337_s14 + $0x720] sm:$0xf]  ;;  %v9013_v40 = vld [vmem:[%s10337_s14 + $0x604] sm:$0xf0] }
 0x1fb   : > { %6089 = vmatpush.bf16.msra.mxu0 %v7658_v7  ;;  %v7754_v7 = vor.u32 %v8981_v56, %v7753_v54  ;;  %v8002_v12 = vor.u32 %v9043_v3, %v8001_v1  ;;  %v9069_v54 = vld [vmem:[%s10337_s14 + $0x7c4] sm:$0xf0]  ;;  %v7905_v58 = vld [vmem:[%s10337_s14 + $0x630] sm:$0xf]  ;;  %v7881_v39 = vld [vmem:[%s10337_s14 + $0x600] sm:$0xf] }
 0x1fc   : > { %6102 = vmatpush.bf16.msra.mxu1 %v7722_v8  ;;  %v8129_v8 = vld [vmem:[%s10337_s14 + $0x7f0] sm:$0xf]  ;;  %v8106_v1 = vor.u32 %v9069_v54, %v8105_v53  ;;  %v9107_v54 = vld [vmem:[%s10337_s14 + $0x8f4] sm:$0xf0] }
 0x1fd   : > { %6115 = vmatpush.bf16.msra.mxu2 %v7786_v9  ;;  %v9075_v9 = vld [vmem:[%s10337_s14 + $0x7f4] sm:$0xf0]  ;;  %v8033_v3 = vld [vmem:[%s10337_s14 + $0x730] sm:$0xf] }
 0x1fe   : > { %6128 = vmatpush.bf16.msra.mxu3 %v7850_v13  ;;  %v8066_v13 = vor.u32 %v9059_v5, %v8065_v4  ;;  %v8130_v17 = vor.u32 %v9075_v9, %v8129_v8  ;;  %v9051_v4 = vld [vmem:[%s10337_s14 + $0x734] sm:$0xf0]  ;;  %v8097_v5 = vld [vmem:[%s10337_s14 + $0x7b0] sm:$0xf] }
 0x1ff   : > { %6090 = vmatpush.bf16.msra.mxu0 %v7650_v19  ;;  %v8057_v19 = vld [vmem:[%s10337_s14 + $0x760] sm:$0xf]  ;;  %v8034_v9 = vor.u32 %v9051_v4, %v8033_v3  ;;  %v8257_v53 = vld [vmem:[%s10337_s14 + $0x8f0] sm:$0xf] }
 0x200   : > { %6103 = vmatpush.bf16.msra.mxu1 %v7714_v20  ;;  %v9057_v20 = vld [vmem:[%s10337_s14 + $0x764] sm:$0xf0] }
 0x201   : > { %6116 = vmatpush.bf16.msra.mxu2 %v7778_v21  ;;  %v10576_v21 = vld [vmem:[#allocation1] sm:$0xff]  ;;  %v8058_v32 = vor.u32 %v9057_v20, %v8057_v19  ;;  %v7889_v20 = vld [vmem:[%s10337_s14 + $0x610] sm:$0xf] }
 0x202   : > { %6129 = vmatpush.bf16.msra.mxu3 %v7842_v25  ;;  %v10582_v25 = vld [vmem:[#allocation1 + $0x9] sm:$0xff] }
 0x203   : > { %6091 = vmatpush.bf16.msra.mxu0 %v7642_v34  ;;  %v9023_v34 = vld [vmem:[%s10337_s14 + $0x654] sm:$0xf0] }
 0x204   : > { %6104 = vmatpush.bf16.msra.mxu1 %v7706_v36  ;;  %v7985_v36 = vld [vmem:[%s10337_s14 + $0x6d0] sm:$0xf]  ;;  %v7922_v43 = vor.u32 %v9023_v34, %v7921_v33 }
 0x205   : > { %6117 = vmatpush.bf16.msra.mxu2 %v7770_v37  ;;  %v8122_v37 = vor.u32 %v9073_v23, %v8121_v22  ;;  %v7986_v44 = vor.u32 %v9039_v38, %v7985_v36  ;;  %v8026_v23 = vor.u32 %v9049_v16, %v8025_v15  ;;  %v8017_v34 = vld [vmem:[%s10337_s14 + $0x710] sm:$0xf]  ;;  %v9047_v36 = vld [vmem:[%s10337_s14 + $0x714] sm:$0xf0]  ;;  %v9105_v15 = vld [vmem:[%s10337_s14 + $0x8e4] sm:$0xf0] }
 0x206   : > { %6130 = vmatpush.bf16.msra.mxu3 %v7834_v41  ;;  %v8113_v41 = vld [vmem:[%s10337_s14 + $0x7d0] sm:$0xf]  ;;  %v9063_v38 = vld [vmem:[%s10337_s14 + $0x794] sm:$0xf0]  ;;  %v8313_v16 = vld [vmem:[%s10337_s14 + $0x960] sm:$0xf] }
 0x207   : > { %6092 = vmatpush.bf16.msra.mxu0 %v7634_v47  ;;  %v9021_v47 = vld [vmem:[%s10337_s14 + $0x644] sm:$0xf0]  ;;  %v8114_v49 = vor.u32 %v9071_v42, %v8113_v41  ;;  %v7945_v42 = vld [vmem:[%s10337_s14 + $0x680] sm:$0xf] }
 0x208   : > { %6105 = vmatpush.bf16.msra.mxu1 %v7698_v50  ;;  %v9037_v50 = vld [vmem:[%s10337_s14 + $0x6c4] sm:$0xf0] }
 0x209   : > { %6118 = vmatpush.bf16.msra.mxu2 %v7762_v51  ;;  %v8041_v51 = vld [vmem:[%s10337_s14 + $0x740] sm:$0xf]  ;;  %v7978_v56 = vor.u32 %v9037_v50, %v7977_v48  ;;  %v8193_v50 = vld [vmem:[%s10337_s14 + $0x870] sm:$0xf] }
 0x20a   : > { %6131 = vmatpush.bf16.msra.mxu3 %v7826_v55  ;;  %v7914_v55 = vor.u32 %v9021_v47, %v7913_v46  ;;  %v8042_v57 = vor.u32 %v9053_v52, %v8041_v51  ;;  %v8018_v47 = vor.u32 %v9047_v36, %v8017_v34  ;;  %v8073_v48 = vld [vmem:[%s10337_s14 + $0x780] sm:$0xf]  ;;  %v9091_v51 = vld [vmem:[%s10337_s14 + $0x874] sm:$0xf0]  ;;  %v8305_v36 = vld [vmem:[%s10337_s14 + $0x950] sm:$0xf] }
 0x20b   : > { %6093 = vmatpush.bf16.msra.mxu0 %v7626_v2  ;;  %v9035_v2 = vld [vmem:[%s10337_s14 + $0x6b4] sm:$0xf0] }
 0x20c   : > { %6106 = vmatpush.bf16.msra.mxu1 %v7690_v6  ;;  %v9067_v6 = vld [vmem:[%s10337_s14 + $0x7b4] sm:$0xf0]  ;;  %v7970_v8 = vor.u32 %v9035_v2, %v7969_v63  ;;  %v7882_v63 = vor.u32 %v9013_v40, %v7881_v39 }
 0x20d   : > { %6119 = vmatpush.bf16.msra.mxu2 %v7754_v7  ;;  %v7906_v7 = vor.u32 %v9019_v61, %v7905_v58  ;;  %v10648_v58 = vld [vmem:[#allocation1 + $0x3f] sm:$0xff]  ;;  %v3562_v61 = vld [vmem:[%s11394_s0 + $0x10] sm:$0xff] }
 0x20e   : > { %6132 = vmatpush.bf16.msra.mxu3 %v7818_v10  ;;  %6094 = vmatmul.bf16.vlgmr.msra.gmra.mxu0 %v10576_v21  ;;  %v7897_v10 = vld [vmem:[%s10337_s14 + $0x620] sm:$0xf]  ;;  %v9123_v2 = vld [vmem:[%s10337_s14 + $0x974] sm:$0xf0] }
 0x20f   : > { %6138 = vmatpush.bf16.msrb.mxu0 %v7938_v11  ;;  %6107 = vmatmul.bf16.vlgmr.msra.gmra.mxu1 %v10582_v25  ;;  %v9017_v11 = vld [vmem:[%s10337_s14 + $0x624] sm:$0xf0]  ;;  %v9103_v34 = vld [vmem:[%s10337_s14 + $0x8d4] sm:$0xf0] }
 0x210   : > { %6151 = vmatpush.bf16.msrb.mxu1 %v8002_v12  ;;  %6120 = vmatmul.bf16.vlgmr.msra.gmra.mxu2 %v10580_v24  ;;  %v7961_v12 = vld [vmem:[%s10337_s14 + $0x6a0] sm:$0xf]  ;;  %v7898_v19 = vor.u32 %v9017_v11, %v7897_v10  ;;  %v9135_v39 = vld [vmem:[%s10337_s14 + $0x9d4] sm:$0xf0] }
 0x211   : > { %6164 = vmatpush.bf16.msrb.mxu2 %v8066_v13  ;;  %6133 = vmatmul.bf16.vlgmr.msra.gmra.mxu3 %v10584_v26  ;;  %v8098_v13 = vor.u32 %v9067_v6, %v8097_v5  ;;  %v7962_v22 = vor.u32 %v9033_v14, %v7961_v12  ;;  %v8385_v5 = vld [vmem:[%s10337_s14 + $0x9f0] sm:$0xf]  ;;  %v9139_v6 = vld [vmem:[%s10337_s14 + $0x9f4] sm:$0xf0]  ;;  %v8185_v11 = vld [vmem:[%s10337_s14 + $0x860] sm:$0xf] }
 0x212   : > { %6177 = vmatpush.bf16.msrb.mxu3 %v8130_v17  ;;  %v8089_v17 = vld [vmem:[%s10337_s14 + $0x7a0] sm:$0xf]  ;;  %v9089_v12 = vld [vmem:[%s10337_s14 + $0x864] sm:$0xf0]  ;;  %v8386_v14 = vor.u32 %v9139_v6, %v8385_v5  ;;  %v9115_v5 = vld [vmem:[%s10337_s14 + $0x934] sm:$0xf0] }
 0x213   : > { %6139 = vmatpush.bf16.msrb.mxu0 %v7930_v27  ;;  %v9015_v27 = vld [vmem:[%s10337_s14 + $0x614] sm:$0xf0]  ;;  %v8090_v33 = vor.u32 %v9065_v18, %v8089_v17  ;;  %v9121_v17 = vld [vmem:[%s10337_s14 + $0x964] sm:$0xf0]  ;;  %v8377_v18 = vld [vmem:[%s10337_s14 + $0x9e0] sm:$0xf] }
 0x214   : > { %6152 = vmatpush.bf16.msrb.mxu1 %v7994_v28  ;;  %v7953_v28 = vld [vmem:[%s10337_s14 + $0x690] sm:$0xf]  ;;  %v7890_v41 = vor.u32 %v9015_v27, %v7889_v20  ;;  %v8186_v20 = vor.u32 %v9089_v12, %v8185_v11  ;;  %v8153_v11 = vld [vmem:[%s10337_s14 + $0x820] sm:$0xf]  ;;  %v9081_v12 = vld [vmem:[%s10337_s14 + $0x824] sm:$0xf0] }
 0x215   : > { %6165 = vmatpush.bf16.msrb.mxu2 %v8058_v32  ;;  %v9031_v32 = vld [vmem:[%s10337_s14 + $0x694] sm:$0xf0]  ;;  %v8177_v27 = vld [vmem:[%s10337_s14 + $0x850] sm:$0xf] }
 0x216   : > { %6178 = vmatpush.bf16.msrb.mxu3 %v8122_v37  ;;  %v8081_v37 = vld [vmem:[%s10337_s14 + $0x790] sm:$0xf]  ;;  %v7954_v46 = vor.u32 %v9031_v32, %v7953_v28  ;;  %v9087_v28 = vld [vmem:[%s10337_s14 + $0x854] sm:$0xf0] }
 0x217   : > { %6140 = vmatpush.bf16.msrb.mxu0 %v7922_v43  ;;  %v9029_v43 = vld [vmem:[%s10337_s14 + $0x684] sm:$0xf0]  ;;  %v8082_v52 = vor.u32 %v9063_v38, %v8081_v37  ;;  %v8241_v32 = vld [vmem:[%s10337_s14 + $0x8d0] sm:$0xf]  ;;  %v9119_v37 = vld [vmem:[%s10337_s14 + $0x954] sm:$0xf0]  ;;  %v8178_v40 = vor.u32 %v9087_v28, %v8177_v27 }
 0x218   : > { %6153 = vmatpush.bf16.msrb.mxu1 %v7986_v44  ;;  %v8009_v44 = vld [vmem:[%s10337_s14 + $0x700] sm:$0xf]  ;;  %v7946_v3 = vor.u32 %v9029_v43, %v7945_v42  ;;  %v8369_v38 = vld [vmem:[%s10337_s14 + $0x9d0] sm:$0xf]  ;;  %v8306_v42 = vor.u32 %v9119_v37, %v8305_v36  ;;  %v9079_v28 = vld [vmem:[%s10337_s14 + $0x814] sm:$0xf0] }
 0x219   : > { %6166 = vmatpush.bf16.msrb.mxu2 %v8050_v45  ;;  %v9045_v45 = vld [vmem:[%s10337_s14 + $0x704] sm:$0xf0]  ;;  %v8169_v43 = vld [vmem:[%s10337_s14 + $0x840] sm:$0xf]  ;;  %v8353_v6 = vld [vmem:[%s10337_s14 + $0x9b0] sm:$0xf] }
 0x21a   : > { %6179 = vmatpush.bf16.msrb.mxu3 %v8114_v49  ;;  %v9061_v49 = vld [vmem:[%s10337_s14 + $0x784] sm:$0xf0]  ;;  %v8010_v4 = vor.u32 %v9045_v45, %v8009_v44  ;;  %v8233_v45 = vld [vmem:[%s10337_s14 + $0x8c0] sm:$0xf]  ;;  %v8145_v27 = vld [vmem:[%s10337_s14 + $0x810] sm:$0xf] }
 0x21b   : > { %6141 = vmatpush.bf16.msrb.mxu0 %v7914_v55  ;;  %v10642_v55 = vld [vmem:[#allocation1 + $0x24] sm:$0xff]  ;;  %v9085_v44 = vld [vmem:[%s10337_s14 + $0x844] sm:$0xf0]  ;;  %v8273_v36 = vld [vmem:[%s10337_s14 + $0x910] sm:$0xf] }
 0x21c   : > { %6154 = vmatpush.bf16.msrb.mxu1 %v7978_v56  ;;  %v10644_v56 = vld [vmem:[#allocation1 + $0x36] sm:$0xff]  ;;  %v9111_v37 = vld [vmem:[%s10337_s14 + $0x914] sm:$0xf0] }
 0x21d   : > { %6167 = vmatpush.bf16.msrb.mxu2 %v8042_v57  ;;  %v10646_v57 = vld [vmem:[#allocation1 + $0x2d] sm:$0xff] }
 0x21e   : > { %6180 = vmatpush.bf16.msrb.mxu3 %v8106_v1  ;;  %v8321_v1 = vld [vmem:[%s10337_s14 + $0x970] sm:$0xf]  ;;  %3983 = vst [vmem:[#allocation1] ss:$9 sm:$0xff] %v3562_v61 }
 0x21f   : > { %6142 = vmatpush.bf16.msrb.mxu0 %v7906_v7  ;;  %v8074_v7 = vor.u32 %v9061_v49, %v8073_v48  ;;  %v8322_v10 = vor.u32 %v9123_v2, %v8321_v1  ;;  %v8297_v48 = vld [vmem:[%s10337_s14 + $0x940] sm:$0xf]  ;;  %v9117_v49 = vld [vmem:[%s10337_s14 + $0x944] sm:$0xf0]  ;;  %v8161_v61 = vld [vmem:[%s10337_s14 + $0x830] sm:$0xf] }
 0x220   : > { %6155 = vmatpush.bf16.msrb.mxu1 %v7970_v8  ;;  %v8194_v8 = vor.u32 %v9091_v51, %v8193_v50  ;;  %v8361_v50 = vld [vmem:[%s10337_s14 + $0x9c0] sm:$0xf]  ;;  %v9133_v51 = vld [vmem:[%s10337_s14 + $0x9c4] sm:$0xf0]  ;;  %v8225_v1 = vld [vmem:[%s10337_s14 + $0x8b0] sm:$0xf] }
 0x221   : > { %6168 = vmatpush.bf16.msrb.mxu2 %v8034_v9  ;;  %v8258_v9 = vor.u32 %v9107_v54, %v8257_v53  ;;  %v8298_v54 = vor.u32 %v9117_v49, %v8297_v48  ;;  %v8362_v2 = vor.u32 %v9133_v51, %v8361_v50  ;;  %v9109_v49 = vld [vmem:[%s10337_s14 + $0x904] sm:$0xf0]  ;;  %v8329_v50 = vld [vmem:[%s10337_s14 + $0x980] sm:$0xf] }
 0x222   : > { %6181 = vmatpush.bf16.msrb.mxu3 %v8098_v13  ;;  %v8249_v13 = vld [vmem:[%s10337_s14 + $0x8e0] sm:$0xf]  ;;  %v9125_v51 = vld [vmem:[%s10337_s14 + $0x984] sm:$0xf0] }
 0x223   : > { %6143 = vmatpush.bf16.msrb.mxu0 %v7898_v19  ;;  %v9137_v19 = vld [vmem:[%s10337_s14 + $0x9e4] sm:$0xf0] }
 0x224   : > { %6156 = vmatpush.bf16.msrb.mxu1 %v7962_v22  ;;  %v8250_v22 = vor.u32 %v9105_v15, %v8249_v13  ;;  %v8217_v13 = vld [vmem:[%s10337_s14 + $0x8a0] sm:$0xf]  ;;  %v9097_v15 = vld [vmem:[%s10337_s14 + $0x8a4] sm:$0xf0] }
 0x225   : > { %6169 = vmatpush.bf16.msrb.mxu2 %v8026_v23  ;;  %v8314_v23 = vor.u32 %v9121_v17, %v8313_v16  ;;  %v8281_v16 = vld [vmem:[%s10337_s14 + $0x920] sm:$0xf]  ;;  %v9113_v17 = vld [vmem:[%s10337_s14 + $0x924] sm:$0xf0] }
 0x226   : > { %6182 = vmatpush.bf16.msrb.mxu3 %v8090_v33  ;;  %v8378_v33 = vor.u32 %v9137_v19, %v8377_v18  ;;  %v8345_v18 = vld [vmem:[%s10337_s14 + $0x9a0] sm:$0xf]  ;;  %v9129_v19 = vld [vmem:[%s10337_s14 + $0x9a4] sm:$0xf0] }
 0x227   : > { %6144 = vmatpush.bf16.msrb.mxu0 %v7890_v41  ;;  %v8242_v41 = vor.u32 %v9103_v34, %v8241_v32  ;;  %v8209_v32 = vld [vmem:[%s10337_s14 + $0x890] sm:$0xf]  ;;  %v9095_v34 = vld [vmem:[%s10337_s14 + $0x894] sm:$0xf0] }
 0x228   : > { %6157 = vmatpush.bf16.msrb.mxu1 %v7954_v46  ;;  %v8370_v46 = vor.u32 %v9135_v39, %v8369_v38  ;;  %v8337_v38 = vld [vmem:[%s10337_s14 + $0x990] sm:$0xf]  ;;  %v9127_v39 = vld [vmem:[%s10337_s14 + $0x994] sm:$0xf0] }
 0x229   : > { %6170 = vmatpush.bf16.msrb.mxu2 %v8018_v47  ;;  %v9101_v47 = vld [vmem:[%s10337_s14 + $0x8c4] sm:$0xf0]  ;;  %v8338_v48 = vor.u32 %v9127_v39, %v8337_v38  ;;  %v9167_v39 = vld [vmem:[%s10337_s14 + $0xad4] sm:$0xf0] }
 0x22a   : > { %6183 = vmatpush.bf16.msrb.mxu3 %v8082_v52  ;;  %v8170_v52 = vor.u32 %v9085_v44, %v8169_v43  ;;  %v8234_v53 = vor.u32 %v9101_v47, %v8233_v45  ;;  %v8210_v43 = vor.u32 %v9095_v34, %v8209_v32  ;;  %v8274_v44 = vor.u32 %v9111_v37, %v8273_v36  ;;  %v8201_v45 = vld [vmem:[%s10337_s14 + $0x880] sm:$0xf]  ;;  %v8433_v34 = vld [vmem:[%s10337_s14 + $0xa50] sm:$0xf]  ;;  %v9151_v36 = vld [vmem:[%s10337_s14 + $0xa54] sm:$0xf0] }
 0x22b   : > { %6145 = vmatpush.bf16.msrb.mxu0 %v7882_v63  ;;  %v9083_v63 = vld [vmem:[%s10337_s14 + $0x834] sm:$0xf0]  ;;  %v8265_v47 = vld [vmem:[%s10337_s14 + $0x900] sm:$0xf]  ;;  %v8497_v37 = vld [vmem:[%s10337_s14 + $0xad0] sm:$0xf] }
 0x22c   : > { %6158 = vmatpush.bf16.msrb.mxu1 %v7946_v3  ;;  %v9099_v3 = vld [vmem:[%s10337_s14 + $0x8b4] sm:$0xf0] }
 0x22d   : > { %6171 = vmatpush.bf16.msrb.mxu2 %v8010_v4  ;;  %v8289_v4 = vld [vmem:[%s10337_s14 + $0x930] sm:$0xf] }
 0x22e   : > { %6184 = vmatpush.bf16.msrb.mxu3 %v8074_v7  ;;  %6146 = vmatmul.bf16.vlgmr.msrb.gmra.mxu0 %v10642_v55  ;;  %v9131_v7 = vld [vmem:[%s10337_s14 + $0x9b4] sm:$0xf0] }
 0x22f   : > { %6190 = vmatpush.bf16.msra.mxu0 %v8194_v8  ;;  %6159 = vmatmul.bf16.vlgmr.msrb.gmra.mxu1 %v10646_v57  ;;  %v8162_v8 = vor.u32 %v9083_v63, %v8161_v61  ;;  %v9171_v63 = vld [vmem:[%s10337_s14 + $0xaf4] sm:$0xf0] }
 0x230   : > { %6203 = vmatpush.bf16.msra.mxu1 %v8258_v9  ;;  %6172 = vmatmul.bf16.vlgmr.msrb.gmra.mxu2 %v10644_v56  ;;  %v8226_v9 = vor.u32 %v9099_v3, %v8225_v1  ;;  %v8577_v1 = vld [vmem:[%s10337_s14 + $0xb70] sm:$0xf] }
 0x231   : > { %6216 = vmatpush.bf16.msra.mxu2 %v8322_v10  ;;  %6185 = vmatmul.bf16.vlgmr.msrb.gmra.mxu3 %v10648_v58  ;;  %v8290_v10 = vor.u32 %v9115_v5, %v8289_v4  ;;  %v8266_v4 = vor.u32 %v9109_v49, %v8265_v47  ;;  %v8641_v5 = vld [vmem:[%s10337_s14 + $0xbf0] sm:$0xf]  ;;  %v8489_v49 = vld [vmem:[%s10337_s14 + $0xac0] sm:$0xf] }
 0x232   : > { %6229 = vmatpush.bf16.msra.mxu3 %v8386_v14  ;;  %v8354_v14 = vor.u32 %v9131_v7, %v8353_v6  ;;  %v9203_v6 = vld [vmem:[%s10337_s14 + $0xbf4] sm:$0xf0]  ;;  %v8330_v7 = vor.u32 %v9125_v51, %v8329_v50  ;;  %v9165_v50 = vld [vmem:[%s10337_s14 + $0xac4] sm:$0xf0] }
 0x233   : > { %6191 = vmatpush.bf16.msra.mxu0 %v8186_v20  ;;  %v8154_v20 = vor.u32 %v9081_v12, %v8153_v11  ;;  %v8441_v11 = vld [vmem:[%s10337_s14 + $0xa60] sm:$0xf]  ;;  %v9153_v12 = vld [vmem:[%s10337_s14 + $0xa64] sm:$0xf0] }
 0x234   : > { %6204 = vmatpush.bf16.msra.mxu1 %v8250_v22  ;;  %v8218_v22 = vor.u32 %v9097_v15, %v8217_v13  ;;  %v8505_v13 = vld [vmem:[%s10337_s14 + $0xae0] sm:$0xf]  ;;  %v9169_v15 = vld [vmem:[%s10337_s14 + $0xae4] sm:$0xf0] }
 0x235   : > { %6217 = vmatpush.bf16.msra.mxu2 %v8314_v23  ;;  %v8282_v23 = vor.u32 %v9113_v17, %v8281_v16  ;;  %v8569_v16 = vld [vmem:[%s10337_s14 + $0xb60] sm:$0xf]  ;;  %v9185_v17 = vld [vmem:[%s10337_s14 + $0xb64] sm:$0xf0]  ;;  %v8506_v32 = vor.u32 %v9169_v15, %v8505_v13  ;;  %v10770_v13 = vld [vmem:[#allocation1 + $0x24] sm:$0xff] }
 0x236   : > { %6230 = vmatpush.bf16.msra.mxu3 %v8378_v33  ;;  %v8346_v33 = vor.u32 %v9129_v19, %v8345_v18  ;;  %v10731_v18 = vld [vmem:[#allocation1] sm:$0xff]  ;;  %v8633_v19 = vld [vmem:[%s10337_s14 + $0xbe0] sm:$0xf] }
 0x237   : > { %6192 = vmatpush.bf16.msra.mxu0 %v8178_v40  ;;  %v8146_v40 = vor.u32 %v9079_v28, %v8145_v27  ;;  %v10739_v27 = vld [vmem:[#allocation1 + $0x1b] sm:$0xff]  ;;  %v8442_v28 = vor.u32 %v9153_v12, %v8441_v11  ;;  %v10774_v15 = vld [vmem:[#allocation1 + $0x2d] sm:$0xff] }
 0x238   : > { %6205 = vmatpush.bf16.msra.mxu1 %v8242_v41  ;;  %v8137_v41 = vld [vmem:[%s10337_s14 + $0x800] sm:$0xf]  ;;  %v3956_v12 = vld [vmem:[%s10330_s8] sm:$0x3] }
 0x239   : > { %6218 = vmatpush.bf16.msra.mxu2 %v8306_v42  ;;  %v9077_v42 = vld [vmem:[%s10337_s14 + $0x804] sm:$0xf0] }
 0x23a   : > { %6231 = vmatpush.bf16.msra.mxu3 %v8370_v46  ;;  %v9093_v46 = vld [vmem:[%s10337_s14 + $0x884] sm:$0xf0]  ;;  %v8138_v61 = vor.u32 %v9077_v42, %v8137_v41  ;;  %v9183_v41 = vld [vmem:[%s10337_s14 + $0xb54] sm:$0xf0]  ;;  %v8625_v42 = vld [vmem:[%s10337_s14 + $0xbd0] sm:$0xf] }
 0x23b   : > { %6193 = vmatpush.bf16.msra.mxu0 %v8170_v52  ;;  %v8449_v52 = vld [vmem:[%s10337_s14 + $0xa70] sm:$0xf]  ;;  %v8202_v3 = vor.u32 %v9093_v46, %v8201_v45  ;;  %v8425_v45 = vld [vmem:[%s10337_s14 + $0xa40] sm:$0xf]  ;;  %v8498_v46 = vor.u32 %v9167_v39, %v8497_v37 }
 0x23c   : > { %6206 = vmatpush.bf16.msra.mxu1 %v8234_v53  ;;  %v9155_v53 = vld [vmem:[%s10337_s14 + $0xa74] sm:$0xf0]  ;;  %v8537_v39 = vld [vmem:[%s10337_s14 + $0xb20] sm:$0xf] }
 0x23d   : > { %6219 = vmatpush.bf16.msra.mxu2 %v8298_v54  ;;  %v8513_v54 = vld [vmem:[%s10337_s14 + $0xaf0] sm:$0xf] }
 0x23e   : > { %6232 = vmatpush.bf16.msra.mxu3 %v8362_v2  ;;  %v9187_v2 = vld [vmem:[%s10337_s14 + $0xb74] sm:$0xf0] }
 0x23f   : > { %6194 = vmatpush.bf16.msra.mxu0 %v8162_v8  ;;  %v8450_v8 = vor.u32 %v9155_v53, %v8449_v52  ;;  %v8553_v52 = vld [vmem:[%s10337_s14 + $0xb40] sm:$0xf]  ;;  %v9181_v53 = vld [vmem:[%s10337_s14 + $0xb44] sm:$0xf0] }
 0x240   : > { %6207 = vmatpush.bf16.msra.mxu1 %v8226_v9  ;;  %v8514_v9 = vor.u32 %v9171_v63, %v8513_v54  ;;  %v8617_v54 = vld [vmem:[%s10337_s14 + $0xbc0] sm:$0xf]  ;;  %v8417_v63 = vld [vmem:[%s10337_s14 + $0xa30] sm:$0xf] }
 0x241   : > { %6220 = vmatpush.bf16.msra.mxu2 %v8290_v10  ;;  %v8578_v10 = vor.u32 %v9187_v2, %v8577_v1  ;;  %v9147_v1 = vld [vmem:[%s10337_s14 + $0xa34] sm:$0xf0] }
 0x242   : > { %6233 = vmatpush.bf16.msra.mxu3 %v8354_v14  ;;  %v8642_v14 = vor.u32 %v9203_v6, %v8641_v5  ;;  %v8545_v5 = vld [vmem:[%s10337_s14 + $0xb30] sm:$0xf]  ;;  %v8490_v6 = vor.u32 %v9165_v50, %v8489_v49 }
 0x243   : > { %6195 = vmatpush.bf16.msra.mxu0 %v8154_v20  ;;  %v9201_v20 = vld [vmem:[%s10337_s14 + $0xbe4] sm:$0xf0]  ;;  %v8465_v49 = vld [vmem:[%s10337_s14 + $0xa90] sm:$0xf] }
 0x244   : > { %6208 = vmatpush.bf16.msra.mxu1 %v8218_v22  ;;  %v10735_v22 = vld [vmem:[#allocation1 + $0x12] sm:$0xff]  ;;  %v8634_v38 = vor.u32 %v9201_v20, %v8633_v19  ;;  %v8418_v19 = vor.u32 %v9147_v1, %v8417_v63  ;;  %v8409_v20 = vld [vmem:[%s10337_s14 + $0xa20] sm:$0xf]  ;;  %v8593_v63 = vld [vmem:[%s10337_s14 + $0xb90] sm:$0xf] }
 0x245   : > { %6221 = vmatpush.bf16.msra.mxu2 %v8282_v23  ;;  %v10737_v23 = vld [vmem:[#allocation1 + $0x9] sm:$0xff]  ;;  %v9191_v1 = vld [vmem:[%s10337_s14 + $0xb94] sm:$0xf0] }
 0x246   : > { %6234 = vmatpush.bf16.msra.mxu3 %v8346_v33  ;;  %v8570_v33 = vor.u32 %v9185_v17, %v8569_v16  ;;  %v10776_v16 = vld [vmem:[#allocation1 + $0x3f] sm:$0xff]  ;;  %v3563_v17 = vld [vmem:[%s11394_s0 + $0x18] sm:$0x1] }
 0x247   : > { %6196 = vmatpush.bf16.msra.mxu0 %v8146_v40  ;;  %v8561_v40 = vld [vmem:[%s10337_s14 + $0xb50] sm:$0xf] }
 0x248   : > { %6209 = vmatpush.bf16.msra.mxu1 %v8210_v43  ;;  %v9199_v43 = vld [vmem:[%s10337_s14 + $0xbd4] sm:$0xf0]  ;;  %v8562_v47 = vor.u32 %v9183_v41, %v8561_v40  ;;  %v9177_v40 = vld [vmem:[%s10337_s14 + $0xb24] sm:$0xf0]  ;;  %v8601_v41 = vld [vmem:[%s10337_s14 + $0xba0] sm:$0xf] }
 0x249   : > { %6222 = vmatpush.bf16.msra.mxu2 %v8274_v44  ;;  %v8434_v44 = vor.u32 %v9151_v36, %v8433_v34  ;;  %v8626_v51 = vor.u32 %v9199_v43, %v8625_v42  ;;  %v8473_v34 = vld [vmem:[%s10337_s14 + $0xaa0] sm:$0xf]  ;;  %v3958_v36 = vperm.slane %v3956_v12, 0  ;;  %v9193_v42 = vld [vmem:[%s10337_s14 + $0xba4] sm:$0xf0]  ;;  %v8594_v12 = vor.u32 %v9191_v1, %v8593_v63 }
 0x24a   : > { %6235 = vmatpush.bf16.msra.mxu3 %v8338_v48  ;;  %v9149_v48 = vld [vmem:[%s10337_s14 + $0xa44] sm:$0xf0]  ;;  %v7163_v63 = vld [vmem:[%s10337_s14 + $0x68] sm:$0xf0]  ;;  %v8848_v1 = vld [vmem:[%s10337_s14 + $0xe4] sm:$0xf] }
 0x24b   : > { %6197 = vmatpush.bf16.msra.mxu0 %v8138_v61  ;;  %v9197_v61 = vld [vmem:[%s10337_s14 + $0xbc4] sm:$0xf0]  ;;  %v8426_v2 = vor.u32 %v9149_v48, %v8425_v45  ;;  %v9143_v48 = vld [vmem:[%s10337_s14 + $0xa14] sm:$0xf0] }
 0x24c   : > { %6210 = vmatpush.bf16.msra.mxu1 %v8202_v3  ;;  %v8481_v3 = vld [vmem:[%s10337_s14 + $0xab0] sm:$0xf]  ;;  %v8618_v11 = vor.u32 %v9197_v61, %v8617_v54  ;;  %v9175_v61 = vld [vmem:[%s10337_s14 + $0xb14] sm:$0xf0] }
 0x24d   : > { %6223 = vmatpush.bf16.msra.mxu2 %v8266_v4  ;;  %v9163_v4 = vld [vmem:[%s10337_s14 + $0xab4] sm:$0xf0]  ;;  %v8529_v54 = vld [vmem:[%s10337_s14 + $0xb10] sm:$0xf] }
 0x24e   : > { %6236 = vmatpush.bf16.msra.mxu3 %v8330_v7  ;;  %6198 = vmatmul.bf16.vlgmr.msra.gmra.mxu0 %v10731_v18  ;;  %v8554_v7 = vor.u32 %v9181_v53, %v8553_v52  ;;  %v8602_v52 = vor.u32 %v9193_v42, %v8601_v41  ;;  %v9159_v53 = vld [vmem:[%s10337_s14 + $0xa94] sm:$0xf0] }
 0x24f   : > { %6242 = vmatpush.bf16.msrb.mxu0 %v8450_v8  ;;  %6211 = vmatmul.bf16.vlgmr.msra.gmra.mxu1 %v10737_v23  ;;  %v9179_v8 = vld [vmem:[%s10337_s14 + $0xb34] sm:$0xf0] }
 0x250   : > { %6255 = vmatpush.bf16.msrb.mxu1 %v8514_v9  ;;  %6224 = vmatmul.bf16.vlgmr.msra.gmra.mxu2 %v10735_v22  ;;  %v8609_v9 = vld [vmem:[%s10337_s14 + $0xbb0] sm:$0xf] }
 0x251   : > { %6268 = vmatpush.bf16.msrb.mxu2 %v8578_v10  ;;  %6237 = vmatmul.bf16.vlgmr.msra.gmra.mxu3 %v10739_v27  ;;  %v9195_v10 = vld [vmem:[%s10337_s14 + $0xbb4] sm:$0xf0] }
 0x252   : > { %6281 = vmatpush.bf16.msrb.mxu3 %v8642_v14  ;;  %v10772_v14 = vld [vmem:[#allocation1 + $0x36] sm:$0xff]  ;;  %v8610_v37 = vor.u32 %v9195_v10, %v8609_v9  ;;  %v8521_v10 = vld [vmem:[%s10337_s14 + $0xb00] sm:$0xf] }
 0x253   : > { %6243 = vmatpush.bf16.msrb.mxu0 %v8442_v28  ;;  %3993 = vst [vmem:[#allocation1] ss:$9 sm:$0xff] %v3563_v17  ;;  %v8482_v28 = vor.u32 %v9163_v4, %v8481_v3  ;;  %v8393_v4 = vld [vmem:[%s10337_s14 + $0xa00] sm:$0xf]  ;;  %v9157_v9 = vld [vmem:[%s10337_s14 + $0xa84] sm:$0xf0] }
 0x254   : > { %6256 = vmatpush.bf16.msrb.mxu1 %v8506_v32  ;;  %v8546_v32 = vor.u32 %v9179_v8, %v8545_v5  ;;  %v9141_v5 = vld [vmem:[%s10337_s14 + $0xa04] sm:$0xf0]  ;;  %v8457_v8 = vld [vmem:[%s10337_s14 + $0xa80] sm:$0xf] }
 0x255   : > { %6269 = vmatpush.bf16.msrb.mxu2 %v8570_v33  ;;  %v9145_v33 = vld [vmem:[%s10337_s14 + $0xa24] sm:$0xf0] }
 0x256   : > { %6282 = vmatpush.bf16.msrb.mxu3 %v8634_v38  ;;  %v9161_v38 = vld [vmem:[%s10337_s14 + $0xaa4] sm:$0xf0]  ;;  %v8410_v43 = vor.u32 %v9145_v33, %v8409_v20  ;;  %v8673_v33 = vld [vmem:[%s10337_s14 + $0xc30] sm:$0xf] }
 0x257   : > { %6244 = vmatpush.bf16.msrb.mxu0 %v8434_v44  ;;  %v5991_v44 = vpop.f32.mrf.mxu0  ;;  %v8474_v45 = vor.u32 %v9161_v38, %v8473_v34  ;;  %v9173_v17 = vld [vmem:[%s10337_s14 + $0xb04] sm:$0xf0]  ;;  %v9211_v34 = vld [vmem:[%s10337_s14 + $0xc34] sm:$0xf0]  ;;  %v7171_v38 = vld [vmem:[%s10337_s14 + $0x78] sm:$0xf0] }
 0x258   : > { %6257 = vmatpush.bf16.msrb.mxu1 %v8498_v46  ;;  %v8538_v46 = vor.u32 %v9177_v40, %v8537_v39  ;;  %v5992_v50 = vadd.f32 %v5991_v44, %v3958_v36  ;;  %v9189_v20 = vld [vmem:[%s10337_s14 + $0xb84] sm:$0xf0]  ;;  %v8834_v36 = vld [vmem:[%s10337_s14 + $0x74] sm:$0xf]  ;;  %v7235_v40 = vld [vmem:[%s10337_s14 + $0xf8] sm:$0xf0]  ;;  %v8522_v44 = vor.u32 %v9173_v17, %v8521_v10 }
 0x259   : > { %6270 = vmatpush.bf16.msrb.mxu2 %v8562_v47  ;;  %v8401_v47 = vld [vmem:[%s10337_s14 + $0xa10] sm:$0xf]  ;;  %v8850_v39 = vld [vmem:[%s10337_s14 + $0xf4] sm:$0xf] }
 0x25a   : > { %6283 = vmatpush.bf16.msrb.mxu3 %v8626_v51  ;;  %v6004_v51 = vpop.f32.mrf.mxu1  ;;  %v8402_v3 = vor.u32 %v9143_v48, %v8401_v47  ;;  %v8657_v10 = vld [vmem:[%s10337_s14 + $0xc10] sm:$0xf] }
 0x25b   : > { %6245 = vmatpush.bf16.msrb.mxu0 %v8426_v2  ;;  %v6005_v2 = vadd.f32 %v6004_v51, %v5992_v50  ;;  %v7174_v50 = vor.u32 %v8834_v36, %v7171_v38  ;;  %v7238_v51 = vor.u32 %v8850_v39, %v7235_v40  ;;  %v8649_v36 = vld [vmem:[%s10337_s14 + $0xc00] sm:$0xf]  ;;  %v9205_v39 = vld [vmem:[%s10337_s14 + $0xc04] sm:$0xf0]  ;;  %v8828_v40 = vld [vmem:[%s10337_s14 + $0x44] sm:$0xf] }
 0x25c   : > { %6258 = vmatpush.bf16.msrb.mxu1 %v8490_v6  ;;  %v8466_v6 = vor.u32 %v9159_v53, %v8465_v49  ;;  %v8674_v49 = vor.u32 %v9211_v34, %v8673_v33  ;;  %v9209_v53 = vld [vmem:[%s10337_s14 + $0xc24] sm:$0xf0]  ;;  %v7283_v33 = vld [vmem:[%s10337_s14 + $0x158] sm:$0xf0] }
 0x25d   : > { %6271 = vmatpush.bf16.msrb.mxu2 %v8554_v7  ;;  %v8530_v7 = vor.u32 %v9175_v61, %v8529_v54  ;;  %v8832_v54 = vld [vmem:[%s10337_s14 + $0x64] sm:$0xf] }
 0x25e   : > { %6284 = vmatpush.bf16.msrb.mxu3 %v8618_v11  ;;  %v6017_v11 = vpop.f32.mrf.mxu2 }
 0x25f   : > { %6246 = vmatpush.bf16.msrb.mxu0 %v8418_v19  ;;  %v8585_v19 = vld [vmem:[%s10337_s14 + $0xb80] sm:$0xf]  ;;  %v5993_v42 = vpop.f32.mrf.mxu0 }
 0x260   : > { %6259 = vmatpush.bf16.msrb.mxu1 %v8482_v28  ;;  %v6018_v28 = vadd.f32 %v6017_v11, %v6005_v2  ;;  %v8586_v48 = vor.u32 %v9189_v20, %v8585_v19  ;;  %v7227_v2 = vld [vmem:[%s10337_s14 + $0xe8] sm:$0xf0]  ;;  %v9207_v11 = vld [vmem:[%s10337_s14 + $0xc14] sm:$0xf0]  ;;  %v7155_v19 = vld [vmem:[%s10337_s14 + $0x58] sm:$0xf0] }
 0x261   : > { %6272 = vmatpush.bf16.msrb.mxu2 %v8546_v32  ;;  %v6030_v32 = vpop.f32.mrf.mxu3  ;;  %v8846_v20 = vld [vmem:[%s10337_s14 + $0xd4] sm:$0xf]  ;;  %v8658_v34 = vor.u32 %v9207_v11, %v8657_v10  ;;  %v7147_v42 = vld [vmem:[%s10337_s14 + $0x48] sm:$0xf0] }
 0x262   : > { %6285 = vmatpush.bf16.msrb.mxu3 %v8610_v37  ;;  %v8394_v37 = vor.u32 %v9141_v5, %v8393_v4  ;;  %v10811_v41 = vadd.f32 %v6030_v32, %v6018_v28  ;;  %v6006_v47 = vpop.f32.mrf.mxu1  ;;  %v7291_v4 = vld [vmem:[%s10337_s14 + $0x168] sm:$0xf0]  ;;  %v7219_v28 = vld [vmem:[%s10337_s14 + $0xd8] sm:$0xf0]  ;;  %v8862_v32 = vld [vmem:[%s10337_s14 + $0x154] sm:$0xf] }
 0x263   : > { %6247 = vmatpush.bf16.msrb.mxu0 %v8410_v43  ;;  %v8458_v43 = vor.u32 %v9157_v9, %v8457_v8  ;;  %v7166_v8 = vor.u32 %v8832_v54, %v7163_v63  ;;  %v7230_v9 = vor.u32 %v8848_v1, %v7227_v2  ;;  %v7222_v38 = vor.u32 %v8846_v20, %v7219_v28  ;;  %v7275_v47 = vld [vmem:[%s10337_s14 + $0x148] sm:$0xf0]  ;;  %v7139_v63 = vld [vmem:[%s10337_s14 + $0x38] sm:$0xf0] }
 0x264   : > { %6260 = vmatpush.bf16.msrb.mxu1 %v8474_v45  ;;  %v8866_v45 = vld [vmem:[%s10337_s14 + $0x174] sm:$0xf]  ;;  %v7355_v10 = vld [vmem:[%s10337_s14 + $0x1e8] sm:$0xf0] }
 0x265   : > { %6273 = vmatpush.bf16.msrb.mxu2 %v8538_v46  ;;  %v7299_v46 = vld [vmem:[%s10337_s14 + $0x178] sm:$0xf0] }
 0x266   : > { %6286 = vmatpush.bf16.msrb.mxu3 %v8602_v52  ;;  %v8665_v52 = vld [vmem:[%s10337_s14 + $0xc20] sm:$0xf]  ;;  %v7302_v61 = vor.u32 %v8866_v45, %v7299_v46  ;;  %v6019_v5 = vpop.f32.mrf.mxu2  ;;  %v7211_v45 = vld [vmem:[%s10337_s14 + $0xc8] sm:$0xf0]  ;;  %v8860_v46 = vld [vmem:[%s10337_s14 + $0x144] sm:$0xf] }
 0x267   : > { %6248 = vmatpush.bf16.msrb.mxu0 %v8402_v3  ;;  %v8864_v3 = vld [vmem:[%s10337_s14 + $0x164] sm:$0xf]  ;;  %v7278_v2 = vor.u32 %v8860_v46, %v7275_v47  ;;  %v7203_v5 = vld [vmem:[%s10337_s14 + $0xb8] sm:$0xf0]  ;;  %v8822_v47 = vld [vmem:[%s10337_s14 + $0x14] sm:$0xf] }
 0x268   : > { %6261 = vmatpush.bf16.msrb.mxu1 %v8466_v6  ;;  %v8666_v6 = vor.u32 %v9209_v53, %v8665_v52  ;;  %v7294_v17 = vor.u32 %v8864_v3, %v7291_v4  ;;  %v7150_v52 = vor.u32 %v8828_v40, %v7147_v42  ;;  %v8842_v4 = vld [vmem:[%s10337_s14 + $0xb4] sm:$0xf]  ;;  %v7347_v40 = vld [vmem:[%s10337_s14 + $0x1d8] sm:$0xf0] }
 0x269   : > { %6274 = vmatpush.bf16.msrb.mxu2 %v8530_v7  ;;  %v6032_v7 = vpop.f32.mrf.mxu3  ;;  %v7206_v11 = vor.u32 %v8842_v4, %v7203_v5  ;;  %v3994_v42 = vld [vmem:[#allocation1] sm:$0xff]  ;;  %v8820_v4 = vld [vmem:[%s10337_s14 + $0x4] sm:$0xf]  ;;  %v7115_v5 = vld [vmem:[%s10337_s14 + $0x8] sm:$0xf0] }
 0x26a   : > { %6287 = vmatpush.bf16.msrb.mxu3 %v8594_v12  ;;  %v8830_v12 = vld [vmem:[%s10337_s14 + $0x54] sm:$0xf]  ;;  %v7267_v7 = vld [vmem:[%s10337_s14 + $0x138] sm:$0xf0] }
 0x26b   : > { %6249 = vmatpush.bf16.msrb.mxu0 %v8394_v37  ;;  %v7158_v37 = vor.u32 %v8830_v12, %v7155_v19  ;;  %v7131_v19 = vld [vmem:[%s10337_s14 + $0x28] sm:$0xf0] }
 0x26c   : > { %6262 = vmatpush.bf16.msrb.mxu1 %v8458_v43  ;;  %v7286_v43 = vor.u32 %v8862_v32, %v7283_v33  ;;  %v6056_v1 = vpop.f32.mrf.mxu1  ;;  %v8840_v33 = vld [vmem:[%s10337_s14 + $0xa4] sm:$0xf] }
 0x26d   : > { %6275 = vmatpush.bf16.msrb.mxu2 %v8522_v44  ;;  %v8844_v44 = vld [vmem:[%s10337_s14 + $0xc4] sm:$0xf] }
 0x26e   : > { %6288 = vmatpush.bf16.msrb.mxu3 %v8586_v48  ;;  %6250 = vmatmul.bf16.vlgmr.msrb.gmra.mxu0 %v10770_v13  ;;  %v8882_v48 = vld [vmem:[%s10337_s14 + $0x1f4] sm:$0xf]  ;;  %v7214_v53 = vor.u32 %v8844_v44, %v7211_v45 }
 0x26f   : > { %6298 = vmatpush.bf16.msra.mxu0 %v8674_v49  ;;  %6263 = vmatmul.bf16.vlgmr.msrb.gmra.mxu1 %v10774_v15  ;;  %v7363_v49 = vld [vmem:[%s10337_s14 + $0x1f8] sm:$0xf0] }
 0x270   : > { %6307 = vmatpush.bf16.msra.mxu1 %v7174_v50  ;;  %6276 = vmatmul.bf16.vlgmr.msrb.gmra.mxu2 %v10772_v14  ;;  %v8650_v50 = vor.u32 %v9205_v39, %v8649_v36  ;;  %v7366_v3 = vor.u32 %v8882_v48, %v7363_v49  ;;  %v8856_v36 = vld [vmem:[%s10337_s14 + $0x124] sm:$0xf]  ;;  %v8878_v39 = vld [vmem:[%s10337_s14 + $0x1d4] sm:$0xf]  ;;  %v7123_v48 = vld [vmem:[%s10337_s14 + $0x18] sm:$0xf0] }
 0x271   : > { %6320 = vmatpush.bf16.msra.mxu2 %v7238_v51  ;;  %6289 = vmatmul.bf16.vlgmr.msrb.gmra.mxu3 %v10776_v16  ;;  %v6043_v51 = vpop.f32.mrf.mxu0 }
 0x272   : > { %6333 = vmatpush.bf16.msra.mxu3 %v7302_v61  ;;  %v6044_v54 = vadd.f32 %v6043_v51, %v10811_v41  ;;  %v8826_v61 = vld [vmem:[%s10337_s14 + $0x34] sm:$0xf]  ;;  %v7350_v51 = vor.u32 %v8878_v39, %v7347_v40 }
 0x273   : > { %6299 = vmatpush.bf16.msra.mxu0 %v8666_v6  ;;  %v8858_v6 = vld [vmem:[%s10337_s14 + $0x134] sm:$0xf]  ;;  %v7142_v41 = vor.u32 %v8826_v61, %v7139_v63  ;;  %v6069_v12 = vpop.f32.mrf.mxu2  ;;  %v7251_v61 = vld [vmem:[%s10337_s14 + $0x118] sm:$0xf0]  ;;  %v8876_v63 = vld [vmem:[%s10337_s14 + $0x1c4] sm:$0xf] }
 0x274   : > { %6308 = vmatpush.bf16.msra.mxu1 %v7166_v8  ;;  %v6057_v8 = vadd.f32 %v6056_v1, %v6044_v54  ;;  %v7270_v20 = vor.u32 %v8858_v6, %v7267_v7  ;;  %v6058_v49 = vpop.f32.mrf.mxu1  ;;  %v8854_v54 = vld [vmem:[%s10337_s14 + $0x114] sm:$0xf]  ;;  %v7339_v1 = vld [vmem:[%s10337_s14 + $0x1c8] sm:$0xf0]  ;;  %v8836_v6 = vld [vmem:[%s10337_s14 + $0x84] sm:$0xf] }
 0x275   : > { %6321 = vmatpush.bf16.msra.mxu2 %v7230_v9  ;;  %v8880_v9 = vld [vmem:[%s10337_s14 + $0x1e4] sm:$0xf]  ;;  %v7419_v49 = vld [vmem:[%s10337_s14 + $0x268] sm:$0xf0] }
 0x276   : > { %6334 = vmatpush.bf16.msra.mxu3 %v7294_v17  ;;  %v8824_v17 = vld [vmem:[%s10337_s14 + $0x24] sm:$0xf]  ;;  %v7358_v28 = vor.u32 %v8880_v9, %v7355_v10  ;;  %v6070_v32 = vadd.f32 %v6069_v12, %v6057_v8  ;;  %v7254_v8 = vor.u32 %v8854_v54, %v7251_v61  ;;  %v7342_v9 = vor.u32 %v8876_v63, %v7339_v1  ;;  %v7179_v10 = vld [vmem:[%s10337_s14 + $0x88] sm:$0xf0]  ;;  %v8870_v1 = vld [vmem:[%s10337_s14 + $0x194] sm:$0xf] }
 0x277   : > { %6300 = vmatpush.bf16.msra.mxu0 %v8658_v34  ;;  %v7195_v34 = vld [vmem:[%s10337_s14 + $0xa8] sm:$0xf0]  ;;  %v7134_v45 = vor.u32 %v8824_v17, %v7131_v19  ;;  %v8874_v17 = vld [vmem:[%s10337_s14 + $0x1b4] sm:$0xf]  ;;  %v7331_v19 = vld [vmem:[%s10337_s14 + $0x1b8] sm:$0xf0] }
 0x278   : > { %6309 = vmatpush.bf16.msra.mxu1 %v7158_v37  ;;  %v6082_v37 = vpop.f32.mrf.mxu3  ;;  %v7198_v46 = vor.u32 %v8840_v33, %v7195_v34  ;;  %v7491_v33 = vld [vmem:[%s10337_s14 + $0x2f8] sm:$0xf0]  ;;  %v7118_v34 = vor.u32 %v8820_v4, %v7115_v5  ;;  %v7334_v40 = vor.u32 %v8874_v17, %v7331_v19  ;;  %v8892_v17 = vld [vmem:[%s10337_s14 + $0x244] sm:$0xf]  ;;  %v7403_v19 = vld [vmem:[%s10337_s14 + $0x248] sm:$0xf0] }
 0x279   : > { %6322 = vmatpush.bf16.msra.mxu2 %v7222_v38  ;;  %v7259_v38 = vld [vmem:[%s10337_s14 + $0x128] sm:$0xf0]  ;;  %v6045_v44 = vpop.f32.mrf.mxu0  ;;  %v7411_v5 = vld [vmem:[%s10337_s14 + $0x258] sm:$0xf0] }
 0x27a   : > { %6335 = vmatpush.bf16.msra.mxu3 %v7286_v43  ;;  %v10862_v43 = vadd.f32 %v6082_v37, %v6070_v32  ;;  %v8914_v32 = vld [vmem:[%s10337_s14 + $0x2f4] sm:$0xf] }
 0x27b   : > { %6301 = vmatpush.bf16.msra.mxu0 %v8650_v50  ;;  %v7262_v50 = vor.u32 %v8856_v36, %v7259_v38  ;;  %v6071_v7 = vpop.f32.mrf.mxu2  ;;  %v7182_v36 = vor.u32 %v8836_v6, %v7179_v10  ;;  %v8930_v37 = vld [vmem:[%s10337_s14 + $0x374] sm:$0xf]  ;;  %v7555_v38 = vld [vmem:[%s10337_s14 + $0x378] sm:$0xf0]  ;;  %v7494_v44 = vor.u32 %v8914_v32, %v7491_v33  ;;  %v7531_v33 = vld [vmem:[%s10337_s14 + $0x348] sm:$0xf0] }
 0x27c   : > { %6310 = vmatpush.bf16.msra.mxu1 %v7150_v52  ;;  %v8838_v52 = vld [vmem:[%s10337_s14 + $0x94] sm:$0xf]  ;;  %v7475_v7 = vld [vmem:[%s10337_s14 + $0x2d8] sm:$0xf0] }
 0x27d   : > { %6323 = vmatpush.bf16.msra.mxu2 %v7214_v53  ;;  %v7187_v53 = vld [vmem:[%s10337_s14 + $0x98] sm:$0xf0]  ;;  %v8910_v6 = vld [vmem:[%s10337_s14 + $0x2d4] sm:$0xf] }
 0x27e   : > { %6336 = vmatpush.bf16.msra.mxu3 %v7278_v2  ;;  %8679 = vmatmul.msk.bf16.vlgmr.msra.gmra.mxu0 %vm5979_vm0, %v3994_v42  ;;  %v7126_v2 = vor.u32 %v8822_v47, %v7123_v48  ;;  %v8896_v47 = vld [vmem:[%s10337_s14 + $0x264] sm:$0xf]  ;;  %v7558_v48 = vor.u32 %v8930_v37, %v7555_v38 }
 0x27f   : > { %6346 = vmatpush.bf16.msrb.mxu0 %v7366_v3  ;;  %v7190_v3 = vor.u32 %v8838_v52, %v7187_v53  ;;  %v8928_v52 = vld [vmem:[%s10337_s14 + $0x364] sm:$0xf]  ;;  %v7547_v53 = vld [vmem:[%s10337_s14 + $0x368] sm:$0xf0]  ;;  %v7422_v61 = vor.u32 %v8896_v47, %v7419_v49  ;;  %v8906_v49 = vld [vmem:[%s10337_s14 + $0x2b4] sm:$0xf] }
 0x280   : > { %6311 = vmatpush.bf16.msra.mxu1 %v7142_v41  ;;  %v8852_v41 = vld [vmem:[%s10337_s14 + $0x104] sm:$0xf]  ;;  %v6084_v12 = vpop.f32.mrf.mxu3  ;;  %v7550_v4 = vor.u32 %v8928_v52, %v7547_v53  ;;  %v7611_v53 = vld [vmem:[%s10337_s14 + $0x3e8] sm:$0xf0] }
 0x281   : > { %6324 = vmatpush.bf16.msra.mxu2 %v7206_v11  ;;  %v7243_v11 = vld [vmem:[%s10337_s14 + $0x108] sm:$0xf0]  ;;  %v7478_v12 = vor.u32 %v8910_v6, %v7475_v7  ;;  %v8944_v52 = vld [vmem:[%s10337_s14 + $0x3e4] sm:$0xf] }
 0x282   : > { %6337 = vmatpush.bf16.msra.mxu3 %v7270_v20  ;;  %v8898_v20 = vld [vmem:[%s10337_s14 + $0x274] sm:$0xf]  ;;  %v7246_v39 = vor.u32 %v8852_v41, %v7243_v11  ;;  %v8868_v41 = vld [vmem:[%s10337_s14 + $0x184] sm:$0xf]  ;;  %v7451_v6 = vld [vmem:[%s10337_s14 + $0x2a8] sm:$0xf0] }
 0x283   : > { %6347 = vmatpush.bf16.msrb.mxu0 %v7358_v28  ;;  %v7427_v28 = vld [vmem:[%s10337_s14 + $0x278] sm:$0xf0]  ;;  %v8920_v7 = vld [vmem:[%s10337_s14 + $0x324] sm:$0xf] }
 0x284   : > { %6312 = vmatpush.bf16.msra.mxu1 %v7134_v45  ;;  %v7430_v42 = vor.u32 %v8898_v20, %v7427_v28  ;;  %v8872_v45 = vld [vmem:[%s10337_s14 + $0x1a4] sm:$0xf]  ;;  %v7467_v28 = vld [vmem:[%s10337_s14 + $0x2c8] sm:$0xf0] }
 0x285   : > { %6325 = vmatpush.bf16.msra.mxu2 %v7198_v46  ;;  %v7323_v46 = vld [vmem:[%s10337_s14 + $0x1a8] sm:$0xf0] }
 0x286   : > { %6338 = vmatpush.bf16.msra.mxu3 %v7262_v50  ;;  %v8912_v50 = vld [vmem:[%s10337_s14 + $0x2e4] sm:$0xf]  ;;  %v7326_v54 = vor.u32 %v8872_v45, %v7323_v46  ;;  %v7395_v45 = vld [vmem:[%s10337_s14 + $0x238] sm:$0xf0] }
 0x287   : > { %6348 = vmatpush.bf16.msrb.mxu0 %v7350_v51  ;;  %v7483_v51 = vld [vmem:[%s10337_s14 + $0x2e8] sm:$0xf0] }
 0x288   : > { %6313 = vmatpush.bf16.msra.mxu1 %v7126_v2  ;;  %v7486_v63 = vor.u32 %v8912_v50, %v7483_v51  ;;  %v7315_v2 = vld [vmem:[%s10337_s14 + $0x198] sm:$0xf0] }
 0x289   : > { %6326 = vmatpush.bf16.msra.mxu2 %v7190_v3  ;;  %v8894_v3 = vld [vmem:[%s10337_s14 + $0x254] sm:$0xf]  ;;  %v7318_v10 = vor.u32 %v8870_v1, %v7315_v2  ;;  %v7459_v50 = vld [vmem:[%s10337_s14 + $0x2b8] sm:$0xf0]  ;;  %v7387_v1 = vld [vmem:[%s10337_s14 + $0x228] sm:$0xf0] }
 0x28a   : > { %6339 = vmatpush.bf16.msra.mxu3 %v7254_v8  ;;  %v8926_v8 = vld [vmem:[%s10337_s14 + $0x354] sm:$0xf]  ;;  %v7414_v11 = vor.u32 %v8894_v3, %v7411_v5  ;;  %v7523_v51 = vld [vmem:[%s10337_s14 + $0x338] sm:$0xf0]  ;;  %v8904_v5 = vld [vmem:[%s10337_s14 + $0x2a4] sm:$0xf] }
 0x28b   : > { %6349 = vmatpush.bf16.msrb.mxu0 %v7342_v9  ;;  %v7539_v9 = vld [vmem:[%s10337_s14 + $0x358] sm:$0xf0]  ;;  %v6095_v32 = vpop.f32.mrf.mxu0 }
 0x28c   : > { %6314 = vmatpush.bf16.msra.mxu1 %v7118_v34  ;;  %v7542_v20 = vor.u32 %v8926_v8, %v7539_v9  ;;  %v8946_v34 = vld [vmem:[%s10337_s14 + $0x3f4] sm:$0xf]  ;;  %v6096_v37 = vadd.f32 %v6095_v32, %v10862_v43 }
 0x28d   : > { %6327 = vmatpush.bf16.msra.mxu2 %v7182_v36  ;;  %v7619_v36 = vld [vmem:[%s10337_s14 + $0x3f8] sm:$0xf0]  ;;  %v8922_v43 = vld [vmem:[%s10337_s14 + $0x334] sm:$0xf] }
 0x28e   : > { %6340 = vmatpush.bf16.msra.mxu3 %v7246_v39  ;;  %v6108_v39 = vpop.f32.mrf.mxu1  ;;  %v7526_v2 = vor.u32 %v8922_v43, %v7523_v51  ;;  %v8902_v32 = vld [vmem:[%s10337_s14 + $0x294] sm:$0xf] }
 0x28f   : > { %6350 = vmatpush.bf16.msrb.mxu0 %v7334_v40  ;;  %6315 = vmatmul.bf16.vlgmr.msra.gmra.mxu1 %v10445_v30  ;;  %v8924_v30 = vld [vmem:[%s10337_s14 + $0x344] sm:$0xf]  ;;  %v7406_v40 = vor.u32 %v8892_v17, %v7403_v19  ;;  %v6109_v47 = vadd.f32 %v6108_v39, %v6096_v37  ;;  %v8938_v51 = vld [vmem:[%s10337_s14 + $0x3b4] sm:$0xf] }
 0x290   : > { %6359 = vmatpush.bf16.msrb.mxu1 %v7430_v42  ;;  %6328 = vmatmul.bf16.vlgmr.msra.gmra.mxu2 %v10452_v35  ;;  %v7307_v35 = vld [vmem:[%s10337_s14 + $0x188] sm:$0xf0]  ;;  %v7534_v46 = vor.u32 %v8924_v30, %v7531_v33  ;;  %v7443_v33 = vld [vmem:[%s10337_s14 + $0x298] sm:$0xf0]  ;;  %v8940_v37 = vld [vmem:[%s10337_s14 + $0x3c4] sm:$0xf] }
 0x291   : > { %6372 = vmatpush.bf16.msrb.mxu2 %v7494_v44  ;;  %6341 = vmatmul.bf16.vlgmr.msra.gmra.mxu3 %v10443_v29  ;;  %v8908_v29 = vld [vmem:[%s10337_s14 + $0x2c4] sm:$0xf]  ;;  %v7310_v38 = vor.u32 %v8868_v41, %v7307_v35  ;;  %v8890_v44 = vld [vmem:[%s10337_s14 + $0x234] sm:$0xf] }
 0x292   : > { %6385 = vmatpush.bf16.msrb.mxu3 %v7558_v48  ;;  %v7470_v42 = vor.u32 %v8908_v29, %v7467_v28  ;;  %v7622_v48 = vor.u32 %v8946_v34, %v7619_v36  ;;  %v8942_v41 = vld [vmem:[%s10337_s14 + $0x3d4] sm:$0xf]  ;;  %v7379_v28 = vld [vmem:[%s10337_s14 + $0x218] sm:$0xf0] }
 0x293   : > { %6351 = vmatpush.bf16.msrb.mxu0 %v7326_v54  ;;  %v7398_v54 = vor.u32 %v8890_v44, %v7395_v45  ;;  %v6121_v3 = vpop.f32.mrf.mxu2  ;;  %v8886_v29 = vld [vmem:[%s10337_s14 + $0x214] sm:$0xf]  ;;  %v7507_v36 = vld [vmem:[%s10337_s14 + $0x318] sm:$0xf0]  ;;  %v7371_v44 = vld [vmem:[%s10337_s14 + $0x208] sm:$0xf0] }
 0x294   : > { %6360 = vmatpush.bf16.msrb.mxu1 %v7422_v61  ;;  %v7462_v61 = vor.u32 %v8906_v49, %v7459_v50  ;;  %v6122_v8 = vadd.f32 %v6121_v3, %v6109_v47  ;;  %v6134_v9 = vpop.f32.mrf.mxu3  ;;  %v8918_v34 = vld [vmem:[%s10337_s14 + $0x314] sm:$0xf]  ;;  %v7382_v39 = vor.u32 %v8886_v29, %v7379_v28  ;;  %v8900_v45 = vld [vmem:[%s10337_s14 + $0x284] sm:$0xf]  ;;  %v7499_v50 = vld [vmem:[%s10337_s14 + $0x308] sm:$0xf0] }
 0x295   : > { %6373 = vmatpush.bf16.msrb.mxu2 %v7486_v63  ;;  %v8888_v63 = vld [vmem:[%s10337_s14 + $0x224] sm:$0xf]  ;;  %v7803_v28 = vld [vmem:[%s10337_s14 + $0x568] sm:$0xf0] }
 0x296   : > { %6386 = vmatpush.bf16.msrb.mxu3 %v7550_v4  ;;  %v7614_v4 = vor.u32 %v8944_v52, %v7611_v53  ;;  %v6110_v35 = vpop.f32.mrf.mxu1  ;;  %v10934_v17 = vadd.f32 %v6134_v9, %v6122_v8  ;;  %v7390_v19 = vor.u32 %v8888_v63, %v7387_v1  ;;  %v8916_v49 = vld [vmem:[%s10337_s14 + $0x304] sm:$0xf]  ;;  %v7587_v52 = vld [vmem:[%s10337_s14 + $0x3b8] sm:$0xf0]  ;;  %v8962_v53 = vld [vmem:[%s10337_s14 + $0x474] sm:$0xf] }
 0x297   : > { %6352 = vmatpush.bf16.msrb.mxu0 %v7318_v10  ;;  %v7515_v10 = vld [vmem:[%s10337_s14 + $0x328] sm:$0xf0]  ;;  %v8978_v63 = vld [vmem:[%s10337_s14 + $0x4f4] sm:$0xf]  ;;  %v7747_v1 = vld [vmem:[%s10337_s14 + $0x4f8] sm:$0xf0] }
 0x298   : > { %6361 = vmatpush.bf16.msrb.mxu1 %v7414_v11  ;;  %v7603_v11 = vld [vmem:[%s10337_s14 + $0x3d8] sm:$0xf0]  ;;  %v7750_v9 = vor.u32 %v8978_v63, %v7747_v1  ;;  %v7675_v35 = vld [vmem:[%s10337_s14 + $0x468] sm:$0xf0]  ;;  %v8992_v29 = vld [vmem:[%s10337_s14 + $0x564] sm:$0xf] }
 0x299   : > { %6374 = vmatpush.bf16.msrb.mxu2 %v7478_v12  ;;  %v6097_v12 = vpop.f32.mrf.mxu0  ;;  %v7606_v30 = vor.u32 %v8942_v41, %v7603_v11  ;;  %v7579_v41 = vld [vmem:[%s10337_s14 + $0x3a8] sm:$0xf0]  ;;  %v8960_v11 = vld [vmem:[%s10337_s14 + $0x464] sm:$0xf] }
 0x29a   : > { %6387 = vmatpush.bf16.msrb.mxu3 %v7542_v20  ;;  %v7454_v20 = vor.u32 %v8904_v5, %v7451_v6  ;;  %v7811_v5 = vld [vmem:[%s10337_s14 + $0x578] sm:$0xf0]  ;;  %v7502_v6 = vor.u32 %v8916_v49, %v7499_v50  ;;  %v8956_v49 = vld [vmem:[%s10337_s14 + $0x444] sm:$0xf] }
 0x29b   : > { %6353 = vmatpush.bf16.msrb.mxu0 %v7310_v38  ;;  %v7595_v38 = vld [vmem:[%s10337_s14 + $0x3c8] sm:$0xf0]  ;;  %v6123_v43 = vpop.f32.mrf.mxu2 }
 0x29c   : > { %6362 = vmatpush.bf16.msrb.mxu1 %v7406_v40  ;;  %v7446_v40 = vor.u32 %v8902_v32, %v7443_v33  ;;  %v7598_v47 = vor.u32 %v8940_v37, %v7595_v38  ;;  %v8934_v33 = vld [vmem:[%s10337_s14 + $0x394] sm:$0xf]  ;;  %v7806_v37 = vor.u32 %v8992_v29, %v7803_v28  ;;  %v7667_v38 = vld [vmem:[%s10337_s14 + $0x458] sm:$0xf0]  ;;  %v7723_v43 = vld [vmem:[%s10337_s14 + $0x4c8] sm:$0xf0] }
 0x29d   : > { %6375 = vmatpush.bf16.msrb.mxu2 %v7470_v42  ;;  %v8884_v42 = vld [vmem:[%s10337_s14 + $0x204] sm:$0xf]  ;;  %v7643_v28 = vld [vmem:[%s10337_s14 + $0x428] sm:$0xf0] }
 0x29e   : > { %6388 = vmatpush.bf16.msrb.mxu3 %v7534_v46  ;;  %6354 = vmatmul.bf16.vlgmr.msrb.gmra.mxu0 %v10447_v31  ;;  %v7518_v31 = vor.u32 %v8920_v7, %v7515_v10  ;;  %v7510_v46 = vor.u32 %v8918_v34, %v7507_v36  ;;  %v7590_v7 = vor.u32 %v8938_v51, %v7587_v52  ;;  %v8936_v10 = vld [vmem:[%s10337_s14 + $0x3a4] sm:$0xf]  ;;  %v7571_v34 = vld [vmem:[%s10337_s14 + $0x398] sm:$0xf0]  ;;  %v8958_v36 = vld [vmem:[%s10337_s14 + $0x454] sm:$0xf] }
 0x29f   : > { %6398 = vmatpush.bf16.msra.mxu0 %v7622_v48  ;;  %v7435_v48 = vld [vmem:[%s10337_s14 + $0x288] sm:$0xf0]  ;;  %v8988_v51 = vld [vmem:[%s10337_s14 + $0x544] sm:$0xf] }
 0x2a0   : > { %6363 = vmatpush.bf16.msrb.mxu1 %v7398_v54  ;;  %v6136_v54 = vpop.f32.mrf.mxu3  ;;  %v7438_v3 = vor.u32 %v8900_v45, %v7435_v48  ;;  %v7574_v45 = vor.u32 %v8934_v33, %v7571_v34  ;;  %v7563_v48 = vld [vmem:[%s10337_s14 + $0x388] sm:$0xf0]  ;;  %v8952_v29 = vld [vmem:[%s10337_s14 + $0x424] sm:$0xf] }
 0x2a1   : > { %6376 = vmatpush.bf16.msrb.mxu2 %v7462_v61  ;;  %v7683_v61 = vld [vmem:[%s10337_s14 + $0x478] sm:$0xf0]  ;;  %v9010_v54 = vld [vmem:[%s10337_s14 + $0x5f4] sm:$0xf]  ;;  %v8968_v33 = vld [vmem:[%s10337_s14 + $0x4a4] sm:$0xf] }
 0x2a2   : > { %6389 = vmatpush.bf16.msrb.mxu3 %v7526_v2  ;;  %v7374_v2 = vor.u32 %v8884_v42, %v7371_v44  ;;  %v7686_v8 = vor.u32 %v8962_v53, %v7683_v61  ;;  %v8990_v42 = vld [vmem:[%s10337_s14 + $0x554] sm:$0xf]  ;;  %v7795_v44 = vld [vmem:[%s10337_s14 + $0x558] sm:$0xf0]  ;;  %v7787_v53 = vld [vmem:[%s10337_s14 + $0x548] sm:$0xf0] }
 0x2a3   : > { %6399 = vmatpush.bf16.msra.mxu0 %v7614_v4  ;;  %v8994_v4 = vld [vmem:[%s10337_s14 + $0x574] sm:$0xf]  ;;  %v7798_v50 = vor.u32 %v8990_v42, %v7795_v44  ;;  %v7875_v61 = vld [vmem:[%s10337_s14 + $0x5f8] sm:$0xf0]  ;;  %v7707_v34 = vld [vmem:[%s10337_s14 + $0x4a8] sm:$0xf0] }
 0x2a4   : > { %6364 = vmatpush.bf16.msrb.mxu1 %v7390_v19  ;;  %v7814_v12 = vor.u32 %v8994_v4, %v7811_v5  ;;  %v8976_v19 = vld [vmem:[%s10337_s14 + $0x4e4] sm:$0xf]  ;;  %v8954_v5 = vld [vmem:[%s10337_s14 + $0x434] sm:$0xf]  ;;  %v7859_v42 = vld [vmem:[%s10337_s14 + $0x5d8] sm:$0xf0] }
 0x2a5   : > { %6377 = vmatpush.bf16.msrb.mxu2 %v7454_v20  ;;  %v7739_v20 = vld [vmem:[%s10337_s14 + $0x4e8] sm:$0xf0] }
 0x2a6   : > { %6390 = vmatpush.bf16.msrb.mxu3 %v7518_v31  ;;  %v7582_v31 = vor.u32 %v8936_v10, %v7579_v41  ;;  %v7742_v32 = vor.u32 %v8976_v19, %v7739_v20  ;;  %v8970_v10 = vld [vmem:[%s10337_s14 + $0x4b4] sm:$0xf]  ;;  %v7715_v41 = vld [vmem:[%s10337_s14 + $0x4b8] sm:$0xf0] }
 0x2a7   : > { %6400 = vmatpush.bf16.msra.mxu0 %v7606_v30  ;;  %v7678_v30 = vor.u32 %v8960_v11, %v7675_v35  ;;  %v7779_v11 = vld [vmem:[%s10337_s14 + $0x538] sm:$0xf0]  ;;  %v7867_v35 = vld [vmem:[%s10337_s14 + $0x5e8] sm:$0xf0]  ;;  %v7718_v20 = vor.u32 %v8970_v10, %v7715_v41  ;;  %v9026_v41 = vld [vmem:[%s10337_s14 + $0x674] sm:$0xf] }
 0x2a8   : > { %6365 = vmatpush.bf16.msrb.mxu1 %v7382_v39  ;;  %v8974_v39 = vld [vmem:[%s10337_s14 + $0x4d4] sm:$0xf]  ;;  %v7843_v10 = vld [vmem:[%s10337_s14 + $0x5b8] sm:$0xf0] }
 0x2a9   : > { %6378 = vmatpush.bf16.msrb.mxu2 %v7446_v40  ;;  %v7731_v40 = vld [vmem:[%s10337_s14 + $0x4d8] sm:$0xf0] }
 0x2aa   : > { %6391 = vmatpush.bf16.msrb.mxu3 %v7510_v46  ;;  %v7670_v46 = vor.u32 %v8958_v36, %v7667_v38  ;;  %v8984_v36 = vld [vmem:[%s10337_s14 + $0x524] sm:$0xf] }
 0x2ab   : > { %6401 = vmatpush.bf16.msra.mxu0 %v7598_v47  ;;  %v7734_v47 = vor.u32 %v8974_v39, %v7731_v40  ;;  %v6147_v52 = vpop.f32.mrf.mxu0  ;;  %v7771_v39 = vld [vmem:[%s10337_s14 + $0x528] sm:$0xf0]  ;;  %v9006_v40 = vld [vmem:[%s10337_s14 + $0x5d4] sm:$0xf] }
 0x2ac   : > { %6366 = vmatpush.bf16.msrb.mxu1 %v7374_v2  ;;  %v6148_v63 = vadd.f32 %v6147_v52, %v10934_v17  ;;  %v6160_v2 = vpop.f32.mrf.mxu1  ;;  %v8986_v17 = vld [vmem:[%s10337_s14 + $0x534] sm:$0xf]  ;;  %v9004_v52 = vld [vmem:[%s10337_s14 + $0x5c4] sm:$0xf] }
 0x2ad   : > { %6379 = vmatpush.bf16.msrb.mxu2 %v7438_v3 }
 0x2ae   : > { %6392 = vmatpush.bf16.msrb.mxu3 %v7502_v6  ;;  %v7651_v6 = vld [vmem:[%s10337_s14 + $0x438] sm:$0xf0] }
 0x2af   : > { %6402 = vmatpush.bf16.msra.mxu0 %v7590_v7  ;;  %6367 = vmatmul.bf16.vlgmr.msrb.gmra.mxu1 %v10475_v60  ;;  %v8972_v60 = vld [vmem:[%s10337_s14 + $0x4c4] sm:$0xf]  ;;  %v7790_v7 = vor.u32 %v8988_v51, %v7787_v53  ;;  %v7654_v19 = vor.u32 %v8954_v5, %v7651_v6  ;;  %v7763_v51 = vld [vmem:[%s10337_s14 + $0x518] sm:$0xf0]  ;;  %v7851_v53 = vld [vmem:[%s10337_s14 + $0x5c8] sm:$0xf0] }
 0x2b0   : > { %6411 = vmatpush.bf16.msra.mxu1 %v7686_v8  ;;  %6380 = vmatmul.bf16.vlgmr.msrb.gmra.mxu2 %v10482_v0  ;;  %v8932_v0 = vld [vmem:[%s10337_s14 + $0x384] sm:$0xf]  ;;  %v7726_v4 = vor.u32 %v8972_v60, %v7723_v43  ;;  %v6161_v8 = vadd.f32 %v6160_v2, %v6148_v63  ;;  %v7699_v60 = vld [vmem:[%s10337_s14 + $0x498] sm:$0xf0]  ;;  %v8982_v43 = vld [vmem:[%s10337_s14 + $0x514] sm:$0xf] }
 0x2b1   : > { %6424 = vmatpush.bf16.msra.mxu2 %v7750_v9  ;;  %6393 = vmatmul.bf16.vlgmr.msrb.gmra.mxu3 %v10473_v59  ;;  %v7659_v59 = vld [vmem:[%s10337_s14 + $0x448] sm:$0xf0]  ;;  %v7566_v1 = vor.u32 %v8932_v0, %v7563_v48  ;;  %v7878_v9 = vor.u32 %v9010_v54, %v7875_v61  ;;  %v7635_v48 = vld [vmem:[%s10337_s14 + $0x418] sm:$0xf0]  ;;  %v8948_v63 = vld [vmem:[%s10337_s14 + $0x404] sm:$0xf] }
 0x2b2   : > { %6437 = vmatpush.bf16.msra.mxu3 %v7814_v12  ;;  %v7662_v3 = vor.u32 %v8956_v49, %v7659_v59  ;;  %v9008_v12 = vld [vmem:[%s10337_s14 + $0x5e4] sm:$0xf]  ;;  %v7774_v49 = vor.u32 %v8984_v36, %v7771_v39  ;;  %v7862_v59 = vor.u32 %v9006_v40, %v7859_v42  ;;  %v7691_v5 = vld [vmem:[%s10337_s14 + $0x488] sm:$0xf0] }
 0x2b3   : > { %6403 = vmatpush.bf16.msra.mxu0 %v7582_v31  ;;  %v7782_v31 = vor.u32 %v8986_v17, %v7779_v11  ;;  %v6149_v44 = vpop.f32.mrf.mxu0  ;;  %v8964_v2 = vld [vmem:[%s10337_s14 + $0x484] sm:$0xf]  ;;  %v7939_v11 = vld [vmem:[%s10337_s14 + $0x678] sm:$0xf0]  ;;  %v7835_v36 = vld [vmem:[%s10337_s14 + $0x5a8] sm:$0xf0] }
 0x2b4   : > { %6412 = vmatpush.bf16.msra.mxu1 %v7678_v30  ;;  %v6173_v30 = vpop.f32.mrf.mxu2  ;;  %v6186_v38 = vpop.f32.mrf.mxu3  ;;  %v8980_v6 = vld [vmem:[%s10337_s14 + $0x504] sm:$0xf]  ;;  %v7931_v39 = vld [vmem:[%s10337_s14 + $0x668] sm:$0xf0] }
 0x2b5   : > { %6425 = vmatpush.bf16.msra.mxu2 %v7742_v32  ;;  %v7870_v32 = vor.u32 %v9008_v12, %v7867_v35  ;;  %v9042_v12 = vld [vmem:[%s10337_s14 + $0x6f4] sm:$0xf]  ;;  %v8003_v35 = vld [vmem:[%s10337_s14 + $0x6f8] sm:$0xf0]  ;;  %v9040_v40 = vld [vmem:[%s10337_s14 + $0x6e4] sm:$0xf] }
 0x2b6   : > { %6438 = vmatpush.bf16.msra.mxu3 %v7806_v37  ;;  %v6174_v37 = vadd.f32 %v6173_v30, %v6161_v8  ;;  %v7995_v42 = vld [vmem:[%s10337_s14 + $0x6e8] sm:$0xf0]  ;;  %v9056_v44 = vld [vmem:[%s10337_s14 + $0x764] sm:$0xf] }
 0x2b7   : > { %6404 = vmatpush.bf16.msra.mxu0 %v7574_v45  ;;  %v6162_v45 = vpop.f32.mrf.mxu1 }
 0x2b8   : > { %6413 = vmatpush.bf16.msra.mxu1 %v7670_v46  ;;  %v11005_v0 = vadd.f32 %v6186_v38, %v6174_v37  ;;  %v7646_v46 = vor.u32 %v8952_v29, %v7643_v28  ;;  %v9058_v29 = vld [vmem:[%s10337_s14 + $0x774] sm:$0xf]  ;;  %v8067_v28 = vld [vmem:[%s10337_s14 + $0x778] sm:$0xf0]  ;;  %v9024_v37 = vld [vmem:[%s10337_s14 + $0x664] sm:$0xf] }
 0x2b9   : > { %6426 = vmatpush.bf16.msra.mxu2 %v7734_v47  ;;  %v7710_v47 = vor.u32 %v8968_v33, %v7707_v34  ;;  %v8006_v33 = vor.u32 %v9042_v12, %v8003_v35  ;;  %v9000_v34 = vld [vmem:[%s10337_s14 + $0x5a4] sm:$0xf]  ;;  %v8070_v38 = vor.u32 %v9058_v29, %v8067_v28  ;;  %v8059_v45 = vld [vmem:[%s10337_s14 + $0x768] sm:$0xf0]  ;;  %v9018_v35 = vld [vmem:[%s10337_s14 + $0x634] sm:$0xf] }
 0x2ba   : > { %6439 = vmatpush.bf16.msra.mxu3 %v7798_v50  ;;  %v8966_v50 = vld [vmem:[%s10337_s14 + $0x494] sm:$0xf] }
 0x2bb   : > { %6405 = vmatpush.bf16.msra.mxu0 %v7566_v1  ;;  %v7702_v61 = vor.u32 %v8966_v50, %v7699_v60  ;;  %v7627_v1 = vld [vmem:[%s10337_s14 + $0x408] sm:$0xf0]  ;;  %v8062_v50 = vor.u32 %v9056_v44, %v8059_v45  ;;  %v7923_v60 = vld [vmem:[%s10337_s14 + $0x658] sm:$0xf0]  ;;  %v9032_v45 = vld [vmem:[%s10337_s14 + $0x6a4] sm:$0xf] }
 0x2bc   : > { %6414 = vmatpush.bf16.msra.mxu1 %v7662_v3  ;;  %v7766_v3 = vor.u32 %v8982_v43, %v7763_v51  ;;  %v6175_v8 = vpop.f32.mrf.mxu2  ;;  %v6188_v17 = vpop.f32.mrf.mxu3  ;;  %v9038_v43 = vld [vmem:[%s10337_s14 + $0x6d4] sm:$0xf]  ;;  %v7987_v51 = vld [vmem:[%s10337_s14 + $0x6d8] sm:$0xf0] }
 0x2bd   : > { %6427 = vmatpush.bf16.msra.mxu2 %v7726_v4  ;;  %v7854_v4 = vor.u32 %v9004_v52, %v7851_v53  ;;  %v9054_v52 = vld [vmem:[%s10337_s14 + $0x754] sm:$0xf]  ;;  %v8051_v53 = vld [vmem:[%s10337_s14 + $0x758] sm:$0xf0] }
 0x2be   : > { %6440 = vmatpush.bf16.msra.mxu3 %v7790_v7  ;;  %6406 = vmatmul.bf16.vlgmr.msra.gmra.mxu0 %v10477_v62  ;;  %v8950_v62 = vld [vmem:[%s10337_s14 + $0x414] sm:$0xf]  ;;  %v7755_v7 = vld [vmem:[%s10337_s14 + $0x508] sm:$0xf0] }
 0x2bf   : > { %6450 = vmatpush.bf16.msrb.mxu0 %v7878_v9  ;;  %v7638_v54 = vor.u32 %v8950_v62, %v7635_v48  ;;  %v9002_v9 = vld [vmem:[%s10337_s14 + $0x5b4] sm:$0xf]  ;;  %v7998_v62 = vor.u32 %v9040_v40, %v7995_v42 }
 0x2c0   : > { %6415 = vmatpush.bf16.msra.mxu1 %v7654_v19  ;;  %v7630_v19 = vor.u32 %v8948_v63, %v7627_v1  ;;  %v7846_v30 = vor.u32 %v9002_v9, %v7843_v10  ;;  %v8998_v48 = vld [vmem:[%s10337_s14 + $0x594] sm:$0xf]  ;;  %v7990_v63 = vor.u32 %v9038_v43, %v7987_v51  ;;  %v7819_v1 = vld [vmem:[%s10337_s14 + $0x588] sm:$0xf0]  ;;  %v8131_v9 = vld [vmem:[%s10337_s14 + $0x7f8] sm:$0xf0] }
 0x2c1   : > { %6428 = vmatpush.bf16.msra.mxu2 %v7718_v20  ;;  %v7694_v20 = vor.u32 %v8964_v2, %v7691_v5  ;;  %v9020_v2 = vld [vmem:[%s10337_s14 + $0x644] sm:$0xf]  ;;  %v9074_v8 = vld [vmem:[%s10337_s14 + $0x7f4] sm:$0xf] }
 0x2c2   : > { %6441 = vmatpush.bf16.msra.mxu3 %v7782_v31  ;;  %v7758_v31 = vor.u32 %v8980_v6, %v7755_v7  ;;  %v9052_v5 = vld [vmem:[%s10337_s14 + $0x744] sm:$0xf]  ;;  %v8043_v7 = vld [vmem:[%s10337_s14 + $0x748] sm:$0xf0]  ;;  %v8134_v28 = vor.u32 %v9074_v8, %v8131_v9 }
 0x2c3   : > { %6451 = vmatpush.bf16.msrb.mxu0 %v7870_v32  ;;  %v7942_v32 = vor.u32 %v9026_v41, %v7939_v11  ;;  %v9028_v8 = vld [vmem:[%s10337_s14 + $0x684] sm:$0xf] }
 0x2c4   : > { %6416 = vmatpush.bf16.msra.mxu1 %v7646_v46  ;;  %v7838_v46 = vor.u32 %v9000_v34, %v7835_v36  ;;  %v8123_v34 = vld [vmem:[%s10337_s14 + $0x7e8] sm:$0xf0] }
 0x2c5   : > { %6429 = vmatpush.bf16.msra.mxu2 %v7710_v47  ;;  %v7934_v47 = vor.u32 %v9024_v37, %v7931_v39  ;;  %v7899_v39 = vld [vmem:[%s10337_s14 + $0x628] sm:$0xf0] }
 0x2c6   : > { %6442 = vmatpush.bf16.msra.mxu3 %v7774_v49  ;;  %v7827_v49 = vld [vmem:[%s10337_s14 + $0x598] sm:$0xf0] }
 0x2c7   : > { %6452 = vmatpush.bf16.msrb.mxu0 %v7862_v59  ;;  %v9022_v59 = vld [vmem:[%s10337_s14 + $0x654] sm:$0xf] }
 0x2c8   : > { %6417 = vmatpush.bf16.msra.mxu1 %v7638_v54  ;;  %v7830_v54 = vor.u32 %v8998_v48, %v7827_v49  ;;  %v8027_v49 = vld [vmem:[%s10337_s14 + $0x728] sm:$0xf0] }
 0x2c9   : > { %6430 = vmatpush.bf16.msra.mxu2 %v7702_v61  ;;  %v7926_v61 = vor.u32 %v9022_v59, %v7923_v60  ;;  %v9070_v59 = vld [vmem:[%s10337_s14 + $0x7d4] sm:$0xf] }
 0x2ca   : > { %6443 = vmatpush.bf16.msra.mxu3 %v7766_v3  ;;  %v8054_v3 = vor.u32 %v9054_v52, %v8051_v53 }
 0x2cb   : > { %6453 = vmatpush.bf16.msrb.mxu0 %v7854_v4  ;;  %v7979_v4 = vld [vmem:[%s10337_s14 + $0x6c8] sm:$0xf0]  ;;  %v6199_v6 = vpop.f32.mrf.mxu0 }
 0x2cc   : > { %6418 = vmatpush.bf16.msra.mxu1 %v7630_v19  ;;  %v6200_v10 = vadd.f32 %v6199_v6, %v11005_v0  ;;  %v6212_v17 = vpop.f32.mrf.mxu1  ;;  %v7907_v19 = vld [vmem:[%s10337_s14 + $0x638] sm:$0xf0]  ;;  %v9050_v0 = vld [vmem:[%s10337_s14 + $0x734] sm:$0xf]  ;;  %v9012_v6 = vld [vmem:[%s10337_s14 + $0x604] sm:$0xf] }
 0x2cd   : > { %6431 = vmatpush.bf16.msra.mxu2 %v7694_v20  ;;  %v8046_v20 = vor.u32 %v9052_v5, %v8043_v7  ;;  %v7910_v36 = vor.u32 %v9018_v35, %v7907_v19  ;;  %v7883_v7 = vld [vmem:[%s10337_s14 + $0x608] sm:$0xf0]  ;;  %v9066_v35 = vld [vmem:[%s10337_s14 + $0x7b4] sm:$0xf]  ;;  %v8099_v19 = vld [vmem:[%s10337_s14 + $0x7b8] sm:$0xf0] }
 0x2ce   : > { %6444 = vmatpush.bf16.msra.mxu3 %v7758_v31  ;;  %v6213_v29 = vadd.f32 %v6212_v17, %v6200_v10  ;;  %v9034_v31 = vld [vmem:[%s10337_s14 + $0x6b4] sm:$0xf]  ;;  %v9044_v17 = vld [vmem:[%s10337_s14 + $0x704] sm:$0xf] }
 0x2cf   : > { %6454 = vmatpush.bf16.msrb.mxu0 %v7846_v30  ;;  %6419 = vmatmul.bf16.vlgmr.msra.gmra.mxu1 %v10576_v21  ;;  %v8996_v21 = vld [vmem:[%s10337_s14 + $0x584] sm:$0xf]  ;;  %v7971_v30 = vld [vmem:[%s10337_s14 + $0x6b8] sm:$0xf0] }
 0x2d0   : > { %6463 = vmatpush.bf16.msrb.mxu1 %v7942_v32  ;;  %6432 = vmatmul.bf16.vlgmr.msra.gmra.mxu2 %v10582_v25  ;;  %v7915_v25 = vld [vmem:[%s10337_s14 + $0x648] sm:$0xf0]  ;;  %v7822_v41 = vor.u32 %v8996_v21, %v7819_v1  ;;  %v8035_v32 = vld [vmem:[%s10337_s14 + $0x738] sm:$0xf0]  ;;  %v7974_v37 = vor.u32 %v9034_v31, %v7971_v30  ;;  %v9106_v31 = vld [vmem:[%s10337_s14 + $0x8f4] sm:$0xf] }
 0x2d1   : > { %6476 = vmatpush.bf16.msrb.mxu2 %v8006_v33  ;;  %6445 = vmatmul.bf16.vlgmr.msra.gmra.mxu3 %v10580_v24  ;;  %v9036_v24 = vld [vmem:[%s10337_s14 + $0x6c4] sm:$0xf]  ;;  %v7918_v11 = vor.u32 %v9020_v2, %v7915_v25  ;;  %v8038_v40 = vor.u32 %v9050_v0, %v8035_v32  ;;  %v7955_v1 = vld [vmem:[%s10337_s14 + $0x698] sm:$0xf0]  ;;  %v9046_v2 = vld [vmem:[%s10337_s14 + $0x714] sm:$0xf]  ;;  %v7886_v0 = vor.u32 %v9012_v6, %v7883_v7 }
 0x2d2   : > { %6489 = vmatpush.bf16.msrb.mxu3 %v8070_v38  ;;  %v7982_v12 = vor.u32 %v9036_v24, %v7979_v4  ;;  %v9072_v33 = vld [vmem:[%s10337_s14 + $0x7e4] sm:$0xf]  ;;  %v8019_v25 = vld [vmem:[%s10337_s14 + $0x718] sm:$0xf0]  ;;  %v8107_v24 = vld [vmem:[%s10337_s14 + $0x7c8] sm:$0xf0] }
 0x2d3   : > { %6455 = vmatpush.bf16.msrb.mxu0 %v7838_v46  ;;  %v9016_v38 = vld [vmem:[%s10337_s14 + $0x624] sm:$0xf]  ;;  %v6225_v42 = vpop.f32.mrf.mxu2  ;;  %v8126_v44 = vor.u32 %v9072_v33, %v8123_v34  ;;  %v7963_v46 = vld [vmem:[%s10337_s14 + $0x6a8] sm:$0xf0]  ;;  %v6201_v60 = vpop.f32.mrf.mxu0  ;;  %v8022_v9 = vor.u32 %v9046_v2, %v8019_v25  ;;  %v8259_v30 = vld [vmem:[%s10337_s14 + $0x8f8] sm:$0xf0] }
 0x2d4   : > { %6464 = vmatpush.bf16.msrb.mxu1 %v7934_v47  ;;  %v9048_v47 = vld [vmem:[%s10337_s14 + $0x724] sm:$0xf]  ;;  %v6238_v48 = vpop.f32.mrf.mxu3  ;;  %v6214_v43 = vpop.f32.mrf.mxu1  ;;  %v7902_v52 = vor.u32 %v9016_v38, %v7899_v39  ;;  %v7966_v53 = vor.u32 %v9032_v45, %v7963_v46  ;;  %v9122_v33 = vld [vmem:[%s10337_s14 + $0x974] sm:$0xf]  ;;  %v8323_v34 = vld [vmem:[%s10337_s14 + $0x978] sm:$0xf0]  ;;  %v8262_v39 = vor.u32 %v9106_v31, %v8259_v30 }
 0x2d5   : > { %6477 = vmatpush.bf16.msrb.mxu2 %v7998_v62  ;;  %v6226_v62 = vadd.f32 %v6225_v42, %v6213_v29  ;;  %v8030_v21 = vor.u32 %v9048_v47, %v8027_v49  ;;  %v8091_v42 = vld [vmem:[%s10337_s14 + $0x7a8] sm:$0xf0]  ;;  %v8326_v45 = vor.u32 %v9122_v33, %v8323_v34  ;;  %v9104_v47 = vld [vmem:[%s10337_s14 + $0x8e4] sm:$0xf]  ;;  %v9062_v43 = vld [vmem:[%s10337_s14 + $0x794] sm:$0xf] }
 0x2d6   : > { %6490 = vmatpush.bf16.msrb.mxu3 %v8062_v50  ;;  %v8115_v50 = vld [vmem:[%s10337_s14 + $0x7d8] sm:$0xf0]  ;;  %v8187_v46 = vld [vmem:[%s10337_s14 + $0x868] sm:$0xf0]  ;;  %v9116_v7 = vld [vmem:[%s10337_s14 + $0x944] sm:$0xf] }
 0x2d7   : > { %6456 = vmatpush.bf16.msrb.mxu0 %v7830_v54  ;;  %v11076_v51 = vadd.f32 %v6238_v48, %v6226_v62  ;;  %v7891_v54 = vld [vmem:[%s10337_s14 + $0x618] sm:$0xf0]  ;;  %v8251_v62 = vld [vmem:[%s10337_s14 + $0x8e8] sm:$0xf0]  ;;  %v9120_v48 = vld [vmem:[%s10337_s14 + $0x964] sm:$0xf] }
 0x2d8   : > { %6465 = vmatpush.bf16.msrb.mxu1 %v7926_v61  ;;  %v8118_v61 = vor.u32 %v9070_v59, %v8115_v50  ;;  %v8315_v49 = vld [vmem:[%s10337_s14 + $0x968] sm:$0xf0]  ;;  %v8254_v60 = vor.u32 %v9104_v47, %v8251_v62  ;;  %v8291_v33 = vld [vmem:[%s10337_s14 + $0x938] sm:$0xf0]  ;;  %v9136_v34 = vld [vmem:[%s10337_s14 + $0x9e4] sm:$0xf] }
 0x2d9   : > { %6478 = vmatpush.bf16.msrb.mxu2 %v7990_v63  ;;  %v9030_v63 = vld [vmem:[%s10337_s14 + $0x694] sm:$0xf]  ;;  %v8235_v6 = vld [vmem:[%s10337_s14 + $0x8c8] sm:$0xf0]  ;;  %v9112_v62 = vld [vmem:[%s10337_s14 + $0x924] sm:$0xf] }
 0x2da   : > { %6491 = vmatpush.bf16.msrb.mxu3 %v8054_v3  ;;  %v9068_v3 = vld [vmem:[%s10337_s14 + $0x7c4] sm:$0xf]  ;;  %v7958_v5 = vor.u32 %v9030_v63, %v7955_v1  ;;  %v9118_v63 = vld [vmem:[%s10337_s14 + $0x954] sm:$0xf]  ;;  %v8307_v1 = vld [vmem:[%s10337_s14 + $0x958] sm:$0xf0] }
 0x2db   : > { %6457 = vmatpush.bf16.msrb.mxu0 %v7822_v41  ;;  %v8110_v10 = vor.u32 %v9068_v3, %v8107_v24  ;;  %v7947_v41 = vld [vmem:[%s10337_s14 + $0x688] sm:$0xf0] }
 0x2dc   : > { %6466 = vmatpush.bf16.msrb.mxu1 %v7918_v11  ;;  %v8011_v11 = vld [vmem:[%s10337_s14 + $0x708] sm:$0xf0]  ;;  %v6240_v29 = vpop.f32.mrf.mxu3  ;;  %v7950_v32 = vor.u32 %v9028_v8, %v7947_v41  ;;  %v8387_v41 = vld [vmem:[%s10337_s14 + $0x9f8] sm:$0xf0] }
 0x2dd   : > { %6479 = vmatpush.bf16.msrb.mxu2 %v7982_v12  ;;  %v6227_v12 = vpop.f32.mrf.mxu2  ;;  %v8075_v24 = vld [vmem:[%s10337_s14 + $0x788] sm:$0xf0]  ;;  %v8163_v29 = vld [vmem:[%s10337_s14 + $0x838] sm:$0xf0] }
 0x2de   : > { %6492 = vmatpush.bf16.msrb.mxu3 %v8046_v20  ;;  %6458 = vmatmul.bf16.vlgmr.msrb.gmra.mxu0 %v10584_v26  ;;  %v9014_v26 = vld [vmem:[%s10337_s14 + $0x614] sm:$0xf]  ;;  %v8219_v47 = vld [vmem:[%s10337_s14 + $0x8a8] sm:$0xf0] }
 0x2df   : > { %6502 = vmatpush.bf16.msra.mxu0 %v8134_v28  ;;  %v7894_v4 = vor.u32 %v9014_v26, %v7891_v54  ;;  %v9090_v20 = vld [vmem:[%s10337_s14 + $0x874] sm:$0xf]  ;;  %v8195_v28 = vld [vmem:[%s10337_s14 + $0x878] sm:$0xf0]  ;;  %v8318_v26 = vor.u32 %v9120_v48, %v8315_v49 }
 0x2e0   : > { %6467 = vmatpush.bf16.msrb.mxu1 %v7910_v36  ;;  %v8014_v36 = vor.u32 %v9044_v17, %v8011_v11  ;;  %v8198_v38 = vor.u32 %v9090_v20, %v8195_v28  ;;  %v8179_v54 = vld [vmem:[%s10337_s14 + $0x858] sm:$0xf0]  ;;  %v9082_v20 = vld [vmem:[%s10337_s14 + $0x834] sm:$0xf] }
 0x2e1   : > { %6480 = vmatpush.bf16.msrb.mxu2 %v7974_v37  ;;  %v8102_v37 = vor.u32 %v9066_v35, %v8099_v19 }
 0x2e2   : > { %6493 = vmatpush.bf16.msrb.mxu3 %v8038_v40  ;;  %v9064_v40 = vld [vmem:[%s10337_s14 + $0x7a4] sm:$0xf] }
 0x2e3   : > { %6503 = vmatpush.bf16.msra.mxu0 %v8126_v44  ;;  %v9088_v44 = vld [vmem:[%s10337_s14 + $0x864] sm:$0xf]  ;;  %v8094_v59 = vor.u32 %v9064_v40, %v8091_v42  ;;  %v8155_v40 = vld [vmem:[%s10337_s14 + $0x828] sm:$0xf0] }
 0x2e4   : > { %6468 = vmatpush.bf16.msrb.mxu1 %v7902_v52  ;;  %v8190_v50 = vor.u32 %v9088_v44, %v8187_v46  ;;  %v8083_v52 = vld [vmem:[%s10337_s14 + $0x798] sm:$0xf0]  ;;  %v9096_v46 = vld [vmem:[%s10337_s14 + $0x8a4] sm:$0xf] }
 0x2e5   : > { %6481 = vmatpush.bf16.msrb.mxu2 %v7966_v53  ;;  %v9086_v53 = vld [vmem:[%s10337_s14 + $0x854] sm:$0xf]  ;;  %v8086_v2 = vor.u32 %v9062_v43, %v8083_v52  ;;  %v8371_v43 = vld [vmem:[%s10337_s14 + $0x9d8] sm:$0xf0] }
 0x2e6   : > { %6494 = vmatpush.bf16.msrb.mxu3 %v8030_v21  ;;  %v9102_v21 = vld [vmem:[%s10337_s14 + $0x8d4] sm:$0xf]  ;;  %v8182_v25 = vor.u32 %v9086_v53, %v8179_v54  ;;  %v8222_v54 = vor.u32 %v9096_v46, %v8219_v47  ;;  %v8507_v46 = vld [vmem:[%s10337_s14 + $0xae8] sm:$0xf0]  ;;  %v9184_v47 = vld [vmem:[%s10337_s14 + $0xb64] sm:$0xf] }
 0x2e7   : > { %6504 = vmatpush.bf16.msra.mxu0 %v8118_v61  ;;  %v8243_v61 = vld [vmem:[%s10337_s14 + $0x8d8] sm:$0xf0] }
 0x2e8   : > { %6469 = vmatpush.bf16.msrb.mxu1 %v7894_v4  ;;  %v8246_v3 = vor.u32 %v9102_v21, %v8243_v61  ;;  %v9084_v4 = vld [vmem:[%s10337_s14 + $0x844] sm:$0xf]  ;;  %v8147_v21 = vld [vmem:[%s10337_s14 + $0x818] sm:$0xf0] }
 0x2e9   : > { %6482 = vmatpush.bf16.msrb.mxu2 %v7958_v5  ;;  %v8310_v5 = vor.u32 %v9118_v63, %v8307_v1  ;;  %v9094_v1 = vld [vmem:[%s10337_s14 + $0x894] sm:$0xf] }
 0x2ea   : > { %6495 = vmatpush.bf16.msrb.mxu3 %v8022_v9  ;;  %v8299_v9 = vld [vmem:[%s10337_s14 + $0x948] sm:$0xf0] }
 0x2eb   : > { %6505 = vmatpush.bf16.msra.mxu0 %v8110_v10  ;;  %v6251_v8 = vpop.f32.mrf.mxu0  ;;  %v9138_v10 = vld [vmem:[%s10337_s14 + $0x9f4] sm:$0xf]  ;;  %v8302_v28 = vor.u32 %v9116_v7, %v8299_v9  ;;  %v8203_v9 = vld [vmem:[%s10337_s14 + $0x888] sm:$0xf0] }
 0x2ec   : > { %6470 = vmatpush.bf16.msrb.mxu1 %v7886_v0  ;;  %v6252_v17 = vadd.f32 %v6251_v8, %v11076_v51  ;;  %v6264_v12 = vpop.f32.mrf.mxu1  ;;  %v8390_v30 = vor.u32 %v9138_v10, %v8387_v41  ;;  %v9098_v0 = vld [vmem:[%s10337_s14 + $0x8b4] sm:$0xf]  ;;  %v9108_v10 = vld [vmem:[%s10337_s14 + $0x904] sm:$0xf]  ;;  %v8267_v41 = vld [vmem:[%s10337_s14 + $0x908] sm:$0xf0] }
 0x2ed   : > { %6483 = vmatpush.bf16.msrb.mxu2 %v7950_v32  ;;  %v8227_v32 = vld [vmem:[%s10337_s14 + $0x8b8] sm:$0xf0]  ;;  %v9114_v51 = vld [vmem:[%s10337_s14 + $0x934] sm:$0xf] }
 0x2ee   : > { %6496 = vmatpush.bf16.msrb.mxu3 %v8014_v36  ;;  %v6265_v31 = vadd.f32 %v6264_v12, %v6252_v17  ;;  %v8379_v36 = vld [vmem:[%s10337_s14 + $0x9e8] sm:$0xf0]  ;;  %v8294_v42 = vor.u32 %v9114_v51, %v8291_v33  ;;  %v8355_v12 = vld [vmem:[%s10337_s14 + $0x9b8] sm:$0xf0]  ;;  %v8270_v33 = vor.u32 %v9108_v10, %v8267_v41 }
 0x2ef   : > { %6506 = vmatpush.bf16.msra.mxu0 %v8102_v37  ;;  %6471 = vmatmul.bf16.vlgmr.msrb.gmra.mxu1 %v10642_v55  ;;  %v9060_v55 = vld [vmem:[%s10337_s14 + $0x784] sm:$0xf]  ;;  %v8166_v37 = vor.u32 %v9082_v20, %v8163_v29  ;;  %v8451_v29 = vld [vmem:[%s10337_s14 + $0xa78] sm:$0xf0] }
 0x2f0   : > { %6515 = vmatpush.bf16.msra.mxu1 %v8198_v38  ;;  %6484 = vmatmul.bf16.vlgmr.msrb.gmra.mxu2 %v10646_v57  ;;  %v8171_v57 = vld [vmem:[%s10337_s14 + $0x848] sm:$0xf0]  ;;  %v8078_v11 = vor.u32 %v9060_v55, %v8075_v24  ;;  %v8230_v38 = vor.u32 %v9098_v0, %v8227_v32  ;;  %v9110_v55 = vld [vmem:[%s10337_s14 + $0x914] sm:$0xf]  ;;  %v8579_v51 = vld [vmem:[%s10337_s14 + $0xb78] sm:$0xf0] }
 0x2f1   : > { %6528 = vmatpush.bf16.msra.mxu2 %v8262_v39  ;;  %6497 = vmatmul.bf16.vlgmr.msrb.gmra.mxu3 %v10644_v56  ;;  %v9100_v56 = vld [vmem:[%s10337_s14 + $0x8c4] sm:$0xf]  ;;  %v8174_v35 = vor.u32 %v9084_v4, %v8171_v57  ;;  %v8363_v24 = vld [vmem:[%s10337_s14 + $0x9c8] sm:$0xf0]  ;;  %v9186_v32 = vld [vmem:[%s10337_s14 + $0xb74] sm:$0xf] }
 0x2f2   : > { %6541 = vmatpush.bf16.msra.mxu3 %v8326_v45  ;;  %v8238_v19 = vor.u32 %v9100_v56, %v8235_v6  ;;  %v9080_v39 = vld [vmem:[%s10337_s14 + $0x824] sm:$0xf]  ;;  %v8382_v45 = vor.u32 %v9136_v34, %v8379_v36  ;;  %v8139_v56 = vld [vmem:[%s10337_s14 + $0x808] sm:$0xf0] }
 0x2f3   : > { %6507 = vmatpush.bf16.msra.mxu0 %v8094_v59  ;;  %v6277_v44 = vpop.f32.mrf.mxu2  ;;  %v6253_v49 = vpop.f32.mrf.mxu0  ;;  %v9092_v6 = vld [vmem:[%s10337_s14 + $0x884] sm:$0xf] }
 0x2f4   : > { %6516 = vmatpush.bf16.msra.mxu1 %v8190_v50  ;;  %v6278_v48 = vadd.f32 %v6277_v44, %v6265_v31  ;;  %v6290_v59 = vpop.f32.mrf.mxu3  ;;  %v8283_v50 = vld [vmem:[%s10337_s14 + $0x928] sm:$0xf0]  ;;  %v6266_v52 = vpop.f32.mrf.mxu1  ;;  %v8515_v31 = vld [vmem:[%s10337_s14 + $0xaf8] sm:$0xf0]  ;;  %v8206_v0 = vor.u32 %v9092_v6, %v8203_v9 }
 0x2f5   : > { %6529 = vmatpush.bf16.msra.mxu2 %v8254_v60  ;;  %v9134_v60 = vld [vmem:[%s10337_s14 + $0x9d4] sm:$0xf]  ;;  %v8286_v61 = vor.u32 %v9112_v62, %v8283_v50  ;;  %v8443_v44 = vld [vmem:[%s10337_s14 + $0xa68] sm:$0xf0] }
 0x2f6   : > { %6542 = vmatpush.bf16.msra.mxu3 %v8318_v26  ;;  %v11147_v53 = vadd.f32 %v6290_v59, %v6278_v48  ;;  %v8158_v26 = vor.u32 %v9080_v39, %v8155_v40  ;;  %v8374_v63 = vor.u32 %v9134_v60, %v8371_v43  ;;  %v8347_v39 = vld [vmem:[%s10337_s14 + $0x9a8] sm:$0xf0]  ;;  %v9152_v40 = vld [vmem:[%s10337_s14 + $0xa64] sm:$0xf]  ;;  %v9126_v50 = vld [vmem:[%s10337_s14 + $0x994] sm:$0xf] }
 0x2f7   : > { %6508 = vmatpush.bf16.msra.mxu0 %v8086_v2  ;;  %v8211_v2 = vld [vmem:[%s10337_s14 + $0x898] sm:$0xf0]  ;;  %v8571_v62 = vld [vmem:[%s10337_s14 + $0xb68] sm:$0xf0]  ;;  %v8446_v49 = vor.u32 %v9152_v40, %v8443_v44  ;;  %v9150_v43 = vld [vmem:[%s10337_s14 + $0xa54] sm:$0xf] }
 0x2f8   : > { %6517 = vmatpush.bf16.msra.mxu1 %v8182_v25  ;;  %v8275_v25 = vld [vmem:[%s10337_s14 + $0x918] sm:$0xf0]  ;;  %v8214_v57 = vor.u32 %v9094_v1, %v8211_v2  ;;  %v8574_v52 = vor.u32 %v9184_v47, %v8571_v62  ;;  %v8331_v2 = vld [vmem:[%s10337_s14 + $0x988] sm:$0xf0] }
 0x2f9   : > { %6530 = vmatpush.bf16.msra.mxu2 %v8246_v3  ;;  %v9132_v3 = vld [vmem:[%s10337_s14 + $0x9c4] sm:$0xf]  ;;  %v8278_v7 = vor.u32 %v9110_v55, %v8275_v25  ;;  %v8339_v60 = vld [vmem:[%s10337_s14 + $0x998] sm:$0xf0]  ;;  %v8555_v6 = vld [vmem:[%s10337_s14 + $0xb48] sm:$0xf0] }
 0x2fa   : > { %6543 = vmatpush.bf16.msra.mxu3 %v8310_v5  ;;  %v9076_v5 = vld [vmem:[%s10337_s14 + $0x804] sm:$0xf]  ;;  %v8366_v8 = vor.u32 %v9132_v3, %v8363_v24  ;;  %v8342_v1 = vor.u32 %v9126_v50, %v8339_v60  ;;  %v8475_v44 = vld [vmem:[%s10337_s14 + $0xaa8] sm:$0xf0] }
 0x2fb   : > { %6509 = vmatpush.bf16.msra.mxu0 %v8078_v11  ;;  %v6279_v17 = vpop.f32.mrf.mxu2  ;;  %v9130_v11 = vld [vmem:[%s10337_s14 + $0x9b4] sm:$0xf]  ;;  %v11166_v20 = vpop.f32.mrf.mxu0  ;;  %v9148_v3 = vld [vmem:[%s10337_s14 + $0xa44] sm:$0xf]  ;;  %v8539_v62 = vld [vmem:[%s10337_s14 + $0xb28] sm:$0xf0] }
 0x2fc   : > { %6518 = vmatpush.bf16.msra.mxu1 %v8174_v35  ;;  %v9154_v35 = vld [vmem:[%s10337_s14 + $0xa74] sm:$0xf]  ;;  %v8358_v34 = vor.u32 %v9130_v11, %v8355_v12  ;;  %v9164_v24 = vld [vmem:[%s10337_s14 + $0xac4] sm:$0xf]  ;;  %v8419_v12 = vld [vmem:[%s10337_s14 + $0xa38] sm:$0xf0] }
 0x2fd   : > { %6531 = vmatpush.bf16.msra.mxu2 %v8238_v19  ;;  %v6292_v19 = vpop.f32.mrf.mxu3  ;;  %v8454_v36 = vor.u32 %v9154_v35, %v8451_v29  ;;  %v9146_v11 = vld [vmem:[%s10337_s14 + $0xa34] sm:$0xf] }
 0x2fe   : > { %6544 = vmatpush.bf16.msra.mxu3 %v8302_v28  ;;  %6510 = vmatmul.bf16.vlgmr.msra.gmra.mxu0 %v10648_v58  ;;  %v9078_v58 = vld [vmem:[%s10337_s14 + $0x814] sm:$0xf] }
 0x2ff   : > { %6554 = vmatpush.bf16.msrb.mxu0 %v8390_v30  ;;  %v8150_v4 = vor.u32 %v9078_v58, %v8147_v21  ;;  %v9170_v28 = vld [vmem:[%s10337_s14 + $0xaf4] sm:$0xf]  ;;  %v8142_v30 = vor.u32 %v9076_v5, %v8139_v56  ;;  %v8499_v58 = vld [vmem:[%s10337_s14 + $0xad8] sm:$0xf0] }
 0x300   : > { %6519 = vmatpush.bf16.msra.mxu1 %v8166_v37  ;;  %v8518_v37 = vor.u32 %v9170_v28, %v8515_v31  ;;  %v9308_v5 = vld [vmem:[%s10330_s8] sm:$0x3]  ;;  %v8483_v28 = vld [vmem:[%s10337_s14 + $0xab8] sm:$0xf0] }
 0x301   : > { %6532 = vmatpush.bf16.msra.mxu2 %v8230_v38  ;;  %v9128_v38 = vld [vmem:[%s10337_s14 + $0x9a4] sm:$0xf]  ;;  %v3959_v56 = vperm.slane %v9308_v5, 1  ;;  %v9162_v29 = vld [vmem:[%s10337_s14 + $0xab4] sm:$0xf] }
 0x302   : > { %6545 = vmatpush.bf16.msra.mxu3 %v8294_v42  ;;  %v8582_v42 = vor.u32 %v9186_v32, %v8579_v51  ;;  %v8350_v48 = vor.u32 %v9128_v38, %v8347_v39  ;;  %v9178_v31 = vld [vmem:[%s10337_s14 + $0xb34] sm:$0xf]  ;;  %v9200_v32 = vld [vmem:[%s10337_s14 + $0xbe4] sm:$0xf]  ;;  %v8635_v51 = vld [vmem:[%s10337_s14 + $0xbe8] sm:$0xf0] }
 0x303   : > { %6555 = vmatpush.bf16.msrb.mxu0 %v8382_v45  ;;  %v9168_v45 = vld [vmem:[%s10337_s14 + $0xae4] sm:$0xf]  ;;  %v6305_v21 = vpop.f32.mrf.mxu0  ;;  %v8638_v40 = vor.u32 %v9200_v32, %v8635_v51  ;;  %v8603_v32 = vld [vmem:[%s10337_s14 + $0xba8] sm:$0xf0]  ;;  %v8731_v51 = vld [vmem:[%s10335_s13 + $0x60] sm:$0xf] }
 0x304   : > { %6520 = vmatpush.bf16.msra.mxu1 %v8158_v26  ;;  %v8510_v59 = vor.u32 %v9168_v45, %v8507_v46  ;;  %v8435_v26 = vld [vmem:[%s10337_s14 + $0xa58] sm:$0xf0]  ;;  %v9176_v45 = vld [vmem:[%s10337_s14 + $0xb24] sm:$0xf] }
 0x305   : > { %6533 = vmatpush.bf16.msra.mxu2 %v8222_v54  ;;  %v9166_v54 = vld [vmem:[%s10337_s14 + $0xad4] sm:$0xf]  ;;  %v8438_v55 = vor.u32 %v9150_v43, %v8435_v26  ;;  %v8403_v26 = vld [vmem:[%s10337_s14 + $0xa18] sm:$0xf0] }
 0x306   : > { %6546 = vmatpush.bf16.msra.mxu3 %v8286_v61  ;;  %v9182_v61 = vld [vmem:[%s10337_s14 + $0xb54] sm:$0xf]  ;;  %v8502_v25 = vor.u32 %v9166_v54, %v8499_v58  ;;  %v8467_v21 = vld [vmem:[%s10337_s14 + $0xa98] sm:$0xf0] }
 0x307   : > { %6556 = vmatpush.bf16.msrb.mxu0 %v8374_v63  ;;  %v8563_v63 = vld [vmem:[%s10337_s14 + $0xb58] sm:$0xf0]  ;;  %v9158_v58 = vld [vmem:[%s10337_s14 + $0xa94] sm:$0xf] }
 0x308   : > { %6521 = vmatpush.bf16.msra.mxu1 %v8150_v4  ;;  %v8491_v4 = vld [vmem:[%s10337_s14 + $0xac8] sm:$0xf0] }
 0x309   : > { %6534 = vmatpush.bf16.msra.mxu2 %v8214_v57  ;;  %v9180_v57 = vld [vmem:[%s10337_s14 + $0xb44] sm:$0xf]  ;;  %v8494_v17 = vor.u32 %v9164_v24, %v8491_v4 }
 0x30a   : > { %6547 = vmatpush.bf16.msra.mxu3 %v8278_v7  ;;  %v9202_v7 = vld [vmem:[%s10337_s14 + $0xbf4] sm:$0xf]  ;;  %v8558_v35 = vor.u32 %v9180_v57, %v8555_v6  ;;  %v9156_v24 = vld [vmem:[%s10337_s14 + $0xa84] sm:$0xf] }
 0x30b   : > { %6557 = vmatpush.bf16.msrb.mxu0 %v8366_v8  ;;  %v8643_v8 = vld [vmem:[%s10337_s14 + $0xbf8] sm:$0xf0]  ;;  %v9172_v6 = vld [vmem:[%s10337_s14 + $0xb04] sm:$0xf] }
 0x30c   : > { %6522 = vmatpush.bf16.msra.mxu1 %v8142_v30  ;;  %v6316_v10 = vpop.f32.mrf.mxu1  ;;  %v8646_v19 = vor.u32 %v9202_v7, %v8643_v8  ;;  %v8523_v7 = vld [vmem:[%s10337_s14 + $0xb08] sm:$0xf0] }
 0x30d   : > { %6535 = vmatpush.bf16.msra.mxu2 %v8206_v0  ;;  %v6317_v30 = vadd.f32 %v6316_v10, %v3959_v56  ;;  %v8547_v0 = vld [vmem:[%s10337_s14 + $0xb38] sm:$0xf0]  ;;  %v8459_v56 = vld [vmem:[%s10337_s14 + $0xa88] sm:$0xf0] }
 0x30e   : > { %6548 = vmatpush.bf16.msra.mxu3 %v8270_v33  ;;  %v8422_v33 = vor.u32 %v9146_v11, %v8419_v12  ;;  %v8550_v39 = vor.u32 %v9178_v31, %v8547_v0  ;;  %v8611_v10 = vld [vmem:[%s10337_s14 + $0xbb8] sm:$0xf0]  ;;  %v9210_v11 = vld [vmem:[%s10337_s14 + $0xc34] sm:$0xf]  ;;  %v9192_v0 = vld [vmem:[%s10337_s14 + $0xba4] sm:$0xf] }
 0x30f   : > { %6558 = vmatpush.bf16.msrb.mxu0 %v8358_v34  ;;  %6523 = vmatmul.bf16.vlgmr.msra.gmra.mxu1 %v10731_v18  ;;  %v9124_v18 = vld [vmem:[%s10337_s14 + $0x984] sm:$0xf]  ;;  %v8486_v34 = vor.u32 %v9162_v29, %v8483_v28  ;;  %v8675_v12 = vld [vmem:[%s10337_s14 + $0xc38] sm:$0xf0]  ;;  %v8526_v29 = vor.u32 %v9172_v6, %v8523_v7 }
 0x310   : > { %6567 = vmatpush.bf16.msrb.mxu1 %v8454_v36  ;;  %6536 = vmatmul.bf16.vlgmr.msra.gmra.mxu2 %v10737_v23  ;;  %v8427_v23 = vld [vmem:[%s10337_s14 + $0xa48] sm:$0xf0]  ;;  %v8334_v9 = vor.u32 %v9124_v18, %v8331_v2  ;;  %v9144_v36 = vld [vmem:[%s10337_s14 + $0xa24] sm:$0xf] }
 0x311   : > { %6580 = vmatpush.bf16.msrb.mxu2 %v8518_v37  ;;  %6549 = vmatmul.bf16.vlgmr.msra.gmra.mxu3 %v10735_v22  ;;  %v8566_v22 = vor.u32 %v9182_v61, %v8563_v63  ;;  %v8430_v41 = vor.u32 %v9148_v3, %v8427_v23  ;;  %v8411_v37 = vld [vmem:[%s10337_s14 + $0xa28] sm:$0xf0]  ;;  %v9174_v61 = vld [vmem:[%s10337_s14 + $0xb14] sm:$0xf]  ;;  %v8531_v63 = vld [vmem:[%s10337_s14 + $0xb18] sm:$0xf0] }
 0x312   : > { %6593 = vmatpush.bf16.msrb.mxu3 %v8582_v42  ;;  %v9160_v42 = vld [vmem:[%s10337_s14 + $0xaa4] sm:$0xf]  ;;  %v8414_v60 = vor.u32 %v9144_v36, %v8411_v37  ;;  %v8619_v18 = vld [vmem:[%s10337_s14 + $0xbc8] sm:$0xf0]  ;;  %v8534_v57 = vor.u32 %v9174_v61, %v8531_v63 }
 0x313   : > { %6559 = vmatpush.bf16.msrb.mxu0 %v8350_v48  ;;  %v6329_v38 = vpop.f32.mrf.mxu2  ;;  %v9198_v48 = vld [vmem:[%s10337_s14 + $0xbd4] sm:$0xf]  ;;  %v8478_v43 = vor.u32 %v9160_v42, %v8475_v44  ;;  %v9140_v3 = vld [vmem:[%s10337_s14 + $0xa04] sm:$0xf]  ;;  %v8395_v23 = vld [vmem:[%s10337_s14 + $0xa08] sm:$0xf0] }
 0x314   : > { %6568 = vmatpush.bf16.msrb.mxu1 %v8446_v49  ;;  %v6330_v46 = vadd.f32 %v6329_v38, %v6317_v30  ;;  %v6342_v47 = vpop.f32.mrf.mxu3  ;;  %v8627_v49 = vld [vmem:[%s10337_s14 + $0xbd8] sm:$0xf0]  ;;  %v6318_v50 = vpop.f32.mrf.mxu1  ;;  %v8678_v30 = vor.u32 %v9210_v11, %v8675_v12  ;;  %v8667_v36 = vld [vmem:[%s10337_s14 + $0xc28] sm:$0xf0]  ;;  %v8606_v38 = vor.u32 %v9192_v0, %v8603_v32  ;;  %v9190_v42 = vld [vmem:[%s10337_s14 + $0xb94] sm:$0xf] }
 0x315   : > { %6581 = vmatpush.bf16.msrb.mxu2 %v8510_v59  ;;  %v8630_v54 = vor.u32 %v9198_v48, %v8627_v49  ;;  %v8595_v44 = vld [vmem:[%s10337_s14 + $0xb98] sm:$0xf0]  ;;  %v9188_v50 = vld [vmem:[%s10337_s14 + $0xb84] sm:$0xf]  ;;  %v9220_v11 = vld [vmem:[%s10335_s13 + $0x44] sm:$0xf] }
 0x316   : > { %6594 = vmatpush.bf16.msrb.mxu3 %v8574_v52  ;;  %v6343_v59 = vadd.f32 %v6342_v47, %v6330_v46  ;;  %v9142_v52 = vld [vmem:[%s10337_s14 + $0xa14] sm:$0xf]  ;;  %v9223_v46 = vld [vmem:[%s10335_s13 + $0x54] sm:$0xf0]  ;;  %v8598_v48 = vor.u32 %v9190_v42, %v8595_v44  ;;  %v8707_v61 = vld [vmem:[%s10335_s13 + $0x30] sm:$0xf] }
 0x317   : > { %6560 = vmatpush.bf16.msrb.mxu0 %v8342_v1  ;;  %v9196_v1 = vld [vmem:[%s10337_s14 + $0xbc4] sm:$0xf]  ;;  %v9206_v47 = vld [vmem:[%s10337_s14 + $0xc14] sm:$0xf]  ;;  %v8717_v12 = vld [vmem:[%s10335_s13 + $0x48] sm:$0xf0] }
 0x318   : > { %6569 = vmatpush.bf16.msrb.mxu1 %v8438_v55  ;;  %v8406_v55 = vor.u32 %v9142_v52, %v8403_v26  ;;  %v8622_v5 = vor.u32 %v9196_v1, %v8619_v18  ;;  %v8741_v52 = vld [vmem:[%s10335_s13 + $0x78] sm:$0xf0]  ;;  %v9204_v26 = vld [vmem:[%s10337_s14 + $0xc04] sm:$0xf]  ;;  %v9219_v18 = vld [vmem:[%s10335_s13 + $0x34] sm:$0xf0] }
 0x319   : > { %6582 = vmatpush.bf16.msrb.mxu2 %v8502_v25  ;;  %v8470_v25 = vor.u32 %v9158_v58, %v8467_v21  ;;  %v9213_v0 = vld [vmem:[%s10335_s13 + $0x4] sm:$0xf0]  ;;  %v9218_v32 = vld [vmem:[%s10335_s13 + $0x34] sm:$0xf]  ;;  %v8693_v44 = vld [vmem:[%s10335_s13 + $0x18] sm:$0xf0] }
 0x31a   : > { %6595 = vmatpush.bf16.msrb.mxu3 %v8566_v22 }
 0x31b   : > { %6561 = vmatpush.bf16.msrb.mxu0 %v8334_v9  ;;  %v6355_v2 = vpop.f32.mrf.mxu0  ;;  %v6331_v4 = vpop.f32.mrf.mxu2  ;;  %v9194_v9 = vld [vmem:[%s10337_s14 + $0xbb4] sm:$0xf] }
 0x31c   : > { %6570 = vmatpush.bf16.msrb.mxu1 %v8430_v41  ;;  %v11231_v22 = vadd.f32 %v6355_v2, %v6343_v59  ;;  %v6344_v8 = vpop.f32.mrf.mxu3  ;;  %v8739_v41 = vld [vmem:[%s10335_s13 + $0x70] sm:$0xf]  ;;  %v8614_v28 = vor.u32 %v9194_v9, %v8611_v10  ;;  %v9224_v2 = vld [vmem:[%s10335_s13 + $0x64] sm:$0xf] }
 0x31d   : > { %6583 = vmatpush.bf16.msrb.mxu2 %v8494_v17  ;;  %v9227_v17 = vld [vmem:[%s10335_s13 + $0x74] sm:$0xf0]  ;;  %v8691_v10 = vld [vmem:[%s10335_s13 + $0x10] sm:$0xf] }
 0x31e   : > { %6596 = vmatpush.bf16.msrb.mxu3 %v8558_v35  ;;  %6562 = vmatmul.bf16.vlgmr.msrb.gmra.mxu0 %v10739_v27  ;;  %v8542_v27 = vor.u32 %v9176_v45, %v8539_v62  ;;  %v8398_v35 = vor.u32 %v9140_v3, %v8395_v23  ;;  %v8740_v31 = vor.u32 %v9227_v17, %v8739_v41  ;;  %v8723_v45 = vld [vmem:[%s10335_s13 + $0x50] sm:$0xf]  ;;  %v8659_v62 = vld [vmem:[%s10337_s14 + $0xc18] sm:$0xf0]  ;;  %v9309_v41 = vld [vmem:[#allocation1] sm:$0xff] }
 0x31f   : > { %6606 = vmatpush.bf16.msra.mxu0 %v8646_v19  ;;  %v8462_v19 = vor.u32 %v9156_v24, %v8459_v56  ;;  %v8724_v49 = vor.u32 %v9223_v46, %v8723_v45  ;;  %v8662_v59 = vor.u32 %v9206_v47, %v8659_v62  ;;  %v8699_v24 = vld [vmem:[%s10335_s13 + $0x20] sm:$0xf]  ;;  %v8725_v56 = vld [vmem:[%s10335_s13 + $0x58] sm:$0xf0]  ;;  %v9215_v17 = vld [vmem:[%s10335_s13 + $0x14] sm:$0xf0] }
 0x320   : > { %6571 = vmatpush.bf16.msrb.mxu1 %v8422_v33  ;;  %v9225_v33 = vld [vmem:[%s10335_s13 + $0x64] sm:$0xf0]  ;;  %v9212_v46 = vld [vmem:[%s10335_s13 + $0x4] sm:$0xf]  ;;  %v8685_v47 = vld [vmem:[%s10335_s13 + $0x8] sm:$0xf0] }
 0x321   : > { %6584 = vmatpush.bf16.msrb.mxu2 %v8486_v34  ;;  %v9208_v34 = vld [vmem:[%s10337_s14 + $0xc24] sm:$0xf] }
 0x322   : > { %6597 = vmatpush.bf16.msrb.mxu3 %v8550_v39  ;;  %v8732_v39 = vor.u32 %v9225_v33, %v8731_v51  ;;  %v8709_v51 = vld [vmem:[%s10335_s13 + $0x38] sm:$0xf0] }
 0x323   : > { %6607 = vmatpush.bf16.msra.mxu0 %v8638_v40  ;;  %v6357_v37 = vpop.f32.mrf.mxu0  ;;  %v8670_v40 = vor.u32 %v9208_v34, %v8667_v36  ;;  %v8712_v36 = vor.u32 %v9218_v32, %v8709_v51  ;;  %v9234_v32 = vld [vmem:[%s10335_s13 + $0xb4] sm:$0xf] }
 0x324   : > { %6572 = vmatpush.bf16.msrb.mxu1 %v8414_v60  ;;  %v8715_v60 = vld [vmem:[%s10335_s13 + $0x40] sm:$0xf] }
 0x325   : > { %6585 = vmatpush.bf16.msrb.mxu2 %v8478_v43  ;;  %v9226_v43 = vld [vmem:[%s10335_s13 + $0x74] sm:$0xf] }
 0x326   : > { %6598 = vmatpush.bf16.msrb.mxu3 %v8542_v27  ;;  %v8651_v27 = vld [vmem:[%s10337_s14 + $0xc08] sm:$0xf0]  ;;  %v8744_v21 = vor.u32 %v9226_v43, %v8741_v52 }
 0x327   : > { %6608 = vmatpush.bf16.msra.mxu0 %v8630_v54  ;;  %v8654_v1 = vor.u32 %v9204_v26, %v8651_v27 }
 0x328   : > { %6573 = vmatpush.bf16.msrb.mxu1 %v8406_v55  ;;  %v8733_v55 = vld [vmem:[%s10335_s13 + $0x68] sm:$0xf0] }
 0x329   : > { %6586 = vmatpush.bf16.msrb.mxu2 %v8470_v25  ;;  %v8708_v25 = vor.u32 %v9219_v18, %v8707_v61  ;;  %v8736_v3 = vor.u32 %v9224_v2, %v8733_v55  ;;  %v9242_v18 = vld [vmem:[%s10335_s13 + $0xf4] sm:$0xf] }
 0x32a   : > { %6599 = vmatpush.bf16.msrb.mxu3 %v8534_v57  ;;  %v9217_v57 = vld [vmem:[%s10335_s13 + $0x24] sm:$0xf0] }
 0x32b   : > { %6609 = vmatpush.bf16.msra.mxu0 %v8622_v5  ;;  %v9222_v5 = vld [vmem:[%s10335_s13 + $0x54] sm:$0xf]  ;;  %v8700_v8 = vor.u32 %v9217_v57, %v8699_v24  ;;  %v8797_v57 = vld [vmem:[%s10335_s13 + $0xe8] sm:$0xf0] }
 0x32c   : > { %6574 = vmatpush.bf16.msrb.mxu1 %v8398_v35  ;;  %v6368_v54 = vpop.f32.mrf.mxu1  ;;  %v8728_v9 = vor.u32 %v9222_v5, %v8725_v56 }
 0x32d   : > { %6587 = vmatpush.bf16.msrb.mxu2 %v8462_v19  ;;  %v6369_v63 = vadd.f32 %v6368_v54, %v11231_v22  ;;  %v8692_v19 = vor.u32 %v9215_v17, %v8691_v10  ;;  %v9238_v10 = vld [vmem:[%s10335_s13 + $0xd4] sm:$0xf]  ;;  %v8789_v17 = vld [vmem:[%s10335_s13 + $0xd8] sm:$0xf0] }
 0x32e   : > { %6600 = vmatpush.bf16.msrb.mxu3 %v8526_v29  ;;  %v8720_v29 = vor.u32 %v9220_v11, %v8717_v12  ;;  %v8792_v11 = vor.u32 %v9238_v10, %v8789_v17  ;;  %v8779_v12 = vld [vmem:[%s10335_s13 + $0xc0] sm:$0xf] }
 0x32f   : > { %6610 = vmatpush.bf16.msra.mxu0 %v8614_v28  ;;  %6575 = vmatmul.bf16.vlgmr.msrb.gmra.mxu1 %v10770_v13  ;;  %v8587_v13 = vld [vmem:[%s10337_s14 + $0xb88] sm:$0xf0]  ;;  %v8683_v28 = vld [vmem:[%s10335_s13] sm:$0xf] }
 0x330   : > { %6623 = vmatpush.bf16.msra.mxu1 %v8678_v30  ;;  %6588 = vmatmul.bf16.vlgmr.msrb.gmra.mxu2 %v10774_v15  ;;  %v9221_v15 = vld [vmem:[%s10335_s13 + $0x44] sm:$0xf0]  ;;  %v6304_v30 = vadd.f32 %v11166_v20, %v11147_v53  ;;  %v8684_v34 = vor.u32 %v9213_v0, %v8683_v28  ;;  %v9214_v20 = vld [vmem:[%s10335_s13 + $0x14] sm:$0xf]  ;;  %v8781_v28 = vld [vmem:[%s10335_s13 + $0xc8] sm:$0xf0] }
 0x331   : > { %6829 = vmatpush.bf16.msra.mxu2 %v8740_v31  ;;  %6601 = vmatmul.bf16.vlgmr.msrb.gmra.mxu3 %v10772_v14  ;;  %v8590_v14 = vor.u32 %v9188_v50, %v8587_v13  ;;  %v8716_v58 = vor.u32 %v9221_v15, %v8715_v60  ;;  %v8696_v45 = vor.u32 %v9214_v20, %v8693_v44  ;;  %v9235_v0 = vld [vmem:[%s10335_s13 + $0xb4] sm:$0xf0]  ;;  %v8765_v20 = vld [vmem:[%s10335_s13 + $0xa8] sm:$0xf0] }
 0x332   : > { %v6632_v37 = vmax.f32 %v6304_v30, 0.0  ;;  %v8771_v30 = vld [vmem:[%s10335_s13 + $0xb0] sm:$0xf] }
 0x333   : > { %6611 = vmatpush.bf16.msra.mxu0 %v8606_v38  ;;  %v6381_v23 = vpop.f32.mrf.mxu2  ;;  %v9216_v38 = vld [vmem:[%s10335_s13 + $0x24] sm:$0xf]  ;;  %v8772_v51 = vor.u32 %v9235_v0, %v8771_v30  ;;  %v6634_v30 = vld [vmem:[#allocation2] sm:$0xf] }
 0x334   : > { %6624 = vmatpush.bf16.msra.mxu1 %v8670_v40  ;;  %v6382_v4 = vadd.f32 %v6381_v23, %v6369_v63  ;;  %v6394_v22 = vpop.f32.mrf.mxu3  ;;  %v6370_v7 = vpop.f32.mrf.mxu1  ;;  %v6635_v53 = vpack.c.bf16 %v6632_v37, %v6632_v37  ;;  %v8803_v63 = vld [vmem:[%s10335_s13 + $0xf0] sm:$0xf]  ;;  %v9241_v23 = vld [vmem:[%s10335_s13 + $0xe4] sm:$0xf0] }
 0x335   : > { %6830 = vmatpush.bf16.msra.mxu2 %v8732_v39  ;;  %v8701_v39 = vld [vmem:[%s10335_s13 + $0x28] sm:$0xf0] }
 0x336   : > { %v6395_v6 = vadd.f32 %v6394_v22, %v6382_v4  ;;  %v8704_v42 = vor.u32 %v9216_v38, %v8701_v39  ;;  %v9240_v4 = vld [vmem:[%s10335_s13 + $0xe4] sm:$0xf]  ;;  %v8763_v38 = vld [vmem:[%s10335_s13 + $0xa0] sm:$0xf]  ;;  %v9233_v39 = vld [vmem:[%s10335_s13 + $0xa4] sm:$0xf0] }
 0x337   : > { %6612 = vmatpush.bf16.msra.mxu0 %v8598_v48  ;;  %v8688_v48 = vor.u32 %v9212_v46, %v8685_v47  ;;  %v9231_v46 = vld [vmem:[%s10335_s13 + $0x94] sm:$0xf0]  ;;  %v9230_v47 = vld [vmem:[%s10335_s13 + $0x94] sm:$0xf] }
 0x338   : > { %6625 = vmatpush.bf16.msra.mxu1 %v8662_v59 }
 0x339   : > { %6831 = vmatpush.bf16.msra.mxu2 %v8724_v49 }
 0x33b   : > { %6613 = vmatpush.bf16.msra.mxu0 %v8590_v14  ;;  %v6407_v35 = vpop.f32.mrf.mxu0  ;;  %v6383_v31 = vpop.f32.mrf.mxu2 }
 0x33c   : > { %6626 = vmatpush.bf16.msra.mxu1 %v8654_v1  ;;  %v6396_v33 = vpop.f32.mrf.mxu3  ;;  %v9243_v1 = vld [vmem:[%s10335_s13 + $0xf4] sm:$0xf0] }
 0x33d   : > { %6832 = vmatpush.bf16.msra.mxu2 %v8716_v58  ;;  %v8804_v55 = vor.u32 %v9243_v1, %v8803_v63  ;;  %v8773_v33 = vld [vmem:[%s10335_s13 + $0xb8] sm:$0xf0] }
 0x33e   : > { %6614 = vmatmul.bf16.vlgmr.msra.gmra.mxu0 %v10776_v16  ;;  %v6408_v16 = vadd.f32 %v6407_v35, %v6395_v6  ;;  %v8800_v6 = vor.u32 %v9240_v4, %v8797_v57  ;;  %v9237_v35 = vld [vmem:[%s10335_s13 + $0xc4] sm:$0xf0] }
 0x33f   : > { %6855 = vmatpush.bf16.msrb.mxu0 %v8744_v21  ;;  %8680 = vmatmul.msk.bf16.vlgmr.msra.gmra.mxu1 %vm5979_vm0, %v9309_v41 }
 0x340   : > { %6842 = vmatpush.bf16.msra.mxu3 %v8804_v55 }
 0x341   : > { %6833 = vmatpush.bf16.msra.mxu2 %v8708_v25  ;;  %v8805_v25 = vld [vmem:[%s10335_s13 + $0xf8] sm:$0xf0] }
 0x342   : > { %v8808_v24 = vor.u32 %v9242_v18, %v8805_v25 }
 0x343   : > { %6856 = vmatpush.bf16.msrb.mxu0 %v8736_v3  ;;  %v6409_v40 = vpop.f32.mrf.mxu0  ;;  %v8795_v3 = vld [vmem:[%s10335_s13 + $0xe0] sm:$0xf] }
 0x344   : > { %v8796_v56 = vor.u32 %v9241_v23, %v8795_v3  ;;  %6868 = vmatpush.bf16.msrb.mxu1 %v8808_v24  ;;  %v9232_v40 = vld [vmem:[%s10335_s13 + $0xa4] sm:$0xf] }
 0x345   : > { %6834 = vmatpush.bf16.msra.mxu2 %v8700_v8  ;;  %v8787_v8 = vld [vmem:[%s10335_s13 + $0xd0] sm:$0xf]  ;;  %v8768_v44 = vor.u32 %v9232_v40, %v8765_v20 }
 0x346   : > { %6843 = vmatpush.bf16.msra.mxu3 %v8796_v56 }
 0x347   : > { %6857 = vmatpush.bf16.msrb.mxu0 %v8728_v9  ;;  %v9239_v9 = vld [vmem:[%s10335_s13 + $0xd4] sm:$0xf0] }
 0x348   : > { %6869 = vmatpush.bf16.msrb.mxu1 %v8800_v6  ;;  %v8788_v41 = vor.u32 %v9239_v9, %v8787_v8 }
 0x349   : > { %6835 = vmatpush.bf16.msra.mxu2 %v8692_v19 }
 0x34a   : > { %6844 = vmatpush.bf16.msra.mxu3 %v8788_v41 }
 0x34b   : > { %6858 = vmatpush.bf16.msrb.mxu0 %v8720_v29  ;;  %v8780_v29 = vor.u32 %v9237_v35, %v8779_v12 }
 0x34c   : > { %v6420_v62 = vpop.f32.mrf.mxu1  ;;  %6870 = vmatpush.bf16.msrb.mxu1 %v8792_v11 }
 0x34d   : > { %6836 = vmatpush.bf16.msra.mxu2 %v8684_v34  ;;  %v6421_v49 = vadd.f32 %v6420_v62, %v6408_v16  ;;  %v9236_v16 = vld [vmem:[%s10335_s13 + $0xc4] sm:$0xf]  ;;  %v8776_v34 = vor.u32 %v9234_v32, %v8773_v33 }
 0x34e   : > { %v8784_v31 = vor.u32 %v9236_v16, %v8781_v28  ;;  %6845 = vmatpush.bf16.msra.mxu3 %v8780_v29 }
 0x34f   : > { %6859 = vmatpush.bf16.msrb.mxu0 %v8712_v36 }
 0x350   : > { %6837 = vmatmul.bf16.vlgmr.msra.gmra.mxu2 %v6635_v53  ;;  %6871 = vmatpush.bf16.msrb.mxu1 %v8784_v31 }
 0x352   : > { %6846 = vmatpush.bf16.msra.mxu3 %v8772_v51 }
 0x353   : > { %6860 = vmatpush.bf16.msrb.mxu0 %v8704_v42  ;;  %v6433_v59 = vpop.f32.mrf.mxu2 }
 0x354   : > { %v6446_v50 = vpop.f32.mrf.mxu3  ;;  %v6434_v13 = vadd.f32 %v6433_v59, %v6421_v49  ;;  %v6422_v60 = vpop.f32.mrf.mxu1  ;;  %6872 = vmatpush.bf16.msrb.mxu1 %v8776_v34  ;;  %v8757_v49 = vld [vmem:[%s10335_s13 + $0x98] sm:$0xf0] }
 0x355   : > { %v8760_v59 = vor.u32 %v9230_v47, %v8757_v49 }
 0x356   : > { %v6447_v15 = vadd.f32 %v6446_v50, %v6434_v13 }
 0x357   : > { %6861 = vmatpush.bf16.msrb.mxu0 %v8696_v45  ;;  %v8755_v45 = vld [vmem:[%s10335_s13 + $0x90] sm:$0xf] }
 0x358   : > { %6873 = vmatpush.bf16.msrb.mxu1 %v8768_v44 }
 0x35b   : > { %6862 = vmatpush.bf16.msrb.mxu0 %v8688_v48  ;;  %v6459_v43 = vpop.f32.mrf.mxu0  ;;  %v6435_v26 = vpop.f32.mrf.mxu2  ;;  %v8756_v48 = vor.u32 %v9231_v46, %v8755_v45 }
 0x35c   : > { %v11292_v52 = vadd.f32 %v6459_v43, %v6447_v15  ;;  %v6448_v27 = vpop.f32.mrf.mxu3  ;;  %6874 = vmatpush.bf16.msrb.mxu1 %v8760_v59  ;;  %v8747_v15 = vld [vmem:[%s10335_s13 + $0x80] sm:$0xf]  ;;  %v9229_v43 = vld [vmem:[%s10335_s13 + $0x84] sm:$0xf0]  ;;  %v9228_v26 = vld [vmem:[%s10335_s13 + $0x84] sm:$0xf] }
 0x35d   : > { %v8748_v27 = vor.u32 %v9229_v43, %v8747_v15 }
 0x35e   : > { %6863 = vmatmul.bf16.vlgmr.msrb.gmra.mxu0 %v6635_v53  ;;  %v8764_v53 = vor.u32 %v9233_v39, %v8763_v38 }
 0x360   : > { %6847 = vmatpush.bf16.msra.mxu3 %v8764_v53 }
 0x363   : > { %v6461_v14 = vpop.f32.mrf.mxu0 }
 0x364   : > { %6848 = vmatpush.bf16.msra.mxu3 %v8756_v48  ;;  %v8749_v14 = vld [vmem:[%s10335_s13 + $0x88] sm:$0xf0] }
 0x365   : > { %v8752_v63 = vor.u32 %v9228_v26, %v8749_v14 }
 0x367   : > { %6875 = vmatpush.bf16.msrb.mxu1 %v8752_v63 }
 0x368   : > { %6849 = vmatpush.bf16.msra.mxu3 %v8748_v27 }
 0x36c   : > { %v11294_v54 = vpop.f32.mrf.mxu1 }
 0x36d   : > { %v6473_v60 = vadd.f32 %v11294_v54, %v11292_v52 }
 0x373   : > { %v11296_v58 = vpop.f32.mrf.mxu2 }
 0x374   : > { %v11298_v21 = vpop.f32.mrf.mxu3  ;;  %v6474_v61 = vpop.f32.mrf.mxu1 }
 0x375   : > { %v6486_v61 = vadd.f32 %v11296_v58, %v6473_v60 }
 0x377   : > { %v6499_v18 = vadd.f32 %v11298_v21, %v6486_v61 }
 0x37b   : > { %v11303_v2 = vpop.f32.mrf.mxu0  ;;  %v6487_v22 = vpop.f32.mrf.mxu2 }
 0x37c   : > { %v6500_v5 = vpop.f32.mrf.mxu3  ;;  %v6512_v55 = vadd.f32 %v11303_v2, %v6499_v18 }
 0x383   : > { %v6513_v7 = vpop.f32.mrf.mxu0 }
 0x38c   : > { %v6524_v19 = vpop.f32.mrf.mxu1 }
 0x38d   : > { %v6525_v25 = vadd.f32 %v6524_v19, %v6512_v55 }
 0x393   : > { %v6537_v36 = vpop.f32.mrf.mxu2 }
 0x394   : > { %v6550_v37 = vpop.f32.mrf.mxu3  ;;  %v6526_v42 = vpop.f32.mrf.mxu1  ;;  %v6538_v3 = vadd.f32 %v6537_v36, %v6525_v25 }
 0x396   : > { %v6551_v52 = vadd.f32 %v6550_v37, %v6538_v3 }
 0x39b   : > { %v6563_v62 = vpop.f32.mrf.mxu0  ;;  %v6539_v50 = vpop.f32.mrf.mxu2 }
 0x39c   : > { %v6552_v13 = vpop.f32.mrf.mxu3  ;;  %v6564_v54 = vadd.f32 %v6563_v62, %v6551_v52 }
 0x3a3   : > { %v6565_v1 = vpop.f32.mrf.mxu0 }
 0x3ac   : > { %v6576_v23 = vpop.f32.mrf.mxu1 }
 0x3ad   : > { %v6577_v24 = vadd.f32 %v6576_v23, %v6564_v54 }
 0x3b3   : > { %v6589_v4 = vpop.f32.mrf.mxu2 }
 0x3b4   : > { %v6602_v57 = vpop.f32.mrf.mxu3  ;;  %v6590_v22 = vadd.f32 %v6589_v4, %v6577_v24  ;;  %v6578_v5 = vpop.f32.mrf.mxu1 }
 0x3b6   : > { %v6603_v56 = vadd.f32 %v6602_v57, %v6590_v22 }
 0x3bb   : > { %v6615_v58 = vpop.f32.mrf.mxu0  ;;  %v6591_v7 = vpop.f32.mrf.mxu2 }
 0x3bc   : > { %v6616_v6 = vadd.f32 %v6615_v58, %v6603_v56  ;;  %v6604_v8 = vpop.f32.mrf.mxu3  ;;  %v6628_v9 = vpop.f32.mrf.mxu1 }
 0x3be   : > { %v6629_v10 = vadd.f32 %v6628_v9, %v6616_v6 }
 0x3c0   : > { %v6633_v21 = vmax.f32 %v6629_v10, 0.0 }
 0x3c2   : > { %v6636_v41 = vpack.c.bf16 %v6633_v21, %v6633_v21 }
 0x3c3   : > { %v6617_v2 = vpop.f32.mrf.mxu0 }
 0x3c4   : > { %6850 = vmatmul.bf16.vlgmr.msra.gmra.mxu3 %v6636_v41  ;;  %6876 = vmatmul.bf16.vlgmr.msrb.gmra.mxu1 %v6636_v41  ;;  %v6630_v17 = vpop.f32.mrf.mxu1 }
 0x3d3   : > { %v6838_v11 = vpop.f32.mrf.mxu2 }
 0x3db   : > { %v6864_v12 = vpop.f32.mrf.mxu0  ;;  %v6840_v35 = vpop.f32.mrf.mxu2 }
 0x3e3   : > { %v6866_v16 = vpop.f32.mrf.mxu0 }
 0x441   : > { %v6877_v19 = vpop.f32.mrf.mxu1 }
 0x442   : > { %v6878_v29 = vadd.f32 %v6877_v19, %v6864_v12 }
 0x444   : > { %v6883_v31 = vrot.slane %v6878_v29, 6 }
 0x447   : > { %v6851_v28 = vpop.f32.mrf.mxu3 }
 0x448   : > { %v6852_v0 = vadd.f32 %v6851_v28, %v6838_v11 }
 0x449   : > { %v6879_v32 = vpop.f32.mrf.mxu1 }
 0x44a   : > { %v6885_v51 = vsel %vm6884_vm1, %v6852_v0, %v6883_v31 }
 0x44b   : > { %v6887_v33 = vadd.f32 %v6885_v51, %v6634_v30  ;;  %6892 = sbr.rel (%p8809_p12) target bundleno = 1380 (0x564), region = 100 }
 0x44d   : > { %6888 = vst [vmem:[#allocation2] sm:$0xf] %v6887_v33 }
 0x44f   : > { %v6853_v34 = vpop.f32.mrf.mxu3 }
 0x450   : > { %v6894_v36 = vld [vmem:[%s11398_s4] sm:$0x3]  ;;  %v6902_v53 = vlaneseq  ;;  %vm6922_vm3 = vcmask 41984  }
 0x451   : > { %v6896_v37 = vperm.slane %v6894_v36, 0  ;;  %v6897_v38 = vperm.slane %v6894_v36, 1 }
 0x452   : > { %v6903_v44 = vand.u32 127, %v6902_v53 }
 0x453   : > { %v6898_v40 = vrot.slane %v6897_v38, 6 }
 0x454   : > { %v6893_v39 = vld [vmem:[#allocation2] sm:$0xf]  ;;  %vm6904_vm2 = vcmp.lt.s32.totalorder %v6903_v44, 6 }
 0x455   : > { %v6899_v42 = vsel %vm6884_vm1, %v6896_v37, %v6898_v40 }
 0x456   : > { %v6901_v20 = vadd.f32 %v6899_v42, %v6893_v39 }
 0x458   : > { %6906 = vst [vmem:[#allocation1] ss:$4 sm:$0xff] %v6901_v20  ;;  %v6928_v43 = vrot.slane %v6901_v20, 2 }
 0x459   : > { %6923 = vst.msk [vmem:[#allocation4] sm:$0x3] %vm6922_vm3, %v6901_v20 }
 0x45f   : > { %v6907_v45 = vld.sshfl [vmem:[#allocation1 + $0x8] sm:$0xff pattern:$0x73625140] }
 0x460   : > { %v6909_v46 = vsel %vm6904_vm2, %v6907_v45, -inf  ;;  %6924 = vst [vmem:[#allocation1] ss:$4 sm:$0xff] %v6901_v20 }
 0x461   : > { %v6910_v47 = vsel %vm6884_vm1, %v6909_v46, -inf }
 0x462   : > { %6911 = vmax.xlane.f32.xlu0 %v6910_v47 }
 0x467   : > { %v6925_v62 = vld.sshfl [vmem:[#allocation1 + $0x8] sm:$0xff pattern:$0x73625140] }
 0x468   : > { %6927 = vst.msk [vmem:[#allocation8] sm:$0x3] %vm6922_vm3, %v6925_v62 }
 0x4d5   : > { %v6912_v48 = vpop.xlane.xlu0 %6911 }
 0x4d6   : > { %v6913_v49 = vsub.f32 %v6909_v46, %v6912_v48 }
 0x4d8   : > { %v6914_v59 = vmul.f32 1.442695, %v6913_v49 }
 0x4da   : > { %9310 = vpow2.f32 %v6914_v59 }
 0x4e0   : > { %v9311_v50 = vpop.eup %9310 }
 0x4e1   : > { %v6916_v13 = vsel %vm6884_vm1, %v9311_v50, 0.0 }
 0x4e2   : > { %6917 = vadd.xlane.f32.xlu0 %v6916_v13 }
 0x555   : > { %v6918_v60 = vpop.xlane.xlu0 %6917 }
 0x556   : > { %9312 = vlog2.f32 %v6918_v60 }
 0x55c   : > { %v9313_v15 = vpop.eup %9312 }
 0x55d   : > { %v6920_v26 = vmul.f32 0.6931472, %v9313_v15 }
 0x55f   : > { %v6921_v27 = vadd.f32 %v6920_v26, %v6912_v48 }
 0x561   : > { %v6930_v14 = vsub.f32 %v6928_v43, %v6921_v27 }
 0x563   : > { %6931 = vst.msk [vmem:[#allocation6] sm:$0x3] %vm6922_vm3, %v6930_v14 }
 0x564 PF: > { %p11352_p13 = scmp.eq.s32.totalorder %s7099_s29, 3  ;;  %s9447_s8 = smov [#allocation6]  }
 0x565   : > { %s6954_s9 = sshll.u32 %s9447_s8, 4  ;;  %s6956_s13 = sshll.u32 %s11400_s6, 4  ;;  %s6955_s9 = int_to_ptr.vmem [resolvable:$true] %s6954_s9  ;;  %s6957_s13 = int_to_ptr.hbm [resolvable:$true] %s6956_s13 }
 0x566   : > { %9249 = dma.vmem_to_hbm [thread:$0]  (%p11352_p13), %s6955_s9, 32, %s6957_s13, [#allocation7]  }
 0x567   : > { %s9448_s14 = smov [#allocation4]   ;;  %s6942_s16 = sshll.u32 %s11399_s5, 4  ;;  %s6943_s16 = int_to_ptr.hbm [resolvable:$true] %s6942_s16 }
 0x568   : > { %s6940_s24 = sshll.u32 %s9448_s14, 4  ;;  %s6970_s19 = sshll.u32 %s11401_s7, 4  ;;  %s6941_s24 = int_to_ptr.vmem [resolvable:$true] %s6940_s24  ;;  %s6971_s19 = int_to_ptr.hbm [resolvable:$true] %s6970_s19 }
 0x569   : > { %9247 = dma.vmem_to_hbm [thread:$0]  (%p11352_p13), %s6941_s24, 32, %s6943_s16, [#allocation5]  }
 0x56a   : > { %s9449_s20 = smov [#allocation8]  }
 0x56b   : > { %s6968_s21 = sshll.u32 %s9449_s20, 4  ;;  %s6969_s21 = int_to_ptr.vmem [resolvable:$true] %s6968_s21 }
 0x56c   : > { %9251 = dma.vmem_to_hbm [thread:$0]  (%p11352_p13), %s6969_s21, 32, %s6971_s19, [#allocation7]  }
 0x56d   : > { %9419 = dma.done.wait (%p11352_p13), [#allocation5], 32  }
 0x56e   : > { %9421 = vsyncadd (%p11352_p13), [#allocation5], 4294967264 }
 0x56f   : > { %9423 = dma.done.wait (%p11352_p13), [#allocation7], 64  }
 0x570   : > { %9425 = vsyncadd (%p11352_p13), [#allocation7], 4294967232 }
 0x571 PF: > { %s20_s28 = sadd.s32 1, %s9444_s28   ;;  %s11403_s24 = smov %s9432_s25 }
 0x572   : > { %p17_p0 = scmp.ge.s32.totalorder %s20_s28, 6   ;;  %s11404_s25 = smov %s9526_s10 }
 0x573   : > { %s11405_s26 = smov %s9440_s27  ;;  %s11406_s27 = smov %s11408_s30 }
 0x574   :  { %19 = sbr.rel (!%p17_p0) target bundleno = 4 (0x4), region = 166 }
 0x579   :  { %6994 = vsyncpa [#allocation5], 1 }
 0x57a   :  { %6996 = vsyncpa [#allocation5 + $0x1], 1 }
 0x57b   :  { %6997 = vsyncpa [#allocation7], 1 }

</bundles_post_ra>
